<compile_context>
chip_gen: v6e
topology: v6e:2x2x1
jax: 0.10.0
libtpu: 0.0.40
codegen_flags: <defaults>
</compile_context>

<pallas_src>
import functools
import math

import jax
import jax.numpy as jnp
from jax.experimental import pallas as pl
from jax.experimental.pallas import tpu as pltpu

ACT_DTYPE = jnp.bfloat16   # activations / MXU inputs
TM_MAX = 512               # row tile for the flat (1x1-conv) matmul kernels
_BN_EPS = 1e-5
_VMEM_LIMIT = 48 * 1024 * 1024   # above 16/32 MiB default scope, below v7x 64 MiB


def _round_up(x, m):
    return ((x + m - 1) // m) * m


def _pad_rows(x2d, mp):
    m = x2d.shape[0]
    return x2d if mp == m else jnp.pad(x2d, ((0, mp - m), (0, 0)))


def _build_tap_plan(ksize, stride):
    """Group the k*k taps by (phase, width-offset) so each width-shifted view
    (a sublane-relayout copy) is materialized once and reused across row taps."""
    plan = {}
    t = 0
    for ki in range(ksize):
        for kj in range(ksize):
            p = (ki % stride) * stride + (kj % stride)
            plan.setdefault((p, kj // stride), []).append((ki // stride, t))
            t += 1
    return tuple((key, tuple(v)) for key, v in sorted(plan.items()))


def _phase_split(xpad, stride, ho_need, wo_need):
    """stride==1: no phase split (pure view).  stride>1: stride^2 phases."""
    if stride == 1:
        return xpad[None, :, :ho_need, :wo_need, :]
    phases = [xpad[:, a::stride, b::stride, :][:, :ho_need, :wo_need, :]
              for a in range(stride) for b in range(stride)]
    return jnp.stack(phases, axis=0)


def _pick_groups_per_block(groups, cin_g, cout_g, cin, cout):
    """How many groups to pack block-diagonally into one lane block.  The
    resulting channel-block widths must be a multiple of 128 lanes or equal
    to the full channel dim (BlockSpec (8,128) constraint)."""
    if groups == 1 or (cin <= 128 and cout <= 128):
        return groups                                   # full block-diagonal
    gpb = max(1, min(128 // max(cin_g, 1), 128 // max(cout_g, 1)))
    while gpb > 1 and (groups % gpb or (gpb * cin_g) % 128 or (gpb * cout_g) % 128):
        gpb -= 1
    ok_in = (gpb * cin_g) % 128 == 0 or gpb * cin_g == cin
    ok_out = (gpb * cout_g) % 128 == 0 or gpb * cout_g == cout
    if groups % gpb or not (ok_in and ok_out):
        return groups                                   # safe fallback
    return gpb


# ----------------------------------------------------------------------------
# Pallas kernels
# ----------------------------------------------------------------------------
def _direct_conv_kernel(ph_ref, w_ref, s_ref, b_ref, o_ref, acc_ref, *,
                        tap_plan, out_h, out_w, relu):
    """Direct kxk conv for one (batch, channel-block) tile + folded BN (+ReLU).

    ph_ref : (P, 1, h_need, w_need, BCI)  phase-split padded input (P=stride^2)
    w_ref  : (T, 1, BCI, BCO)             block-diagonally packed weights (bf16)
    s_ref, b_ref : (1, BCO)               folded BN scale / bias (f32)
    o_ref  : (1, out_h*out_w, BCO)
    acc_ref: (out_h*out_w, BCO) f32 VMEM scratch accumulator
    """
    acc_ref[...] = jnp.zeros_like(acc_ref)
    for (p, ws), row_taps in tap_plan:
        # One width-shifted (sublane-relayout) view per (phase, ws), reused
        # across the row-offset taps (row slices are layout-free).
        view = ph_ref[p, 0, :, ws:ws + out_w, :]          # (h_need, out_w, BCI)
        for (hs, t) in row_taps:
            win = view[hs:hs + out_h].reshape(out_h * out_w, -1)
            acc_ref[...] += jnp.dot(win, w_ref[t, 0],
                                    preferred_element_type=jnp.float32)
    acc = acc_ref[...] * s_ref[...] + b_ref[...]
    if relu:
        acc = jnp.maximum(acc, 0.0)
    o_ref[0] = acc.astype(o_ref.dtype)


def _mm_bn_kernel(x_ref, w_ref, s_ref, b_ref, o_ref, *, relu):
    acc = jnp.dot(x_ref[...].astype(ACT_DTYPE), w_ref[...],
                  preferred_element_type=jnp.float32)
    acc = acc * s_ref[...] + b_ref[...]
    if relu:
        acc = jnp.maximum(acc, 0.0)
    o_ref[...] = acc.astype(o_ref.dtype)


def _mm2_bn_kernel(x_ref, w_ref, s_ref, b_ref, r_ref, wr_ref, sr_ref, br_ref, o_ref):
    # conv3(1x1)+BN  fused with  shortcut(1x1)+BN, residual add, ReLU.
    acc = jnp.dot(x_ref[...].astype(ACT_DTYPE), w_ref[...],
                  preferred_element_type=jnp.float32)
    acc = acc * s_ref[...] + b_ref[...]
    sc = jnp.dot(r_ref[...].astype(ACT_DTYPE), wr_ref[...],
                 preferred_element_type=jnp.float32)
    acc = acc + sc * sr_ref[...] + br_ref[...]
    acc = jnp.maximum(acc, 0.0)
    o_ref[...] = acc.astype(o_ref.dtype)


def _maxpool_kernel(ph_ref, o_ref, *, tap_plan, out_h, out_w):
    m = None
    for (p, ws), row_taps in tap_plan:
        view = ph_ref[p, 0, :, ws:ws + out_w, :]
        for (hs, _t) in row_taps:
            win = view[hs:hs + out_h]
            m = win if m is None else jnp.maximum(m, win)
    o_ref[0] = m


def _pool_fc_kernel(x_ref, w_ref, b_ref, o_ref):
    pooled = jnp.mean(x_ref[...].astype(jnp.float32), axis=1)   # (N, C)
    o_ref[...] = jnp.dot(pooled.astype(ACT_DTYPE), w_ref[...],
                         preferred_element_type=jnp.float32) + b_ref[...]


# ----------------------------------------------------------------------------
# Pallas wrappers
# ----------------------------------------------------------------------------
def grouped_conv_bn(x, w, scale, bias, *, ksize, stride, pad, relu, groups=1):
    """NHWC kxk conv (stride, zero pad, optional groups) + folded BN (+ReLU).

    Grouped conv runs as one dense MXU matmul per tap against a block-diagonal
    weight, grid over (batch, channel_block), single f32 scratch accumulator.
    """
    N, H, W, Cin = x.shape
    Cout = scale.shape[0]
    Ho = (H + 2 * pad - ksize) // stride + 1
    Wo = (W + 2 * pad - ksize) // stride + 1
    Wo_p = _round_up(Wo, 16)        # sublane-align the (Ho,Wo,C)->(Ho*Wo,C) reshape
    max_off = (ksize - 1) // stride
    ho_need = max_off + Ho
    wo_need = max_off + Wo_p
    Hp = stride * ho_need
    Wp = stride * wo_need
    xp = jnp.pad(x.astype(ACT_DTYPE),
                 ((0, 0), (pad, Hp - H - pad), (pad, Wp - W - pad), (0, 0)))
    ph = _phase_split(xp, stride, ho_need, wo_need)   # (P,N,ho_need,wo_need,Cin)
    P = stride * stride

    T = ksize * ksize
    tap_plan = _build_tap_plan(ksize, stride)

    cin_g, cout_g = Cin // groups, Cout // groups
    gpb = _pick_groups_per_block(groups, cin_g, cout_g, Cin, Cout)
    nblk = groups // gpb
    BCI, BCO = gpb * cin_g, gpb * cout_g

    # Block-diagonal, lane-dense weight packing: (T, nblk, BCI, BCO).
    if groups == 1:
        wbd = w.reshape(T, 1, Cin, Cout).astype(ACT_DTYPE)
    else:
        w_t = jnp.transpose(w.astype(jnp.float32), (1, 2, 0, 3, 4))   # (kh,kw,G,ci,co)
        w_t = w_t.reshape(T, nblk, gpb, cin_g, cout_g)
        eye = jnp.eye(gpb, dtype=jnp.float32)
        wbd = jnp.einsum('tngio,gh->tngiho', w_t, eye)
        wbd = wbd.reshape(T, nblk, BCI, BCO).astype(ACT_DTYPE)

    rows = Ho * Wo_p
    kern = functools.partial(_direct_conv_kernel, tap_plan=tap_plan,
                             out_h=Ho, out_w=Wo_p, relu=relu)
    out = pl.pallas_call(
        kern,
        out_shape=jax.ShapeDtypeStruct((N, rows, Cout), ACT_DTYPE),
        grid=(N, nblk),
        in_specs=[
            pl.BlockSpec((P, 1, ho_need, wo_need, BCI),
                         lambda n, b: (0, n, 0, 0, b)),
            pl.BlockSpec((T, 1, BCI, BCO), lambda n, b: (0, b, 0, 0)),
            pl.BlockSpec((1, BCO), lambda n, b: (0, b)),
            pl.BlockSpec((1, BCO), lambda n, b: (0, b)),
        ],
        out_specs=pl.BlockSpec((1, rows, BCO), lambda n, b: (n, 0, b)),
        scratch_shapes=[pltpu.VMEM((rows, BCO), jnp.float32)],
        compiler_params=pltpu.CompilerParams(
            dimension_semantics=("parallel", "parallel"),
            vmem_limit_bytes=_VMEM_LIMIT),
    )(ph, wbd,
      scale.reshape(1, Cout).astype(jnp.float32),
      bias.reshape(1, Cout).astype(jnp.float32))

    out = out.reshape(N, Ho, Wo_p, Cout)
    return out[:, :, :Wo, :] if Wo_p != Wo else out


def matmul_bn(x2d, w, scale, bias, *, relu):
    """(M,K) @ (K,N) * scale + bias [-> relu], row-tiled up to TM_MAX."""
    M, K = x2d.shape
    Nout = w.shape[1]
    Mp = _round_up(M, 16)
    tm = min(TM_MAX, Mp)
    out = pl.pallas_call(
        functools.partial(_mm_bn_kernel, relu=relu),
        out_shape=jax.ShapeDtypeStruct((Mp, Nout), ACT_DTYPE),
        grid=(pl.cdiv(Mp, tm),),
        in_specs=[
            pl.BlockSpec((tm, K), lambda i: (i, 0)),
            pl.BlockSpec((K, Nout), lambda i: (0, 0)),
            pl.BlockSpec((1, Nout), lambda i: (0, 0)),
            pl.BlockSpec((1, Nout), lambda i: (0, 0)),
        ],
        out_specs=pl.BlockSpec((tm, Nout), lambda i: (i, 0)),
        compiler_params=pltpu.CompilerParams(
            dimension_semantics=("parallel",),
            vmem_limit_bytes=_VMEM_LIMIT),
    )(_pad_rows(x2d, Mp), w.astype(ACT_DTYPE),
      scale.reshape(1, Nout).astype(jnp.float32),
      bias.reshape(1, Nout).astype(jnp.float32))
    return out[:M] if Mp != M else out


def conv3_shortcut_fused(h2d, w3, s3, b3, xs2d, ws, ss, bs):
    """relu( (h@w3)*s3+b3 + (xs@ws)*ss+bs ) — conv3+BN fused with shortcut+BN."""
    M, K3 = h2d.shape
    Ks = xs2d.shape[1]
    Nout = w3.shape[1]
    Mp = _round_up(M, 16)
    tm = min(TM_MAX, Mp)
    out = pl.pallas_call(
        _mm2_bn_kernel,
        out_shape=jax.ShapeDtypeStruct((Mp, Nout), ACT_DTYPE),
        grid=(pl.cdiv(Mp, tm),),
        in_specs=[
            pl.BlockSpec((tm, K3), lambda i: (i, 0)),
            pl.BlockSpec((K3, Nout), lambda i: (0, 0)),
            pl.BlockSpec((1, Nout), lambda i: (0, 0)),
            pl.BlockSpec((1, Nout), lambda i: (0, 0)),
            pl.BlockSpec((tm, Ks), lambda i: (i, 0)),
            pl.BlockSpec((Ks, Nout), lambda i: (0, 0)),
            pl.BlockSpec((1, Nout), lambda i: (0, 0)),
            pl.BlockSpec((1, Nout), lambda i: (0, 0)),
        ],
        out_specs=pl.BlockSpec((tm, Nout), lambda i: (i, 0)),
        compiler_params=pltpu.CompilerParams(
            dimension_semantics=("parallel",),
            vmem_limit_bytes=_VMEM_LIMIT),
    )(_pad_rows(h2d, Mp), w3.astype(ACT_DTYPE),
      s3.reshape(1, Nout).astype(jnp.float32), b3.reshape(1, Nout).astype(jnp.float32),
      _pad_rows(xs2d, Mp), ws.astype(ACT_DTYPE),
      ss.reshape(1, Nout).astype(jnp.float32), bs.reshape(1, Nout).astype(jnp.float32))
    return out[:M] if Mp != M else out


def stem_conv_bn(x, w, scale, bias):
    """3x3/s1/p1 conv with Cin=3: fold the 9 taps into the contraction (K=27)."""
    N, H, W, Cin = x.shape
    k = 3
    xp = jnp.pad(x.astype(ACT_DTYPE), ((0, 0), (1, 1), (1, 1), (0, 0)))
    cols = jnp.concatenate([xp[:, i:i + H, j:j + W, :]
                            for i in range(k) for j in range(k)], axis=-1)
    Cout = scale.shape[0]
    w27 = w.reshape(k * k * Cin, Cout)
    out = matmul_bn(cols.reshape(N * H * W, k * k * Cin), w27, scale, bias, relu=True)
    return out.reshape(N, H, W, Cout)


def max_pool2d(x, ksize=3, stride=2, pad=1):
    """Phase-split max pool; in-kernel maximum tree (shared width views)."""
    N, H, W, C = x.shape
    Ho = (H + 2 * pad - ksize) // stride + 1
    Wo = (W + 2 * pad - ksize) // stride + 1
    max_off = (ksize - 1) // stride
    ho_need = max_off + Ho
    wo_need = max_off + Wo
    Hp = stride * ho_need
    Wp = stride * wo_need
    xp = jnp.pad(x, ((0, 0), (pad, Hp - H - pad), (pad, Wp - W - pad), (0, 0)),
                 constant_values=-jnp.inf)
    ph = _phase_split(xp, stride, ho_need, wo_need)
    P = stride * stride
    tap_plan = _build_tap_plan(ksize, stride)
    kern = functools.partial(_maxpool_kernel, tap_plan=tap_plan, out_h=Ho, out_w=Wo)
    return pl.pallas_call(
        kern,
        out_shape=jax.ShapeDtypeStruct((N, Ho, Wo, C), x.dtype),
        grid=(N,),
        in_specs=[pl.BlockSpec((P, 1, ho_need, wo_need, C),
                               lambda n: (0, n, 0, 0, 0))],
        out_specs=pl.BlockSpec((1, Ho, Wo, C), lambda n: (n, 0, 0, 0)),
        compiler_params=pltpu.CompilerParams(
            dimension_semantics=("parallel",),
            vmem_limit_bytes=_VMEM_LIMIT),
    )(ph)


def avgpool_fc(x, w, b, num_classes):
    """Global average pool + Linear, output lane-padded to 128 and trimmed."""
    N, H, W, C = x.shape
    ncls_p = _round_up(num_classes, 128)
    wp = jnp.pad(w, ((0, 0), (0, ncls_p - num_classes))).astype(ACT_DTYPE)
    bp = jnp.pad(b, (0, ncls_p - num_classes)).reshape(1, ncls_p).astype(jnp.float32)
    xr = x.reshape(N, H * W, C)
    out = pl.pallas_call(
        _pool_fc_kernel,
        out_shape=jax.ShapeDtypeStruct((N, ncls_p), jnp.float32),
        grid=(1,),
        in_specs=[
            pl.BlockSpec((N, H * W, C), lambda i: (0, 0, 0)),
            pl.BlockSpec((C, ncls_p), lambda i: (0, 0)),
            pl.BlockSpec((1, ncls_p), lambda i: (0, 0)),
        ],
        out_specs=pl.BlockSpec((N, ncls_p), lambda i: (0, 0)),
        compiler_params=pltpu.CompilerParams(vmem_limit_bytes=_VMEM_LIMIT),
    )(xr, wp, bp)
    return out[:, :num_classes]


# ----------------------------------------------------------------------------
# Model (forward semantics of ResNeXt / BN_Conv2d / ResNeXt_Block)
# ----------------------------------------------------------------------------
def resnext_block(x, blk):
    s = blk["stride"]
    N, H, W, Cin = x.shape
    gc = blk["conv1"]["scale"].shape[0]

    # conv1: 1x1 conv + BN + ReLU  (flat matmul kernel)
    h = matmul_bn(x.reshape(N * H * W, Cin), blk["conv1"]["w"],
                  blk["conv1"]["scale"], blk["conv1"]["bias"], relu=True)
    h = h.reshape(N, H, W, gc)

    # conv2: grouped 3x3 (stride s) + BN + ReLU  (block-diagonal direct conv)
    h = grouped_conv_bn(h, blk["conv2"]["w"], blk["conv2"]["scale"],
                        blk["conv2"]["bias"], ksize=3, stride=s, pad=1,
                        relu=True, groups=blk["conv2"]["groups"])
    _, Ho, Wo, _ = h.shape

    # shortcut input positions for the 1x1 stride-s conv
    xs = x if s == 1 else x[:, ::s, ::s, :][:, :Ho, :Wo, :]
    xs2d = xs.reshape(N * Ho * Wo, Cin)

    # conv3(+bias)+BN fused with shortcut conv+BN, residual add, ReLU
    cout = blk["conv3"]["scale"].shape[0]
    y = conv3_shortcut_fused(
        h.reshape(N * Ho * Wo, gc),
        blk["conv3"]["w"], blk["conv3"]["scale"], blk["conv3"]["bias"],
        xs2d, blk["short"]["w"], blk["short"]["scale"], blk["short"]["bias"])
    return y.reshape(N, Ho, Wo, cout)


def resnext_forward(params, x_nchw):
    x = jnp.transpose(x_nchw, (0, 2, 3, 1)).astype(ACT_DTYPE)   # NCHW -> NHWC
    x = stem_conv_bn(x, params["conv1"]["w"], params["conv1"]["scale"],
                     params["conv1"]["bias"])
    x = max_pool2d(x, 3, 2, 1)
    for blk in params["blocks"]:
        x = resnext_block(x, blk)
    return avgpool_fc(x, params["fc_w"], params["fc_b"], params["num_classes"])


# ----------------------------------------------------------------------------
# Deterministic parameter initialization (BN folded, inference mode)
# ----------------------------------------------------------------------------
def _fold_scale(gamma):
    return gamma / jnp.sqrt(jnp.float32(1.0 + _BN_EPS))   # running_var=1, mean=0


def init_bn_conv1x1(key, cin, cout, conv_bias=False):
    ks = jax.random.split(key, 4)
    w = jax.random.normal(ks[0], (cin, cout), jnp.float32) / math.sqrt(cin)
    gamma = 1.0 + 0.1 * jax.random.normal(ks[1], (cout,), jnp.float32)
    beta = 0.1 * jax.random.normal(ks[2], (cout,), jnp.float32)
    scale = _fold_scale(gamma)
    bias = beta
    if conv_bias:
        cb = 0.1 * jax.random.normal(ks[3], (cout,), jnp.float32)
        bias = beta + scale * cb
    return {"w": w.astype(ACT_DTYPE), "scale": scale, "bias": bias}


def init_bn_conv_kxk(key, kh, kw, cin, cout):
    ks = jax.random.split(key, 3)
    w = jax.random.normal(ks[0], (kh, kw, cin, cout), jnp.float32) / math.sqrt(kh * kw * cin)
    gamma = 1.0 + 0.1 * jax.random.normal(ks[1], (cout,), jnp.float32)
    beta = 0.1 * jax.random.normal(ks[2], (cout,), jnp.float32)
    return {"w": w.astype(ACT_DTYPE), "scale": _fold_scale(gamma), "bias": beta}


def init_grouped_bn_conv(key, kh, kw, cin, cout, groups):
    ks = jax.random.split(key, 3)
    cin_g, cout_g = cin // groups, cout // groups
    w = jax.random.normal(ks[0], (groups, kh, kw, cin_g, cout_g), jnp.float32) \
        / math.sqrt(kh * kw * cin_g)
    gamma = 1.0 + 0.1 * jax.random.normal(ks[1], (cout,), jnp.float32)
    beta = 0.1 * jax.random.normal(ks[2], (cout,), jnp.float32)
    return {"w": w.astype(ACT_DTYPE), "scale": _fold_scale(gamma), "bias": beta,
            "groups": groups}


def init_params(key, layers, cardinality, group_depth, num_classes):
    keys = iter(jax.random.split(key, 256))
    params = {"num_classes": num_classes}
    channels = 64
    params["conv1"] = init_bn_conv_kxk(next(keys), 3, 3, 3, channels)

    blocks = []
    d = group_depth
    stage_strides = [1, 2, 2, 2]
    for stage in range(4):
        strides = [stage_strides[stage]] + [1] * (layers[stage] - 1)
        for s in strides:
            gc = cardinality * d
            blk = {
                "stride": s,
                "conv1": init_bn_conv1x1(next(keys), channels, gc),
                "conv2": init_grouped_bn_conv(next(keys), 3, 3, gc, gc, cardinality),
                "conv3": init_bn_conv1x1(next(keys), gc, 2 * gc, conv_bias=True),
                "short": init_bn_conv1x1(next(keys), channels, 2 * gc),
            }
            blocks.append(blk)
            channels = 2 * gc
        d *= 2
    params["blocks"] = blocks

    kfw, kfb = jax.random.split(next(keys))
    params["fc_w"] = 0.05 * jax.random.normal(kfw, (channels, num_classes), jnp.float32)
    params["fc_b"] = 0.01 * jax.random.normal(kfb, (num_classes,), jnp.float32)
    return params


# ----------------------------------------------------------------------------
if __name__ == "__main__":
    key = jax.random.PRNGKey(0)
    kp, kx = jax.random.split(key)

    # Small ResNeXt: layers=[1,1,1,1], cardinality=2, group_depth=4, 10 classes.
    params = init_params(kp, layers=[1, 1, 1, 1], cardinality=2,
                         group_depth=4, num_classes=10)

    # PyTorch-style NCHW input: batch=2, 3 channels, 16x16 spatial.
    x = jax.random.normal(kx, (2, 3, 16, 16), jnp.float32)

    fwd = jax.jit(lambda inp: resnext_forward(params, inp))
    out = jax.block_until_ready(fwd(x))
    assert out.shape == (2, 10), out.shape
    assert bool(jnp.all(jnp.isfinite(out)))
    print("KERNEL_OK")
</pallas_src>

<mosaic_0001>
module attributes {stable_mosaic.version = 11 : i64} {
  func.func @_mm_bn_kernel(%arg0: i32, %arg1: memref<512x27xbf16, #tpu.memory_space<vmem>>, %arg2: memref<27x64xbf16, #tpu.memory_space<vmem>>, %arg3: memref<1x64xf32, #tpu.memory_space<vmem>>, %arg4: memref<1x64xf32, #tpu.memory_space<vmem>>, %arg5: memref<512x64xbf16, #tpu.memory_space<vmem>>) attributes {dimension_semantics = [#tpu.dimension_semantics<parallel>], iteration_bounds = array<i64: 1>, scalar_prefetch = 0 : i64, scratch_operands = 0 : i64, tpu.core_type = #tpu.core_type<tc>, window_params = [{transform_indices = @transform_0, window_bounds = array<i64: 512, 27>}, {pipeline_mode = #tpu.pipeline_mode<synchronous>, transform_indices = @transform_1, window_bounds = array<i64: 27, 64>}, {pipeline_mode = #tpu.pipeline_mode<synchronous>, transform_indices = @transform_2, window_bounds = array<i64: 1, 64>}, {pipeline_mode = #tpu.pipeline_mode<synchronous>, transform_indices = @transform_3, window_bounds = array<i64: 1, 64>}, {transform_indices = @transform_4, window_bounds = array<i64: 512, 64>}]} {
    %c0 = arith.constant 0 : index
    %c0_0 = arith.constant 0 : index
    %0 = vector.load %arg1[%c0, %c0_0] : memref<512x27xbf16, #tpu.memory_space<vmem>>, vector<512x27xbf16>
    %c0_1 = arith.constant 0 : index
    %c0_2 = arith.constant 0 : index
    %1 = vector.load %arg2[%c0_1, %c0_2] : memref<27x64xbf16, #tpu.memory_space<vmem>>, vector<27x64xbf16>
    %cst = arith.constant dense<0.000000e+00> : vector<512x64xf32>
    %2 = tpu.matmul %0, %1, %cst {dimension_numbers = #tpu.dot_dimension_numbers<[1], [0], [0], [1], [0, 0, 1, 1], [], []>} : vector<512x27xbf16>, vector<27x64xbf16>, vector<512x64xf32> -> vector<512x64xf32>
    %c0_3 = arith.constant 0 : index
    %c0_4 = arith.constant 0 : index
    %3 = vector.load %arg3[%c0_3, %c0_4] : memref<1x64xf32, #tpu.memory_space<vmem>>, vector<1x64xf32>
    %4 = vector.broadcast %3 : vector<1x64xf32> to vector<512x64xf32>
    %5 = arith.mulf %2, %4 : vector<512x64xf32>
    %c0_5 = arith.constant 0 : index
    %c0_6 = arith.constant 0 : index
    %6 = vector.load %arg4[%c0_5, %c0_6] : memref<1x64xf32, #tpu.memory_space<vmem>>, vector<1x64xf32>
    %7 = vector.broadcast %6 : vector<1x64xf32> to vector<512x64xf32>
    %8 = arith.addf %5, %7 : vector<512x64xf32>
    %cst_7 = arith.constant 0.000000e+00 : f32
    %9 = vector.broadcast %cst_7 : f32 to vector<512x64xf32>
    %10 = arith.maximumf %8, %9 : vector<512x64xf32>
    %11 = arith.truncf %10 : vector<512x64xf32> to vector<512x64xbf16>
    %c0_8 = arith.constant 0 : index
    %c0_9 = arith.constant 0 : index
    %12 = vector.load %arg5[%c0_8, %c0_9] : memref<512x64xbf16, #tpu.memory_space<vmem>>, vector<512x64xbf16>
    tpu.vector_store %arg5[%c0_8, %c0_9], %11 {strides = array<i32>} : memref<512x64xbf16, #tpu.memory_space<vmem>>, vector<512x64xbf16>,
    return
  }
  func.func @transform_0(%arg0: i32) -> (i32, i32) {
    %c0_i32 = arith.constant 0 : i32
    %c0_i32_0 = arith.constant 0 : i32
    return %arg0, %c0_i32 : i32, i32
  }
  func.func @transform_1(%arg0: i32) -> (i32, i32) {
    %c0_i32 = arith.constant 0 : i32
    %c0_i32_0 = arith.constant 0 : i32
    %c0_i32_1 = arith.constant 0 : i32
    return %c0_i32, %c0_i32_0 : i32, i32
  }
  func.func @transform_2(%arg0: i32) -> (i32, i32) {
    %c0_i32 = arith.constant 0 : i32
    %c0_i32_0 = arith.constant 0 : i32
    %c0_i32_1 = arith.constant 0 : i32
    return %c0_i32, %c0_i32_0 : i32, i32
  }
  func.func @transform_3(%arg0: i32) -> (i32, i32) {
    %c0_i32 = arith.constant 0 : i32
    %c0_i32_0 = arith.constant 0 : i32
    %c0_i32_1 = arith.constant 0 : i32
    return %c0_i32, %c0_i32_0 : i32, i32
  }
  func.func @transform_4(%arg0: i32) -> (i32, i32) {
    %c0_i32 = arith.constant 0 : i32
    %c0_i32_0 = arith.constant 0 : i32
    return %arg0, %c0_i32 : i32, i32
  }
}

module attributes {stable_mosaic.version = 11 : i64} {
  func.func @_maxpool_kernel(%arg0: i32, %arg1: memref<4x1x9x9x64xbf16, #tpu.memory_space<vmem>>, %arg2: memref<1x8x8x64xbf16, #tpu.memory_space<vmem>>) attributes {dimension_semantics = [#tpu.dimension_semantics<parallel>], iteration_bounds = array<i64: 2>, scalar_prefetch = 0 : i64, scratch_operands = 0 : i64, tpu.core_type = #tpu.core_type<tc>, window_params = [{transform_indices = @transform_0, window_bounds = array<i64: 4, 1, 9, 9, 64>}, {transform_indices = @transform_1, window_bounds = array<i64: 1, 8, 8, 64>}]} {
    %c0 = arith.constant 0 : index
    %c0_0 = arith.constant 0 : index
    %c0_1 = arith.constant 0 : index
    %c0_2 = arith.constant 0 : index
    %c0_3 = arith.constant 0 : index
    %0 = vector.load %arg1[%c0, %c0_0, %c0_1, %c0_2, %c0_3] : memref<4x1x9x9x64xbf16, #tpu.memory_space<vmem>>, vector<1x1x9x8x64xbf16>
    %1 = vector.shape_cast %0 : vector<1x1x9x8x64xbf16> to vector<9x8x64xbf16>
    %2 = vector.extract_strided_slice %1 {offsets = [0, 0, 0], sizes = [8, 8, 64], strides = [1, 1, 1]} : vector<9x8x64xbf16> to vector<8x8x64xbf16>
    %3 = vector.extract_strided_slice %1 {offsets = [1, 0, 0], sizes = [8, 8, 64], strides = [1, 1, 1]} : vector<9x8x64xbf16> to vector<8x8x64xbf16>
    %4 = arith.maximumf %2, %3 : vector<8x8x64xbf16>
    %c0_4 = arith.constant 0 : index
    %c0_5 = arith.constant 0 : index
    %c0_6 = arith.constant 0 : index
    %c1 = arith.constant 1 : index
    %c0_7 = arith.constant 0 : index
    %5 = vector.load %arg1[%c0_4, %c0_5, %c0_6, %c1, %c0_7] : memref<4x1x9x9x64xbf16, #tpu.memory_space<vmem>>, vector<1x1x9x8x64xbf16>
    %6 = vector.shape_cast %5 : vector<1x1x9x8x64xbf16> to vector<9x8x64xbf16>
    %7 = vector.extract_strided_slice %6 {offsets = [0, 0, 0], sizes = [8, 8, 64], strides = [1, 1, 1]} : vector<9x8x64xbf16> to vector<8x8x64xbf16>
    %8 = arith.maximumf %4, %7 : vector<8x8x64xbf16>
    %9 = vector.extract_strided_slice %6 {offsets = [1, 0, 0], sizes = [8, 8, 64], strides = [1, 1, 1]} : vector<9x8x64xbf16> to vector<8x8x64xbf16>
    %10 = arith.maximumf %8, %9 : vector<8x8x64xbf16>
    %c1_8 = arith.constant 1 : index
    %c0_9 = arith.constant 0 : index
    %c0_10 = arith.constant 0 : index
    %c0_11 = arith.constant 0 : index
    %c0_12 = arith.constant 0 : index
    %11 = vector.load %arg1[%c1_8, %c0_9, %c0_10, %c0_11, %c0_12] : memref<4x1x9x9x64xbf16, #tpu.memory_space<vmem>>, vector<1x1x9x8x64xbf16>
    %12 = vector.shape_cast %11 : vector<1x1x9x8x64xbf16> to vector<9x8x64xbf16>
    %13 = vector.extract_strided_slice %12 {offsets = [0, 0, 0], sizes = [8, 8, 64], strides = [1, 1, 1]} : vector<9x8x64xbf16> to vector<8x8x64xbf16>
    %14 = arith.maximumf %10, %13 : vector<8x8x64xbf16>
    %15 = vector.extract_strided_slice %12 {offsets = [1, 0, 0], sizes = [8, 8, 64], strides = [1, 1, 1]} : vector<9x8x64xbf16> to vector<8x8x64xbf16>
    %16 = arith.maximumf %14, %15 : vector<8x8x64xbf16>
    %c2 = arith.constant 2 : index
    %c0_13 = arith.constant 0 : index
    %c0_14 = arith.constant 0 : index
    %c0_15 = arith.constant 0 : index
    %c0_16 = arith.constant 0 : index
    %17 = vector.load %arg1[%c2, %c0_13, %c0_14, %c0_15, %c0_16] : memref<4x1x9x9x64xbf16, #tpu.memory_space<vmem>>, vector<1x1x9x8x64xbf16>
    %18 = vector.shape_cast %17 : vector<1x1x9x8x64xbf16> to vector<9x8x64xbf16>
    %19 = vector.extract_strided_slice %18 {offsets = [0, 0, 0], sizes = [8, 8, 64], strides = [1, 1, 1]} : vector<9x8x64xbf16> to vector<8x8x64xbf16>
    %20 = arith.maximumf %16, %19 : vector<8x8x64xbf16>
    %c2_17 = arith.constant 2 : index
    %c0_18 = arith.constant 0 : index
    %c0_19 = arith.constant 0 : index
    %c1_20 = arith.constant 1 : index
    %c0_21 = arith.constant 0 : index
    %21 = vector.load %arg1[%c2_17, %c0_18, %c0_19, %c1_20, %c0_21] : memref<4x1x9x9x64xbf16, #tpu.memory_space<vmem>>, vector<1x1x9x8x64xbf16>
    %22 = vector.shape_cast %21 : vector<1x1x9x8x64xbf16> to vector<9x8x64xbf16>
    %23 = vector.extract_strided_slice %22 {offsets = [0, 0, 0], sizes = [8, 8, 64], strides = [1, 1, 1]} : vector<9x8x64xbf16> to vector<8x8x64xbf16>
    %24 = arith.maximumf %20, %23 : vector<8x8x64xbf16>
    %c3 = arith.constant 3 : index
    %c0_22 = arith.constant 0 : index
    %c0_23 = arith.constant 0 : index
    %c0_24 = arith.constant 0 : index
    %c0_25 = arith.constant 0 : index
    %25 = vector.load %arg1[%c3, %c0_22, %c0_23, %c0_24, %c0_25] : memref<4x1x9x9x64xbf16, #tpu.memory_space<vmem>>, vector<1x1x9x8x64xbf16>
    %26 = vector.shape_cast %25 : vector<1x1x9x8x64xbf16> to vector<9x8x64xbf16>
    %27 = vector.extract_strided_slice %26 {offsets = [0, 0, 0], sizes = [8, 8, 64], strides = [1, 1, 1]} : vector<9x8x64xbf16> to vector<8x8x64xbf16>
    %28 = arith.maximumf %24, %27 : vector<8x8x64xbf16>
    %c0_26 = arith.constant 0 : index
    %c0_27 = arith.constant 0 : index
    %c0_28 = arith.constant 0 : index
    %c0_29 = arith.constant 0 : index
    %29 = vector.load %arg2[%c0_26, %c0_27, %c0_28, %c0_29] : memref<1x8x8x64xbf16, #tpu.memory_space<vmem>>, vector<1x8x8x64xbf16>
    %30 = vector.shape_cast %29 : vector<1x8x8x64xbf16> to vector<8x8x64xbf16>
    %31 = vector.shape_cast %28 : vector<8x8x64xbf16> to vector<1x8x8x64xbf16>
    tpu.vector_store %arg2[%c0_26, %c0_27, %c0_28, %c0_29], %31 {strides = array<i32>} : memref<1x8x8x64xbf16, #tpu.memory_space<vmem>>, vector<1x8x8x64xbf16>,
    return
  }
  func.func @transform_0(%arg0: i32) -> (i32, i32, i32, i32, i32) {
    %c0_i32 = arith.constant 0 : i32
    %c0_i32_0 = arith.constant 0 : i32
    %c0_i32_1 = arith.constant 0 : i32
    %c0_i32_2 = arith.constant 0 : i32
    %c0_i32_3 = arith.constant 0 : i32
    return %c0_i32, %arg0, %c0_i32_0, %c0_i32_1, %c0_i32_2 : i32, i32, i32, i32, i32
  }
  func.func @transform_1(%arg0: i32) -> (i32, i32, i32, i32) {
    %c0_i32 = arith.constant 0 : i32
    %c0_i32_0 = arith.constant 0 : i32
    %c0_i32_1 = arith.constant 0 : i32
    %c0_i32_2 = arith.constant 0 : i32
    return %arg0, %c0_i32, %c0_i32_0, %c0_i32_1 : i32, i32, i32, i32
  }
}

module attributes {stable_mosaic.version = 11 : i64} {
  func.func @_mm_bn_kernel(%arg0: i32, %arg1: memref<128x64xbf16, #tpu.memory_space<vmem>>, %arg2: memref<64x8xbf16, #tpu.memory_space<vmem>>, %arg3: memref<1x8xf32, #tpu.memory_space<vmem>>, %arg4: memref<1x8xf32, #tpu.memory_space<vmem>>, %arg5: memref<128x8xbf16, #tpu.memory_space<vmem>>) attributes {dimension_semantics = [#tpu.dimension_semantics<parallel>], iteration_bounds = array<i64: 1>, scalar_prefetch = 0 : i64, scratch_operands = 0 : i64, tpu.core_type = #tpu.core_type<tc>, window_params = [{transform_indices = @transform_0, window_bounds = array<i64: 128, 64>}, {pipeline_mode = #tpu.pipeline_mode<synchronous>, transform_indices = @transform_1, window_bounds = array<i64: 64, 8>}, {pipeline_mode = #tpu.pipeline_mode<synchronous>, transform_indices = @transform_2, window_bounds = array<i64: 1, 8>}, {pipeline_mode = #tpu.pipeline_mode<synchronous>, transform_indices = @transform_3, window_bounds = array<i64: 1, 8>}, {transform_indices = @transform_4, window_bounds = array<i64: 128, 8>}]} {
    %c0 = arith.constant 0 : index
    %c0_0 = arith.constant 0 : index
    %0 = vector.load %arg1[%c0, %c0_0] : memref<128x64xbf16, #tpu.memory_space<vmem>>, vector<128x64xbf16>
    %c0_1 = arith.constant 0 : index
    %c0_2 = arith.constant 0 : index
    %1 = vector.load %arg2[%c0_1, %c0_2] : memref<64x8xbf16, #tpu.memory_space<vmem>>, vector<64x8xbf16>
    %cst = arith.constant dense<0.000000e+00> : vector<128x8xf32>
    %2 = tpu.matmul %0, %1, %cst {dimension_numbers = #tpu.dot_dimension_numbers<[1], [0], [0], [1], [0, 0, 1, 1], [], []>} : vector<128x64xbf16>, vector<64x8xbf16>, vector<128x8xf32> -> vector<128x8xf32>
    %c0_3 = arith.constant 0 : index
    %c0_4 = arith.constant 0 : index
    %3 = vector.load %arg3[%c0_3, %c0_4] : memref<1x8xf32, #tpu.memory_space<vmem>>, vector<1x8xf32>
    %4 = vector.broadcast %3 : vector<1x8xf32> to vector<128x8xf32>
    %5 = arith.mulf %2, %4 : vector<128x8xf32>
    %c0_5 = arith.constant 0 : index
    %c0_6 = arith.constant 0 : index
    %6 = vector.load %arg4[%c0_5, %c0_6] : memref<1x8xf32, #tpu.memory_space<vmem>>, vector<1x8xf32>
    %7 = vector.broadcast %6 : vector<1x8xf32> to vector<128x8xf32>
    %8 = arith.addf %5, %7 : vector<128x8xf32>
    %cst_7 = arith.constant 0.000000e+00 : f32
    %9 = vector.broadcast %cst_7 : f32 to vector<128x8xf32>
    %10 = arith.maximumf %8, %9 : vector<128x8xf32>
    %11 = arith.truncf %10 : vector<128x8xf32> to vector<128x8xbf16>
    %c0_8 = arith.constant 0 : index
    %c0_9 = arith.constant 0 : index
    %12 = vector.load %arg5[%c0_8, %c0_9] : memref<128x8xbf16, #tpu.memory_space<vmem>>, vector<128x8xbf16>
    tpu.vector_store %arg5[%c0_8, %c0_9], %11 {strides = array<i32>} : memref<128x8xbf16, #tpu.memory_space<vmem>>, vector<128x8xbf16>,
    return
  }
  func.func @transform_0(%arg0: i32) -> (i32, i32) {
    %c0_i32 = arith.constant 0 : i32
    %c0_i32_0 = arith.constant 0 : i32
    return %arg0, %c0_i32 : i32, i32
  }
  func.func @transform_1(%arg0: i32) -> (i32, i32) {
    %c0_i32 = arith.constant 0 : i32
    %c0_i32_0 = arith.constant 0 : i32
    %c0_i32_1 = arith.constant 0 : i32
    return %c0_i32, %c0_i32_0 : i32, i32
  }
  func.func @transform_2(%arg0: i32) -> (i32, i32) {
    %c0_i32 = arith.constant 0 : i32
    %c0_i32_0 = arith.constant 0 : i32
    %c0_i32_1 = arith.constant 0 : i32
    return %c0_i32, %c0_i32_0 : i32, i32
  }
  func.func @transform_3(%arg0: i32) -> (i32, i32) {
    %c0_i32 = arith.constant 0 : i32
    %c0_i32_0 = arith.constant 0 : i32
    %c0_i32_1 = arith.constant 0 : i32
    return %c0_i32, %c0_i32_0 : i32, i32
  }
  func.func @transform_4(%arg0: i32) -> (i32, i32) {
    %c0_i32 = arith.constant 0 : i32
    %c0_i32_0 = arith.constant 0 : i32
    return %arg0, %c0_i32 : i32, i32
  }
}

module attributes {stable_mosaic.version = 11 : i64} {
  func.func @_direct_conv_kernel(%arg0: i32, %arg1: i32, %arg2: memref<1x1x10x18x8xbf16, #tpu.memory_space<vmem>>, %arg3: memref<9x1x8x8xbf16, #tpu.memory_space<vmem>>, %arg4: memref<1x8xf32, #tpu.memory_space<vmem>>, %arg5: memref<1x8xf32, #tpu.memory_space<vmem>>, %arg6: memref<1x128x8xbf16, #tpu.memory_space<vmem>>, %arg7: memref<128x8xf32, #tpu.memory_space<vmem>>) attributes {dimension_semantics = [#tpu.dimension_semantics<parallel>, #tpu.dimension_semantics<parallel>], iteration_bounds = array<i64: 2, 1>, scalar_prefetch = 0 : i64, scratch_operands = 1 : i64, tpu.core_type = #tpu.core_type<tc>, window_params = [{transform_indices = @transform_0, window_bounds = array<i64: 1, 1, 10, 18, 8>}, {transform_indices = @transform_1, window_bounds = array<i64: 9, 1, 8, 8>}, {transform_indices = @transform_2, window_bounds = array<i64: 1, 8>}, {transform_indices = @transform_3, window_bounds = array<i64: 1, 8>}, {transform_indices = @transform_4, window_bounds = array<i64: 1, 128, 8>}]} {
    %cst = arith.constant 0.000000e+00 : f32
    %0 = vector.broadcast %cst : f32 to vector<128x8xf32>
    %c0 = arith.constant 0 : index
    %c0_0 = arith.constant 0 : index
    %1 = vector.load %arg7[%c0, %c0_0] : memref<128x8xf32, #tpu.memory_space<vmem>>, vector<128x8xf32>
    tpu.vector_store %arg7[%c0, %c0_0], %0 {strides = array<i32>} : memref<128x8xf32, #tpu.memory_space<vmem>>, vector<128x8xf32>,
    %c0_1 = arith.constant 0 : index
    %c0_2 = arith.constant 0 : index
    %c0_3 = arith.constant 0 : index
    %c0_4 = arith.constant 0 : index
    %c0_5 = arith.constant 0 : index
    %2 = vector.load %arg2[%c0_1, %c0_2, %c0_3, %c0_4, %c0_5] : memref<1x1x10x18x8xbf16, #tpu.memory_space<vmem>>, vector<1x1x10x16x8xbf16>
    %3 = vector.shape_cast %2 : vector<1x1x10x16x8xbf16> to vector<10x16x8xbf16>
    %4 = vector.extract_strided_slice %3 {offsets = [0, 0, 0], sizes = [8, 16, 8], strides = [1, 1, 1]} : vector<10x16x8xbf16> to vector<8x16x8xbf16>
    %5 = vector.shape_cast %4 : vector<8x16x8xbf16> to vector<128x8xbf16>
    %c0_6 = arith.constant 0 : index
    %c0_7 = arith.constant 0 : index
    %6 = vector.load %arg7[%c0_6, %c0_7] : memref<128x8xf32, #tpu.memory_space<vmem>>, vector<128x8xf32>
    %c0_8 = arith.constant 0 : index
    %c0_9 = arith.constant 0 : index
    %c0_10 = arith.constant 0 : index
    %c0_11 = arith.constant 0 : index
    %7 = vector.load %arg3[%c0_8, %c0_9, %c0_10, %c0_11] : memref<9x1x8x8xbf16, #tpu.memory_space<vmem>>, vector<1x1x8x8xbf16>
    %8 = vector.shape_cast %7 : vector<1x1x8x8xbf16> to vector<8x8xbf16>
    %cst_12 = arith.constant dense<0.000000e+00> : vector<128x8xf32>
    %9 = tpu.matmul %5, %8, %cst_12 {dimension_numbers = #tpu.dot_dimension_numbers<[1], [0], [0], [1], [0, 0, 1, 1], [], []>} : vector<128x8xbf16>, vector<8x8xbf16>, vector<128x8xf32> -> vector<128x8xf32>
    %10 = arith.addf %6, %9 : vector<128x8xf32>
    %c0_13 = arith.constant 0 : index
    %c0_14 = arith.constant 0 : index
    %11 = vector.load %arg7[%c0_13, %c0_14] : memref<128x8xf32, #tpu.memory_space<vmem>>, vector<128x8xf32>
    tpu.vector_store %arg7[%c0_13, %c0_14], %10 {strides = array<i32>} : memref<128x8xf32, #tpu.memory_space<vmem>>, vector<128x8xf32>,
    %12 = vector.extract_strided_slice %3 {offsets = [1, 0, 0], sizes = [8, 16, 8], strides = [1, 1, 1]} : vector<10x16x8xbf16> to vector<8x16x8xbf16>
    %13 = vector.shape_cast %12 : vector<8x16x8xbf16> to vector<128x8xbf16>
    %c0_15 = arith.constant 0 : index
    %c0_16 = arith.constant 0 : index
    %14 = vector.load %arg7[%c0_15, %c0_16] : memref<128x8xf32, #tpu.memory_space<vmem>>, vector<128x8xf32>
    %c3 = arith.constant 3 : index
    %c0_17 = arith.constant 0 : index
    %c0_18 = arith.constant 0 : index
    %c0_19 = arith.constant 0 : index
    %15 = vector.load %arg3[%c3, %c0_17, %c0_18, %c0_19] : memref<9x1x8x8xbf16, #tpu.memory_space<vmem>>, vector<1x1x8x8xbf16>
    %16 = vector.shape_cast %15 : vector<1x1x8x8xbf16> to vector<8x8xbf16>
    %cst_20 = arith.constant dense<0.000000e+00> : vector<128x8xf32>
    %17 = tpu.matmul %13, %16, %cst_20 {dimension_numbers = #tpu.dot_dimension_numbers<[1], [0], [0], [1], [0, 0, 1, 1], [], []>} : vector<128x8xbf16>, vector<8x8xbf16>, vector<128x8xf32> -> vector<128x8xf32>
    %18 = arith.addf %14, %17 : vector<128x8xf32>
    %c0_21 = arith.constant 0 : index
    %c0_22 = arith.constant 0 : index
    %19 = vector.load %arg7[%c0_21, %c0_22] : memref<128x8xf32, #tpu.memory_space<vmem>>, vector<128x8xf32>
    tpu.vector_store %arg7[%c0_21, %c0_22], %18 {strides = array<i32>} : memref<128x8xf32, #tpu.memory_space<vmem>>, vector<128x8xf32>,
    %20 = vector.extract_strided_slice %3 {offsets = [2, 0, 0], sizes = [8, 16, 8], strides = [1, 1, 1]} : vector<10x16x8xbf16> to vector<8x16x8xbf16>
    %21 = vector.shape_cast %20 : vector<8x16x8xbf16> to vector<128x8xbf16>
    %c0_23 = arith.constant 0 : index
    %c0_24 = arith.constant 0 : index
    %22 = vector.load %arg7[%c0_23, %c0_24] : memref<128x8xf32, #tpu.memory_space<vmem>>, vector<128x8xf32>
    %c6 = arith.constant 6 : index
    %c0_25 = arith.constant 0 : index
    %c0_26 = arith.constant 0 : index
    %c0_27 = arith.constant 0 : index
    %23 = vector.load %arg3[%c6, %c0_25, %c0_26, %c0_27] : memref<9x1x8x8xbf16, #tpu.memory_space<vmem>>, vector<1x1x8x8xbf16>
    %24 = vector.shape_cast %23 : vector<1x1x8x8xbf16> to vector<8x8xbf16>
    %cst_28 = arith.constant dense<0.000000e+00> : vector<128x8xf32>
    %25 = tpu.matmul %21, %24, %cst_28 {dimension_numbers = #tpu.dot_dimension_numbers<[1], [0], [0], [1], [0, 0, 1, 1], [], []>} : vector<128x8xbf16>, vector<8x8xbf16>, vector<128x8xf32> -> vector<128x8xf32>
    %26 = arith.addf %22, %25 : vector<128x8xf32>
    %c0_29 = arith.constant 0 : index
    %c0_30 = arith.constant 0 : index
    %27 = vector.load %arg7[%c0_29, %c0_30] : memref<128x8xf32, #tpu.memory_space<vmem>>, vector<128x8xf32>
    tpu.vector_store %arg7[%c0_29, %c0_30], %26 {strides = array<i32>} : memref<128x8xf32, #tpu.memory_space<vmem>>, vector<128x8xf32>,
    %c0_31 = arith.constant 0 : index
    %c0_32 = arith.constant 0 : index
    %c0_33 = arith.constant 0 : index
    %c1 = arith.constant 1 : index
    %c0_34 = arith.constant 0 : index
    %28 = vector.load %arg2[%c0_31, %c0_32, %c0_33, %c1, %c0_34] : memref<1x1x10x18x8xbf16, #tpu.memory_space<vmem>>, vector<1x1x10x16x8xbf16>
    %29 = vector.shape_cast %28 : vector<1x1x10x16x8xbf16> to vector<10x16x8xbf16>
    %30 = vector.extract_strided_slice %29 {offsets = [0, 0, 0], sizes = [8, 16, 8], strides = [1, 1, 1]} : vector<10x16x8xbf16> to vector<8x16x8xbf16>
    %31 = vector.shape_cast %30 : vector<8x16x8xbf16> to vector<128x8xbf16>
    %c0_35 = arith.constant 0 : index
    %c0_36 = arith.constant 0 : index
    %32 = vector.load %arg7[%c0_35, %c0_36] : memref<128x8xf32, #tpu.memory_space<vmem>>, vector<128x8xf32>
    %c1_37 = arith.constant 1 : index
    %c0_38 = arith.constant 0 : index
    %c0_39 = arith.constant 0 : index
    %c0_40 = arith.constant 0 : index
    %33 = vector.load %arg3[%c1_37, %c0_38, %c0_39, %c0_40] : memref<9x1x8x8xbf16, #tpu.memory_space<vmem>>, vector<1x1x8x8xbf16>
    %34 = vector.shape_cast %33 : vector<1x1x8x8xbf16> to vector<8x8xbf16>
    %cst_41 = arith.constant dense<0.000000e+00> : vector<128x8xf32>
    %35 = tpu.matmul %31, %34, %cst_41 {dimension_numbers = #tpu.dot_dimension_numbers<[1], [0], [0], [1], [0, 0, 1, 1], [], []>} : vector<128x8xbf16>, vector<8x8xbf16>, vector<128x8xf32> -> vector<128x8xf32>
    %36 = arith.addf %32, %35 : vector<128x8xf32>
    %c0_42 = arith.constant 0 : index
    %c0_43 = arith.constant 0 : index
    %37 = vector.load %arg7[%c0_42, %c0_43] : memref<128x8xf32, #tpu.memory_space<vmem>>, vector<128x8xf32>
    tpu.vector_store %arg7[%c0_42, %c0_43], %36 {strides = array<i32>} : memref<128x8xf32, #tpu.memory_space<vmem>>, vector<128x8xf32>,
    %38 = vector.extract_strided_slice %29 {offsets = [1, 0, 0], sizes = [8, 16, 8], strides = [1, 1, 1]} : vector<10x16x8xbf16> to vector<8x16x8xbf16>
    %39 = vector.shape_cast %38 : vector<8x16x8xbf16> to vector<128x8xbf16>
    %c0_44 = arith.constant 0 : index
    %c0_45 = arith.constant 0 : index
    %40 = vector.load %arg7[%c0_44, %c0_45] : memref<128x8xf32, #tpu.memory_space<vmem>>, vector<128x8xf32>
    %c4 = arith.constant 4 : index
    %c0_46 = arith.constant 0 : index
    %c0_47 = arith.constant 0 : index
    %c0_48 = arith.constant 0 : index
    %41 = vector.load %arg3[%c4, %c0_46, %c0_47, %c0_48] : memref<9x1x8x8xbf16, #tpu.memory_space<vmem>>, vector<1x1x8x8xbf16>
    %42 = vector.shape_cast %41 : vector<1x1x8x8xbf16> to vector<8x8xbf16>
    %cst_49 = arith.constant dense<0.000000e+00> : vector<128x8xf32>
    %43 = tpu.matmul %39, %42, %cst_49 {dimension_numbers = #tpu.dot_dimension_numbers<[1], [0], [0], [1], [0, 0, 1, 1], [], []>} : vector<128x8xbf16>, vector<8x8xbf16>, vector<128x8xf32> -> vector<128x8xf32>
    %44 = arith.addf %40, %43 : vector<128x8xf32>
    %c0_50 = arith.constant 0 : index
    %c0_51 = arith.constant 0 : index
    %45 = vector.load %arg7[%c0_50, %c0_51] : memref<128x8xf32, #tpu.memory_space<vmem>>, vector<128x8xf32>
    tpu.vector_store %arg7[%c0_50, %c0_51], %44 {strides = array<i32>} : memref<128x8xf32, #tpu.memory_space<vmem>>, vector<128x8xf32>,
    %46 = vector.extract_strided_slice %29 {offsets = [2, 0, 0], sizes = [8, 16, 8], strides = [1, 1, 1]} : vector<10x16x8xbf16> to vector<8x16x8xbf16>
    %47 = vector.shape_cast %46 : vector<8x16x8xbf16> to vector<128x8xbf16>
    %c0_52 = arith.constant 0 : index
    %c0_53 = arith.constant 0 : index
    %48 = vector.load %arg7[%c0_52, %c0_53] : memref<128x8xf32, #tpu.memory_space<vmem>>, vector<128x8xf32>
    %c7 = arith.constant 7 : index
    %c0_54 = arith.constant 0 : index
    %c0_55 = arith.constant 0 : index
    %c0_56 = arith.constant 0 : index
    %49 = vector.load %arg3[%c7, %c0_54, %c0_55, %c0_56] : memref<9x1x8x8xbf16, #tpu.memory_space<vmem>>, vector<1x1x8x8xbf16>
    %50 = vector.shape_cast %49 : vector<1x1x8x8xbf16> to vector<8x8xbf16>
    %cst_57 = arith.constant dense<0.000000e+00> : vector<128x8xf32>
    %51 = tpu.matmul %47, %50, %cst_57 {dimension_numbers = #tpu.dot_dimension_numbers<[1], [0], [0], [1], [0, 0, 1, 1], [], []>} : vector<128x8xbf16>, vector<8x8xbf16>, vector<128x8xf32> -> vector<128x8xf32>
    %52 = arith.addf %48, %51 : vector<128x8xf32>
    %c0_58 = arith.constant 0 : index
    %c0_59 = arith.constant 0 : index
    %53 = vector.load %arg7[%c0_58, %c0_59] : memref<128x8xf32, #tpu.memory_space<vmem>>, vector<128x8xf32>
    tpu.vector_store %arg7[%c0_58, %c0_59], %52 {strides = array<i32>} : memref<128x8xf32, #tpu.memory_space<vmem>>, vector<128x8xf32>,
    %c0_60 = arith.constant 0 : index
    %c0_61 = arith.constant 0 : index
    %c0_62 = arith.constant 0 : index
    %c2 = arith.constant 2 : index
    %c0_63 = arith.constant 0 : index
    %54 = vector.load %arg2[%c0_60, %c0_61, %c0_62, %c2, %c0_63] : memref<1x1x10x18x8xbf16, #tpu.memory_space<vmem>>, vector<1x1x10x16x8xbf16>
    %55 = vector.shape_cast %54 : vector<1x1x10x16x8xbf16> to vector<10x16x8xbf16>
    %56 = vector.extract_strided_slice %55 {offsets = [0, 0, 0], sizes = [8, 16, 8], strides = [1, 1, 1]} : vector<10x16x8xbf16> to vector<8x16x8xbf16>
    %57 = vector.shape_cast %56 : vector<8x16x8xbf16> to vector<128x8xbf16>
    %c0_64 = arith.constant 0 : index
    %c0_65 = arith.constant 0 : index
    %58 = vector.load %arg7[%c0_64, %c0_65] : memref<128x8xf32, #tpu.memory_space<vmem>>, vector<128x8xf32>
    %c2_66 = arith.constant 2 : index
    %c0_67 = arith.constant 0 : index
    %c0_68 = arith.constant 0 : index
    %c0_69 = arith.constant 0 : index
    %59 = vector.load %arg3[%c2_66, %c0_67, %c0_68, %c0_69] : memref<9x1x8x8xbf16, #tpu.memory_space<vmem>>, vector<1x1x8x8xbf16>
    %60 = vector.shape_cast %59 : vector<1x1x8x8xbf16> to vector<8x8xbf16>
    %cst_70 = arith.constant dense<0.000000e+00> : vector<128x8xf32>
    %61 = tpu.matmul %57, %60, %cst_70 {dimension_numbers = #tpu.dot_dimension_numbers<[1], [0], [0], [1], [0, 0, 1, 1], [], []>} : vector<128x8xbf16>, vector<8x8xbf16>, vector<128x8xf32> -> vector<128x8xf32>
    %62 = arith.addf %58, %61 : vector<128x8xf32>
    %c0_71 = arith.constant 0 : index
    %c0_72 = arith.constant 0 : index
    %63 = vector.load %arg7[%c0_71, %c0_72] : memref<128x8xf32, #tpu.memory_space<vmem>>, vector<128x8xf32>
    tpu.vector_store %arg7[%c0_71, %c0_72], %62 {strides = array<i32>} : memref<128x8xf32, #tpu.memory_space<vmem>>, vector<128x8xf32>,
    %64 = vector.extract_strided_slice %55 {offsets = [1, 0, 0], sizes = [8, 16, 8], strides = [1, 1, 1]} : vector<10x16x8xbf16> to vector<8x16x8xbf16>
    %65 = vector.shape_cast %64 : vector<8x16x8xbf16> to vector<128x8xbf16>
    %c0_73 = arith.constant 0 : index
    %c0_74 = arith.constant 0 : index
    %66 = vector.load %arg7[%c0_73, %c0_74] : memref<128x8xf32, #tpu.memory_space<vmem>>, vector<128x8xf32>
    %c5 = arith.constant 5 : index
    %c0_75 = arith.constant 0 : index
    %c0_76 = arith.constant 0 : index
    %c0_77 = arith.constant 0 : index
    %67 = vector.load %arg3[%c5, %c0_75, %c0_76, %c0_77] : memref<9x1x8x8xbf16, #tpu.memory_space<vmem>>, vector<1x1x8x8xbf16>
    %68 = vector.shape_cast %67 : vector<1x1x8x8xbf16> to vector<8x8xbf16>
    %cst_78 = arith.constant dense<0.000000e+00> : vector<128x8xf32>
    %69 = tpu.matmul %65, %68, %cst_78 {dimension_numbers = #tpu.dot_dimension_numbers<[1], [0], [0], [1], [0, 0, 1, 1], [], []>} : vector<128x8xbf16>, vector<8x8xbf16>, vector<128x8xf32> -> vector<128x8xf32>
    %70 = arith.addf %66, %69 : vector<128x8xf32>
    %c0_79 = arith.constant 0 : index
    %c0_80 = arith.constant 0 : index
    %71 = vector.load %arg7[%c0_79, %c0_80] : memref<128x8xf32, #tpu.memory_space<vmem>>, vector<128x8xf32>
    tpu.vector_store %arg7[%c0_79, %c0_80], %70 {strides = array<i32>} : memref<128x8xf32, #tpu.memory_space<vmem>>, vector<128x8xf32>,
    %72 = vector.extract_strided_slice %55 {offsets = [2, 0, 0], sizes = [8, 16, 8], strides = [1, 1, 1]} : vector<10x16x8xbf16> to vector<8x16x8xbf16>
    %73 = vector.shape_cast %72 : vector<8x16x8xbf16> to vector<128x8xbf16>
    %c0_81 = arith.constant 0 : index
    %c0_82 = arith.constant 0 : index
    %74 = vector.load %arg7[%c0_81, %c0_82] : memref<128x8xf32, #tpu.memory_space<vmem>>, vector<128x8xf32>
    %c8 = arith.constant 8 : index
    %c0_83 = arith.constant 0 : index
    %c0_84 = arith.constant 0 : index
    %c0_85 = arith.constant 0 : index
    %75 = vector.load %arg3[%c8, %c0_83, %c0_84, %c0_85] : memref<9x1x8x8xbf16, #tpu.memory_space<vmem>>, vector<1x1x8x8xbf16>
    %76 = vector.shape_cast %75 : vector<1x1x8x8xbf16> to vector<8x8xbf16>
    %cst_86 = arith.constant dense<0.000000e+00> : vector<128x8xf32>
    %77 = tpu.matmul %73, %76, %cst_86 {dimension_numbers = #tpu.dot_dimension_numbers<[1], [0], [0], [1], [0, 0, 1, 1], [], []>} : vector<128x8xbf16>, vector<8x8xbf16>, vector<128x8xf32> -> vector<128x8xf32>
    %78 = arith.addf %74, %77 : vector<128x8xf32>
    %c0_87 = arith.constant 0 : index
    %c0_88 = arith.constant 0 : index
    %79 = vector.load %arg7[%c0_87, %c0_88] : memref<128x8xf32, #tpu.memory_space<vmem>>, vector<128x8xf32>
    tpu.vector_store %arg7[%c0_87, %c0_88], %78 {strides = array<i32>} : memref<128x8xf32, #tpu.memory_space<vmem>>, vector<128x8xf32>,
    %c0_89 = arith.constant 0 : index
    %c0_90 = arith.constant 0 : index
    %80 = vector.load %arg7[%c0_89, %c0_90] : memref<128x8xf32, #tpu.memory_space<vmem>>, vector<128x8xf32>
    %c0_91 = arith.constant 0 : index
    %c0_92 = arith.constant 0 : index
    %81 = vector.load %arg4[%c0_91, %c0_92] : memref<1x8xf32, #tpu.memory_space<vmem>>, vector<1x8xf32>
    %82 = vector.broadcast %81 : vector<1x8xf32> to vector<128x8xf32>
    %83 = arith.mulf %80, %82 : vector<128x8xf32>
    %c0_93 = arith.constant 0 : index
    %c0_94 = arith.constant 0 : index
    %84 = vector.load %arg5[%c0_93, %c0_94] : memref<1x8xf32, #tpu.memory_space<vmem>>, vector<1x8xf32>
    %85 = vector.broadcast %84 : vector<1x8xf32> to vector<128x8xf32>
    %86 = arith.addf %83, %85 : vector<128x8xf32>
    %cst_95 = arith.constant 0.000000e+00 : f32
    %87 = vector.broadcast %cst_95 : f32 to vector<128x8xf32>
    %88 = arith.maximumf %86, %87 : vector<128x8xf32>
    %89 = arith.truncf %88 : vector<128x8xf32> to vector<128x8xbf16>
    %c0_96 = arith.constant 0 : index
    %c0_97 = arith.constant 0 : index
    %c0_98 = arith.constant 0 : index
    %90 = vector.load %arg6[%c0_96, %c0_97, %c0_98] : memref<1x128x8xbf16, #tpu.memory_space<vmem>>, vector<1x128x8xbf16>
    %91 = vector.shape_cast %90 : vector<1x128x8xbf16> to vector<128x8xbf16>
    %92 = vector.shape_cast %89 : vector<128x8xbf16> to vector<1x128x8xbf16>
    tpu.vector_store %arg6[%c0_96, %c0_97, %c0_98], %92 {strides = array<i32>} : memref<1x128x8xbf16, #tpu.memory_space<vmem>>, vector<1x128x8xbf16>,
    return
  }
  func.func @transform_0(%arg0: i32, %arg1: i32) -> (i32, i32, i32, i32, i32) {
    %c0_i32 = arith.constant 0 : i32
    %c0_i32_0 = arith.constant 0 : i32
    %c0_i32_1 = arith.constant 0 : i32
    %c0_i32_2 = arith.constant 0 : i32
    return %c0_i32, %arg0, %c0_i32_0, %c0_i32_1, %arg1 : i32, i32, i32, i32, i32
  }
  func.func @transform_1(%arg0: i32, %arg1: i32) -> (i32, i32, i32, i32) {
    %c0_i32 = arith.constant 0 : i32
    %c0_i32_0 = arith.constant 0 : i32
    %c0_i32_1 = arith.constant 0 : i32
    %c0_i32_2 = arith.constant 0 : i32
    return %c0_i32, %arg1, %c0_i32_0, %c0_i32_1 : i32, i32, i32, i32
  }
  func.func @transform_2(%arg0: i32, %arg1: i32) -> (i32, i32) {
    %c0_i32 = arith.constant 0 : i32
    %c0_i32_0 = arith.constant 0 : i32
    return %c0_i32, %arg1 : i32, i32
  }
  func.func @transform_3(%arg0: i32, %arg1: i32) -> (i32, i32) {
    %c0_i32 = arith.constant 0 : i32
    %c0_i32_0 = arith.constant 0 : i32
    return %c0_i32, %arg1 : i32, i32
  }
  func.func @transform_4(%arg0: i32, %arg1: i32) -> (i32, i32, i32) {
    %c0_i32 = arith.constant 0 : i32
    %c0_i32_0 = arith.constant 0 : i32
    return %arg0, %c0_i32, %arg1 : i32, i32, i32
  }
}

module attributes {stable_mosaic.version = 11 : i64} {
  func.func @_mm2_bn_kernel(%arg0: i32, %arg1: memref<128x8xbf16, #tpu.memory_space<vmem>>, %arg2: memref<8x16xbf16, #tpu.memory_space<vmem>>, %arg3: memref<1x16xf32, #tpu.memory_space<vmem>>, %arg4: memref<1x16xf32, #tpu.memory_space<vmem>>, %arg5: memref<128x64xbf16, #tpu.memory_space<vmem>>, %arg6: memref<64x16xbf16, #tpu.memory_space<vmem>>, %arg7: memref<1x16xf32, #tpu.memory_space<vmem>>, %arg8: memref<1x16xf32, #tpu.memory_space<vmem>>, %arg9: memref<128x16xbf16, #tpu.memory_space<vmem>>) attributes {dimension_semantics = [#tpu.dimension_semantics<parallel>], iteration_bounds = array<i64: 1>, scalar_prefetch = 0 : i64, scratch_operands = 0 : i64, tpu.core_type = #tpu.core_type<tc>, window_params = [{transform_indices = @transform_0, window_bounds = array<i64: 128, 8>}, {pipeline_mode = #tpu.pipeline_mode<synchronous>, transform_indices = @transform_1, window_bounds = array<i64: 8, 16>}, {pipeline_mode = #tpu.pipeline_mode<synchronous>, transform_indices = @transform_2, window_bounds = array<i64: 1, 16>}, {pipeline_mode = #tpu.pipeline_mode<synchronous>, transform_indices = @transform_3, window_bounds = array<i64: 1, 16>}, {transform_indices = @transform_4, window_bounds = array<i64: 128, 64>}, {pipeline_mode = #tpu.pipeline_mode<synchronous>, transform_indices = @transform_5, window_bounds = array<i64: 64, 16>}, {pipeline_mode = #tpu.pipeline_mode<synchronous>, transform_indices = @transform_6, window_bounds = array<i64: 1, 16>}, {pipeline_mode = #tpu.pipeline_mode<synchronous>, transform_indices = @transform_7, window_bounds = array<i64: 1, 16>}, {transform_indices = @transform_8, window_bounds = array<i64: 128, 16>}]} {
    %c0 = arith.constant 0 : index
    %c0_0 = arith.constant 0 : index
    %0 = vector.load %arg1[%c0, %c0_0] : memref<128x8xbf16, #tpu.memory_space<vmem>>, vector<128x8xbf16>
    %c0_1 = arith.constant 0 : index
    %c0_2 = arith.constant 0 : index
    %1 = vector.load %arg2[%c0_1, %c0_2] : memref<8x16xbf16, #tpu.memory_space<vmem>>, vector<8x16xbf16>
    %cst = arith.constant dense<0.000000e+00> : vector<128x16xf32>
    %2 = tpu.matmul %0, %1, %cst {dimension_numbers = #tpu.dot_dimension_numbers<[1], [0], [0], [1], [0, 0, 1, 1], [], []>} : vector<128x8xbf16>, vector<8x16xbf16>, vector<128x16xf32> -> vector<128x16xf32>
    %c0_3 = arith.constant 0 : index
    %c0_4 = arith.constant 0 : index
    %3 = vector.load %arg3[%c0_3, %c0_4] : memref<1x16xf32, #tpu.memory_space<vmem>>, vector<1x16xf32>
    %4 = vector.broadcast %3 : vector<1x16xf32> to vector<128x16xf32>
    %5 = arith.mulf %2, %4 : vector<128x16xf32>
    %c0_5 = arith.constant 0 : index
    %c0_6 = arith.constant 0 : index
    %6 = vector.load %arg4[%c0_5, %c0_6] : memref<1x16xf32, #tpu.memory_space<vmem>>, vector<1x16xf32>
    %7 = vector.broadcast %6 : vector<1x16xf32> to vector<128x16xf32>
    %8 = arith.addf %5, %7 : vector<128x16xf32>
    %c0_7 = arith.constant 0 : index
    %c0_8 = arith.constant 0 : index
    %9 = vector.load %arg5[%c0_7, %c0_8] : memref<128x64xbf16, #tpu.memory_space<vmem>>, vector<128x64xbf16>
    %c0_9 = arith.constant 0 : index
    %c0_10 = arith.constant 0 : index
    %10 = vector.load %arg6[%c0_9, %c0_10] : memref<64x16xbf16, #tpu.memory_space<vmem>>, vector<64x16xbf16>
    %cst_11 = arith.constant dense<0.000000e+00> : vector<128x16xf32>
    %11 = tpu.matmul %9, %10, %cst_11 {dimension_numbers = #tpu.dot_dimension_numbers<[1], [0], [0], [1], [0, 0, 1, 1], [], []>} : vector<128x64xbf16>, vector<64x16xbf16>, vector<128x16xf32> -> vector<128x16xf32>
    %c0_12 = arith.constant 0 : index
    %c0_13 = arith.constant 0 : index
    %12 = vector.load %arg7[%c0_12, %c0_13] : memref<1x16xf32, #tpu.memory_space<vmem>>, vector<1x16xf32>
    %13 = vector.broadcast %12 : vector<1x16xf32> to vector<128x16xf32>
    %14 = arith.mulf %11, %13 : vector<128x16xf32>
    %15 = arith.addf %8, %14 : vector<128x16xf32>
    %c0_14 = arith.constant 0 : index
    %c0_15 = arith.constant 0 : index
    %16 = vector.load %arg8[%c0_14, %c0_15] : memref<1x16xf32, #tpu.memory_space<vmem>>, vector<1x16xf32>
    %17 = vector.broadcast %16 : vector<1x16xf32> to vector<128x16xf32>
    %18 = arith.addf %15, %17 : vector<128x16xf32>
    %cst_16 = arith.constant 0.000000e+00 : f32
    %19 = vector.broadcast %cst_16 : f32 to vector<128x16xf32>
    %20 = arith.maximumf %18, %19 : vector<128x16xf32>
    %21 = arith.truncf %20 : vector<128x16xf32> to vector<128x16xbf16>
    %c0_17 = arith.constant 0 : index
    %c0_18 = arith.constant 0 : index
    %22 = vector.load %arg9[%c0_17, %c0_18] : memref<128x16xbf16, #tpu.memory_space<vmem>>, vector<128x16xbf16>
    tpu.vector_store %arg9[%c0_17, %c0_18], %21 {strides = array<i32>} : memref<128x16xbf16, #tpu.memory_space<vmem>>, vector<128x16xbf16>,
    return
  }
  func.func @transform_0(%arg0: i32) -> (i32, i32) {
    %c0_i32 = arith.constant 0 : i32
    %c0_i32_0 = arith.constant 0 : i32
    return %arg0, %c0_i32 : i32, i32
  }
  func.func @transform_1(%arg0: i32) -> (i32, i32) {
    %c0_i32 = arith.constant 0 : i32
    %c0_i32_0 = arith.constant 0 : i32
    %c0_i32_1 = arith.constant 0 : i32
    return %c0_i32, %c0_i32_0 : i32, i32
  }
  func.func @transform_2(%arg0: i32) -> (i32, i32) {
    %c0_i32 = arith.constant 0 : i32
    %c0_i32_0 = arith.constant 0 : i32
    %c0_i32_1 = arith.constant 0 : i32
    return %c0_i32, %c0_i32_0 : i32, i32
  }
  func.func @transform_3(%arg0: i32) -> (i32, i32) {
    %c0_i32 = arith.constant 0 : i32
    %c0_i32_0 = arith.constant 0 : i32
    %c0_i32_1 = arith.constant 0 : i32
    return %c0_i32, %c0_i32_0 : i32, i32
  }
  func.func @transform_4(%arg0: i32) -> (i32, i32) {
    %c0_i32 = arith.constant 0 : i32
    %c0_i32_0 = arith.constant 0 : i32
    return %arg0, %c0_i32 : i32, i32
  }
  func.func @transform_5(%arg0: i32) -> (i32, i32) {
    %c0_i32 = arith.constant 0 : i32
    %c0_i32_0 = arith.constant 0 : i32
    %c0_i32_1 = arith.constant 0 : i32
    return %c0_i32, %c0_i32_0 : i32, i32
  }
  func.func @transform_6(%arg0: i32) -> (i32, i32) {
    %c0_i32 = arith.constant 0 : i32
    %c0_i32_0 = arith.constant 0 : i32
    %c0_i32_1 = arith.constant 0 : i32
    return %c0_i32, %c0_i32_0 : i32, i32
  }
  func.func @transform_7(%arg0: i32) -> (i32, i32) {
    %c0_i32 = arith.constant 0 : i32
    %c0_i32_0 = arith.constant 0 : i32
    %c0_i32_1 = arith.constant 0 : i32
    return %c0_i32, %c0_i32_0 : i32, i32
  }
  func.func @transform_8(%arg0: i32) -> (i32, i32) {
    %c0_i32 = arith.constant 0 : i32
    %c0_i32_0 = arith.constant 0 : i32
    return %arg0, %c0_i32 : i32, i32
  }
}

module attributes {stable_mosaic.version = 11 : i64} {
  func.func @_mm_bn_kernel(%arg0: i32, %arg1: memref<128x16xbf16, #tpu.memory_space<vmem>>, %arg2: memref<16x16xbf16, #tpu.memory_space<vmem>>, %arg3: memref<1x16xf32, #tpu.memory_space<vmem>>, %arg4: memref<1x16xf32, #tpu.memory_space<vmem>>, %arg5: memref<128x16xbf16, #tpu.memory_space<vmem>>) attributes {dimension_semantics = [#tpu.dimension_semantics<parallel>], iteration_bounds = array<i64: 1>, scalar_prefetch = 0 : i64, scratch_operands = 0 : i64, tpu.core_type = #tpu.core_type<tc>, window_params = [{transform_indices = @transform_0, window_bounds = array<i64: 128, 16>}, {pipeline_mode = #tpu.pipeline_mode<synchronous>, transform_indices = @transform_1, window_bounds = array<i64: 16, 16>}, {pipeline_mode = #tpu.pipeline_mode<synchronous>, transform_indices = @transform_2, window_bounds = array<i64: 1, 16>}, {pipeline_mode = #tpu.pipeline_mode<synchronous>, transform_indices = @transform_3, window_bounds = array<i64: 1, 16>}, {transform_indices = @transform_4, window_bounds = array<i64: 128, 16>}]} {
    %c0 = arith.constant 0 : index
    %c0_0 = arith.constant 0 : index
    %0 = vector.load %arg1[%c0, %c0_0] : memref<128x16xbf16, #tpu.memory_space<vmem>>, vector<128x16xbf16>
    %c0_1 = arith.constant 0 : index
    %c0_2 = arith.constant 0 : index
    %1 = vector.load %arg2[%c0_1, %c0_2] : memref<16x16xbf16, #tpu.memory_space<vmem>>, vector<16x16xbf16>
    %cst = arith.constant dense<0.000000e+00> : vector<128x16xf32>
    %2 = tpu.matmul %0, %1, %cst {dimension_numbers = #tpu.dot_dimension_numbers<[1], [0], [0], [1], [0, 0, 1, 1], [], []>} : vector<128x16xbf16>, vector<16x16xbf16>, vector<128x16xf32> -> vector<128x16xf32>
    %c0_3 = arith.constant 0 : index
    %c0_4 = arith.constant 0 : index
    %3 = vector.load %arg3[%c0_3, %c0_4] : memref<1x16xf32, #tpu.memory_space<vmem>>, vector<1x16xf32>
    %4 = vector.broadcast %3 : vector<1x16xf32> to vector<128x16xf32>
    %5 = arith.mulf %2, %4 : vector<128x16xf32>
    %c0_5 = arith.constant 0 : index
    %c0_6 = arith.constant 0 : index
    %6 = vector.load %arg4[%c0_5, %c0_6] : memref<1x16xf32, #tpu.memory_space<vmem>>, vector<1x16xf32>
    %7 = vector.broadcast %6 : vector<1x16xf32> to vector<128x16xf32>
    %8 = arith.addf %5, %7 : vector<128x16xf32>
    %cst_7 = arith.constant 0.000000e+00 : f32
    %9 = vector.broadcast %cst_7 : f32 to vector<128x16xf32>
    %10 = arith.maximumf %8, %9 : vector<128x16xf32>
    %11 = arith.truncf %10 : vector<128x16xf32> to vector<128x16xbf16>
    %c0_8 = arith.constant 0 : index
    %c0_9 = arith.constant 0 : index
    %12 = vector.load %arg5[%c0_8, %c0_9] : memref<128x16xbf16, #tpu.memory_space<vmem>>, vector<128x16xbf16>
    tpu.vector_store %arg5[%c0_8, %c0_9], %11 {strides = array<i32>} : memref<128x16xbf16, #tpu.memory_space<vmem>>, vector<128x16xbf16>,
    return
  }
  func.func @transform_0(%arg0: i32) -> (i32, i32) {
    %c0_i32 = arith.constant 0 : i32
    %c0_i32_0 = arith.constant 0 : i32
    return %arg0, %c0_i32 : i32, i32
  }
  func.func @transform_1(%arg0: i32) -> (i32, i32) {
    %c0_i32 = arith.constant 0 : i32
    %c0_i32_0 = arith.constant 0 : i32
    %c0_i32_1 = arith.constant 0 : i32
    return %c0_i32, %c0_i32_0 : i32, i32
  }
  func.func @transform_2(%arg0: i32) -> (i32, i32) {
    %c0_i32 = arith.constant 0 : i32
    %c0_i32_0 = arith.constant 0 : i32
    %c0_i32_1 = arith.constant 0 : i32
    return %c0_i32, %c0_i32_0 : i32, i32
  }
  func.func @transform_3(%arg0: i32) -> (i32, i32) {
    %c0_i32 = arith.constant 0 : i32
    %c0_i32_0 = arith.constant 0 : i32
    %c0_i32_1 = arith.constant 0 : i32
    return %c0_i32, %c0_i32_0 : i32, i32
  }
  func.func @transform_4(%arg0: i32) -> (i32, i32) {
    %c0_i32 = arith.constant 0 : i32
    %c0_i32_0 = arith.constant 0 : i32
    return %arg0, %c0_i32 : i32, i32
  }
}

module attributes {stable_mosaic.version = 11 : i64} {
  func.func @_direct_conv_kernel(%arg0: i32, %arg1: i32, %arg2: memref<4x1x5x17x16xbf16, #tpu.memory_space<vmem>>, %arg3: memref<9x1x16x16xbf16, #tpu.memory_space<vmem>>, %arg4: memref<1x16xf32, #tpu.memory_space<vmem>>, %arg5: memref<1x16xf32, #tpu.memory_space<vmem>>, %arg6: memref<1x64x16xbf16, #tpu.memory_space<vmem>>, %arg7: memref<64x16xf32, #tpu.memory_space<vmem>>) attributes {dimension_semantics = [#tpu.dimension_semantics<parallel>, #tpu.dimension_semantics<parallel>], iteration_bounds = array<i64: 2, 1>, scalar_prefetch = 0 : i64, scratch_operands = 1 : i64, tpu.core_type = #tpu.core_type<tc>, window_params = [{transform_indices = @transform_0, window_bounds = array<i64: 4, 1, 5, 17, 16>}, {transform_indices = @transform_1, window_bounds = array<i64: 9, 1, 16, 16>}, {transform_indices = @transform_2, window_bounds = array<i64: 1, 16>}, {transform_indices = @transform_3, window_bounds = array<i64: 1, 16>}, {transform_indices = @transform_4, window_bounds = array<i64: 1, 64, 16>}]} {
    %cst = arith.constant 0.000000e+00 : f32
    %0 = vector.broadcast %cst : f32 to vector<64x16xf32>
    %c0 = arith.constant 0 : index
    %c0_0 = arith.constant 0 : index
    %1 = vector.load %arg7[%c0, %c0_0] : memref<64x16xf32, #tpu.memory_space<vmem>>, vector<64x16xf32>
    tpu.vector_store %arg7[%c0, %c0_0], %0 {strides = array<i32>} : memref<64x16xf32, #tpu.memory_space<vmem>>, vector<64x16xf32>,
    %c0_1 = arith.constant 0 : index
    %c0_2 = arith.constant 0 : index
    %c0_3 = arith.constant 0 : index
    %c0_4 = arith.constant 0 : index
    %c0_5 = arith.constant 0 : index
    %2 = vector.load %arg2[%c0_1, %c0_2, %c0_3, %c0_4, %c0_5] : memref<4x1x5x17x16xbf16, #tpu.memory_space<vmem>>, vector<1x1x5x16x16xbf16>
    %3 = vector.shape_cast %2 : vector<1x1x5x16x16xbf16> to vector<5x16x16xbf16>
    %4 = vector.extract_strided_slice %3 {offsets = [0, 0, 0], sizes = [4, 16, 16], strides = [1, 1, 1]} : vector<5x16x16xbf16> to vector<4x16x16xbf16>
    %5 = vector.shape_cast %4 : vector<4x16x16xbf16> to vector<64x16xbf16>
    %c0_6 = arith.constant 0 : index
    %c0_7 = arith.constant 0 : index
    %6 = vector.load %arg7[%c0_6, %c0_7] : memref<64x16xf32, #tpu.memory_space<vmem>>, vector<64x16xf32>
    %c0_8 = arith.constant 0 : index
    %c0_9 = arith.constant 0 : index
    %c0_10 = arith.constant 0 : index
    %c0_11 = arith.constant 0 : index
    %7 = vector.load %arg3[%c0_8, %c0_9, %c0_10, %c0_11] : memref<9x1x16x16xbf16, #tpu.memory_space<vmem>>, vector<1x1x16x16xbf16>
    %8 = vector.shape_cast %7 : vector<1x1x16x16xbf16> to vector<16x16xbf16>
    %cst_12 = arith.constant dense<0.000000e+00> : vector<64x16xf32>
    %9 = tpu.matmul %5, %8, %cst_12 {dimension_numbers = #tpu.dot_dimension_numbers<[1], [0], [0], [1], [0, 0, 1, 1], [], []>} : vector<64x16xbf16>, vector<16x16xbf16>, vector<64x16xf32> -> vector<64x16xf32>
    %10 = arith.addf %6, %9 : vector<64x16xf32>
    %c0_13 = arith.constant 0 : index
    %c0_14 = arith.constant 0 : index
    %11 = vector.load %arg7[%c0_13, %c0_14] : memref<64x16xf32, #tpu.memory_space<vmem>>, vector<64x16xf32>
    tpu.vector_store %arg7[%c0_13, %c0_14], %10 {strides = array<i32>} : memref<64x16xf32, #tpu.memory_space<vmem>>, vector<64x16xf32>,
    %12 = vector.extract_strided_slice %3 {offsets = [1, 0, 0], sizes = [4, 16, 16], strides = [1, 1, 1]} : vector<5x16x16xbf16> to vector<4x16x16xbf16>
    %13 = vector.shape_cast %12 : vector<4x16x16xbf16> to vector<64x16xbf16>
    %c0_15 = arith.constant 0 : index
    %c0_16 = arith.constant 0 : index
    %14 = vector.load %arg7[%c0_15, %c0_16] : memref<64x16xf32, #tpu.memory_space<vmem>>, vector<64x16xf32>
    %c6 = arith.constant 6 : index
    %c0_17 = arith.constant 0 : index
    %c0_18 = arith.constant 0 : index
    %c0_19 = arith.constant 0 : index
    %15 = vector.load %arg3[%c6, %c0_17, %c0_18, %c0_19] : memref<9x1x16x16xbf16, #tpu.memory_space<vmem>>, vector<1x1x16x16xbf16>
    %16 = vector.shape_cast %15 : vector<1x1x16x16xbf16> to vector<16x16xbf16>
    %cst_20 = arith.constant dense<0.000000e+00> : vector<64x16xf32>
    %17 = tpu.matmul %13, %16, %cst_20 {dimension_numbers = #tpu.dot_dimension_numbers<[1], [0], [0], [1], [0, 0, 1, 1], [], []>} : vector<64x16xbf16>, vector<16x16xbf16>, vector<64x16xf32> -> vector<64x16xf32>
    %18 = arith.addf %14, %17 : vector<64x16xf32>
    %c0_21 = arith.constant 0 : index
    %c0_22 = arith.constant 0 : index
    %19 = vector.load %arg7[%c0_21, %c0_22] : memref<64x16xf32, #tpu.memory_space<vmem>>, vector<64x16xf32>
    tpu.vector_store %arg7[%c0_21, %c0_22], %18 {strides = array<i32>} : memref<64x16xf32, #tpu.memory_space<vmem>>, vector<64x16xf32>,
    %c0_23 = arith.constant 0 : index
    %c0_24 = arith.constant 0 : index
    %c0_25 = arith.constant 0 : index
    %c1 = arith.constant 1 : index
    %c0_26 = arith.constant 0 : index
    %20 = vector.load %arg2[%c0_23, %c0_24, %c0_25, %c1, %c0_26] : memref<4x1x5x17x16xbf16, #tpu.memory_space<vmem>>, vector<1x1x5x16x16xbf16>
    %21 = vector.shape_cast %20 : vector<1x1x5x16x16xbf16> to vector<5x16x16xbf16>
    %22 = vector.extract_strided_slice %21 {offsets = [0, 0, 0], sizes = [4, 16, 16], strides = [1, 1, 1]} : vector<5x16x16xbf16> to vector<4x16x16xbf16>
    %23 = vector.shape_cast %22 : vector<4x16x16xbf16> to vector<64x16xbf16>
    %c0_27 = arith.constant 0 : index
    %c0_28 = arith.constant 0 : index
    %24 = vector.load %arg7[%c0_27, %c0_28] : memref<64x16xf32, #tpu.memory_space<vmem>>, vector<64x16xf32>
    %c2 = arith.constant 2 : index
    %c0_29 = arith.constant 0 : index
    %c0_30 = arith.constant 0 : index
    %c0_31 = arith.constant 0 : index
    %25 = vector.load %arg3[%c2, %c0_29, %c0_30, %c0_31] : memref<9x1x16x16xbf16, #tpu.memory_space<vmem>>, vector<1x1x16x16xbf16>
    %26 = vector.shape_cast %25 : vector<1x1x16x16xbf16> to vector<16x16xbf16>
    %cst_32 = arith.constant dense<0.000000e+00> : vector<64x16xf32>
    %27 = tpu.matmul %23, %26, %cst_32 {dimension_numbers = #tpu.dot_dimension_numbers<[1], [0], [0], [1], [0, 0, 1, 1], [], []>} : vector<64x16xbf16>, vector<16x16xbf16>, vector<64x16xf32> -> vector<64x16xf32>
    %28 = arith.addf %24, %27 : vector<64x16xf32>
    %c0_33 = arith.constant 0 : index
    %c0_34 = arith.constant 0 : index
    %29 = vector.load %arg7[%c0_33, %c0_34] : memref<64x16xf32, #tpu.memory_space<vmem>>, vector<64x16xf32>
    tpu.vector_store %arg7[%c0_33, %c0_34], %28 {strides = array<i32>} : memref<64x16xf32, #tpu.memory_space<vmem>>, vector<64x16xf32>,
    %30 = vector.extract_strided_slice %21 {offsets = [1, 0, 0], sizes = [4, 16, 16], strides = [1, 1, 1]} : vector<5x16x16xbf16> to vector<4x16x16xbf16>
    %31 = vector.shape_cast %30 : vector<4x16x16xbf16> to vector<64x16xbf16>
    %c0_35 = arith.constant 0 : index
    %c0_36 = arith.constant 0 : index
    %32 = vector.load %arg7[%c0_35, %c0_36] : memref<64x16xf32, #tpu.memory_space<vmem>>, vector<64x16xf32>
    %c8 = arith.constant 8 : index
    %c0_37 = arith.constant 0 : index
    %c0_38 = arith.constant 0 : index
    %c0_39 = arith.constant 0 : index
    %33 = vector.load %arg3[%c8, %c0_37, %c0_38, %c0_39] : memref<9x1x16x16xbf16, #tpu.memory_space<vmem>>, vector<1x1x16x16xbf16>
    %34 = vector.shape_cast %33 : vector<1x1x16x16xbf16> to vector<16x16xbf16>
    %cst_40 = arith.constant dense<0.000000e+00> : vector<64x16xf32>
    %35 = tpu.matmul %31, %34, %cst_40 {dimension_numbers = #tpu.dot_dimension_numbers<[1], [0], [0], [1], [0, 0, 1, 1], [], []>} : vector<64x16xbf16>, vector<16x16xbf16>, vector<64x16xf32> -> vector<64x16xf32>
    %36 = arith.addf %32, %35 : vector<64x16xf32>
    %c0_41 = arith.constant 0 : index
    %c0_42 = arith.constant 0 : index
    %37 = vector.load %arg7[%c0_41, %c0_42] : memref<64x16xf32, #tpu.memory_space<vmem>>, vector<64x16xf32>
    tpu.vector_store %arg7[%c0_41, %c0_42], %36 {strides = array<i32>} : memref<64x16xf32, #tpu.memory_space<vmem>>, vector<64x16xf32>,
    %c1_43 = arith.constant 1 : index
    %c0_44 = arith.constant 0 : index
    %c0_45 = arith.constant 0 : index
    %c0_46 = arith.constant 0 : index
    %c0_47 = arith.constant 0 : index
    %38 = vector.load %arg2[%c1_43, %c0_44, %c0_45, %c0_46, %c0_47] : memref<4x1x5x17x16xbf16, #tpu.memory_space<vmem>>, vector<1x1x5x16x16xbf16>
    %39 = vector.shape_cast %38 : vector<1x1x5x16x16xbf16> to vector<5x16x16xbf16>
    %40 = vector.extract_strided_slice %39 {offsets = [0, 0, 0], sizes = [4, 16, 16], strides = [1, 1, 1]} : vector<5x16x16xbf16> to vector<4x16x16xbf16>
    %41 = vector.shape_cast %40 : vector<4x16x16xbf16> to vector<64x16xbf16>
    %c0_48 = arith.constant 0 : index
    %c0_49 = arith.constant 0 : index
    %42 = vector.load %arg7[%c0_48, %c0_49] : memref<64x16xf32, #tpu.memory_space<vmem>>, vector<64x16xf32>
    %c1_50 = arith.constant 1 : index
    %c0_51 = arith.constant 0 : index
    %c0_52 = arith.constant 0 : index
    %c0_53 = arith.constant 0 : index
    %43 = vector.load %arg3[%c1_50, %c0_51, %c0_52, %c0_53] : memref<9x1x16x16xbf16, #tpu.memory_space<vmem>>, vector<1x1x16x16xbf16>
    %44 = vector.shape_cast %43 : vector<1x1x16x16xbf16> to vector<16x16xbf16>
    %cst_54 = arith.constant dense<0.000000e+00> : vector<64x16xf32>
    %45 = tpu.matmul %41, %44, %cst_54 {dimension_numbers = #tpu.dot_dimension_numbers<[1], [0], [0], [1], [0, 0, 1, 1], [], []>} : vector<64x16xbf16>, vector<16x16xbf16>, vector<64x16xf32> -> vector<64x16xf32>
    %46 = arith.addf %42, %45 : vector<64x16xf32>
    %c0_55 = arith.constant 0 : index
    %c0_56 = arith.constant 0 : index
    %47 = vector.load %arg7[%c0_55, %c0_56] : memref<64x16xf32, #tpu.memory_space<vmem>>, vector<64x16xf32>
    tpu.vector_store %arg7[%c0_55, %c0_56], %46 {strides = array<i32>} : memref<64x16xf32, #tpu.memory_space<vmem>>, vector<64x16xf32>,
    %48 = vector.extract_strided_slice %39 {offsets = [1, 0, 0], sizes = [4, 16, 16], strides = [1, 1, 1]} : vector<5x16x16xbf16> to vector<4x16x16xbf16>
    %49 = vector.shape_cast %48 : vector<4x16x16xbf16> to vector<64x16xbf16>
    %c0_57 = arith.constant 0 : index
    %c0_58 = arith.constant 0 : index
    %50 = vector.load %arg7[%c0_57, %c0_58] : memref<64x16xf32, #tpu.memory_space<vmem>>, vector<64x16xf32>
    %c7 = arith.constant 7 : index
    %c0_59 = arith.constant 0 : index
    %c0_60 = arith.constant 0 : index
    %c0_61 = arith.constant 0 : index
    %51 = vector.load %arg3[%c7, %c0_59, %c0_60, %c0_61] : memref<9x1x16x16xbf16, #tpu.memory_space<vmem>>, vector<1x1x16x16xbf16>
    %52 = vector.shape_cast %51 : vector<1x1x16x16xbf16> to vector<16x16xbf16>
    %cst_62 = arith.constant dense<0.000000e+00> : vector<64x16xf32>
    %53 = tpu.matmul %49, %52, %cst_62 {dimension_numbers = #tpu.dot_dimension_numbers<[1], [0], [0], [1], [0, 0, 1, 1], [], []>} : vector<64x16xbf16>, vector<16x16xbf16>, vector<64x16xf32> -> vector<64x16xf32>
    %54 = arith.addf %50, %53 : vector<64x16xf32>
    %c0_63 = arith.constant 0 : index
    %c0_64 = arith.constant 0 : index
    %55 = vector.load %arg7[%c0_63, %c0_64] : memref<64x16xf32, #tpu.memory_space<vmem>>, vector<64x16xf32>
    tpu.vector_store %arg7[%c0_63, %c0_64], %54 {strides = array<i32>} : memref<64x16xf32, #tpu.memory_space<vmem>>, vector<64x16xf32>,
    %c2_65 = arith.constant 2 : index
    %c0_66 = arith.constant 0 : index
    %c0_67 = arith.constant 0 : index
    %c0_68 = arith.constant 0 : index
    %c0_69 = arith.constant 0 : index
    %56 = vector.load %arg2[%c2_65, %c0_66, %c0_67, %c0_68, %c0_69] : memref<4x1x5x17x16xbf16, #tpu.memory_space<vmem>>, vector<1x1x5x16x16xbf16>
    %57 = vector.shape_cast %56 : vector<1x1x5x16x16xbf16> to vector<5x16x16xbf16>
    %58 = vector.extract_strided_slice %57 {offsets = [0, 0, 0], sizes = [4, 16, 16], strides = [1, 1, 1]} : vector<5x16x16xbf16> to vector<4x16x16xbf16>
    %59 = vector.shape_cast %58 : vector<4x16x16xbf16> to vector<64x16xbf16>
    %c0_70 = arith.constant 0 : index
    %c0_71 = arith.constant 0 : index
    %60 = vector.load %arg7[%c0_70, %c0_71] : memref<64x16xf32, #tpu.memory_space<vmem>>, vector<64x16xf32>
    %c3 = arith.constant 3 : index
    %c0_72 = arith.constant 0 : index
    %c0_73 = arith.constant 0 : index
    %c0_74 = arith.constant 0 : index
    %61 = vector.load %arg3[%c3, %c0_72, %c0_73, %c0_74] : memref<9x1x16x16xbf16, #tpu.memory_space<vmem>>, vector<1x1x16x16xbf16>
    %62 = vector.shape_cast %61 : vector<1x1x16x16xbf16> to vector<16x16xbf16>
    %cst_75 = arith.constant dense<0.000000e+00> : vector<64x16xf32>
    %63 = tpu.matmul %59, %62, %cst_75 {dimension_numbers = #tpu.dot_dimension_numbers<[1], [0], [0], [1], [0, 0, 1, 1], [], []>} : vector<64x16xbf16>, vector<16x16xbf16>, vector<64x16xf32> -> vector<64x16xf32>
    %64 = arith.addf %60, %63 : vector<64x16xf32>
    %c0_76 = arith.constant 0 : index
    %c0_77 = arith.constant 0 : index
    %65 = vector.load %arg7[%c0_76, %c0_77] : memref<64x16xf32, #tpu.memory_space<vmem>>, vector<64x16xf32>
    tpu.vector_store %arg7[%c0_76, %c0_77], %64 {strides = array<i32>} : memref<64x16xf32, #tpu.memory_space<vmem>>, vector<64x16xf32>,
    %c2_78 = arith.constant 2 : index
    %c0_79 = arith.constant 0 : index
    %c0_80 = arith.constant 0 : index
    %c1_81 = arith.constant 1 : index
    %c0_82 = arith.constant 0 : index
    %66 = vector.load %arg2[%c2_78, %c0_79, %c0_80, %c1_81, %c0_82] : memref<4x1x5x17x16xbf16, #tpu.memory_space<vmem>>, vector<1x1x5x16x16xbf16>
    %67 = vector.shape_cast %66 : vector<1x1x5x16x16xbf16> to vector<5x16x16xbf16>
    %68 = vector.extract_strided_slice %67 {offsets = [0, 0, 0], sizes = [4, 16, 16], strides = [1, 1, 1]} : vector<5x16x16xbf16> to vector<4x16x16xbf16>
    %69 = vector.shape_cast %68 : vector<4x16x16xbf16> to vector<64x16xbf16>
    %c0_83 = arith.constant 0 : index
    %c0_84 = arith.constant 0 : index
    %70 = vector.load %arg7[%c0_83, %c0_84] : memref<64x16xf32, #tpu.memory_space<vmem>>, vector<64x16xf32>
    %c5 = arith.constant 5 : index
    %c0_85 = arith.constant 0 : index
    %c0_86 = arith.constant 0 : index
    %c0_87 = arith.constant 0 : index
    %71 = vector.load %arg3[%c5, %c0_85, %c0_86, %c0_87] : memref<9x1x16x16xbf16, #tpu.memory_space<vmem>>, vector<1x1x16x16xbf16>
    %72 = vector.shape_cast %71 : vector<1x1x16x16xbf16> to vector<16x16xbf16>
    %cst_88 = arith.constant dense<0.000000e+00> : vector<64x16xf32>
    %73 = tpu.matmul %69, %72, %cst_88 {dimension_numbers = #tpu.dot_dimension_numbers<[1], [0], [0], [1], [0, 0, 1, 1], [], []>} : vector<64x16xbf16>, vector<16x16xbf16>, vector<64x16xf32> -> vector<64x16xf32>
    %74 = arith.addf %70, %73 : vector<64x16xf32>
    %c0_89 = arith.constant 0 : index
    %c0_90 = arith.constant 0 : index
    %75 = vector.load %arg7[%c0_89, %c0_90] : memref<64x16xf32, #tpu.memory_space<vmem>>, vector<64x16xf32>
    tpu.vector_store %arg7[%c0_89, %c0_90], %74 {strides = array<i32>} : memref<64x16xf32, #tpu.memory_space<vmem>>, vector<64x16xf32>,
    %c3_91 = arith.constant 3 : index
    %c0_92 = arith.constant 0 : index
    %c0_93 = arith.constant 0 : index
    %c0_94 = arith.constant 0 : index
    %c0_95 = arith.constant 0 : index
    %76 = vector.load %arg2[%c3_91, %c0_92, %c0_93, %c0_94, %c0_95] : memref<4x1x5x17x16xbf16, #tpu.memory_space<vmem>>, vector<1x1x5x16x16xbf16>
    %77 = vector.shape_cast %76 : vector<1x1x5x16x16xbf16> to vector<5x16x16xbf16>
    %78 = vector.extract_strided_slice %77 {offsets = [0, 0, 0], sizes = [4, 16, 16], strides = [1, 1, 1]} : vector<5x16x16xbf16> to vector<4x16x16xbf16>
    %79 = vector.shape_cast %78 : vector<4x16x16xbf16> to vector<64x16xbf16>
    %c0_96 = arith.constant 0 : index
    %c0_97 = arith.constant 0 : index
    %80 = vector.load %arg7[%c0_96, %c0_97] : memref<64x16xf32, #tpu.memory_space<vmem>>, vector<64x16xf32>
    %c4 = arith.constant 4 : index
    %c0_98 = arith.constant 0 : index
    %c0_99 = arith.constant 0 : index
    %c0_100 = arith.constant 0 : index
    %81 = vector.load %arg3[%c4, %c0_98, %c0_99, %c0_100] : memref<9x1x16x16xbf16, #tpu.memory_space<vmem>>, vector<1x1x16x16xbf16>
    %82 = vector.shape_cast %81 : vector<1x1x16x16xbf16> to vector<16x16xbf16>
    %cst_101 = arith.constant dense<0.000000e+00> : vector<64x16xf32>
    %83 = tpu.matmul %79, %82, %cst_101 {dimension_numbers = #tpu.dot_dimension_numbers<[1], [0], [0], [1], [0, 0, 1, 1], [], []>} : vector<64x16xbf16>, vector<16x16xbf16>, vector<64x16xf32> -> vector<64x16xf32>
    %84 = arith.addf %80, %83 : vector<64x16xf32>
    %c0_102 = arith.constant 0 : index
    %c0_103 = arith.constant 0 : index
    %85 = vector.load %arg7[%c0_102, %c0_103] : memref<64x16xf32, #tpu.memory_space<vmem>>, vector<64x16xf32>
    tpu.vector_store %arg7[%c0_102, %c0_103], %84 {strides = array<i32>} : memref<64x16xf32, #tpu.memory_space<vmem>>, vector<64x16xf32>,
    %c0_104 = arith.constant 0 : index
    %c0_105 = arith.constant 0 : index
    %86 = vector.load %arg7[%c0_104, %c0_105] : memref<64x16xf32, #tpu.memory_space<vmem>>, vector<64x16xf32>
    %c0_106 = arith.constant 0 : index
    %c0_107 = arith.constant 0 : index
    %87 = vector.load %arg4[%c0_106, %c0_107] : memref<1x16xf32, #tpu.memory_space<vmem>>, vector<1x16xf32>
    %88 = vector.broadcast %87 : vector<1x16xf32> to vector<64x16xf32>
    %89 = arith.mulf %86, %88 : vector<64x16xf32>
    %c0_108 = arith.constant 0 : index
    %c0_109 = arith.constant 0 : index
    %90 = vector.load %arg5[%c0_108, %c0_109] : memref<1x16xf32, #tpu.memory_space<vmem>>, vector<1x16xf32>
    %91 = vector.broadcast %90 : vector<1x16xf32> to vector<64x16xf32>
    %92 = arith.addf %89, %91 : vector<64x16xf32>
    %cst_110 = arith.constant 0.000000e+00 : f32
    %93 = vector.broadcast %cst_110 : f32 to vector<64x16xf32>
    %94 = arith.maximumf %92, %93 : vector<64x16xf32>
    %95 = arith.truncf %94 : vector<64x16xf32> to vector<64x16xbf16>
    %c0_111 = arith.constant 0 : index
    %c0_112 = arith.constant 0 : index
    %c0_113 = arith.constant 0 : index
    %96 = vector.load %arg6[%c0_111, %c0_112, %c0_113] : memref<1x64x16xbf16, #tpu.memory_space<vmem>>, vector<1x64x16xbf16>
    %97 = vector.shape_cast %96 : vector<1x64x16xbf16> to vector<64x16xbf16>
    %98 = vector.shape_cast %95 : vector<64x16xbf16> to vector<1x64x16xbf16>
    tpu.vector_store %arg6[%c0_111, %c0_112, %c0_113], %98 {strides = array<i32>} : memref<1x64x16xbf16, #tpu.memory_space<vmem>>, vector<1x64x16xbf16>,
    return
  }
  func.func @transform_0(%arg0: i32, %arg1: i32) -> (i32, i32, i32, i32, i32) {
    %c0_i32 = arith.constant 0 : i32
    %c0_i32_0 = arith.constant 0 : i32
    %c0_i32_1 = arith.constant 0 : i32
    %c0_i32_2 = arith.constant 0 : i32
    return %c0_i32, %arg0, %c0_i32_0, %c0_i32_1, %arg1 : i32, i32, i32, i32, i32
  }
  func.func @transform_1(%arg0: i32, %arg1: i32) -> (i32, i32, i32, i32) {
    %c0_i32 = arith.constant 0 : i32
    %c0_i32_0 = arith.constant 0 : i32
    %c0_i32_1 = arith.constant 0 : i32
    %c0_i32_2 = arith.constant 0 : i32
    return %c0_i32, %arg1, %c0_i32_0, %c0_i32_1 : i32, i32, i32, i32
  }
  func.func @transform_2(%arg0: i32, %arg1: i32) -> (i32, i32) {
    %c0_i32 = arith.constant 0 : i32
    %c0_i32_0 = arith.constant 0 : i32
    return %c0_i32, %arg1 : i32, i32
  }
  func.func @transform_3(%arg0: i32, %arg1: i32) -> (i32, i32) {
    %c0_i32 = arith.constant 0 : i32
    %c0_i32_0 = arith.constant 0 : i32
    return %c0_i32, %arg1 : i32, i32
  }
  func.func @transform_4(%arg0: i32, %arg1: i32) -> (i32, i32, i32) {
    %c0_i32 = arith.constant 0 : i32
    %c0_i32_0 = arith.constant 0 : i32
    return %arg0, %c0_i32, %arg1 : i32, i32, i32
  }
}

module attributes {stable_mosaic.version = 11 : i64} {
  func.func @_mm2_bn_kernel(%arg0: i32, %arg1: memref<32x16xbf16, #tpu.memory_space<vmem>>, %arg2: memref<16x32xbf16, #tpu.memory_space<vmem>>, %arg3: memref<1x32xf32, #tpu.memory_space<vmem>>, %arg4: memref<1x32xf32, #tpu.memory_space<vmem>>, %arg5: memref<32x16xbf16, #tpu.memory_space<vmem>>, %arg6: memref<16x32xbf16, #tpu.memory_space<vmem>>, %arg7: memref<1x32xf32, #tpu.memory_space<vmem>>, %arg8: memref<1x32xf32, #tpu.memory_space<vmem>>, %arg9: memref<32x32xbf16, #tpu.memory_space<vmem>>) attributes {dimension_semantics = [#tpu.dimension_semantics<parallel>], iteration_bounds = array<i64: 1>, scalar_prefetch = 0 : i64, scratch_operands = 0 : i64, tpu.core_type = #tpu.core_type<tc>, window_params = [{transform_indices = @transform_0, window_bounds = array<i64: 32, 16>}, {pipeline_mode = #tpu.pipeline_mode<synchronous>, transform_indices = @transform_1, window_bounds = array<i64: 16, 32>}, {pipeline_mode = #tpu.pipeline_mode<synchronous>, transform_indices = @transform_2, window_bounds = array<i64: 1, 32>}, {pipeline_mode = #tpu.pipeline_mode<synchronous>, transform_indices = @transform_3, window_bounds = array<i64: 1, 32>}, {transform_indices = @transform_4, window_bounds = array<i64: 32, 16>}, {pipeline_mode = #tpu.pipeline_mode<synchronous>, transform_indices = @transform_5, window_bounds = array<i64: 16, 32>}, {pipeline_mode = #tpu.pipeline_mode<synchronous>, transform_indices = @transform_6, window_bounds = array<i64: 1, 32>}, {pipeline_mode = #tpu.pipeline_mode<synchronous>, transform_indices = @transform_7, window_bounds = array<i64: 1, 32>}, {transform_indices = @transform_8, window_bounds = array<i64: 32, 32>}]} {
    %c0 = arith.constant 0 : index
    %c0_0 = arith.constant 0 : index
    %0 = vector.load %arg1[%c0, %c0_0] : memref<32x16xbf16, #tpu.memory_space<vmem>>, vector<32x16xbf16>
    %c0_1 = arith.constant 0 : index
    %c0_2 = arith.constant 0 : index
    %1 = vector.load %arg2[%c0_1, %c0_2] : memref<16x32xbf16, #tpu.memory_space<vmem>>, vector<16x32xbf16>
    %cst = arith.constant dense<0.000000e+00> : vector<32x32xf32>
    %2 = tpu.matmul %0, %1, %cst {dimension_numbers = #tpu.dot_dimension_numbers<[1], [0], [0], [1], [0, 0, 1, 1], [], []>} : vector<32x16xbf16>, vector<16x32xbf16>, vector<32x32xf32> -> vector<32x32xf32>
    %c0_3 = arith.constant 0 : index
    %c0_4 = arith.constant 0 : index
    %3 = vector.load %arg3[%c0_3, %c0_4] : memref<1x32xf32, #tpu.memory_space<vmem>>, vector<1x32xf32>
    %4 = vector.broadcast %3 : vector<1x32xf32> to vector<32x32xf32>
    %5 = arith.mulf %2, %4 : vector<32x32xf32>
    %c0_5 = arith.constant 0 : index
    %c0_6 = arith.constant 0 : index
    %6 = vector.load %arg4[%c0_5, %c0_6] : memref<1x32xf32, #tpu.memory_space<vmem>>, vector<1x32xf32>
    %7 = vector.broadcast %6 : vector<1x32xf32> to vector<32x32xf32>
    %8 = arith.addf %5, %7 : vector<32x32xf32>
    %c0_7 = arith.constant 0 : index
    %c0_8 = arith.constant 0 : index
    %9 = vector.load %arg5[%c0_7, %c0_8] : memref<32x16xbf16, #tpu.memory_space<vmem>>, vector<32x16xbf16>
    %c0_9 = arith.constant 0 : index
    %c0_10 = arith.constant 0 : index
    %10 = vector.load %arg6[%c0_9, %c0_10] : memref<16x32xbf16, #tpu.memory_space<vmem>>, vector<16x32xbf16>
    %cst_11 = arith.constant dense<0.000000e+00> : vector<32x32xf32>
    %11 = tpu.matmul %9, %10, %cst_11 {dimension_numbers = #tpu.dot_dimension_numbers<[1], [0], [0], [1], [0, 0, 1, 1], [], []>} : vector<32x16xbf16>, vector<16x32xbf16>, vector<32x32xf32> -> vector<32x32xf32>
    %c0_12 = arith.constant 0 : index
    %c0_13 = arith.constant 0 : index
    %12 = vector.load %arg7[%c0_12, %c0_13] : memref<1x32xf32, #tpu.memory_space<vmem>>, vector<1x32xf32>
    %13 = vector.broadcast %12 : vector<1x32xf32> to vector<32x32xf32>
    %14 = arith.mulf %11, %13 : vector<32x32xf32>
    %15 = arith.addf %8, %14 : vector<32x32xf32>
    %c0_14 = arith.constant 0 : index
    %c0_15 = arith.constant 0 : index
    %16 = vector.load %arg8[%c0_14, %c0_15] : memref<1x32xf32, #tpu.memory_space<vmem>>, vector<1x32xf32>
    %17 = vector.broadcast %16 : vector<1x32xf32> to vector<32x32xf32>
    %18 = arith.addf %15, %17 : vector<32x32xf32>
    %cst_16 = arith.constant 0.000000e+00 : f32
    %19 = vector.broadcast %cst_16 : f32 to vector<32x32xf32>
    %20 = arith.maximumf %18, %19 : vector<32x32xf32>
    %21 = arith.truncf %20 : vector<32x32xf32> to vector<32x32xbf16>
    %c0_17 = arith.constant 0 : index
    %c0_18 = arith.constant 0 : index
    %22 = vector.load %arg9[%c0_17, %c0_18] : memref<32x32xbf16, #tpu.memory_space<vmem>>, vector<32x32xbf16>
    tpu.vector_store %arg9[%c0_17, %c0_18], %21 {strides = array<i32>} : memref<32x32xbf16, #tpu.memory_space<vmem>>, vector<32x32xbf16>,
    return
  }
  func.func @transform_0(%arg0: i32) -> (i32, i32) {
    %c0_i32 = arith.constant 0 : i32
    %c0_i32_0 = arith.constant 0 : i32
    return %arg0, %c0_i32 : i32, i32
  }
  func.func @transform_1(%arg0: i32) -> (i32, i32) {
    %c0_i32 = arith.constant 0 : i32
    %c0_i32_0 = arith.constant 0 : i32
    %c0_i32_1 = arith.constant 0 : i32
    return %c0_i32, %c0_i32_0 : i32, i32
  }
  func.func @transform_2(%arg0: i32) -> (i32, i32) {
    %c0_i32 = arith.constant 0 : i32
    %c0_i32_0 = arith.constant 0 : i32
    %c0_i32_1 = arith.constant 0 : i32
    return %c0_i32, %c0_i32_0 : i32, i32
  }
  func.func @transform_3(%arg0: i32) -> (i32, i32) {
    %c0_i32 = arith.constant 0 : i32
    %c0_i32_0 = arith.constant 0 : i32
    %c0_i32_1 = arith.constant 0 : i32
    return %c0_i32, %c0_i32_0 : i32, i32
  }
  func.func @transform_4(%arg0: i32) -> (i32, i32) {
    %c0_i32 = arith.constant 0 : i32
    %c0_i32_0 = arith.constant 0 : i32
    return %arg0, %c0_i32 : i32, i32
  }
  func.func @transform_5(%arg0: i32) -> (i32, i32) {
    %c0_i32 = arith.constant 0 : i32
    %c0_i32_0 = arith.constant 0 : i32
    %c0_i32_1 = arith.constant 0 : i32
    return %c0_i32, %c0_i32_0 : i32, i32
  }
  func.func @transform_6(%arg0: i32) -> (i32, i32) {
    %c0_i32 = arith.constant 0 : i32
    %c0_i32_0 = arith.constant 0 : i32
    %c0_i32_1 = arith.constant 0 : i32
    return %c0_i32, %c0_i32_0 : i32, i32
  }
  func.func @transform_7(%arg0: i32) -> (i32, i32) {
    %c0_i32 = arith.constant 0 : i32
    %c0_i32_0 = arith.constant 0 : i32
    %c0_i32_1 = arith.constant 0 : i32
    return %c0_i32, %c0_i32_0 : i32, i32
  }
  func.func @transform_8(%arg0: i32) -> (i32, i32) {
    %c0_i32 = arith.constant 0 : i32
    %c0_i32_0 = arith.constant 0 : i32
    return %arg0, %c0_i32 : i32, i32
  }
}

module attributes {stable_mosaic.version = 11 : i64} {
  func.func @_mm_bn_kernel(%arg0: i32, %arg1: memref<32x32xbf16, #tpu.memory_space<vmem>>, %arg2: memref<32x32xbf16, #tpu.memory_space<vmem>>, %arg3: memref<1x32xf32, #tpu.memory_space<vmem>>, %arg4: memref<1x32xf32, #tpu.memory_space<vmem>>, %arg5: memref<32x32xbf16, #tpu.memory_space<vmem>>) attributes {dimension_semantics = [#tpu.dimension_semantics<parallel>], iteration_bounds = array<i64: 1>, scalar_prefetch = 0 : i64, scratch_operands = 0 : i64, tpu.core_type = #tpu.core_type<tc>, window_params = [{transform_indices = @transform_0, window_bounds = array<i64: 32, 32>}, {pipeline_mode = #tpu.pipeline_mode<synchronous>, transform_indices = @transform_1, window_bounds = array<i64: 32, 32>}, {pipeline_mode = #tpu.pipeline_mode<synchronous>, transform_indices = @transform_2, window_bounds = array<i64: 1, 32>}, {pipeline_mode = #tpu.pipeline_mode<synchronous>, transform_indices = @transform_3, window_bounds = array<i64: 1, 32>}, {transform_indices = @transform_4, window_bounds = array<i64: 32, 32>}]} {
    %c0 = arith.constant 0 : index
    %c0_0 = arith.constant 0 : index
    %0 = vector.load %arg1[%c0, %c0_0] : memref<32x32xbf16, #tpu.memory_space<vmem>>, vector<32x32xbf16>
    %c0_1 = arith.constant 0 : index
    %c0_2 = arith.constant 0 : index
    %1 = vector.load %arg2[%c0_1, %c0_2] : memref<32x32xbf16, #tpu.memory_space<vmem>>, vector<32x32xbf16>
    %cst = arith.constant dense<0.000000e+00> : vector<32x32xf32>
    %2 = tpu.matmul %0, %1, %cst {dimension_numbers = #tpu.dot_dimension_numbers<[1], [0], [0], [1], [0, 0, 1, 1], [], []>} : vector<32x32xbf16>, vector<32x32xbf16>, vector<32x32xf32> -> vector<32x32xf32>
    %c0_3 = arith.constant 0 : index
    %c0_4 = arith.constant 0 : index
    %3 = vector.load %arg3[%c0_3, %c0_4] : memref<1x32xf32, #tpu.memory_space<vmem>>, vector<1x32xf32>
    %4 = vector.broadcast %3 : vector<1x32xf32> to vector<32x32xf32>
    %5 = arith.mulf %2, %4 : vector<32x32xf32>
    %c0_5 = arith.constant 0 : index
    %c0_6 = arith.constant 0 : index
    %6 = vector.load %arg4[%c0_5, %c0_6] : memref<1x32xf32, #tpu.memory_space<vmem>>, vector<1x32xf32>
    %7 = vector.broadcast %6 : vector<1x32xf32> to vector<32x32xf32>
    %8 = arith.addf %5, %7 : vector<32x32xf32>
    %cst_7 = arith.constant 0.000000e+00 : f32
    %9 = vector.broadcast %cst_7 : f32 to vector<32x32xf32>
    %10 = arith.maximumf %8, %9 : vector<32x32xf32>
    %11 = arith.truncf %10 : vector<32x32xf32> to vector<32x32xbf16>
    %c0_8 = arith.constant 0 : index
    %c0_9 = arith.constant 0 : index
    %12 = vector.load %arg5[%c0_8, %c0_9] : memref<32x32xbf16, #tpu.memory_space<vmem>>, vector<32x32xbf16>
    tpu.vector_store %arg5[%c0_8, %c0_9], %11 {strides = array<i32>} : memref<32x32xbf16, #tpu.memory_space<vmem>>, vector<32x32xbf16>,
    return
  }
  func.func @transform_0(%arg0: i32) -> (i32, i32) {
    %c0_i32 = arith.constant 0 : i32
    %c0_i32_0 = arith.constant 0 : i32
    return %arg0, %c0_i32 : i32, i32
  }
  func.func @transform_1(%arg0: i32) -> (i32, i32) {
    %c0_i32 = arith.constant 0 : i32
    %c0_i32_0 = arith.constant 0 : i32
    %c0_i32_1 = arith.constant 0 : i32
    return %c0_i32, %c0_i32_0 : i32, i32
  }
  func.func @transform_2(%arg0: i32) -> (i32, i32) {
    %c0_i32 = arith.constant 0 : i32
    %c0_i32_0 = arith.constant 0 : i32
    %c0_i32_1 = arith.constant 0 : i32
    return %c0_i32, %c0_i32_0 : i32, i32
  }
  func.func @transform_3(%arg0: i32) -> (i32, i32) {
    %c0_i32 = arith.constant 0 : i32
    %c0_i32_0 = arith.constant 0 : i32
    %c0_i32_1 = arith.constant 0 : i32
    return %c0_i32, %c0_i32_0 : i32, i32
  }
  func.func @transform_4(%arg0: i32) -> (i32, i32) {
    %c0_i32 = arith.constant 0 : i32
    %c0_i32_0 = arith.constant 0 : i32
    return %arg0, %c0_i32 : i32, i32
  }
}

module attributes {stable_mosaic.version = 11 : i64} {
  func.func @_direct_conv_kernel(%arg0: i32, %arg1: i32, %arg2: memref<4x1x3x17x32xbf16, #tpu.memory_space<vmem>>, %arg3: memref<9x1x32x32xbf16, #tpu.memory_space<vmem>>, %arg4: memref<1x32xf32, #tpu.memory_space<vmem>>, %arg5: memref<1x32xf32, #tpu.memory_space<vmem>>, %arg6: memref<1x32x32xbf16, #tpu.memory_space<vmem>>, %arg7: memref<32x32xf32, #tpu.memory_space<vmem>>) attributes {dimension_semantics = [#tpu.dimension_semantics<parallel>, #tpu.dimension_semantics<parallel>], iteration_bounds = array<i64: 2, 1>, scalar_prefetch = 0 : i64, scratch_operands = 1 : i64, tpu.core_type = #tpu.core_type<tc>, window_params = [{transform_indices = @transform_0, window_bounds = array<i64: 4, 1, 3, 17, 32>}, {transform_indices = @transform_1, window_bounds = array<i64: 9, 1, 32, 32>}, {transform_indices = @transform_2, window_bounds = array<i64: 1, 32>}, {transform_indices = @transform_3, window_bounds = array<i64: 1, 32>}, {transform_indices = @transform_4, window_bounds = array<i64: 1, 32, 32>}]} {
    %cst = arith.constant 0.000000e+00 : f32
    %0 = vector.broadcast %cst : f32 to vector<32x32xf32>
    %c0 = arith.constant 0 : index
    %c0_0 = arith.constant 0 : index
    %1 = vector.load %arg7[%c0, %c0_0] : memref<32x32xf32, #tpu.memory_space<vmem>>, vector<32x32xf32>
    tpu.vector_store %arg7[%c0, %c0_0], %0 {strides = array<i32>} : memref<32x32xf32, #tpu.memory_space<vmem>>, vector<32x32xf32>,
    %c0_1 = arith.constant 0 : index
    %c0_2 = arith.constant 0 : index
    %c0_3 = arith.constant 0 : index
    %c0_4 = arith.constant 0 : index
    %c0_5 = arith.constant 0 : index
    %2 = vector.load %arg2[%c0_1, %c0_2, %c0_3, %c0_4, %c0_5] : memref<4x1x3x17x32xbf16, #tpu.memory_space<vmem>>, vector<1x1x3x16x32xbf16>
    %3 = vector.shape_cast %2 : vector<1x1x3x16x32xbf16> to vector<3x16x32xbf16>
    %4 = vector.extract_strided_slice %3 {offsets = [0, 0, 0], sizes = [2, 16, 32], strides = [1, 1, 1]} : vector<3x16x32xbf16> to vector<2x16x32xbf16>
    %5 = vector.shape_cast %4 : vector<2x16x32xbf16> to vector<32x32xbf16>
    %c0_6 = arith.constant 0 : index
    %c0_7 = arith.constant 0 : index
    %6 = vector.load %arg7[%c0_6, %c0_7] : memref<32x32xf32, #tpu.memory_space<vmem>>, vector<32x32xf32>
    %c0_8 = arith.constant 0 : index
    %c0_9 = arith.constant 0 : index
    %c0_10 = arith.constant 0 : index
    %c0_11 = arith.constant 0 : index
    %7 = vector.load %arg3[%c0_8, %c0_9, %c0_10, %c0_11] : memref<9x1x32x32xbf16, #tpu.memory_space<vmem>>, vector<1x1x32x32xbf16>
    %8 = vector.shape_cast %7 : vector<1x1x32x32xbf16> to vector<32x32xbf16>
    %cst_12 = arith.constant dense<0.000000e+00> : vector<32x32xf32>
    %9 = tpu.matmul %5, %8, %cst_12 {dimension_numbers = #tpu.dot_dimension_numbers<[1], [0], [0], [1], [0, 0, 1, 1], [], []>} : vector<32x32xbf16>, vector<32x32xbf16>, vector<32x32xf32> -> vector<32x32xf32>
    %10 = arith.addf %6, %9 : vector<32x32xf32>
    %c0_13 = arith.constant 0 : index
    %c0_14 = arith.constant 0 : index
    %11 = vector.load %arg7[%c0_13, %c0_14] : memref<32x32xf32, #tpu.memory_space<vmem>>, vector<32x32xf32>
    tpu.vector_store %arg7[%c0_13, %c0_14], %10 {strides = array<i32>} : memref<32x32xf32, #tpu.memory_space<vmem>>, vector<32x32xf32>,
    %12 = vector.extract_strided_slice %3 {offsets = [1, 0, 0], sizes = [2, 16, 32], strides = [1, 1, 1]} : vector<3x16x32xbf16> to vector<2x16x32xbf16>
    %13 = vector.shape_cast %12 : vector<2x16x32xbf16> to vector<32x32xbf16>
    %c0_15 = arith.constant 0 : index
    %c0_16 = arith.constant 0 : index
    %14 = vector.load %arg7[%c0_15, %c0_16] : memref<32x32xf32, #tpu.memory_space<vmem>>, vector<32x32xf32>
    %c6 = arith.constant 6 : index
    %c0_17 = arith.constant 0 : index
    %c0_18 = arith.constant 0 : index
    %c0_19 = arith.constant 0 : index
    %15 = vector.load %arg3[%c6, %c0_17, %c0_18, %c0_19] : memref<9x1x32x32xbf16, #tpu.memory_space<vmem>>, vector<1x1x32x32xbf16>
    %16 = vector.shape_cast %15 : vector<1x1x32x32xbf16> to vector<32x32xbf16>
    %cst_20 = arith.constant dense<0.000000e+00> : vector<32x32xf32>
    %17 = tpu.matmul %13, %16, %cst_20 {dimension_numbers = #tpu.dot_dimension_numbers<[1], [0], [0], [1], [0, 0, 1, 1], [], []>} : vector<32x32xbf16>, vector<32x32xbf16>, vector<32x32xf32> -> vector<32x32xf32>
    %18 = arith.addf %14, %17 : vector<32x32xf32>
    %c0_21 = arith.constant 0 : index
    %c0_22 = arith.constant 0 : index
    %19 = vector.load %arg7[%c0_21, %c0_22] : memref<32x32xf32, #tpu.memory_space<vmem>>, vector<32x32xf32>
    tpu.vector_store %arg7[%c0_21, %c0_22], %18 {strides = array<i32>} : memref<32x32xf32, #tpu.memory_space<vmem>>, vector<32x32xf32>,
    %c0_23 = arith.constant 0 : index
    %c0_24 = arith.constant 0 : index
    %c0_25 = arith.constant 0 : index
    %c1 = arith.constant 1 : index
    %c0_26 = arith.constant 0 : index
    %20 = vector.load %arg2[%c0_23, %c0_24, %c0_25, %c1, %c0_26] : memref<4x1x3x17x32xbf16, #tpu.memory_space<vmem>>, vector<1x1x3x16x32xbf16>
    %21 = vector.shape_cast %20 : vector<1x1x3x16x32xbf16> to vector<3x16x32xbf16>
    %22 = vector.extract_strided_slice %21 {offsets = [0, 0, 0], sizes = [2, 16, 32], strides = [1, 1, 1]} : vector<3x16x32xbf16> to vector<2x16x32xbf16>
    %23 = vector.shape_cast %22 : vector<2x16x32xbf16> to vector<32x32xbf16>
    %c0_27 = arith.constant 0 : index
    %c0_28 = arith.constant 0 : index
    %24 = vector.load %arg7[%c0_27, %c0_28] : memref<32x32xf32, #tpu.memory_space<vmem>>, vector<32x32xf32>
    %c2 = arith.constant 2 : index
    %c0_29 = arith.constant 0 : index
    %c0_30 = arith.constant 0 : index
    %c0_31 = arith.constant 0 : index
    %25 = vector.load %arg3[%c2, %c0_29, %c0_30, %c0_31] : memref<9x1x32x32xbf16, #tpu.memory_space<vmem>>, vector<1x1x32x32xbf16>
    %26 = vector.shape_cast %25 : vector<1x1x32x32xbf16> to vector<32x32xbf16>
    %cst_32 = arith.constant dense<0.000000e+00> : vector<32x32xf32>
    %27 = tpu.matmul %23, %26, %cst_32 {dimension_numbers = #tpu.dot_dimension_numbers<[1], [0], [0], [1], [0, 0, 1, 1], [], []>} : vector<32x32xbf16>, vector<32x32xbf16>, vector<32x32xf32> -> vector<32x32xf32>
    %28 = arith.addf %24, %27 : vector<32x32xf32>
    %c0_33 = arith.constant 0 : index
    %c0_34 = arith.constant 0 : index
    %29 = vector.load %arg7[%c0_33, %c0_34] : memref<32x32xf32, #tpu.memory_space<vmem>>, vector<32x32xf32>
    tpu.vector_store %arg7[%c0_33, %c0_34], %28 {strides = array<i32>} : memref<32x32xf32, #tpu.memory_space<vmem>>, vector<32x32xf32>,
    %30 = vector.extract_strided_slice %21 {offsets = [1, 0, 0], sizes = [2, 16, 32], strides = [1, 1, 1]} : vector<3x16x32xbf16> to vector<2x16x32xbf16>
    %31 = vector.shape_cast %30 : vector<2x16x32xbf16> to vector<32x32xbf16>
    %c0_35 = arith.constant 0 : index
    %c0_36 = arith.constant 0 : index
    %32 = vector.load %arg7[%c0_35, %c0_36] : memref<32x32xf32, #tpu.memory_space<vmem>>, vector<32x32xf32>
    %c8 = arith.constant 8 : index
    %c0_37 = arith.constant 0 : index
    %c0_38 = arith.constant 0 : index
    %c0_39 = arith.constant 0 : index
    %33 = vector.load %arg3[%c8, %c0_37, %c0_38, %c0_39] : memref<9x1x32x32xbf16, #tpu.memory_space<vmem>>, vector<1x1x32x32xbf16>
    %34 = vector.shape_cast %33 : vector<1x1x32x32xbf16> to vector<32x32xbf16>
    %cst_40 = arith.constant dense<0.000000e+00> : vector<32x32xf32>
    %35 = tpu.matmul %31, %34, %cst_40 {dimension_numbers = #tpu.dot_dimension_numbers<[1], [0], [0], [1], [0, 0, 1, 1], [], []>} : vector<32x32xbf16>, vector<32x32xbf16>, vector<32x32xf32> -> vector<32x32xf32>
    %36 = arith.addf %32, %35 : vector<32x32xf32>
    %c0_41 = arith.constant 0 : index
    %c0_42 = arith.constant 0 : index
    %37 = vector.load %arg7[%c0_41, %c0_42] : memref<32x32xf32, #tpu.memory_space<vmem>>, vector<32x32xf32>
    tpu.vector_store %arg7[%c0_41, %c0_42], %36 {strides = array<i32>} : memref<32x32xf32, #tpu.memory_space<vmem>>, vector<32x32xf32>,
    %c1_43 = arith.constant 1 : index
    %c0_44 = arith.constant 0 : index
    %c0_45 = arith.constant 0 : index
    %c0_46 = arith.constant 0 : index
    %c0_47 = arith.constant 0 : index
    %38 = vector.load %arg2[%c1_43, %c0_44, %c0_45, %c0_46, %c0_47] : memref<4x1x3x17x32xbf16, #tpu.memory_space<vmem>>, vector<1x1x3x16x32xbf16>
    %39 = vector.shape_cast %38 : vector<1x1x3x16x32xbf16> to vector<3x16x32xbf16>
    %40 = vector.extract_strided_slice %39 {offsets = [0, 0, 0], sizes = [2, 16, 32], strides = [1, 1, 1]} : vector<3x16x32xbf16> to vector<2x16x32xbf16>
    %41 = vector.shape_cast %40 : vector<2x16x32xbf16> to vector<32x32xbf16>
    %c0_48 = arith.constant 0 : index
    %c0_49 = arith.constant 0 : index
    %42 = vector.load %arg7[%c0_48, %c0_49] : memref<32x32xf32, #tpu.memory_space<vmem>>, vector<32x32xf32>
    %c1_50 = arith.constant 1 : index
    %c0_51 = arith.constant 0 : index
    %c0_52 = arith.constant 0 : index
    %c0_53 = arith.constant 0 : index
    %43 = vector.load %arg3[%c1_50, %c0_51, %c0_52, %c0_53] : memref<9x1x32x32xbf16, #tpu.memory_space<vmem>>, vector<1x1x32x32xbf16>
    %44 = vector.shape_cast %43 : vector<1x1x32x32xbf16> to vector<32x32xbf16>
    %cst_54 = arith.constant dense<0.000000e+00> : vector<32x32xf32>
    %45 = tpu.matmul %41, %44, %cst_54 {dimension_numbers = #tpu.dot_dimension_numbers<[1], [0], [0], [1], [0, 0, 1, 1], [], []>} : vector<32x32xbf16>, vector<32x32xbf16>, vector<32x32xf32> -> vector<32x32xf32>
    %46 = arith.addf %42, %45 : vector<32x32xf32>
    %c0_55 = arith.constant 0 : index
    %c0_56 = arith.constant 0 : index
    %47 = vector.load %arg7[%c0_55, %c0_56] : memref<32x32xf32, #tpu.memory_space<vmem>>, vector<32x32xf32>
    tpu.vector_store %arg7[%c0_55, %c0_56], %46 {strides = array<i32>} : memref<32x32xf32, #tpu.memory_space<vmem>>, vector<32x32xf32>,
    %48 = vector.extract_strided_slice %39 {offsets = [1, 0, 0], sizes = [2, 16, 32], strides = [1, 1, 1]} : vector<3x16x32xbf16> to vector<2x16x32xbf16>
    %49 = vector.shape_cast %48 : vector<2x16x32xbf16> to vector<32x32xbf16>
    %c0_57 = arith.constant 0 : index
    %c0_58 = arith.constant 0 : index
    %50 = vector.load %arg7[%c0_57, %c0_58] : memref<32x32xf32, #tpu.memory_space<vmem>>, vector<32x32xf32>
    %c7 = arith.constant 7 : index
    %c0_59 = arith.constant 0 : index
    %c0_60 = arith.constant 0 : index
    %c0_61 = arith.constant 0 : index
    %51 = vector.load %arg3[%c7, %c0_59, %c0_60, %c0_61] : memref<9x1x32x32xbf16, #tpu.memory_space<vmem>>, vector<1x1x32x32xbf16>
    %52 = vector.shape_cast %51 : vector<1x1x32x32xbf16> to vector<32x32xbf16>
    %cst_62 = arith.constant dense<0.000000e+00> : vector<32x32xf32>
    %53 = tpu.matmul %49, %52, %cst_62 {dimension_numbers = #tpu.dot_dimension_numbers<[1], [0], [0], [1], [0, 0, 1, 1], [], []>} : vector<32x32xbf16>, vector<32x32xbf16>, vector<32x32xf32> -> vector<32x32xf32>
    %54 = arith.addf %50, %53 : vector<32x32xf32>
    %c0_63 = arith.constant 0 : index
    %c0_64 = arith.constant 0 : index
    %55 = vector.load %arg7[%c0_63, %c0_64] : memref<32x32xf32, #tpu.memory_space<vmem>>, vector<32x32xf32>
    tpu.vector_store %arg7[%c0_63, %c0_64], %54 {strides = array<i32>} : memref<32x32xf32, #tpu.memory_space<vmem>>, vector<32x32xf32>,
    %c2_65 = arith.constant 2 : index
    %c0_66 = arith.constant 0 : index
    %c0_67 = arith.constant 0 : index
    %c0_68 = arith.constant 0 : index
    %c0_69 = arith.constant 0 : index
    %56 = vector.load %arg2[%c2_65, %c0_66, %c0_67, %c0_68, %c0_69] : memref<4x1x3x17x32xbf16, #tpu.memory_space<vmem>>, vector<1x1x3x16x32xbf16>
    %57 = vector.shape_cast %56 : vector<1x1x3x16x32xbf16> to vector<3x16x32xbf16>
    %58 = vector.extract_strided_slice %57 {offsets = [0, 0, 0], sizes = [2, 16, 32], strides = [1, 1, 1]} : vector<3x16x32xbf16> to vector<2x16x32xbf16>
    %59 = vector.shape_cast %58 : vector<2x16x32xbf16> to vector<32x32xbf16>
    %c0_70 = arith.constant 0 : index
    %c0_71 = arith.constant 0 : index
    %60 = vector.load %arg7[%c0_70, %c0_71] : memref<32x32xf32, #tpu.memory_space<vmem>>, vector<32x32xf32>
    %c3 = arith.constant 3 : index
    %c0_72 = arith.constant 0 : index
    %c0_73 = arith.constant 0 : index
    %c0_74 = arith.constant 0 : index
    %61 = vector.load %arg3[%c3, %c0_72, %c0_73, %c0_74] : memref<9x1x32x32xbf16, #tpu.memory_space<vmem>>, vector<1x1x32x32xbf16>
    %62 = vector.shape_cast %61 : vector<1x1x32x32xbf16> to vector<32x32xbf16>
    %cst_75 = arith.constant dense<0.000000e+00> : vector<32x32xf32>
    %63 = tpu.matmul %59, %62, %cst_75 {dimension_numbers = #tpu.dot_dimension_numbers<[1], [0], [0], [1], [0, 0, 1, 1], [], []>} : vector<32x32xbf16>, vector<32x32xbf16>, vector<32x32xf32> -> vector<32x32xf32>
    %64 = arith.addf %60, %63 : vector<32x32xf32>
    %c0_76 = arith.constant 0 : index
    %c0_77 = arith.constant 0 : index
    %65 = vector.load %arg7[%c0_76, %c0_77] : memref<32x32xf32, #tpu.memory_space<vmem>>, vector<32x32xf32>
    tpu.vector_store %arg7[%c0_76, %c0_77], %64 {strides = array<i32>} : memref<32x32xf32, #tpu.memory_space<vmem>>, vector<32x32xf32>,
    %c2_78 = arith.constant 2 : index
    %c0_79 = arith.constant 0 : index
    %c0_80 = arith.constant 0 : index
    %c1_81 = arith.constant 1 : index
    %c0_82 = arith.constant 0 : index
    %66 = vector.load %arg2[%c2_78, %c0_79, %c0_80, %c1_81, %c0_82] : memref<4x1x3x17x32xbf16, #tpu.memory_space<vmem>>, vector<1x1x3x16x32xbf16>
    %67 = vector.shape_cast %66 : vector<1x1x3x16x32xbf16> to vector<3x16x32xbf16>
    %68 = vector.extract_strided_slice %67 {offsets = [0, 0, 0], sizes = [2, 16, 32], strides = [1, 1, 1]} : vector<3x16x32xbf16> to vector<2x16x32xbf16>
    %69 = vector.shape_cast %68 : vector<2x16x32xbf16> to vector<32x32xbf16>
    %c0_83 = arith.constant 0 : index
    %c0_84 = arith.constant 0 : index
    %70 = vector.load %arg7[%c0_83, %c0_84] : memref<32x32xf32, #tpu.memory_space<vmem>>, vector<32x32xf32>
    %c5 = arith.constant 5 : index
    %c0_85 = arith.constant 0 : index
    %c0_86 = arith.constant 0 : index
    %c0_87 = arith.constant 0 : index
    %71 = vector.load %arg3[%c5, %c0_85, %c0_86, %c0_87] : memref<9x1x32x32xbf16, #tpu.memory_space<vmem>>, vector<1x1x32x32xbf16>
    %72 = vector.shape_cast %71 : vector<1x1x32x32xbf16> to vector<32x32xbf16>
    %cst_88 = arith.constant dense<0.000000e+00> : vector<32x32xf32>
    %73 = tpu.matmul %69, %72, %cst_88 {dimension_numbers = #tpu.dot_dimension_numbers<[1], [0], [0], [1], [0, 0, 1, 1], [], []>} : vector<32x32xbf16>, vector<32x32xbf16>, vector<32x32xf32> -> vector<32x32xf32>
    %74 = arith.addf %70, %73 : vector<32x32xf32>
    %c0_89 = arith.constant 0 : index
    %c0_90 = arith.constant 0 : index
    %75 = vector.load %arg7[%c0_89, %c0_90] : memref<32x32xf32, #tpu.memory_space<vmem>>, vector<32x32xf32>
    tpu.vector_store %arg7[%c0_89, %c0_90], %74 {strides = array<i32>} : memref<32x32xf32, #tpu.memory_space<vmem>>, vector<32x32xf32>,
    %c3_91 = arith.constant 3 : index
    %c0_92 = arith.constant 0 : index
    %c0_93 = arith.constant 0 : index
    %c0_94 = arith.constant 0 : index
    %c0_95 = arith.constant 0 : index
    %76 = vector.load %arg2[%c3_91, %c0_92, %c0_93, %c0_94, %c0_95] : memref<4x1x3x17x32xbf16, #tpu.memory_space<vmem>>, vector<1x1x3x16x32xbf16>
    %77 = vector.shape_cast %76 : vector<1x1x3x16x32xbf16> to vector<3x16x32xbf16>
    %78 = vector.extract_strided_slice %77 {offsets = [0, 0, 0], sizes = [2, 16, 32], strides = [1, 1, 1]} : vector<3x16x32xbf16> to vector<2x16x32xbf16>
    %79 = vector.shape_cast %78 : vector<2x16x32xbf16> to vector<32x32xbf16>
    %c0_96 = arith.constant 0 : index
    %c0_97 = arith.constant 0 : index
    %80 = vector.load %arg7[%c0_96, %c0_97] : memref<32x32xf32, #tpu.memory_space<vmem>>, vector<32x32xf32>
    %c4 = arith.constant 4 : index
    %c0_98 = arith.constant 0 : index
    %c0_99 = arith.constant 0 : index
    %c0_100 = arith.constant 0 : index
    %81 = vector.load %arg3[%c4, %c0_98, %c0_99, %c0_100] : memref<9x1x32x32xbf16, #tpu.memory_space<vmem>>, vector<1x1x32x32xbf16>
    %82 = vector.shape_cast %81 : vector<1x1x32x32xbf16> to vector<32x32xbf16>
    %cst_101 = arith.constant dense<0.000000e+00> : vector<32x32xf32>
    %83 = tpu.matmul %79, %82, %cst_101 {dimension_numbers = #tpu.dot_dimension_numbers<[1], [0], [0], [1], [0, 0, 1, 1], [], []>} : vector<32x32xbf16>, vector<32x32xbf16>, vector<32x32xf32> -> vector<32x32xf32>
    %84 = arith.addf %80, %83 : vector<32x32xf32>
    %c0_102 = arith.constant 0 : index
    %c0_103 = arith.constant 0 : index
    %85 = vector.load %arg7[%c0_102, %c0_103] : memref<32x32xf32, #tpu.memory_space<vmem>>, vector<32x32xf32>
    tpu.vector_store %arg7[%c0_102, %c0_103], %84 {strides = array<i32>} : memref<32x32xf32, #tpu.memory_space<vmem>>, vector<32x32xf32>,
    %c0_104 = arith.constant 0 : index
    %c0_105 = arith.constant 0 : index
    %86 = vector.load %arg7[%c0_104, %c0_105] : memref<32x32xf32, #tpu.memory_space<vmem>>, vector<32x32xf32>
    %c0_106 = arith.constant 0 : index
    %c0_107 = arith.constant 0 : index
    %87 = vector.load %arg4[%c0_106, %c0_107] : memref<1x32xf32, #tpu.memory_space<vmem>>, vector<1x32xf32>
    %88 = vector.broadcast %87 : vector<1x32xf32> to vector<32x32xf32>
    %89 = arith.mulf %86, %88 : vector<32x32xf32>
    %c0_108 = arith.constant 0 : index
    %c0_109 = arith.constant 0 : index
    %90 = vector.load %arg5[%c0_108, %c0_109] : memref<1x32xf32, #tpu.memory_space<vmem>>, vector<1x32xf32>
    %91 = vector.broadcast %90 : vector<1x32xf32> to vector<32x32xf32>
    %92 = arith.addf %89, %91 : vector<32x32xf32>
    %cst_110 = arith.constant 0.000000e+00 : f32
    %93 = vector.broadcast %cst_110 : f32 to vector<32x32xf32>
    %94 = arith.maximumf %92, %93 : vector<32x32xf32>
    %95 = arith.truncf %94 : vector<32x32xf32> to vector<32x32xbf16>
    %c0_111 = arith.constant 0 : index
    %c0_112 = arith.constant 0 : index
    %c0_113 = arith.constant 0 : index
    %96 = vector.load %arg6[%c0_111, %c0_112, %c0_113] : memref<1x32x32xbf16, #tpu.memory_space<vmem>>, vector<1x32x32xbf16>
    %97 = vector.shape_cast %96 : vector<1x32x32xbf16> to vector<32x32xbf16>
    %98 = vector.shape_cast %95 : vector<32x32xbf16> to vector<1x32x32xbf16>
    tpu.vector_store %arg6[%c0_111, %c0_112, %c0_113], %98 {strides = array<i32>} : memref<1x32x32xbf16, #tpu.memory_space<vmem>>, vector<1x32x32xbf16>,
    return
  }
  func.func @transform_0(%arg0: i32, %arg1: i32) -> (i32, i32, i32, i32, i32) {
    %c0_i32 = arith.constant 0 : i32
    %c0_i32_0 = arith.constant 0 : i32
    %c0_i32_1 = arith.constant 0 : i32
    %c0_i32_2 = arith.constant 0 : i32
    return %c0_i32, %arg0, %c0_i32_0, %c0_i32_1, %arg1 : i32, i32, i32, i32, i32
  }
  func.func @transform_1(%arg0: i32, %arg1: i32) -> (i32, i32, i32, i32) {
    %c0_i32 = arith.constant 0 : i32
    %c0_i32_0 = arith.constant 0 : i32
    %c0_i32_1 = arith.constant 0 : i32
    %c0_i32_2 = arith.constant 0 : i32
    return %c0_i32, %arg1, %c0_i32_0, %c0_i32_1 : i32, i32, i32, i32
  }
  func.func @transform_2(%arg0: i32, %arg1: i32) -> (i32, i32) {
    %c0_i32 = arith.constant 0 : i32
    %c0_i32_0 = arith.constant 0 : i32
    return %c0_i32, %arg1 : i32, i32
  }
  func.func @transform_3(%arg0: i32, %arg1: i32) -> (i32, i32) {
    %c0_i32 = arith.constant 0 : i32
    %c0_i32_0 = arith.constant 0 : i32
    return %c0_i32, %arg1 : i32, i32
  }
  func.func @transform_4(%arg0: i32, %arg1: i32) -> (i32, i32, i32) {
    %c0_i32 = arith.constant 0 : i32
    %c0_i32_0 = arith.constant 0 : i32
    return %arg0, %c0_i32, %arg1 : i32, i32, i32
  }
}

module attributes {stable_mosaic.version = 11 : i64} {
  func.func @_mm2_bn_kernel(%arg0: i32, %arg1: memref<16x32xbf16, #tpu.memory_space<vmem>>, %arg2: memref<32x64xbf16, #tpu.memory_space<vmem>>, %arg3: memref<1x64xf32, #tpu.memory_space<vmem>>, %arg4: memref<1x64xf32, #tpu.memory_space<vmem>>, %arg5: memref<16x32xbf16, #tpu.memory_space<vmem>>, %arg6: memref<32x64xbf16, #tpu.memory_space<vmem>>, %arg7: memref<1x64xf32, #tpu.memory_space<vmem>>, %arg8: memref<1x64xf32, #tpu.memory_space<vmem>>, %arg9: memref<16x64xbf16, #tpu.memory_space<vmem>>) attributes {dimension_semantics = [#tpu.dimension_semantics<parallel>], iteration_bounds = array<i64: 1>, scalar_prefetch = 0 : i64, scratch_operands = 0 : i64, tpu.core_type = #tpu.core_type<tc>, window_params = [{transform_indices = @transform_0, window_bounds = array<i64: 16, 32>}, {pipeline_mode = #tpu.pipeline_mode<synchronous>, transform_indices = @transform_1, window_bounds = array<i64: 32, 64>}, {pipeline_mode = #tpu.pipeline_mode<synchronous>, transform_indices = @transform_2, window_bounds = array<i64: 1, 64>}, {pipeline_mode = #tpu.pipeline_mode<synchronous>, transform_indices = @transform_3, window_bounds = array<i64: 1, 64>}, {transform_indices = @transform_4, window_bounds = array<i64: 16, 32>}, {pipeline_mode = #tpu.pipeline_mode<synchronous>, transform_indices = @transform_5, window_bounds = array<i64: 32, 64>}, {pipeline_mode = #tpu.pipeline_mode<synchronous>, transform_indices = @transform_6, window_bounds = array<i64: 1, 64>}, {pipeline_mode = #tpu.pipeline_mode<synchronous>, transform_indices = @transform_7, window_bounds = array<i64: 1, 64>}, {transform_indices = @transform_8, window_bounds = array<i64: 16, 64>}]} {
    %c0 = arith.constant 0 : index
    %c0_0 = arith.constant 0 : index
    %0 = vector.load %arg1[%c0, %c0_0] : memref<16x32xbf16, #tpu.memory_space<vmem>>, vector<16x32xbf16>
    %c0_1 = arith.constant 0 : index
    %c0_2 = arith.constant 0 : index
    %1 = vector.load %arg2[%c0_1, %c0_2] : memref<32x64xbf16, #tpu.memory_space<vmem>>, vector<32x64xbf16>
    %cst = arith.constant dense<0.000000e+00> : vector<16x64xf32>
    %2 = tpu.matmul %0, %1, %cst {dimension_numbers = #tpu.dot_dimension_numbers<[1], [0], [0], [1], [0, 0, 1, 1], [], []>} : vector<16x32xbf16>, vector<32x64xbf16>, vector<16x64xf32> -> vector<16x64xf32>
    %c0_3 = arith.constant 0 : index
    %c0_4 = arith.constant 0 : index
    %3 = vector.load %arg3[%c0_3, %c0_4] : memref<1x64xf32, #tpu.memory_space<vmem>>, vector<1x64xf32>
    %4 = vector.broadcast %3 : vector<1x64xf32> to vector<16x64xf32>
    %5 = arith.mulf %2, %4 : vector<16x64xf32>
    %c0_5 = arith.constant 0 : index
    %c0_6 = arith.constant 0 : index
    %6 = vector.load %arg4[%c0_5, %c0_6] : memref<1x64xf32, #tpu.memory_space<vmem>>, vector<1x64xf32>
    %7 = vector.broadcast %6 : vector<1x64xf32> to vector<16x64xf32>
    %8 = arith.addf %5, %7 : vector<16x64xf32>
    %c0_7 = arith.constant 0 : index
    %c0_8 = arith.constant 0 : index
    %9 = vector.load %arg5[%c0_7, %c0_8] : memref<16x32xbf16, #tpu.memory_space<vmem>>, vector<16x32xbf16>
    %c0_9 = arith.constant 0 : index
    %c0_10 = arith.constant 0 : index
    %10 = vector.load %arg6[%c0_9, %c0_10] : memref<32x64xbf16, #tpu.memory_space<vmem>>, vector<32x64xbf16>
    %cst_11 = arith.constant dense<0.000000e+00> : vector<16x64xf32>
    %11 = tpu.matmul %9, %10, %cst_11 {dimension_numbers = #tpu.dot_dimension_numbers<[1], [0], [0], [1], [0, 0, 1, 1], [], []>} : vector<16x32xbf16>, vector<32x64xbf16>, vector<16x64xf32> -> vector<16x64xf32>
    %c0_12 = arith.constant 0 : index
    %c0_13 = arith.constant 0 : index
    %12 = vector.load %arg7[%c0_12, %c0_13] : memref<1x64xf32, #tpu.memory_space<vmem>>, vector<1x64xf32>
    %13 = vector.broadcast %12 : vector<1x64xf32> to vector<16x64xf32>
    %14 = arith.mulf %11, %13 : vector<16x64xf32>
    %15 = arith.addf %8, %14 : vector<16x64xf32>
    %c0_14 = arith.constant 0 : index
    %c0_15 = arith.constant 0 : index
    %16 = vector.load %arg8[%c0_14, %c0_15] : memref<1x64xf32, #tpu.memory_space<vmem>>, vector<1x64xf32>
    %17 = vector.broadcast %16 : vector<1x64xf32> to vector<16x64xf32>
    %18 = arith.addf %15, %17 : vector<16x64xf32>
    %cst_16 = arith.constant 0.000000e+00 : f32
    %19 = vector.broadcast %cst_16 : f32 to vector<16x64xf32>
    %20 = arith.maximumf %18, %19 : vector<16x64xf32>
    %21 = arith.truncf %20 : vector<16x64xf32> to vector<16x64xbf16>
    %c0_17 = arith.constant 0 : index
    %c0_18 = arith.constant 0 : index
    %22 = vector.load %arg9[%c0_17, %c0_18] : memref<16x64xbf16, #tpu.memory_space<vmem>>, vector<16x64xbf16>
    tpu.vector_store %arg9[%c0_17, %c0_18], %21 {strides = array<i32>} : memref<16x64xbf16, #tpu.memory_space<vmem>>, vector<16x64xbf16>,
    return
  }
  func.func @transform_0(%arg0: i32) -> (i32, i32) {
    %c0_i32 = arith.constant 0 : i32
    %c0_i32_0 = arith.constant 0 : i32
    return %arg0, %c0_i32 : i32, i32
  }
  func.func @transform_1(%arg0: i32) -> (i32, i32) {
    %c0_i32 = arith.constant 0 : i32
    %c0_i32_0 = arith.constant 0 : i32
    %c0_i32_1 = arith.constant 0 : i32
    return %c0_i32, %c0_i32_0 : i32, i32
  }
  func.func @transform_2(%arg0: i32) -> (i32, i32) {
    %c0_i32 = arith.constant 0 : i32
    %c0_i32_0 = arith.constant 0 : i32
    %c0_i32_1 = arith.constant 0 : i32
    return %c0_i32, %c0_i32_0 : i32, i32
  }
  func.func @transform_3(%arg0: i32) -> (i32, i32) {
    %c0_i32 = arith.constant 0 : i32
    %c0_i32_0 = arith.constant 0 : i32
    %c0_i32_1 = arith.constant 0 : i32
    return %c0_i32, %c0_i32_0 : i32, i32
  }
  func.func @transform_4(%arg0: i32) -> (i32, i32) {
    %c0_i32 = arith.constant 0 : i32
    %c0_i32_0 = arith.constant 0 : i32
    return %arg0, %c0_i32 : i32, i32
  }
  func.func @transform_5(%arg0: i32) -> (i32, i32) {
    %c0_i32 = arith.constant 0 : i32
    %c0_i32_0 = arith.constant 0 : i32
    %c0_i32_1 = arith.constant 0 : i32
    return %c0_i32, %c0_i32_0 : i32, i32
  }
  func.func @transform_6(%arg0: i32) -> (i32, i32) {
    %c0_i32 = arith.constant 0 : i32
    %c0_i32_0 = arith.constant 0 : i32
    %c0_i32_1 = arith.constant 0 : i32
    return %c0_i32, %c0_i32_0 : i32, i32
  }
  func.func @transform_7(%arg0: i32) -> (i32, i32) {
    %c0_i32 = arith.constant 0 : i32
    %c0_i32_0 = arith.constant 0 : i32
    %c0_i32_1 = arith.constant 0 : i32
    return %c0_i32, %c0_i32_0 : i32, i32
  }
  func.func @transform_8(%arg0: i32) -> (i32, i32) {
    %c0_i32 = arith.constant 0 : i32
    %c0_i32_0 = arith.constant 0 : i32
    return %arg0, %c0_i32 : i32, i32
  }
}

module attributes {stable_mosaic.version = 11 : i64} {
  func.func @_mm_bn_kernel(%arg0: i32, %arg1: memref<16x64xbf16, #tpu.memory_space<vmem>>, %arg2: memref<64x64xbf16, #tpu.memory_space<vmem>>, %arg3: memref<1x64xf32, #tpu.memory_space<vmem>>, %arg4: memref<1x64xf32, #tpu.memory_space<vmem>>, %arg5: memref<16x64xbf16, #tpu.memory_space<vmem>>) attributes {dimension_semantics = [#tpu.dimension_semantics<parallel>], iteration_bounds = array<i64: 1>, scalar_prefetch = 0 : i64, scratch_operands = 0 : i64, tpu.core_type = #tpu.core_type<tc>, window_params = [{transform_indices = @transform_0, window_bounds = array<i64: 16, 64>}, {pipeline_mode = #tpu.pipeline_mode<synchronous>, transform_indices = @transform_1, window_bounds = array<i64: 64, 64>}, {pipeline_mode = #tpu.pipeline_mode<synchronous>, transform_indices = @transform_2, window_bounds = array<i64: 1, 64>}, {pipeline_mode = #tpu.pipeline_mode<synchronous>, transform_indices = @transform_3, window_bounds = array<i64: 1, 64>}, {transform_indices = @transform_4, window_bounds = array<i64: 16, 64>}]} {
    %c0 = arith.constant 0 : index
    %c0_0 = arith.constant 0 : index
    %0 = vector.load %arg1[%c0, %c0_0] : memref<16x64xbf16, #tpu.memory_space<vmem>>, vector<16x64xbf16>
    %c0_1 = arith.constant 0 : index
    %c0_2 = arith.constant 0 : index
    %1 = vector.load %arg2[%c0_1, %c0_2] : memref<64x64xbf16, #tpu.memory_space<vmem>>, vector<64x64xbf16>
    %cst = arith.constant dense<0.000000e+00> : vector<16x64xf32>
    %2 = tpu.matmul %0, %1, %cst {dimension_numbers = #tpu.dot_dimension_numbers<[1], [0], [0], [1], [0, 0, 1, 1], [], []>} : vector<16x64xbf16>, vector<64x64xbf16>, vector<16x64xf32> -> vector<16x64xf32>
    %c0_3 = arith.constant 0 : index
    %c0_4 = arith.constant 0 : index
    %3 = vector.load %arg3[%c0_3, %c0_4] : memref<1x64xf32, #tpu.memory_space<vmem>>, vector<1x64xf32>
    %4 = vector.broadcast %3 : vector<1x64xf32> to vector<16x64xf32>
    %5 = arith.mulf %2, %4 : vector<16x64xf32>
    %c0_5 = arith.constant 0 : index
    %c0_6 = arith.constant 0 : index
    %6 = vector.load %arg4[%c0_5, %c0_6] : memref<1x64xf32, #tpu.memory_space<vmem>>, vector<1x64xf32>
    %7 = vector.broadcast %6 : vector<1x64xf32> to vector<16x64xf32>
    %8 = arith.addf %5, %7 : vector<16x64xf32>
    %cst_7 = arith.constant 0.000000e+00 : f32
    %9 = vector.broadcast %cst_7 : f32 to vector<16x64xf32>
    %10 = arith.maximumf %8, %9 : vector<16x64xf32>
    %11 = arith.truncf %10 : vector<16x64xf32> to vector<16x64xbf16>
    %c0_8 = arith.constant 0 : index
    %c0_9 = arith.constant 0 : index
    %12 = vector.load %arg5[%c0_8, %c0_9] : memref<16x64xbf16, #tpu.memory_space<vmem>>, vector<16x64xbf16>
    tpu.vector_store %arg5[%c0_8, %c0_9], %11 {strides = array<i32>} : memref<16x64xbf16, #tpu.memory_space<vmem>>, vector<16x64xbf16>,
    return
  }
  func.func @transform_0(%arg0: i32) -> (i32, i32) {
    %c0_i32 = arith.constant 0 : i32
    %c0_i32_0 = arith.constant 0 : i32
    return %arg0, %c0_i32 : i32, i32
  }
  func.func @transform_1(%arg0: i32) -> (i32, i32) {
    %c0_i32 = arith.constant 0 : i32
    %c0_i32_0 = arith.constant 0 : i32
    %c0_i32_1 = arith.constant 0 : i32
    return %c0_i32, %c0_i32_0 : i32, i32
  }
  func.func @transform_2(%arg0: i32) -> (i32, i32) {
    %c0_i32 = arith.constant 0 : i32
    %c0_i32_0 = arith.constant 0 : i32
    %c0_i32_1 = arith.constant 0 : i32
    return %c0_i32, %c0_i32_0 : i32, i32
  }
  func.func @transform_3(%arg0: i32) -> (i32, i32) {
    %c0_i32 = arith.constant 0 : i32
    %c0_i32_0 = arith.constant 0 : i32
    %c0_i32_1 = arith.constant 0 : i32
    return %c0_i32, %c0_i32_0 : i32, i32
  }
  func.func @transform_4(%arg0: i32) -> (i32, i32) {
    %c0_i32 = arith.constant 0 : i32
    %c0_i32_0 = arith.constant 0 : i32
    return %arg0, %c0_i32 : i32, i32
  }
}

module attributes {stable_mosaic.version = 11 : i64} {
  func.func @_direct_conv_kernel(%arg0: i32, %arg1: i32, %arg2: memref<4x1x2x17x64xbf16, #tpu.memory_space<vmem>>, %arg3: memref<9x1x64x64xbf16, #tpu.memory_space<vmem>>, %arg4: memref<1x64xf32, #tpu.memory_space<vmem>>, %arg5: memref<1x64xf32, #tpu.memory_space<vmem>>, %arg6: memref<1x16x64xbf16, #tpu.memory_space<vmem>>, %arg7: memref<16x64xf32, #tpu.memory_space<vmem>>) attributes {dimension_semantics = [#tpu.dimension_semantics<parallel>, #tpu.dimension_semantics<parallel>], iteration_bounds = array<i64: 2, 1>, scalar_prefetch = 0 : i64, scratch_operands = 1 : i64, tpu.core_type = #tpu.core_type<tc>, window_params = [{transform_indices = @transform_0, window_bounds = array<i64: 4, 1, 2, 17, 64>}, {transform_indices = @transform_1, window_bounds = array<i64: 9, 1, 64, 64>}, {transform_indices = @transform_2, window_bounds = array<i64: 1, 64>}, {transform_indices = @transform_3, window_bounds = array<i64: 1, 64>}, {transform_indices = @transform_4, window_bounds = array<i64: 1, 16, 64>}]} {
    %cst = arith.constant 0.000000e+00 : f32
    %0 = vector.broadcast %cst : f32 to vector<16x64xf32>
    %c0 = arith.constant 0 : index
    %c0_0 = arith.constant 0 : index
    %1 = vector.load %arg7[%c0, %c0_0] : memref<16x64xf32, #tpu.memory_space<vmem>>, vector<16x64xf32>
    tpu.vector_store %arg7[%c0, %c0_0], %0 {strides = array<i32>} : memref<16x64xf32, #tpu.memory_space<vmem>>, vector<16x64xf32>,
    %c0_1 = arith.constant 0 : index
    %c0_2 = arith.constant 0 : index
    %c0_3 = arith.constant 0 : index
    %c0_4 = arith.constant 0 : index
    %c0_5 = arith.constant 0 : index
    %2 = vector.load %arg2[%c0_1, %c0_2, %c0_3, %c0_4, %c0_5] : memref<4x1x2x17x64xbf16, #tpu.memory_space<vmem>>, vector<1x1x2x16x64xbf16>
    %3 = vector.shape_cast %2 : vector<1x1x2x16x64xbf16> to vector<2x16x64xbf16>
    %4 = vector.extract_strided_slice %3 {offsets = [0, 0, 0], sizes = [1, 16, 64], strides = [1, 1, 1]} : vector<2x16x64xbf16> to vector<1x16x64xbf16>
    %5 = vector.shape_cast %4 : vector<1x16x64xbf16> to vector<16x64xbf16>
    %c0_6 = arith.constant 0 : index
    %c0_7 = arith.constant 0 : index
    %6 = vector.load %arg7[%c0_6, %c0_7] : memref<16x64xf32, #tpu.memory_space<vmem>>, vector<16x64xf32>
    %c0_8 = arith.constant 0 : index
    %c0_9 = arith.constant 0 : index
    %c0_10 = arith.constant 0 : index
    %c0_11 = arith.constant 0 : index
    %7 = vector.load %arg3[%c0_8, %c0_9, %c0_10, %c0_11] : memref<9x1x64x64xbf16, #tpu.memory_space<vmem>>, vector<1x1x64x64xbf16>
    %8 = vector.shape_cast %7 : vector<1x1x64x64xbf16> to vector<64x64xbf16>
    %cst_12 = arith.constant dense<0.000000e+00> : vector<16x64xf32>
    %9 = tpu.matmul %5, %8, %cst_12 {dimension_numbers = #tpu.dot_dimension_numbers<[1], [0], [0], [1], [0, 0, 1, 1], [], []>} : vector<16x64xbf16>, vector<64x64xbf16>, vector<16x64xf32> -> vector<16x64xf32>
    %10 = arith.addf %6, %9 : vector<16x64xf32>
    %c0_13 = arith.constant 0 : index
    %c0_14 = arith.constant 0 : index
    %11 = vector.load %arg7[%c0_13, %c0_14] : memref<16x64xf32, #tpu.memory_space<vmem>>, vector<16x64xf32>
    tpu.vector_store %arg7[%c0_13, %c0_14], %10 {strides = array<i32>} : memref<16x64xf32, #tpu.memory_space<vmem>>, vector<16x64xf32>,
    %12 = vector.extract_strided_slice %3 {offsets = [1, 0, 0], sizes = [1, 16, 64], strides = [1, 1, 1]} : vector<2x16x64xbf16> to vector<1x16x64xbf16>
    %13 = vector.shape_cast %12 : vector<1x16x64xbf16> to vector<16x64xbf16>
    %c0_15 = arith.constant 0 : index
    %c0_16 = arith.constant 0 : index
    %14 = vector.load %arg7[%c0_15, %c0_16] : memref<16x64xf32, #tpu.memory_space<vmem>>, vector<16x64xf32>
    %c6 = arith.constant 6 : index
    %c0_17 = arith.constant 0 : index
    %c0_18 = arith.constant 0 : index
    %c0_19 = arith.constant 0 : index
    %15 = vector.load %arg3[%c6, %c0_17, %c0_18, %c0_19] : memref<9x1x64x64xbf16, #tpu.memory_space<vmem>>, vector<1x1x64x64xbf16>
    %16 = vector.shape_cast %15 : vector<1x1x64x64xbf16> to vector<64x64xbf16>
    %cst_20 = arith.constant dense<0.000000e+00> : vector<16x64xf32>
    %17 = tpu.matmul %13, %16, %cst_20 {dimension_numbers = #tpu.dot_dimension_numbers<[1], [0], [0], [1], [0, 0, 1, 1], [], []>} : vector<16x64xbf16>, vector<64x64xbf16>, vector<16x64xf32> -> vector<16x64xf32>
    %18 = arith.addf %14, %17 : vector<16x64xf32>
    %c0_21 = arith.constant 0 : index
    %c0_22 = arith.constant 0 : index
    %19 = vector.load %arg7[%c0_21, %c0_22] : memref<16x64xf32, #tpu.memory_space<vmem>>, vector<16x64xf32>
    tpu.vector_store %arg7[%c0_21, %c0_22], %18 {strides = array<i32>} : memref<16x64xf32, #tpu.memory_space<vmem>>, vector<16x64xf32>,
    %c0_23 = arith.constant 0 : index
    %c0_24 = arith.constant 0 : index
    %c0_25 = arith.constant 0 : index
    %c1 = arith.constant 1 : index
    %c0_26 = arith.constant 0 : index
    %20 = vector.load %arg2[%c0_23, %c0_24, %c0_25, %c1, %c0_26] : memref<4x1x2x17x64xbf16, #tpu.memory_space<vmem>>, vector<1x1x2x16x64xbf16>
    %21 = vector.shape_cast %20 : vector<1x1x2x16x64xbf16> to vector<2x16x64xbf16>
    %22 = vector.extract_strided_slice %21 {offsets = [0, 0, 0], sizes = [1, 16, 64], strides = [1, 1, 1]} : vector<2x16x64xbf16> to vector<1x16x64xbf16>
    %23 = vector.shape_cast %22 : vector<1x16x64xbf16> to vector<16x64xbf16>
    %c0_27 = arith.constant 0 : index
    %c0_28 = arith.constant 0 : index
    %24 = vector.load %arg7[%c0_27, %c0_28] : memref<16x64xf32, #tpu.memory_space<vmem>>, vector<16x64xf32>
    %c2 = arith.constant 2 : index
    %c0_29 = arith.constant 0 : index
    %c0_30 = arith.constant 0 : index
    %c0_31 = arith.constant 0 : index
    %25 = vector.load %arg3[%c2, %c0_29, %c0_30, %c0_31] : memref<9x1x64x64xbf16, #tpu.memory_space<vmem>>, vector<1x1x64x64xbf16>
    %26 = vector.shape_cast %25 : vector<1x1x64x64xbf16> to vector<64x64xbf16>
    %cst_32 = arith.constant dense<0.000000e+00> : vector<16x64xf32>
    %27 = tpu.matmul %23, %26, %cst_32 {dimension_numbers = #tpu.dot_dimension_numbers<[1], [0], [0], [1], [0, 0, 1, 1], [], []>} : vector<16x64xbf16>, vector<64x64xbf16>, vector<16x64xf32> -> vector<16x64xf32>
    %28 = arith.addf %24, %27 : vector<16x64xf32>
    %c0_33 = arith.constant 0 : index
    %c0_34 = arith.constant 0 : index
    %29 = vector.load %arg7[%c0_33, %c0_34] : memref<16x64xf32, #tpu.memory_space<vmem>>, vector<16x64xf32>
    tpu.vector_store %arg7[%c0_33, %c0_34], %28 {strides = array<i32>} : memref<16x64xf32, #tpu.memory_space<vmem>>, vector<16x64xf32>,
    %30 = vector.extract_strided_slice %21 {offsets = [1, 0, 0], sizes = [1, 16, 64], strides = [1, 1, 1]} : vector<2x16x64xbf16> to vector<1x16x64xbf16>
    %31 = vector.shape_cast %30 : vector<1x16x64xbf16> to vector<16x64xbf16>
    %c0_35 = arith.constant 0 : index
    %c0_36 = arith.constant 0 : index
    %32 = vector.load %arg7[%c0_35, %c0_36] : memref<16x64xf32, #tpu.memory_space<vmem>>, vector<16x64xf32>
    %c8 = arith.constant 8 : index
    %c0_37 = arith.constant 0 : index
    %c0_38 = arith.constant 0 : index
    %c0_39 = arith.constant 0 : index
    %33 = vector.load %arg3[%c8, %c0_37, %c0_38, %c0_39] : memref<9x1x64x64xbf16, #tpu.memory_space<vmem>>, vector<1x1x64x64xbf16>
    %34 = vector.shape_cast %33 : vector<1x1x64x64xbf16> to vector<64x64xbf16>
    %cst_40 = arith.constant dense<0.000000e+00> : vector<16x64xf32>
    %35 = tpu.matmul %31, %34, %cst_40 {dimension_numbers = #tpu.dot_dimension_numbers<[1], [0], [0], [1], [0, 0, 1, 1], [], []>} : vector<16x64xbf16>, vector<64x64xbf16>, vector<16x64xf32> -> vector<16x64xf32>
    %36 = arith.addf %32, %35 : vector<16x64xf32>
    %c0_41 = arith.constant 0 : index
    %c0_42 = arith.constant 0 : index
    %37 = vector.load %arg7[%c0_41, %c0_42] : memref<16x64xf32, #tpu.memory_space<vmem>>, vector<16x64xf32>
    tpu.vector_store %arg7[%c0_41, %c0_42], %36 {strides = array<i32>} : memref<16x64xf32, #tpu.memory_space<vmem>>, vector<16x64xf32>,
    %c1_43 = arith.constant 1 : index
    %c0_44 = arith.constant 0 : index
    %c0_45 = arith.constant 0 : index
    %c0_46 = arith.constant 0 : index
    %c0_47 = arith.constant 0 : index
    %38 = vector.load %arg2[%c1_43, %c0_44, %c0_45, %c0_46, %c0_47] : memref<4x1x2x17x64xbf16, #tpu.memory_space<vmem>>, vector<1x1x2x16x64xbf16>
    %39 = vector.shape_cast %38 : vector<1x1x2x16x64xbf16> to vector<2x16x64xbf16>
    %40 = vector.extract_strided_slice %39 {offsets = [0, 0, 0], sizes = [1, 16, 64], strides = [1, 1, 1]} : vector<2x16x64xbf16> to vector<1x16x64xbf16>
    %41 = vector.shape_cast %40 : vector<1x16x64xbf16> to vector<16x64xbf16>
    %c0_48 = arith.constant 0 : index
    %c0_49 = arith.constant 0 : index
    %42 = vector.load %arg7[%c0_48, %c0_49] : memref<16x64xf32, #tpu.memory_space<vmem>>, vector<16x64xf32>
    %c1_50 = arith.constant 1 : index
    %c0_51 = arith.constant 0 : index
    %c0_52 = arith.constant 0 : index
    %c0_53 = arith.constant 0 : index
    %43 = vector.load %arg3[%c1_50, %c0_51, %c0_52, %c0_53] : memref<9x1x64x64xbf16, #tpu.memory_space<vmem>>, vector<1x1x64x64xbf16>
    %44 = vector.shape_cast %43 : vector<1x1x64x64xbf16> to vector<64x64xbf16>
    %cst_54 = arith.constant dense<0.000000e+00> : vector<16x64xf32>
    %45 = tpu.matmul %41, %44, %cst_54 {dimension_numbers = #tpu.dot_dimension_numbers<[1], [0], [0], [1], [0, 0, 1, 1], [], []>} : vector<16x64xbf16>, vector<64x64xbf16>, vector<16x64xf32> -> vector<16x64xf32>
    %46 = arith.addf %42, %45 : vector<16x64xf32>
    %c0_55 = arith.constant 0 : index
    %c0_56 = arith.constant 0 : index
    %47 = vector.load %arg7[%c0_55, %c0_56] : memref<16x64xf32, #tpu.memory_space<vmem>>, vector<16x64xf32>
    tpu.vector_store %arg7[%c0_55, %c0_56], %46 {strides = array<i32>} : memref<16x64xf32, #tpu.memory_space<vmem>>, vector<16x64xf32>,
    %48 = vector.extract_strided_slice %39 {offsets = [1, 0, 0], sizes = [1, 16, 64], strides = [1, 1, 1]} : vector<2x16x64xbf16> to vector<1x16x64xbf16>
    %49 = vector.shape_cast %48 : vector<1x16x64xbf16> to vector<16x64xbf16>
    %c0_57 = arith.constant 0 : index
    %c0_58 = arith.constant 0 : index
    %50 = vector.load %arg7[%c0_57, %c0_58] : memref<16x64xf32, #tpu.memory_space<vmem>>, vector<16x64xf32>
    %c7 = arith.constant 7 : index
    %c0_59 = arith.constant 0 : index
    %c0_60 = arith.constant 0 : index
    %c0_61 = arith.constant 0 : index
    %51 = vector.load %arg3[%c7, %c0_59, %c0_60, %c0_61] : memref<9x1x64x64xbf16, #tpu.memory_space<vmem>>, vector<1x1x64x64xbf16>
    %52 = vector.shape_cast %51 : vector<1x1x64x64xbf16> to vector<64x64xbf16>
    %cst_62 = arith.constant dense<0.000000e+00> : vector<16x64xf32>
    %53 = tpu.matmul %49, %52, %cst_62 {dimension_numbers = #tpu.dot_dimension_numbers<[1], [0], [0], [1], [0, 0, 1, 1], [], []>} : vector<16x64xbf16>, vector<64x64xbf16>, vector<16x64xf32> -> vector<16x64xf32>
    %54 = arith.addf %50, %53 : vector<16x64xf32>
    %c0_63 = arith.constant 0 : index
    %c0_64 = arith.constant 0 : index
    %55 = vector.load %arg7[%c0_63, %c0_64] : memref<16x64xf32, #tpu.memory_space<vmem>>, vector<16x64xf32>
    tpu.vector_store %arg7[%c0_63, %c0_64], %54 {strides = array<i32>} : memref<16x64xf32, #tpu.memory_space<vmem>>, vector<16x64xf32>,
    %c2_65 = arith.constant 2 : index
    %c0_66 = arith.constant 0 : index
    %c0_67 = arith.constant 0 : index
    %c0_68 = arith.constant 0 : index
    %c0_69 = arith.constant 0 : index
    %56 = vector.load %arg2[%c2_65, %c0_66, %c0_67, %c0_68, %c0_69] : memref<4x1x2x17x64xbf16, #tpu.memory_space<vmem>>, vector<1x1x2x16x64xbf16>
    %57 = vector.shape_cast %56 : vector<1x1x2x16x64xbf16> to vector<2x16x64xbf16>
    %58 = vector.extract_strided_slice %57 {offsets = [0, 0, 0], sizes = [1, 16, 64], strides = [1, 1, 1]} : vector<2x16x64xbf16> to vector<1x16x64xbf16>
    %59 = vector.shape_cast %58 : vector<1x16x64xbf16> to vector<16x64xbf16>
    %c0_70 = arith.constant 0 : index
    %c0_71 = arith.constant 0 : index
    %60 = vector.load %arg7[%c0_70, %c0_71] : memref<16x64xf32, #tpu.memory_space<vmem>>, vector<16x64xf32>
    %c3 = arith.constant 3 : index
    %c0_72 = arith.constant 0 : index
    %c0_73 = arith.constant 0 : index
    %c0_74 = arith.constant 0 : index
    %61 = vector.load %arg3[%c3, %c0_72, %c0_73, %c0_74] : memref<9x1x64x64xbf16, #tpu.memory_space<vmem>>, vector<1x1x64x64xbf16>
    %62 = vector.shape_cast %61 : vector<1x1x64x64xbf16> to vector<64x64xbf16>
    %cst_75 = arith.constant dense<0.000000e+00> : vector<16x64xf32>
    %63 = tpu.matmul %59, %62, %cst_75 {dimension_numbers = #tpu.dot_dimension_numbers<[1], [0], [0], [1], [0, 0, 1, 1], [], []>} : vector<16x64xbf16>, vector<64x64xbf16>, vector<16x64xf32> -> vector<16x64xf32>
    %64 = arith.addf %60, %63 : vector<16x64xf32>
    %c0_76 = arith.constant 0 : index
    %c0_77 = arith.constant 0 : index
    %65 = vector.load %arg7[%c0_76, %c0_77] : memref<16x64xf32, #tpu.memory_space<vmem>>, vector<16x64xf32>
    tpu.vector_store %arg7[%c0_76, %c0_77], %64 {strides = array<i32>} : memref<16x64xf32, #tpu.memory_space<vmem>>, vector<16x64xf32>,
    %c2_78 = arith.constant 2 : index
    %c0_79 = arith.constant 0 : index
    %c0_80 = arith.constant 0 : index
    %c1_81 = arith.constant 1 : index
    %c0_82 = arith.constant 0 : index
    %66 = vector.load %arg2[%c2_78, %c0_79, %c0_80, %c1_81, %c0_82] : memref<4x1x2x17x64xbf16, #tpu.memory_space<vmem>>, vector<1x1x2x16x64xbf16>
    %67 = vector.shape_cast %66 : vector<1x1x2x16x64xbf16> to vector<2x16x64xbf16>
    %68 = vector.extract_strided_slice %67 {offsets = [0, 0, 0], sizes = [1, 16, 64], strides = [1, 1, 1]} : vector<2x16x64xbf16> to vector<1x16x64xbf16>
    %69 = vector.shape_cast %68 : vector<1x16x64xbf16> to vector<16x64xbf16>
    %c0_83 = arith.constant 0 : index
    %c0_84 = arith.constant 0 : index
    %70 = vector.load %arg7[%c0_83, %c0_84] : memref<16x64xf32, #tpu.memory_space<vmem>>, vector<16x64xf32>
    %c5 = arith.constant 5 : index
    %c0_85 = arith.constant 0 : index
    %c0_86 = arith.constant 0 : index
    %c0_87 = arith.constant 0 : index
    %71 = vector.load %arg3[%c5, %c0_85, %c0_86, %c0_87] : memref<9x1x64x64xbf16, #tpu.memory_space<vmem>>, vector<1x1x64x64xbf16>
    %72 = vector.shape_cast %71 : vector<1x1x64x64xbf16> to vector<64x64xbf16>
    %cst_88 = arith.constant dense<0.000000e+00> : vector<16x64xf32>
    %73 = tpu.matmul %69, %72, %cst_88 {dimension_numbers = #tpu.dot_dimension_numbers<[1], [0], [0], [1], [0, 0, 1, 1], [], []>} : vector<16x64xbf16>, vector<64x64xbf16>, vector<16x64xf32> -> vector<16x64xf32>
    %74 = arith.addf %70, %73 : vector<16x64xf32>
    %c0_89 = arith.constant 0 : index
    %c0_90 = arith.constant 0 : index
    %75 = vector.load %arg7[%c0_89, %c0_90] : memref<16x64xf32, #tpu.memory_space<vmem>>, vector<16x64xf32>
    tpu.vector_store %arg7[%c0_89, %c0_90], %74 {strides = array<i32>} : memref<16x64xf32, #tpu.memory_space<vmem>>, vector<16x64xf32>,
    %c3_91 = arith.constant 3 : index
    %c0_92 = arith.constant 0 : index
    %c0_93 = arith.constant 0 : index
    %c0_94 = arith.constant 0 : index
    %c0_95 = arith.constant 0 : index
    %76 = vector.load %arg2[%c3_91, %c0_92, %c0_93, %c0_94, %c0_95] : memref<4x1x2x17x64xbf16, #tpu.memory_space<vmem>>, vector<1x1x2x16x64xbf16>
    %77 = vector.shape_cast %76 : vector<1x1x2x16x64xbf16> to vector<2x16x64xbf16>
    %78 = vector.extract_strided_slice %77 {offsets = [0, 0, 0], sizes = [1, 16, 64], strides = [1, 1, 1]} : vector<2x16x64xbf16> to vector<1x16x64xbf16>
    %79 = vector.shape_cast %78 : vector<1x16x64xbf16> to vector<16x64xbf16>
    %c0_96 = arith.constant 0 : index
    %c0_97 = arith.constant 0 : index
    %80 = vector.load %arg7[%c0_96, %c0_97] : memref<16x64xf32, #tpu.memory_space<vmem>>, vector<16x64xf32>
    %c4 = arith.constant 4 : index
    %c0_98 = arith.constant 0 : index
    %c0_99 = arith.constant 0 : index
    %c0_100 = arith.constant 0 : index
    %81 = vector.load %arg3[%c4, %c0_98, %c0_99, %c0_100] : memref<9x1x64x64xbf16, #tpu.memory_space<vmem>>, vector<1x1x64x64xbf16>
    %82 = vector.shape_cast %81 : vector<1x1x64x64xbf16> to vector<64x64xbf16>
    %cst_101 = arith.constant dense<0.000000e+00> : vector<16x64xf32>
    %83 = tpu.matmul %79, %82, %cst_101 {dimension_numbers = #tpu.dot_dimension_numbers<[1], [0], [0], [1], [0, 0, 1, 1], [], []>} : vector<16x64xbf16>, vector<64x64xbf16>, vector<16x64xf32> -> vector<16x64xf32>
    %84 = arith.addf %80, %83 : vector<16x64xf32>
    %c0_102 = arith.constant 0 : index
    %c0_103 = arith.constant 0 : index
    %85 = vector.load %arg7[%c0_102, %c0_103] : memref<16x64xf32, #tpu.memory_space<vmem>>, vector<16x64xf32>
    tpu.vector_store %arg7[%c0_102, %c0_103], %84 {strides = array<i32>} : memref<16x64xf32, #tpu.memory_space<vmem>>, vector<16x64xf32>,
    %c0_104 = arith.constant 0 : index
    %c0_105 = arith.constant 0 : index
    %86 = vector.load %arg7[%c0_104, %c0_105] : memref<16x64xf32, #tpu.memory_space<vmem>>, vector<16x64xf32>
    %c0_106 = arith.constant 0 : index
    %c0_107 = arith.constant 0 : index
    %87 = vector.load %arg4[%c0_106, %c0_107] : memref<1x64xf32, #tpu.memory_space<vmem>>, vector<1x64xf32>
    %88 = vector.broadcast %87 : vector<1x64xf32> to vector<16x64xf32>
    %89 = arith.mulf %86, %88 : vector<16x64xf32>
    %c0_108 = arith.constant 0 : index
    %c0_109 = arith.constant 0 : index
    %90 = vector.load %arg5[%c0_108, %c0_109] : memref<1x64xf32, #tpu.memory_space<vmem>>, vector<1x64xf32>
    %91 = vector.broadcast %90 : vector<1x64xf32> to vector<16x64xf32>
    %92 = arith.addf %89, %91 : vector<16x64xf32>
    %cst_110 = arith.constant 0.000000e+00 : f32
    %93 = vector.broadcast %cst_110 : f32 to vector<16x64xf32>
    %94 = arith.maximumf %92, %93 : vector<16x64xf32>
    %95 = arith.truncf %94 : vector<16x64xf32> to vector<16x64xbf16>
    %c0_111 = arith.constant 0 : index
    %c0_112 = arith.constant 0 : index
    %c0_113 = arith.constant 0 : index
    %96 = vector.load %arg6[%c0_111, %c0_112, %c0_113] : memref<1x16x64xbf16, #tpu.memory_space<vmem>>, vector<1x16x64xbf16>
    %97 = vector.shape_cast %96 : vector<1x16x64xbf16> to vector<16x64xbf16>
    %98 = vector.shape_cast %95 : vector<16x64xbf16> to vector<1x16x64xbf16>
    tpu.vector_store %arg6[%c0_111, %c0_112, %c0_113], %98 {strides = array<i32>} : memref<1x16x64xbf16, #tpu.memory_space<vmem>>, vector<1x16x64xbf16>,
    return
  }
  func.func @transform_0(%arg0: i32, %arg1: i32) -> (i32, i32, i32, i32, i32) {
    %c0_i32 = arith.constant 0 : i32
    %c0_i32_0 = arith.constant 0 : i32
    %c0_i32_1 = arith.constant 0 : i32
    %c0_i32_2 = arith.constant 0 : i32
    return %c0_i32, %arg0, %c0_i32_0, %c0_i32_1, %arg1 : i32, i32, i32, i32, i32
  }
  func.func @transform_1(%arg0: i32, %arg1: i32) -> (i32, i32, i32, i32) {
    %c0_i32 = arith.constant 0 : i32
    %c0_i32_0 = arith.constant 0 : i32
    %c0_i32_1 = arith.constant 0 : i32
    %c0_i32_2 = arith.constant 0 : i32
    return %c0_i32, %arg1, %c0_i32_0, %c0_i32_1 : i32, i32, i32, i32
  }
  func.func @transform_2(%arg0: i32, %arg1: i32) -> (i32, i32) {
    %c0_i32 = arith.constant 0 : i32
    %c0_i32_0 = arith.constant 0 : i32
    return %c0_i32, %arg1 : i32, i32
  }
  func.func @transform_3(%arg0: i32, %arg1: i32) -> (i32, i32) {
    %c0_i32 = arith.constant 0 : i32
    %c0_i32_0 = arith.constant 0 : i32
    return %c0_i32, %arg1 : i32, i32
  }
  func.func @transform_4(%arg0: i32, %arg1: i32) -> (i32, i32, i32) {
    %c0_i32 = arith.constant 0 : i32
    %c0_i32_0 = arith.constant 0 : i32
    return %arg0, %c0_i32, %arg1 : i32, i32, i32
  }
}

module attributes {stable_mosaic.version = 11 : i64} {
  func.func @_mm2_bn_kernel(%arg0: i32, %arg1: memref<16x64xbf16, #tpu.memory_space<vmem>>, %arg2: memref<64x128xbf16, #tpu.memory_space<vmem>>, %arg3: memref<1x128xf32, #tpu.memory_space<vmem>>, %arg4: memref<1x128xf32, #tpu.memory_space<vmem>>, %arg5: memref<16x64xbf16, #tpu.memory_space<vmem>>, %arg6: memref<64x128xbf16, #tpu.memory_space<vmem>>, %arg7: memref<1x128xf32, #tpu.memory_space<vmem>>, %arg8: memref<1x128xf32, #tpu.memory_space<vmem>>, %arg9: memref<16x128xbf16, #tpu.memory_space<vmem>>) attributes {dimension_semantics = [#tpu.dimension_semantics<parallel>], iteration_bounds = array<i64: 1>, scalar_prefetch = 0 : i64, scratch_operands = 0 : i64, tpu.core_type = #tpu.core_type<tc>, window_params = [{transform_indices = @transform_0, window_bounds = array<i64: 16, 64>}, {pipeline_mode = #tpu.pipeline_mode<synchronous>, transform_indices = @transform_1, window_bounds = array<i64: 64, 128>}, {pipeline_mode = #tpu.pipeline_mode<synchronous>, transform_indices = @transform_2, window_bounds = array<i64: 1, 128>}, {pipeline_mode = #tpu.pipeline_mode<synchronous>, transform_indices = @transform_3, window_bounds = array<i64: 1, 128>}, {transform_indices = @transform_4, window_bounds = array<i64: 16, 64>}, {pipeline_mode = #tpu.pipeline_mode<synchronous>, transform_indices = @transform_5, window_bounds = array<i64: 64, 128>}, {pipeline_mode = #tpu.pipeline_mode<synchronous>, transform_indices = @transform_6, window_bounds = array<i64: 1, 128>}, {pipeline_mode = #tpu.pipeline_mode<synchronous>, transform_indices = @transform_7, window_bounds = array<i64: 1, 128>}, {transform_indices = @transform_8, window_bounds = array<i64: 16, 128>}]} {
    %c0 = arith.constant 0 : index
    %c0_0 = arith.constant 0 : index
    %0 = vector.load %arg1[%c0, %c0_0] : memref<16x64xbf16, #tpu.memory_space<vmem>>, vector<16x64xbf16>
    %c0_1 = arith.constant 0 : index
    %c0_2 = arith.constant 0 : index
    %1 = vector.load %arg2[%c0_1, %c0_2] : memref<64x128xbf16, #tpu.memory_space<vmem>>, vector<64x128xbf16>
    %cst = arith.constant dense<0.000000e+00> : vector<16x128xf32>
    %2 = tpu.matmul %0, %1, %cst {dimension_numbers = #tpu.dot_dimension_numbers<[1], [0], [0], [1], [0, 0, 1, 1], [], []>} : vector<16x64xbf16>, vector<64x128xbf16>, vector<16x128xf32> -> vector<16x128xf32>
    %c0_3 = arith.constant 0 : index
    %c0_4 = arith.constant 0 : index
    %3 = vector.load %arg3[%c0_3, %c0_4] : memref<1x128xf32, #tpu.memory_space<vmem>>, vector<1x128xf32>
    %4 = vector.broadcast %3 : vector<1x128xf32> to vector<16x128xf32>
    %5 = arith.mulf %2, %4 : vector<16x128xf32>
    %c0_5 = arith.constant 0 : index
    %c0_6 = arith.constant 0 : index
    %6 = vector.load %arg4[%c0_5, %c0_6] : memref<1x128xf32, #tpu.memory_space<vmem>>, vector<1x128xf32>
    %7 = vector.broadcast %6 : vector<1x128xf32> to vector<16x128xf32>
    %8 = arith.addf %5, %7 : vector<16x128xf32>
    %c0_7 = arith.constant 0 : index
    %c0_8 = arith.constant 0 : index
    %9 = vector.load %arg5[%c0_7, %c0_8] : memref<16x64xbf16, #tpu.memory_space<vmem>>, vector<16x64xbf16>
    %c0_9 = arith.constant 0 : index
    %c0_10 = arith.constant 0 : index
    %10 = vector.load %arg6[%c0_9, %c0_10] : memref<64x128xbf16, #tpu.memory_space<vmem>>, vector<64x128xbf16>
    %cst_11 = arith.constant dense<0.000000e+00> : vector<16x128xf32>
    %11 = tpu.matmul %9, %10, %cst_11 {dimension_numbers = #tpu.dot_dimension_numbers<[1], [0], [0], [1], [0, 0, 1, 1], [], []>} : vector<16x64xbf16>, vector<64x128xbf16>, vector<16x128xf32> -> vector<16x128xf32>
    %c0_12 = arith.constant 0 : index
    %c0_13 = arith.constant 0 : index
    %12 = vector.load %arg7[%c0_12, %c0_13] : memref<1x128xf32, #tpu.memory_space<vmem>>, vector<1x128xf32>
    %13 = vector.broadcast %12 : vector<1x128xf32> to vector<16x128xf32>
    %14 = arith.mulf %11, %13 : vector<16x128xf32>
    %15 = arith.addf %8, %14 : vector<16x128xf32>
    %c0_14 = arith.constant 0 : index
    %c0_15 = arith.constant 0 : index
    %16 = vector.load %arg8[%c0_14, %c0_15] : memref<1x128xf32, #tpu.memory_space<vmem>>, vector<1x128xf32>
    %17 = vector.broadcast %16 : vector<1x128xf32> to vector<16x128xf32>
    %18 = arith.addf %15, %17 : vector<16x128xf32>
    %cst_16 = arith.constant 0.000000e+00 : f32
    %19 = vector.broadcast %cst_16 : f32 to vector<16x128xf32>
    %20 = arith.maximumf %18, %19 : vector<16x128xf32>
    %21 = arith.truncf %20 : vector<16x128xf32> to vector<16x128xbf16>
    %c0_17 = arith.constant 0 : index
    %c0_18 = arith.constant 0 : index
    %22 = vector.load %arg9[%c0_17, %c0_18] : memref<16x128xbf16, #tpu.memory_space<vmem>>, vector<16x128xbf16>
    tpu.vector_store %arg9[%c0_17, %c0_18], %21 {strides = array<i32>} : memref<16x128xbf16, #tpu.memory_space<vmem>>, vector<16x128xbf16>,
    return
  }
  func.func @transform_0(%arg0: i32) -> (i32, i32) {
    %c0_i32 = arith.constant 0 : i32
    %c0_i32_0 = arith.constant 0 : i32
    return %arg0, %c0_i32 : i32, i32
  }
  func.func @transform_1(%arg0: i32) -> (i32, i32) {
    %c0_i32 = arith.constant 0 : i32
    %c0_i32_0 = arith.constant 0 : i32
    %c0_i32_1 = arith.constant 0 : i32
    return %c0_i32, %c0_i32_0 : i32, i32
  }
  func.func @transform_2(%arg0: i32) -> (i32, i32) {
    %c0_i32 = arith.constant 0 : i32
    %c0_i32_0 = arith.constant 0 : i32
    %c0_i32_1 = arith.constant 0 : i32
    return %c0_i32, %c0_i32_0 : i32, i32
  }
  func.func @transform_3(%arg0: i32) -> (i32, i32) {
    %c0_i32 = arith.constant 0 : i32
    %c0_i32_0 = arith.constant 0 : i32
    %c0_i32_1 = arith.constant 0 : i32
    return %c0_i32, %c0_i32_0 : i32, i32
  }
  func.func @transform_4(%arg0: i32) -> (i32, i32) {
    %c0_i32 = arith.constant 0 : i32
    %c0_i32_0 = arith.constant 0 : i32
    return %arg0, %c0_i32 : i32, i32
  }
  func.func @transform_5(%arg0: i32) -> (i32, i32) {
    %c0_i32 = arith.constant 0 : i32
    %c0_i32_0 = arith.constant 0 : i32
    %c0_i32_1 = arith.constant 0 : i32
    return %c0_i32, %c0_i32_0 : i32, i32
  }
  func.func @transform_6(%arg0: i32) -> (i32, i32) {
    %c0_i32 = arith.constant 0 : i32
    %c0_i32_0 = arith.constant 0 : i32
    %c0_i32_1 = arith.constant 0 : i32
    return %c0_i32, %c0_i32_0 : i32, i32
  }
  func.func @transform_7(%arg0: i32) -> (i32, i32) {
    %c0_i32 = arith.constant 0 : i32
    %c0_i32_0 = arith.constant 0 : i32
    %c0_i32_1 = arith.constant 0 : i32
    return %c0_i32, %c0_i32_0 : i32, i32
  }
  func.func @transform_8(%arg0: i32) -> (i32, i32) {
    %c0_i32 = arith.constant 0 : i32
    %c0_i32_0 = arith.constant 0 : i32
    return %arg0, %c0_i32 : i32, i32
  }
}

module attributes {stable_mosaic.version = 11 : i64} {
  func.func @_pool_fc_kernel(%arg0: i32, %arg1: memref<2x1x128xbf16, #tpu.memory_space<vmem>>, %arg2: memref<128x128xbf16, #tpu.memory_space<vmem>>, %arg3: memref<1x128xf32, #tpu.memory_space<vmem>>, %arg4: memref<2x128xf32, #tpu.memory_space<vmem>>) attributes {dimension_semantics = [#tpu.dimension_semantics<arbitrary>], iteration_bounds = array<i64: 1>, scalar_prefetch = 0 : i64, scratch_operands = 0 : i64, tpu.core_type = #tpu.core_type<tc>, window_params = [{pipeline_mode = #tpu.pipeline_mode<synchronous>, transform_indices = @transform_0, window_bounds = array<i64: 2, 1, 128>}, {pipeline_mode = #tpu.pipeline_mode<synchronous>, transform_indices = @transform_1, window_bounds = array<i64: 128, 128>}, {pipeline_mode = #tpu.pipeline_mode<synchronous>, transform_indices = @transform_2, window_bounds = array<i64: 1, 128>}, {pipeline_mode = #tpu.pipeline_mode<synchronous>, transform_indices = @transform_3, window_bounds = array<i64: 2, 128>}]} {
    %c0 = arith.constant 0 : index
    %c0_0 = arith.constant 0 : index
    %c0_1 = arith.constant 0 : index
    %0 = vector.load %arg1[%c0, %c0_0, %c0_1] : memref<2x1x128xbf16, #tpu.memory_space<vmem>>, vector<2x1x128xbf16>
    %1 = arith.extf %0 : vector<2x1x128xbf16> to vector<2x1x128xf32>
    %cst = arith.constant dense<0.000000e+00> : vector<2x128xf32>
    %2 = vector.multi_reduction <add>, %1, %cst [1] : vector<2x1x128xf32> to vector<2x128xf32>
    %cst_2 = arith.constant 1.000000e+00 : f32
    %3 = vector.broadcast %cst_2 : f32 to vector<2x128xf32>
    %4 = arith.divf %2, %3 : vector<2x128xf32>
    %5 = arith.truncf %4 : vector<2x128xf32> to vector<2x128xbf16>
    %c0_3 = arith.constant 0 : index
    %c0_4 = arith.constant 0 : index
    %6 = vector.load %arg2[%c0_3, %c0_4] : memref<128x128xbf16, #tpu.memory_space<vmem>>, vector<128x128xbf16>
    %cst_5 = arith.constant dense<0.000000e+00> : vector<2x128xf32>
    %7 = tpu.matmul %5, %6, %cst_5 {dimension_numbers = #tpu.dot_dimension_numbers<[1], [0], [0], [1], [0, 0, 1, 1], [], []>} : vector<2x128xbf16>, vector<128x128xbf16>, vector<2x128xf32> -> vector<2x128xf32>
    %c0_6 = arith.constant 0 : index
    %c0_7 = arith.constant 0 : index
    %8 = vector.load %arg3[%c0_6, %c0_7] : memref<1x128xf32, #tpu.memory_space<vmem>>, vector<1x128xf32>
    %9 = vector.broadcast %8 : vector<1x128xf32> to vector<2x128xf32>
    %10 = arith.addf %7, %9 : vector<2x128xf32>
    %c0_8 = arith.constant 0 : index
    %c0_9 = arith.constant 0 : index
    %11 = vector.load %arg4[%c0_8, %c0_9] : memref<2x128xf32, #tpu.memory_space<vmem>>, vector<2x128xf32>
    tpu.vector_store %arg4[%c0_8, %c0_9], %10 {strides = array<i32>} : memref<2x128xf32, #tpu.memory_space<vmem>>, vector<2x128xf32>,
    return
  }
  func.func @transform_0(%arg0: i32) -> (i32, i32, i32) {
    %c0_i32 = arith.constant 0 : i32
    %c0_i32_0 = arith.constant 0 : i32
    %c0_i32_1 = arith.constant 0 : i32
    %c0_i32_2 = arith.constant 0 : i32
    return %c0_i32, %c0_i32_0, %c0_i32_1 : i32, i32, i32
  }
  func.func @transform_1(%arg0: i32) -> (i32, i32) {
    %c0_i32 = arith.constant 0 : i32
    %c0_i32_0 = arith.constant 0 : i32
    %c0_i32_1 = arith.constant 0 : i32
    return %c0_i32, %c0_i32_0 : i32, i32
  }
  func.func @transform_2(%arg0: i32) -> (i32, i32) {
    %c0_i32 = arith.constant 0 : i32
    %c0_i32_0 = arith.constant 0 : i32
    %c0_i32_1 = arith.constant 0 : i32
    return %c0_i32, %c0_i32_0 : i32, i32
  }
  func.func @transform_3(%arg0: i32) -> (i32, i32) {
    %c0_i32 = arith.constant 0 : i32
    %c0_i32_0 = arith.constant 0 : i32
    %c0_i32_1 = arith.constant 0 : i32
    return %c0_i32, %c0_i32_0 : i32, i32
  }
}

</mosaic_0001>

<bundles_post_ra>
// kernel: _lambda_.16
= control target key start
LH: loop header
LB: loop body
LE: loop exit
PB: predicated region body
PF: predicated region fallthrough
CT: control target
= control target key end

     0   :  { %s996_s6 = smov 0   ;;  %s998_s7 = smov 0   ;;  %s1313_s0 = inlined_call_operand.vmem [shape: bf16[4,2,9,9,64], index: 0, kind: input, shape index: {}]   ;;  %s1314_s1 = inlined_call_operand.vmem [shape: bf16[2,8,8,64], index: 1, kind: output, shape index: {}]  }
   0x1   :  { %s1000_s8 = smov 0  }
   0x2 LB: > { %s891_s9 = sadd.s32 4294967295, %s984_s8   ;;  %s1013_s10 = sadd.s32 1, %s984_s8   ;;  %s984_s8 = sphi %s1000_s8, %s1320_s8   ;;  %s980_s7 = sphi %s998_s7, %s1319_s7   ;;  %s976_s6 = sphi %s996_s6, %s1318_s6  }
   0x3   : > { %s15_s11 = ssub.s32 %s984_s8, %s1013_s10  ;;  %s18_s12 = sadd.s32 1, %s980_s7 }
   0x4   : > { %p16_p0 = scmp.eq.s32.totalorder %s15_s11, 0  ;;  %p25_p1 = scmp.ne.s32.totalorder %s980_s7, %s976_s6 }
   0x5   : > { %p26_p2 = scmp.eq.s32.totalorder %s984_s8, 0  ;;  %p894_p4 = scmp.ge.s32.totalorder %s984_s8, 2 }
   0x6   : > { %s1022_s13 = scalar_select %p16_p0, %s980_s7, %s18_s12  }
   0x7   : > { %p27_p3 = por %p26_p2, %p25_p1  ;;  %77 = sbr.rel (%p894_p4) target bundleno = 35 (0x23), region = 16 }
   0xc   : > { %80 = sbr.rel (!%p27_p3) target bundleno = 35 (0x23), region = 20  ;;  %s82_s14 = sand.u32 (%p27_p3), 1, %s980_s7  }
   0xd   : > { %s936_s15 = smul.u32 (%p27_p3), 72, %s984_s8 }
   0xe   : > { %s935_s16 = smul.u32 (%p27_p3), 288, %s82_s14 }
   0xf   : > { %s1030_s19 = scalar_lea.vmem (%p27_p3), %s1313_s0, %s936_s15 }
  0x10   : > { %v104_v0 = vld [vmem:[%s1030_s19] sm:$0xff] (%p27_p3)   ;;  %v108_v1 = vld [vmem:[%s1030_s19 + $0x8] sm:$0xff] (%p27_p3)   ;;  %v112_v2 = vld [vmem:[%s1030_s19 + $0x10] sm:$0xff] (%p27_p3)   ;;  %s1035_s20 = scalar_lea.vmem (%p27_p3), [#allocation2], %s935_s16 }
  0x11   : > { %105 = vst [vmem:[%s1035_s20] sm:$0xff] %v104_v0   ;;  %109 = vst [vmem:[%s1035_s20 + $0x8] sm:$0xff] %v108_v1   ;;  %v116_v3 = vld [vmem:[%s1030_s19 + $0x18] sm:$0xff]   ;;  %v120_v4 = vld [vmem:[%s1030_s19 + $0x20] sm:$0xff]  }
  0x12   : > { %113 = vst [vmem:[%s1035_s20 + $0x10] sm:$0xff] %v112_v2   ;;  %v124_v5 = vld [vmem:[%s1030_s19 + $0x28] sm:$0xff]   ;;  %117 = vst [vmem:[%s1035_s20 + $0x18] sm:$0xff] %v116_v3   ;;  %v128_v6 = vld [vmem:[%s1030_s19 + $0x30] sm:$0xff]  }
  0x13   : > { %121 = vst [vmem:[%s1035_s20 + $0x20] sm:$0xff] %v120_v4   ;;  %125 = vst [vmem:[%s1035_s20 + $0x28] sm:$0xff] %v124_v5   ;;  %v132_v7 = vld [vmem:[%s1030_s19 + $0x38] sm:$0xff]   ;;  %v136_v8 = vld [vmem:[%s1030_s19 + $0x40] sm:$0xff]  }
  0x14   : > { %129 = vst [vmem:[%s1035_s20 + $0x30] sm:$0xff] %v128_v6   ;;  %133 = vst [vmem:[%s1035_s20 + $0x38] sm:$0xff] %v132_v7   ;;  %v140_v9 = vld [vmem:[%s1030_s19 + $0x90] sm:$0xff]   ;;  %v144_v10 = vld [vmem:[%s1030_s19 + $0x98] sm:$0xff]  }
  0x15   : > { %137 = vst [vmem:[%s1035_s20 + $0x40] sm:$0xff] %v136_v8   ;;  %v148_v11 = vld [vmem:[%s1030_s19 + $0xa0] sm:$0xff]   ;;  %141 = vst [vmem:[%s1035_s20 + $0x48] sm:$0xff] %v140_v9   ;;  %v152_v12 = vld [vmem:[%s1030_s19 + $0xa8] sm:$0xff]  }
  0x16   : > { %145 = vst [vmem:[%s1035_s20 + $0x50] sm:$0xff] %v144_v10   ;;  %149 = vst [vmem:[%s1035_s20 + $0x58] sm:$0xff] %v148_v11   ;;  %v156_v13 = vld [vmem:[%s1030_s19 + $0xb0] sm:$0xff]   ;;  %v160_v14 = vld [vmem:[%s1030_s19 + $0xb8] sm:$0xff]  }
  0x17   : > { %153 = vst [vmem:[%s1035_s20 + $0x60] sm:$0xff] %v152_v12   ;;  %157 = vst [vmem:[%s1035_s20 + $0x68] sm:$0xff] %v156_v13   ;;  %v164_v15 = vld [vmem:[%s1030_s19 + $0xc0] sm:$0xff]   ;;  %v168_v16 = vld [vmem:[%s1030_s19 + $0xc8] sm:$0xff]  }
  0x18   : > { %161 = vst [vmem:[%s1035_s20 + $0x70] sm:$0xff] %v160_v14   ;;  %v172_v17 = vld [vmem:[%s1030_s19 + $0xd0] sm:$0xff]   ;;  %165 = vst [vmem:[%s1035_s20 + $0x78] sm:$0xff] %v164_v15   ;;  %v176_v18 = vld [vmem:[%s1030_s19 + $0x120] sm:$0xff]  }
  0x19   : > { %169 = vst [vmem:[%s1035_s20 + $0x80] sm:$0xff] %v168_v16   ;;  %173 = vst [vmem:[%s1035_s20 + $0x88] sm:$0xff] %v172_v17   ;;  %v180_v19 = vld [vmem:[%s1030_s19 + $0x128] sm:$0xff]   ;;  %v184_v20 = vld [vmem:[%s1030_s19 + $0x130] sm:$0xff]  }
  0x1a   : > { %177 = vst [vmem:[%s1035_s20 + $0x90] sm:$0xff] %v176_v18   ;;  %181 = vst [vmem:[%s1035_s20 + $0x98] sm:$0xff] %v180_v19   ;;  %v188_v21 = vld [vmem:[%s1030_s19 + $0x138] sm:$0xff]   ;;  %v192_v22 = vld [vmem:[%s1030_s19 + $0x140] sm:$0xff]  }
  0x1b   : > { %185 = vst [vmem:[%s1035_s20 + $0xa0] sm:$0xff] %v184_v20   ;;  %v196_v23 = vld [vmem:[%s1030_s19 + $0x148] sm:$0xff]   ;;  %189 = vst [vmem:[%s1035_s20 + $0xa8] sm:$0xff] %v188_v21   ;;  %v200_v24 = vld [vmem:[%s1030_s19 + $0x150] sm:$0xff]  }
  0x1c   : > { %193 = vst [vmem:[%s1035_s20 + $0xb0] sm:$0xff] %v192_v22   ;;  %197 = vst [vmem:[%s1035_s20 + $0xb8] sm:$0xff] %v196_v23   ;;  %v204_v25 = vld [vmem:[%s1030_s19 + $0x158] sm:$0xff]   ;;  %v208_v26 = vld [vmem:[%s1030_s19 + $0x160] sm:$0xff]  }
  0x1d   : > { %201 = vst [vmem:[%s1035_s20 + $0xc0] sm:$0xff] %v200_v24   ;;  %205 = vst [vmem:[%s1035_s20 + $0xc8] sm:$0xff] %v204_v25   ;;  %v212_v27 = vld [vmem:[%s1030_s19 + $0x1b0] sm:$0xff]   ;;  %v216_v28 = vld [vmem:[%s1030_s19 + $0x1b8] sm:$0xff]  }
  0x1e   : > { %209 = vst [vmem:[%s1035_s20 + $0xd0] sm:$0xff] %v208_v26   ;;  %v220_v29 = vld [vmem:[%s1030_s19 + $0x1c0] sm:$0xff]   ;;  %213 = vst [vmem:[%s1035_s20 + $0xd8] sm:$0xff] %v212_v27   ;;  %v224_v30 = vld [vmem:[%s1030_s19 + $0x1c8] sm:$0xff]  }
  0x1f   : > { %217 = vst [vmem:[%s1035_s20 + $0xe0] sm:$0xff] %v216_v28   ;;  %221 = vst [vmem:[%s1035_s20 + $0xe8] sm:$0xff] %v220_v29   ;;  %v228_v31 = vld [vmem:[%s1030_s19 + $0x1d0] sm:$0xff]   ;;  %v232_v32 = vld [vmem:[%s1030_s19 + $0x1d8] sm:$0xff]  }
  0x20   : > { %225 = vst [vmem:[%s1035_s20 + $0xf0] sm:$0xff] %v224_v30   ;;  %229 = vst [vmem:[%s1035_s20 + $0xf8] sm:$0xff] %v228_v31   ;;  %v236_v33 = vld [vmem:[%s1030_s19 + $0x1e0] sm:$0xff]   ;;  %v240_v34 = vld [vmem:[%s1030_s19 + $0x1e8] sm:$0xff]  }
  0x21   : > { %233 = vst [vmem:[%s1035_s20 + $0x100] sm:$0xff] %v232_v32   ;;  %v244_v35 = vld [vmem:[%s1030_s19 + $0x1f0] sm:$0xff]   ;;  %237 = vst [vmem:[%s1035_s20 + $0x108] sm:$0xff] %v236_v33  }
  0x22   : > { %241 = vst [vmem:[%s1035_s20 + $0x110] sm:$0xff] %v240_v34   ;;  %245 = vst [vmem:[%s1035_s20 + $0x118] sm:$0xff] %v244_v35  }
  0x23 PF: > { %p896_p5 = scmp.ge.s32.totalorder %s984_s8, 1  ;;  %p414_p6 = scmp.lt.s32.totalorder %s984_s8, 3 }
  0x25   : > { %p415_p7 = pnand %p896_p5, %p414_p6 }
  0x26   : > { %s421_s21 = sand.u32 (!%p415_p7), 1, %s976_s6   ;;  %p1139_p8 = scmp.lt.s32.totalorder (!%p415_p7), %s891_s9, 1 }
  0x27   : > { %418 = sbr.rel (%p415_p7) target bundleno = 113 (0x71), region = 61 }
  0x28   : > { %s937_s22 = smul.u32 (!%p415_p7), 288, %s421_s21 }
  0x2a   : > { %s1109_s23 = scalar_lea.vmem (!%p415_p7), [#allocation2], %s937_s22 }
  0x2c   : > { %v445_v36 = vld [vmem:[%s1109_s23] sm:$0xf]  ;;  %v446_v37 = vld [vmem:[%s1109_s23 + $0x8] sm:$0xf]  ;;  %vm471_vm0 = vsmask.f32 3328 }
  0x2d   : > { %v462_v38 = vld [vmem:[%s1109_s23 + $0x4] sm:$0x1]  ;;  %v463_v39 = vld [vmem:[%s1109_s23 + $0xc] sm:$0x1]  ;;  %v475_v40 = vshrl.u32 %v445_v36, 16  ;;  %v478_v41 = vshll.u32 %v445_v36, 16  ;;  %v454_v57 = vmax.bf16 %v446_v37, %v445_v36 }
  0x2e   : > { %v484_v42 = vshll.u32 %v462_v38, 16  ;;  %v489_v43 = vshrl.u32 %v446_v37, 16  ;;  %v492_v44 = vshll.u32 %v446_v37, 16  ;;  %v498_v45 = vshll.u32 %v463_v39, 16  ;;  %v1116_v48 = vld [vmem:[%s1109_s23 + $0x90] sm:$0xf] }
  0x2f   : > { %vm472_vm1 = vsmask.f32 7440  ;;  %v477_v46 = vrot.slane %v475_v40, 4  ;;  %v480_v47 = vrot.slane %v478_v41, 5  ;;  %v916_v52 = vld [vmem:[%s1109_s23 + $0x94] sm:$0x1] }
  0x30   : > { %v486_v49 = vrot.slane %v484_v42, 5  ;;  %v491_v50 = vrot.slane %v489_v43, 4  ;;  %v494_v51 = vrot.slane %v492_v44, 5  ;;  %v677_v54 = vshrl.u32 %v1116_v48, 16  ;;  %vm1122_vm2 = vmor %vm471_vm0, %vm472_vm1  ;;  %v447_v61 = vld [vmem:[%s1109_s23 + $0x10] sm:$0xf] }
  0x31   : > { %v481_v53 = vor.u32 %v480_v47, %v477_v46  ;;  %v680_v55 = vshll.u32 %v1116_v48, 16  ;;  %v686_v56 = vshll.u32 %v916_v52, 16  ;;  %v500_v60 = vrot.slane %v498_v45, 5  ;;  %v464_v62 = vld [vmem:[%s1109_s23 + $0x14] sm:$0x1]  ;;  %s1322_s9 = smov (!%p1139_p8, %s891_s9), 1 }
  0x32   : > { %v495_v59 = vor.u32 %v494_v51, %v491_v50  ;;  %v679_v0 = vrot.slane %v677_v54, 4  ;;  %v1131_v3 = vld [vmem:[%s1109_s23 + $0x98] sm:$0xf]  ;;  %v455_v5 = vmax.bf16 %v447_v61, %v446_v37  ;;  %v503_v6 = vshrl.u32 %v447_v61, 16  ;;  %v917_v11 = vld [vmem:[%s1109_s23 + $0x9c] sm:$0x1] }
  0x33   : > { %v482_v63 = vrot.slane %v481_v53, 4  ;;  %v682_v1 = vrot.slane %v680_v55, 5  ;;  %v1128_v2 = vrot.slane %v686_v56, 5  ;;  %v506_v7 = vshll.u32 %v447_v61, 16  ;;  %v1146_v17 = vld [vmem:[%s1109_s23 + $0x18] sm:$0xf] }
  0x34   : > { %v496_v4 = vrot.slane %v495_v59, 4  ;;  %v512_v10 = vshll.u32 %v464_v62, 16  ;;  %v691_v12 = vshrl.u32 %v1131_v3, 16  ;;  %v505_v15 = vrot.slane %v503_v6, 4  ;;  %v899_v18 = vld [vmem:[%s1109_s23 + $0x48] sm:$0xf] }
  0x35   : > { %v487_v8 = vsel %vm1122_vm2, %v482_v63, %v486_v49  ;;  %v683_v9 = vor.u32 %v682_v1, %v679_v0  ;;  %v508_v16 = vrot.slane %v506_v7, 5  ;;  %v694_v25 = vshll.u32 %v1131_v3, 16  ;;  %v465_v27 = vld [vmem:[%s1109_s23 + $0x1c] sm:$0x1]  ;;  %v1152_v28 = vld [vmem:[%s1109_s23 + $0xa0] sm:$0xf] }
  0x36   : > { %v501_v13 = vsel %vm1122_vm2, %v496_v4, %v500_v60  ;;  %v594_v14 = vmax.bf16 %v487_v8, %v454_v57  ;;  %v514_v20 = vrot.slane %v512_v10, 5  ;;  %v693_v22 = vrot.slane %v691_v12, 4  ;;  %v900_v37 = vld [vmem:[%s1109_s23 + $0x50] sm:$0xf]  ;;  %v918_v45 = vld [vmem:[%s1109_s23 + $0xa4] sm:$0x1] }
  0x37   : > { %v684_v19 = vrot.slane %v683_v9, 4  ;;  %v595_v21 = vmax.bf16 %v501_v13, %v455_v5  ;;  %v509_v24 = vor.u32 %v508_v16, %v505_v15  ;;  %v700_v26 = vshll.u32 %v917_v11, 16  ;;  %v1173_v52 = vld [vmem:[%s1109_s23 + $0x20] sm:$0xf]  ;;  %s934_s25 = sshll.u32 %s1322_s9, 5 }
  0x38   : > { %v617_v23 = vmax.bf16 %v594_v14, %v501_v13  ;;  %vm821_vm3 = vcmask 519168   ;;  %v456_v30 = vmax.bf16 %v1146_v17, %v447_v61  ;;  %v517_v31 = vshrl.u32 %v1146_v17, 16  ;;  %v924_v57 = vld [vmem:[%s1109_s23 + $0xd8] sm:$0xf]  ;;  %v466_v4 = vld [vmem:[%s1109_s23 + $0x24] sm:$0x1]  ;;  %s1188_s28 = scalar_lea.vmem %s1314_s1, %s934_s25 }
  0x39   : > { %v689_v29 = vsel %vm1122_vm2, %v684_v19, %v1128_v2  ;;  %v520_v32 = vshll.u32 %v1146_v17, 16  ;;  %v510_v34 = vrot.slane %v509_v24, 4  ;;  %v696_v35 = vrot.slane %v694_v25, 5  ;;  %v901_v0 = vld [vmem:[%s1109_s23 + $0x58] sm:$0xf] }
  0x3a   : > { %v635_v33 = vmax.bf16 %v899_v18, %v617_v23  ;;  %v702_v36 = vrot.slane %v700_v26, 5  ;;  %v519_v38 = vrot.slane %v517_v31, 4  ;;  %v526_v40 = vshll.u32 %v465_v27, 16  ;;  %v1194_v9 = vld [vmem:[%s1109_s23 + $0xa8] sm:$0xf] }
  0x3b   : > { %v522_v39 = vrot.slane %v520_v32, 5  ;;  %v705_v41 = vshrl.u32 %v1152_v28, 16  ;;  %v515_v43 = vsel %vm1122_vm2, %v510_v34, %v514_v20  ;;  %v697_v44 = vor.u32 %v696_v35, %v693_v22  ;;  %v919_v14 = vld [vmem:[%s1109_s23 + $0xac] sm:$0x1]  ;;  %v925_v19 = vld [vmem:[%s1109_s23 + $0xe0] sm:$0xf] }
  0x3c   : > { %v643_v42 = vmax.bf16 %v900_v37, %v635_v33  ;;  %v708_v46 = vshll.u32 %v1152_v28, 16  ;;  %v618_v47 = vmax.bf16 %v595_v21, %v515_v43  ;;  %v528_v50 = vrot.slane %v526_v40, 5  ;;  %v1206_v24 = vld [vmem:[%s1109_s23 + $0x28] sm:$0xf]  ;;  %v1213_v35 = vld [vmem:[%s1109_s23 + $0xb0] sm:$0xf] }
  0x3d   : > { %v523_v49 = vor.u32 %v522_v39, %v519_v38  ;;  %v596_v51 = vmax.bf16 %v515_v43, %v456_v30  ;;  %v698_v54 = vrot.slane %v697_v44, 4  ;;  %v707_v55 = vrot.slane %v705_v41, 4  ;;  %v467_v30 = vld [vmem:[%s1109_s23 + $0x2c] sm:$0x1]  ;;  %v926_v44 = vld [vmem:[%s1109_s23 + $0xe8] sm:$0xf] }
  0x3e   : > { %v660_v53 = vmax.bf16 %v1116_v48, %v643_v42  ;;  %v710_v56 = vrot.slane %v708_v46, 5  ;;  %v636_v59 = vmax.bf16 %v900_v37, %v618_v47  ;;  %v714_v61 = vshll.u32 %v918_v45, 16 }
  0x3f   : > { %v524_v60 = vrot.slane %v523_v49, 4  ;;  %v457_v62 = vmax.bf16 %v1173_v52, %v1146_v17  ;;  %v703_v1 = vsel %vm1122_vm2, %v698_v54, %v702_v36  ;;  %v531_v48 = vshrl.u32 %v1173_v52, 16  ;;  %v1227_v54 = vld [vmem:[%s1109_s23 + $0x30] sm:$0xf] }
  0x40   : > { %v796_v63 = vmax.bf16 %v689_v29, %v660_v53  ;;  %v711_v2 = vor.u32 %v710_v56, %v707_v55  ;;  %v644_v5 = vmax.bf16 %v901_v0, %v636_v59  ;;  %v716_v7 = vrot.slane %v714_v61, 5  ;;  %v920_v53 = vld [vmem:[%s1109_s23 + $0xb4] sm:$0x1] }
  0x41   : > { %v529_v6 = vsel %vm1122_vm2, %v524_v60, %v528_v50  ;;  %v534_v8 = vshll.u32 %v1173_v52, 16  ;;  %v533_v13 = vrot.slane %v531_v48, 4  ;;  %v540_v17 = vshll.u32 %v466_v4, 16  ;;  %v468_v60 = vld [vmem:[%s1109_s23 + $0x34] sm:$0x1] }
  0x42   : > { %v813_v10 = vmax.bf16 %v924_v57, %v796_v63  ;;  %v619_v11 = vmax.bf16 %v596_v51, %v529_v6  ;;  %v712_v12 = vrot.slane %v711_v2, 4  ;;  %v661_v15 = vmax.bf16 %v1131_v3, %v644_v5  ;;  %v902_v3 = vld [vmem:[%s1109_s23 + $0x60] sm:$0xf]  ;;  %v903_v2 = vld [vmem:[%s1109_s23 + $0x68] sm:$0xf] }
  0x43   : > { %v536_v16 = vrot.slane %v534_v8, 5  ;;  %v597_v18 = vmax.bf16 %v529_v6, %v457_v62  ;;  %v719_v22 = vshrl.u32 %v1194_v9, 16  ;;  %v722_v23 = vshll.u32 %v1194_v9, 16 }
  0x44   : > { %822 = vst.msk [vmem:[%s1188_s28] sm:$0xf] %vm821_vm3, %v813_v10  ;;  %v637_v20 = vmax.bf16 %v901_v0, %v619_v11  ;;  %v717_v21 = vsel %vm1122_vm2, %v712_v12, %v716_v7  ;;  %v797_v25 = vmax.bf16 %v703_v1, %v661_v15  ;;  %v542_v27 = vrot.slane %v540_v17, 5  ;;  %v1233_v1 = vld [vmem:[%s1109_s23 + $0xb8] sm:$0xf] }
  0x45   : > { %v537_v26 = vor.u32 %v536_v16, %v533_v13  ;;  %v728_v29 = vshll.u32 %v919_v14, 16  ;;  %v721_v32 = vrot.slane %v719_v22, 4  ;;  %v724_v33 = vrot.slane %v722_v23, 5  ;;  %v921_v15 = vld [vmem:[%s1109_s23 + $0xbc] sm:$0x1] }
  0x46   : > { %v645_v31 = vmax.bf16 %v902_v3, %v637_v20  ;;  %v458_v34 = vmax.bf16 %v1206_v24, %v1173_v52  ;;  %v814_v36 = vmax.bf16 %v925_v19, %v797_v25  ;;  %v545_v39 = vshrl.u32 %v1206_v24, 16  ;;  %v927_v22 = vld [vmem:[%s1109_s23 + $0xf0] sm:$0xf] }
  0x47   : > { %v538_v37 = vrot.slane %v537_v26, 4  ;;  %v730_v38 = vrot.slane %v728_v29, 5  ;;  %v725_v41 = vor.u32 %v724_v33, %v721_v32  ;;  %v548_v42 = vshll.u32 %v1206_v24, 16 }
  0x48   : > { %v662_v40 = vmax.bf16 %v1152_v28, %v645_v31  ;;  %v554_v43 = vshll.u32 %v467_v30, 16  ;;  %823 = vst.msk [vmem:[%s1188_s28 + $0x4] sm:$0xf] %vm821_vm3, %v814_v36  ;;  %v547_v46 = vrot.slane %v545_v39, 4  ;;  %v733_v47 = vshrl.u32 %v1213_v35, 16 }
  0x49   : > { %v543_v45 = vsel %vm1122_vm2, %v538_v37, %v542_v27  ;;  %v736_v49 = vshll.u32 %v1213_v35, 16  ;;  %v726_v51 = vrot.slane %v725_v41, 4  ;;  %v550_v52 = vrot.slane %v548_v42, 5  ;;  %v469_v30 = vld [vmem:[%s1109_s23 + $0x3c] sm:$0x1] }
  0x4a   : > { %v798_v50 = vmax.bf16 %v717_v21, %v662_v40  ;;  %v620_v28 = vmax.bf16 %v597_v18, %v543_v45  ;;  %v556_v55 = vrot.slane %v554_v43, 5  ;;  %v598_v56 = vmax.bf16 %v543_v45, %v458_v34  ;;  %v1248_v21 = vld [vmem:[%s1109_s23 + $0x38] sm:$0xf]  ;;  %v1260_v36 = vld [vmem:[%s1109_s23 + $0xc0] sm:$0xf] }
  0x4b   : > { %v735_v57 = vrot.slane %v733_v47, 4  ;;  %v738_v59 = vrot.slane %v736_v49, 5  ;;  %v731_v63 = vsel %vm1122_vm2, %v726_v51, %v730_v38  ;;  %v551_v0 = vor.u32 %v550_v52, %v547_v46  ;;  %v904_v38 = vld [vmem:[%s1109_s23 + $0x70] sm:$0xf]  ;;  %v922_v49 = vld [vmem:[%s1109_s23 + $0xc4] sm:$0x1] }
  0x4c   : > { %v815_v61 = vmax.bf16 %v926_v44, %v798_v50  ;;  %v638_v62 = vmax.bf16 %v902_v3, %v620_v28  ;;  %v742_v48 = vshll.u32 %v920_v53, 16  ;;  %v459_v5 = vmax.bf16 %v1227_v54, %v1206_v24 }
  0x4d   : > { %v739_v4 = vor.u32 %v738_v59, %v735_v57  ;;  %v559_v6 = vshrl.u32 %v1227_v54, 16  ;;  %v552_v8 = vrot.slane %v551_v0, 4  ;;  %v562_v10 = vshll.u32 %v1227_v54, 16 }
  0x4e   : > { %824 = vst.msk [vmem:[%s1188_s28 + $0x8] sm:$0xf] %vm821_vm3, %v815_v61  ;;  %v646_v7 = vmax.bf16 %v903_v2, %v638_v62  ;;  %v568_v11 = vshll.u32 %v468_v60, 16  ;;  %v744_v13 = vrot.slane %v742_v48, 5  ;;  %v747_v16 = vshrl.u32 %v1233_v1, 16 }
  0x4f   : > { %v740_v12 = vrot.slane %v739_v4, 4  ;;  %v561_v14 = vrot.slane %v559_v6, 4  ;;  %v557_v18 = vsel %vm1122_vm2, %v552_v8, %v556_v55  ;;  %v564_v19 = vrot.slane %v562_v10, 5  ;;  %v453_v55 = vld [vmem:[%s1109_s23 + $0x40] sm:$0xf] }
  0x50   : > { %v663_v17 = vmax.bf16 %v1194_v9, %v646_v7  ;;  %v570_v20 = vrot.slane %v568_v11, 5  ;;  %v621_v23 = vmax.bf16 %v598_v56, %v557_v18  ;;  %v599_v25 = vmax.bf16 %v557_v18, %v459_v5  ;;  %v928_v56 = vld [vmem:[%s1109_s23 + $0xf8] sm:$0xf]  ;;  %v470_v5 = vld [vmem:[%s1109_s23 + $0x44] sm:$0x1] }
  0x51   : > { %v745_v24 = vsel %vm1122_vm2, %v740_v12, %v744_v13  ;;  %v749_v3 = vrot.slane %v747_v16, 4  ;;  %v565_v27 = vor.u32 %v564_v19, %v561_v14  ;;  %v750_v9 = vshll.u32 %v1233_v1, 16  ;;  %v915_v6 = vld [vmem:[%s1109_s23 + $0xc8] sm:$0xf] }
  0x52   : > { %v799_v26 = vmax.bf16 %v731_v63, %v663_v17  ;;  %v756_v29 = vshll.u32 %v921_v15, 16  ;;  %v639_v31 = vmax.bf16 %v903_v2, %v621_v23  ;;  %v460_v32 = vmax.bf16 %v1248_v21, %v1227_v54  ;;  %v905_v63 = vld [vmem:[%s1109_s23 + $0x78] sm:$0xf] }
  0x53   : > { %v573_v33 = vshrl.u32 %v1248_v21, 16  ;;  %v576_v34 = vshll.u32 %v1248_v21, 16  ;;  %v566_v39 = vrot.slane %v565_v27, 4  ;;  %v752_v40 = vrot.slane %v750_v9, 5 }
  0x54   : > { %v816_v37 = vmax.bf16 %v927_v22, %v799_v26  ;;  %v758_v41 = vrot.slane %v756_v29, 5  ;;  %v647_v42 = vmax.bf16 %v904_v38, %v639_v31  ;;  %v582_v45 = vshll.u32 %v469_v30, 16  ;;  %v923_v29 = vld [vmem:[%s1109_s23 + $0xcc] sm:$0x1] }
  0x55   : > { %v575_v43 = vrot.slane %v573_v33, 4  ;;  %v578_v44 = vrot.slane %v576_v34, 5  ;;  %v571_v46 = vsel %vm1122_vm2, %v566_v39, %v570_v20  ;;  %v753_v47 = vor.u32 %v752_v40, %v749_v3  ;;  %v929_v20 = vld [vmem:[%s1109_s23 + $0x100] sm:$0xf] }
  0x56   : > { %825 = vst.msk [vmem:[%s1188_s28 + $0xc] sm:$0xf] %vm821_vm3, %v816_v37  ;;  %v761_v50 = vshrl.u32 %v1260_v36, 16  ;;  %v764_v28 = vshll.u32 %v1260_v36, 16  ;;  %v664_v51 = vmax.bf16 %v1213_v35, %v647_v42  ;;  %v622_v52 = vmax.bf16 %v599_v25, %v571_v46  ;;  %v906_v3 = vld [vmem:[%s1109_s23 + $0x80] sm:$0xf] }
  0x57   : > { %v579_v53 = vor.u32 %v578_v44, %v575_v43  ;;  %v584_v54 = vrot.slane %v582_v45, 5  ;;  %v754_v57 = vrot.slane %v753_v47, 4  ;;  %v600_v59 = vmax.bf16 %v571_v46, %v460_v32  ;;  %v930_v37 = vld [vmem:[%s1109_s23 + $0x108] sm:$0xf] }
  0x58   : > { %v763_v60 = vrot.slane %v761_v50, 4  ;;  %v766_v61 = vrot.slane %v764_v28, 5  ;;  %v800_v62 = vmax.bf16 %v745_v24, %v664_v51  ;;  %v640_v0 = vmax.bf16 %v904_v38, %v622_v52  ;;  %v907_v45 = vld [vmem:[%s1109_s23 + $0x88] sm:$0xf]  ;;  %v931_v51 = vld [vmem:[%s1109_s23 + $0x110] sm:$0xf] }
  0x59   : > { %v580_v2 = vrot.slane %v579_v53, 4  ;;  %v770_v4 = vshll.u32 %v922_v49, 16  ;;  %v603_v35 = vshrl.u32 %v453_v55, 16  ;;  %v759_v10 = vsel %vm1122_vm2, %v754_v57, %v758_v41 }
  0x5a   : > { %v767_v48 = vor.u32 %v766_v61, %v763_v60  ;;  %v817_v7 = vmax.bf16 %v928_v56, %v800_v62  ;;  %v648_v8 = vmax.bf16 %v905_v63, %v640_v0  ;;  %v606_v17 = vshll.u32 %v453_v55, 16 }
  0x5b   : > { %v585_v11 = vsel %vm1122_vm2, %v580_v2, %v584_v54  ;;  %v772_v14 = vrot.slane %v770_v4, 5  ;;  %v605_v15 = vrot.slane %v603_v35, 4  ;;  %v612_v18 = vshll.u32 %v470_v5, 16 }
  0x5c   : > { %v623_v12 = vmax.bf16 %v600_v59, %v585_v11  ;;  %v768_v13 = vrot.slane %v767_v48, 4  ;;  %826 = vst.msk [vmem:[%s1188_s28 + $0x10] sm:$0xf] %vm821_vm3, %v817_v7  ;;  %v665_v16 = vmax.bf16 %v1233_v1, %v648_v8  ;;  %v775_v19 = vshrl.u32 %v915_v6, 16 }
  0x5d   : > { %v461_v23 = vmax.bf16 %v453_v55, %v1248_v21  ;;  %v778_v24 = vshll.u32 %v915_v6, 16  ;;  %v608_v26 = vrot.slane %v606_v17, 5  ;;  %v614_v33 = vrot.slane %v612_v18, 5 }
  0x5e   : > { %v641_v22 = vmax.bf16 %v905_v63, %v623_v12  ;;  %v801_v25 = vmax.bf16 %v759_v10, %v665_v16  ;;  %v777_v27 = vrot.slane %v775_v19, 4  ;;  %v773_v1 = vsel %vm1122_vm2, %v768_v13, %v772_v14 }
  0x5f   : > { %v780_v30 = vrot.slane %v778_v24, 5  ;;  %v609_v32 = vor.u32 %v608_v26, %v605_v15  ;;  %v601_v21 = vmax.bf16 %v585_v11, %v461_v23  ;;  %v784_v40 = vshll.u32 %v923_v29, 16 }
  0x60   : > { %v649_v9 = vmax.bf16 %v906_v3, %v641_v22  ;;  %v818_v31 = vmax.bf16 %v929_v20, %v801_v25 }
  0x61   : > { %v610_v38 = vrot.slane %v609_v32, 4  ;;  %v781_v39 = vor.u32 %v780_v30, %v777_v27  ;;  %v786_v47 = vrot.slane %v784_v40, 5 }
  0x62   : > { %v666_v34 = vmax.bf16 %v1260_v36, %v649_v9  ;;  %827 = vst.msk [vmem:[%s1188_s28 + $0x14] sm:$0xf] %vm821_vm3, %v818_v31 }
  0x63   : > { %v615_v42 = vsel %vm1122_vm2, %v610_v38, %v614_v33  ;;  %v782_v46 = vrot.slane %v781_v39, 4 }
  0x64   : > { %v802_v41 = vmax.bf16 %v773_v1, %v666_v34  ;;  %v624_v44 = vmax.bf16 %v615_v42, %v601_v21 }
  0x65   : > { %v787_v50 = vsel %vm1122_vm2, %v782_v46, %v786_v47 }
  0x66   : > { %v819_v43 = vmax.bf16 %v930_v37, %v802_v41  ;;  %v642_v36 = vmax.bf16 %v906_v3, %v624_v44 }
  0x68   : > { %828 = vst.msk [vmem:[%s1188_s28 + $0x18] sm:$0xf] %vm821_vm3, %v819_v43  ;;  %v650_v49 = vmax.bf16 %v907_v45, %v642_v36 }
  0x6a   : > { %v667_v28 = vmax.bf16 %v915_v6, %v650_v49 }
  0x6c   : > { %v803_v52 = vmax.bf16 %v787_v50, %v667_v28 }
  0x6e   : > { %v820_v53 = vmax.bf16 %v931_v51, %v803_v52 }
  0x70   : > { %829 = vst.msk [vmem:[%s1188_s28 + $0x1c] sm:$0xf] %vm821_vm3, %v820_v53 }
  0x71 PF: > { %p8_p9 = scmp.ge.s32.totalorder %s1013_s10, 4   ;;  %s1318_s6 = smov %s980_s7 }
  0x72   : > { %s1319_s7 = smov %s1022_s13  ;;  %s1320_s8 = smov %s1013_s10 }
  0x73   :  { %10 = sbr.rel (!%p8_p9) target bundleno = 2 (0x2), region = 103 }

// kernel: _lambda_.15
= control target key start
LH: loop header
LB: loop body
LE: loop exit
PB: predicated region body
PF: predicated region fallthrough
CT: control target
= control target key end

     0   :  { %vm354_vm0 = vcmask 1044480   ;;  %vm355_vm1 = vcmask 1045504   ;;  %v1518_v1 = vmov 65535   ;;  %vm257_vm2 = vcmask 220160   ;;  %s2072_s1 = inlined_call_operand.vmem [shape: bf16[27,64], index: 1, kind: input, shape index: {}]   ;;  %s2073_s0 = inlined_call_operand.vmem [shape: bf16[512,27], index: 0, kind: input, shape index: {}]   ;;  %s2074_s2 = inlined_call_operand.vmem [shape: f32[1,64], index: 2, kind: input, shape index: {}]   ;;  %s2075_s3 = inlined_call_operand.vmem [shape: f32[1,64], index: 3, kind: input, shape index: {}]   ;;  %s2076_s4 = inlined_call_operand.vmem [shape: bf16[512,64], index: 4, kind: output, shape index: {}]  }
   0x1   :  { %v1484_v0 = vld [vmem:[%s2072_s1 + $0x8] sm:$0x3f]   ;;  %v356_v2 = vsel %vm354_vm0, 4294967295, %v1518_v1  ;;  %v1486_v4 = vld [vmem:[%s2073_s0] sm:$0xff]   ;;  %v1490_v10 = vld [vmem:[%s2073_s0 + $0x10] sm:$0xff]   ;;  %vm1112_vm3 = vcmask 519168  }
   0x2   :  { %v357_v3 = vsel %vm355_vm1, %v356_v2, 0  ;;  %v1485_v6 = vld [vmem:[%s2072_s1] sm:$0xff]   ;;  %1415 = vmatprep.mubr.msk.bf16.mxu0 %vm257_vm2, %v1486_v4  ;;  %v1488_v8 = vld [vmem:[%s2073_s0 + $0x8] sm:$0xff]   ;;  %v1491_v11 = vld [vmem:[%s2073_s0 + $0x90] sm:$0xff]  }
   0x3   :  { %v359_v5 = vand.u32 %v1484_v0, %v357_v3  ;;  %v1487_v7 = vld [vmem:[%s2073_s0 + $0x80] sm:$0xff]   ;;  %v1489_v9 = vld [vmem:[%s2073_s0 + $0x88] sm:$0xff]   ;;  %v1492_v12 = vld [vmem:[%s2073_s0 + $0x18] sm:$0xff]  }
   0x4   :  { %1447 = vmatprep.mubr.msk.bf16.mxu1 %vm257_vm2, %v1487_v7  ;;  %v1493_v13 = vld [vmem:[%s2073_s0 + $0x98] sm:$0xff]   ;;  %v1494_v14 = vld [vmem:[%s2073_s0 + $0x20] sm:$0xff]   ;;  %v1496_v16 = vld [vmem:[%s2073_s0 + $0x28] sm:$0xff]  }
   0x5   :  { %1411 = vmatprep.subr.bf16.mxu0 %v359_v5  ;;  %1479 = vmatprep.subr.bf16.mxu1 %v359_v5  ;;  %v1495_v15 = vld [vmem:[%s2073_s0 + $0xa0] sm:$0xff]   ;;  %v1497_v17 = vld [vmem:[%s2073_s0 + $0xa8] sm:$0xff]   ;;  %v1498_v18 = vld [vmem:[%s2073_s0 + $0x30] sm:$0xff]  }
   0x6   :  { %1412 = vmatpush3.bf16.msra.mxu0 %v359_v5  ;;  %1481 = vmatpush3.bf16.msra.mxu1 %v359_v5  ;;  %v1499_v19 = vld [vmem:[%s2073_s0 + $0xb0] sm:$0xff]   ;;  %v1500_v20 = vld [vmem:[%s2073_s0 + $0x38] sm:$0xff]   ;;  %v1502_v22 = vld [vmem:[%s2073_s0 + $0x40] sm:$0xff]  }
   0x7   :  { %1413 = vmatprep.subr.bf16.mxu0 %v1485_v6  ;;  %1480 = vmatprep.subr.bf16.mxu1 %v1485_v6  ;;  %v1501_v21 = vld [vmem:[%s2073_s0 + $0xb8] sm:$0xff]   ;;  %v1503_v23 = vld [vmem:[%s2073_s0 + $0xc0] sm:$0xff]   ;;  %v1504_v24 = vld [vmem:[%s2073_s0 + $0x48] sm:$0xff]  }
   0x8   :  { %v1505_v25 = vld [vmem:[%s2073_s0 + $0xc8] sm:$0xff]   ;;  %v1506_v26 = vld [vmem:[%s2073_s0 + $0x50] sm:$0xff]   ;;  %v1508_v28 = vld [vmem:[%s2073_s0 + $0x58] sm:$0xff]  }
   0x9   :  { %v1507_v27 = vld [vmem:[%s2073_s0 + $0xd0] sm:$0xff]   ;;  %v1509_v29 = vld [vmem:[%s2073_s0 + $0xd8] sm:$0xff]   ;;  %v1510_v30 = vld [vmem:[%s2073_s0 + $0x60] sm:$0xff]  }
   0xa   :  { %1414 = vmatpush3.bf16.msra.mxu0 %v1485_v6  ;;  %1482 = vmatpush3.bf16.msra.mxu1 %v1485_v6  ;;  %v1511_v31 = vld [vmem:[%s2073_s0 + $0xe0] sm:$0xff]   ;;  %v1512_v32 = vld [vmem:[%s2073_s0 + $0x68] sm:$0xff]   ;;  %v1514_v34 = vld [vmem:[%s2073_s0 + $0x70] sm:$0xff]  }
   0xb   :  { %v1513_v33 = vld [vmem:[%s2073_s0 + $0xe8] sm:$0xff]   ;;  %v1515_v35 = vld [vmem:[%s2073_s0 + $0xf0] sm:$0xff]   ;;  %v1516_v36 = vld [vmem:[%s2073_s0 + $0x78] sm:$0xff]  }
   0xc   :  { %v1517_v37 = vld [vmem:[%s2073_s0 + $0xf8] sm:$0xff]   ;;  %v1681_v38 = vld [vmem:[%s2074_s2] ss:$0 sm:$0xff] }
   0xd   :  { %1416 = vmatmul.mubr.msk.bf16.vlgmr.msra.gmra.mxu0 %vm257_vm2, %v1488_v8  ;;  %1448 = vmatmul.mubr.msk.bf16.vlgmr.msra.gmra.mxu1 %vm257_vm2, %v1489_v9  ;;  %v1686_v40 = vld [vmem:[%s2075_s3] ss:$0 sm:$0xff] }
   0xe   :  { %1419 = vmatprep.mubr.msk.bf16.mxu0 %vm257_vm2, %v1490_v10  ;;  %1451 = vmatprep.mubr.msk.bf16.mxu1 %vm257_vm2, %v1491_v11 }
  0x15   :  { %1420 = vmatmul.mubr.msk.bf16.gmra.mxu0 %vm257_vm2, %v1492_v12  ;;  %1452 = vmatmul.mubr.msk.bf16.gmra.mxu1 %vm257_vm2, %v1493_v13 }
  0x16   :  { %1423 = vmatprep.mubr.msk.bf16.mxu0 %vm257_vm2, %v1494_v14  ;;  %1455 = vmatprep.mubr.msk.bf16.mxu1 %vm257_vm2, %v1495_v15 }
  0x1d   :  { %1424 = vmatmul.mubr.msk.bf16.gmra.mxu0 %vm257_vm2, %v1496_v16  ;;  %1456 = vmatmul.mubr.msk.bf16.gmra.mxu1 %vm257_vm2, %v1497_v17 }
  0x1e   :  { %1427 = vmatprep.mubr.msk.bf16.mxu0 %vm257_vm2, %v1498_v18  ;;  %1459 = vmatprep.mubr.msk.bf16.mxu1 %vm257_vm2, %v1499_v19 }
  0x25   :  { %1428 = vmatmul.mubr.msk.bf16.gmra.mxu0 %vm257_vm2, %v1500_v20  ;;  %1460 = vmatmul.mubr.msk.bf16.gmra.mxu1 %vm257_vm2, %v1501_v21 }
  0x26   :  { %1431 = vmatprep.mubr.msk.bf16.mxu0 %vm257_vm2, %v1502_v22  ;;  %1463 = vmatprep.mubr.msk.bf16.mxu1 %vm257_vm2, %v1503_v23 }
  0x2d   :  { %1432 = vmatmul.mubr.msk.bf16.gmra.mxu0 %vm257_vm2, %v1504_v24  ;;  %1464 = vmatmul.mubr.msk.bf16.gmra.mxu1 %vm257_vm2, %v1505_v25 }
  0x2e   :  { %1435 = vmatprep.mubr.msk.bf16.mxu0 %vm257_vm2, %v1506_v26  ;;  %1467 = vmatprep.mubr.msk.bf16.mxu1 %vm257_vm2, %v1507_v27 }
  0x35   :  { %1436 = vmatmul.mubr.msk.bf16.gmra.mxu0 %vm257_vm2, %v1508_v28  ;;  %1468 = vmatmul.mubr.msk.bf16.gmra.mxu1 %vm257_vm2, %v1509_v29 }
  0x36   :  { %1439 = vmatprep.mubr.msk.bf16.mxu0 %vm257_vm2, %v1510_v30  ;;  %1471 = vmatprep.mubr.msk.bf16.mxu1 %vm257_vm2, %v1511_v31 }
  0x3d   :  { %1440 = vmatmul.mubr.msk.bf16.gmra.mxu0 %vm257_vm2, %v1512_v32  ;;  %1472 = vmatmul.mubr.msk.bf16.gmra.mxu1 %vm257_vm2, %v1513_v33 }
  0x3e   :  { %1443 = vmatprep.mubr.msk.bf16.mxu0 %vm257_vm2, %v1514_v34  ;;  %1475 = vmatprep.mubr.msk.bf16.mxu1 %vm257_vm2, %v1515_v35 }
  0x45   :  { %1444 = vmatmul.mubr.msk.bf16.gmra.mxu0 %vm257_vm2, %v1516_v36  ;;  %1476 = vmatmul.mubr.msk.bf16.gmra.mxu1 %vm257_vm2, %v1517_v37 }
  0xcd   :  { %v1417_v39 = vpop.f32.mrf.mxu0  ;;  %v1449_v41 = vpop.f32.mrf.mxu1 }
  0xce   :  { %v659_v42 = vmul.f32 %v1417_v39, %v1681_v38  ;;  %v691_v43 = vmul.f32 %v1449_v41, %v1681_v38 }
  0xcf   :  { %v395_v44 = vpop.f32.mrf.mxu0  ;;  %v523_v45 = vpop.f32.mrf.mxu1 }
  0xd0   :  { %v730_v46 = vadd.f32 %v1686_v40, %v659_v42  ;;  %v762_v47 = vadd.f32 %v1686_v40, %v691_v43  ;;  %v657_v48 = vmul.f32 %v1681_v38, %v395_v44  ;;  %v689_v49 = vmul.f32 %v1681_v38, %v523_v45 }
  0xd1   :  { %v1418_v50 = vpop.f32.mrf.mxu0  ;;  %v1450_v51 = vpop.f32.mrf.mxu1 }
  0xd2   :  { %v794_v52 = vmax.f32 %v730_v46, 0.0  ;;  %v826_v53 = vmax.f32 %v762_v47, 0.0  ;;  %v728_v54 = vadd.f32 %v1686_v40, %v657_v48  ;;  %v760_v55 = vadd.f32 %v1686_v40, %v689_v49 }
  0xd3   :  { %v660_v56 = vmul.f32 %v1418_v50, %v1681_v38  ;;  %v692_v57 = vmul.f32 %v1450_v51, %v1681_v38  ;;  %v398_v58 = vpop.f32.mrf.mxu0  ;;  %v526_v59 = vpop.f32.mrf.mxu1 }
  0xd4   :  { %v1315_v60 = vpack.c.bf16 %v794_v52, %v794_v52  ;;  %v1347_v61 = vpack.c.bf16 %v826_v53, %v826_v53  ;;  %v792_v62 = vmax.f32 %v728_v54, 0.0  ;;  %v824_v63 = vmax.f32 %v760_v55, 0.0 }
  0xd5   :  { %v731_v0 = vadd.f32 %v1686_v40, %v660_v56  ;;  %v763_v1 = vadd.f32 %v1686_v40, %v692_v57  ;;  %v658_v2 = vmul.f32 %v1681_v38, %v398_v58  ;;  %v690_v3 = vmul.f32 %v1681_v38, %v526_v59  ;;  %v1421_v4 = vpop.f32.mrf.mxu0  ;;  %v1453_v5 = vpop.f32.mrf.mxu1 }
  0xd6   :  { %1115 = vst.msk [vmem:[%s2076_s4 + $0x8] sm:$0xf] %vm1112_vm3, %v1315_v60  ;;  %1147 = vst.msk [vmem:[%s2076_s4 + $0x88] sm:$0xf] %vm1112_vm3, %v1347_v61  ;;  %v1313_v6 = vpack.c.bf16 %v792_v62, %v792_v62  ;;  %v1345_v7 = vpack.c.bf16 %v824_v63, %v824_v63  ;;  %v663_v8 = vmul.f32 %v1421_v4, %v1681_v38 }
  0xd7   :  { %v695_v9 = vmul.f32 %v1453_v5, %v1681_v38  ;;  %v795_v10 = vmax.f32 %v731_v0, 0.0  ;;  %v827_v11 = vmax.f32 %v763_v1, 0.0  ;;  %v729_v12 = vadd.f32 %v1686_v40, %v658_v2  ;;  %v411_v14 = vpop.f32.mrf.mxu0  ;;  %v539_v15 = vpop.f32.mrf.mxu1 }
  0xd8   :  { %v761_v13 = vadd.f32 %v1686_v40, %v690_v3  ;;  %1113 = vst.msk [vmem:[%s2076_s4] sm:$0xf] %vm1112_vm3, %v1313_v6  ;;  %1145 = vst.msk [vmem:[%s2076_s4 + $0x80] sm:$0xf] %vm1112_vm3, %v1345_v7  ;;  %v734_v16 = vadd.f32 %v1686_v40, %v663_v8  ;;  %v661_v18 = vmul.f32 %v1681_v38, %v411_v14 }
  0xd9   :  { %v766_v17 = vadd.f32 %v1686_v40, %v695_v9  ;;  %v693_v19 = vmul.f32 %v1681_v38, %v539_v15  ;;  %v1316_v20 = vpack.c.bf16 %v795_v10, %v795_v10  ;;  %v1348_v21 = vpack.c.bf16 %v827_v11, %v827_v11  ;;  %v1422_v24 = vpop.f32.mrf.mxu0  ;;  %v1454_v25 = vpop.f32.mrf.mxu1 }
  0xda   :  { %v793_v22 = vmax.f32 %v729_v12, 0.0  ;;  %v825_v23 = vmax.f32 %v761_v13, 0.0  ;;  %v798_v26 = vmax.f32 %v734_v16, 0.0  ;;  %v732_v28 = vadd.f32 %v1686_v40, %v661_v18 }
  0xdb   :  { %v830_v27 = vmax.f32 %v766_v17, 0.0  ;;  %v764_v29 = vadd.f32 %v1686_v40, %v693_v19  ;;  %1116 = vst.msk [vmem:[%s2076_s4 + $0xc] sm:$0xf] %vm1112_vm3, %v1316_v20  ;;  %1148 = vst.msk [vmem:[%s2076_s4 + $0x8c] sm:$0xf] %vm1112_vm3, %v1348_v21  ;;  %v664_v32 = vmul.f32 %v1422_v24, %v1681_v38  ;;  %v696_v33 = vmul.f32 %v1454_v25, %v1681_v38  ;;  %v414_v34 = vpop.f32.mrf.mxu0  ;;  %v542_v35 = vpop.f32.mrf.mxu1 }
  0xdc   :  { %v1314_v30 = vpack.c.bf16 %v793_v22, %v793_v22  ;;  %v1346_v31 = vpack.c.bf16 %v825_v23, %v825_v23  ;;  %v1319_v36 = vpack.c.bf16 %v798_v26, %v798_v26  ;;  %v796_v39 = vmax.f32 %v732_v28, 0.0 }
  0xdd   :  { %v1351_v37 = vpack.c.bf16 %v830_v27, %v830_v27  ;;  %v828_v41 = vmax.f32 %v764_v29, 0.0  ;;  %v735_v42 = vadd.f32 %v1686_v40, %v664_v32  ;;  %v767_v43 = vadd.f32 %v1686_v40, %v696_v33  ;;  %v1425_v46 = vpop.f32.mrf.mxu0  ;;  %v1457_v47 = vpop.f32.mrf.mxu1 }
  0xde   :  { %1114 = vst.msk [vmem:[%s2076_s4 + $0x4] sm:$0xf] %vm1112_vm3, %v1314_v30  ;;  %1146 = vst.msk [vmem:[%s2076_s4 + $0x84] sm:$0xf] %vm1112_vm3, %v1346_v31  ;;  %v662_v44 = vmul.f32 %v1681_v38, %v414_v34  ;;  %v694_v45 = vmul.f32 %v1681_v38, %v542_v35  ;;  %v1317_v48 = vpack.c.bf16 %v796_v39, %v796_v39 }
  0xdf   :  { %1119 = vst.msk [vmem:[%s2076_s4 + $0x18] sm:$0xf] %vm1112_vm3, %v1319_v36  ;;  %1151 = vst.msk [vmem:[%s2076_s4 + $0x98] sm:$0xf] %vm1112_vm3, %v1351_v37  ;;  %v1349_v49 = vpack.c.bf16 %v828_v41, %v828_v41  ;;  %v667_v50 = vmul.f32 %v1425_v46, %v1681_v38  ;;  %v699_v51 = vmul.f32 %v1457_v47, %v1681_v38  ;;  %v799_v52 = vmax.f32 %v735_v42, 0.0  ;;  %v427_v56 = vpop.f32.mrf.mxu0  ;;  %v555_v57 = vpop.f32.mrf.mxu1 }
  0xe0   :  { %v831_v53 = vmax.f32 %v767_v43, 0.0  ;;  %v733_v54 = vadd.f32 %v1686_v40, %v662_v44  ;;  %v765_v55 = vadd.f32 %v1686_v40, %v694_v45  ;;  %1117 = vst.msk [vmem:[%s2076_s4 + $0x10] sm:$0xf] %vm1112_vm3, %v1317_v48  ;;  %v665_v60 = vmul.f32 %v1681_v38, %v427_v56 }
  0xe1   :  { %1149 = vst.msk [vmem:[%s2076_s4 + $0x90] sm:$0xf] %vm1112_vm3, %v1349_v49  ;;  %v738_v58 = vadd.f32 %v1686_v40, %v667_v50  ;;  %v770_v59 = vadd.f32 %v1686_v40, %v699_v51  ;;  %v697_v61 = vmul.f32 %v1681_v38, %v555_v57  ;;  %v1320_v62 = vpack.c.bf16 %v799_v52, %v799_v52  ;;  %v1426_v2 = vpop.f32.mrf.mxu0  ;;  %v1458_v3 = vpop.f32.mrf.mxu1 }
  0xe2   :  { %v1352_v63 = vpack.c.bf16 %v831_v53, %v831_v53  ;;  %v797_v0 = vmax.f32 %v733_v54, 0.0  ;;  %v829_v1 = vmax.f32 %v765_v55, 0.0  ;;  %v736_v6 = vadd.f32 %v1686_v40, %v665_v60 }
  0xe3   :  { %v802_v4 = vmax.f32 %v738_v58, 0.0  ;;  %v834_v5 = vmax.f32 %v770_v59, 0.0  ;;  %v768_v7 = vadd.f32 %v1686_v40, %v697_v61  ;;  %1120 = vst.msk [vmem:[%s2076_s4 + $0x1c] sm:$0xf] %vm1112_vm3, %v1320_v62  ;;  %v668_v10 = vmul.f32 %v1426_v2, %v1681_v38  ;;  %v430_v12 = vpop.f32.mrf.mxu0  ;;  %v558_v13 = vpop.f32.mrf.mxu1 }
  0xe4   :  { %1152 = vst.msk [vmem:[%s2076_s4 + $0x9c] sm:$0xf] %vm1112_vm3, %v1352_v63  ;;  %v1318_v8 = vpack.c.bf16 %v797_v0, %v797_v0  ;;  %v1350_v9 = vpack.c.bf16 %v829_v1, %v829_v1  ;;  %v700_v11 = vmul.f32 %v1458_v3, %v1681_v38  ;;  %v800_v16 = vmax.f32 %v736_v6, 0.0 }
  0xe5   :  { %v1323_v14 = vpack.c.bf16 %v802_v4, %v802_v4  ;;  %v1355_v15 = vpack.c.bf16 %v834_v5, %v834_v5  ;;  %v832_v17 = vmax.f32 %v768_v7, 0.0  ;;  %v739_v18 = vadd.f32 %v1686_v40, %v668_v10  ;;  %v1429_v22 = vpop.f32.mrf.mxu0  ;;  %v1461_v23 = vpop.f32.mrf.mxu1 }
  0xe6   :  { %1118 = vst.msk [vmem:[%s2076_s4 + $0x14] sm:$0xf] %vm1112_vm3, %v1318_v8  ;;  %1150 = vst.msk [vmem:[%s2076_s4 + $0x94] sm:$0xf] %vm1112_vm3, %v1350_v9  ;;  %v771_v19 = vadd.f32 %v1686_v40, %v700_v11  ;;  %v666_v20 = vmul.f32 %v1681_v38, %v430_v12  ;;  %v698_v21 = vmul.f32 %v1681_v38, %v558_v13 }
  0xe7   :  { %1123 = vst.msk [vmem:[%s2076_s4 + $0x28] sm:$0xf] %vm1112_vm3, %v1323_v14  ;;  %1155 = vst.msk [vmem:[%s2076_s4 + $0xa8] sm:$0xf] %vm1112_vm3, %v1355_v15  ;;  %v1321_v24 = vpack.c.bf16 %v800_v16, %v800_v16  ;;  %v1353_v25 = vpack.c.bf16 %v832_v17, %v832_v17  ;;  %v671_v26 = vmul.f32 %v1429_v22, %v1681_v38  ;;  %v803_v28 = vmax.f32 %v739_v18, 0.0  ;;  %v443_v32 = vpop.f32.mrf.mxu0  ;;  %v571_v33 = vpop.f32.mrf.mxu1 }
  0xe8   :  { %v703_v27 = vmul.f32 %v1461_v23, %v1681_v38  ;;  %v835_v29 = vmax.f32 %v771_v19, 0.0  ;;  %v737_v30 = vadd.f32 %v1686_v40, %v666_v20  ;;  %v769_v31 = vadd.f32 %v1686_v40, %v698_v21 }
  0xe9   :  { %1121 = vst.msk [vmem:[%s2076_s4 + $0x20] sm:$0xf] %vm1112_vm3, %v1321_v24  ;;  %1153 = vst.msk [vmem:[%s2076_s4 + $0xa0] sm:$0xf] %vm1112_vm3, %v1353_v25  ;;  %v742_v34 = vadd.f32 %v1686_v40, %v671_v26  ;;  %v669_v36 = vmul.f32 %v1681_v38, %v443_v32  ;;  %v701_v37 = vmul.f32 %v1681_v38, %v571_v33  ;;  %v1430_v44 = vpop.f32.mrf.mxu0  ;;  %v1462_v45 = vpop.f32.mrf.mxu1 }
  0xea   :  { %v774_v35 = vadd.f32 %v1686_v40, %v703_v27  ;;  %v1324_v39 = vpack.c.bf16 %v803_v28, %v803_v28  ;;  %v1356_v41 = vpack.c.bf16 %v835_v29, %v835_v29  ;;  %v801_v42 = vmax.f32 %v737_v30, 0.0 }
  0xeb   :  { %v833_v43 = vmax.f32 %v769_v31, 0.0  ;;  %v806_v46 = vmax.f32 %v742_v34, 0.0  ;;  %v740_v48 = vadd.f32 %v1686_v40, %v669_v36  ;;  %v772_v49 = vadd.f32 %v1686_v40, %v701_v37  ;;  %v446_v54 = vpop.f32.mrf.mxu0  ;;  %v574_v55 = vpop.f32.mrf.mxu1 }
  0xec   :  { %v838_v47 = vmax.f32 %v774_v35, 0.0  ;;  %1124 = vst.msk [vmem:[%s2076_s4 + $0x2c] sm:$0xf] %vm1112_vm3, %v1324_v39  ;;  %1156 = vst.msk [vmem:[%s2076_s4 + $0xac] sm:$0xf] %vm1112_vm3, %v1356_v41  ;;  %v1322_v50 = vpack.c.bf16 %v801_v42, %v801_v42  ;;  %v672_v52 = vmul.f32 %v1430_v44, %v1681_v38  ;;  %v704_v53 = vmul.f32 %v1462_v45, %v1681_v38 }
  0xed   :  { %v1354_v51 = vpack.c.bf16 %v833_v43, %v833_v43  ;;  %v1327_v56 = vpack.c.bf16 %v806_v46, %v806_v46  ;;  %v804_v58 = vmax.f32 %v740_v48, 0.0  ;;  %v836_v59 = vmax.f32 %v772_v49, 0.0  ;;  %v1433_v0 = vpop.f32.mrf.mxu0  ;;  %v1465_v1 = vpop.f32.mrf.mxu1 }
  0xee   :  { %v1359_v57 = vpack.c.bf16 %v838_v47, %v838_v47  ;;  %1122 = vst.msk [vmem:[%s2076_s4 + $0x24] sm:$0xf] %vm1112_vm3, %v1322_v50  ;;  %v743_v60 = vadd.f32 %v1686_v40, %v672_v52  ;;  %v775_v61 = vadd.f32 %v1686_v40, %v704_v53  ;;  %v670_v62 = vmul.f32 %v1681_v38, %v446_v54 }
  0xef   :  { %1154 = vst.msk [vmem:[%s2076_s4 + $0xa4] sm:$0xf] %vm1112_vm3, %v1354_v51  ;;  %v702_v63 = vmul.f32 %v1681_v38, %v574_v55  ;;  %1127 = vst.msk [vmem:[%s2076_s4 + $0x38] sm:$0xf] %vm1112_vm3, %v1327_v56  ;;  %v1325_v2 = vpack.c.bf16 %v804_v58, %v804_v58  ;;  %v1357_v3 = vpack.c.bf16 %v836_v59, %v836_v59  ;;  %v459_v10 = vpop.f32.mrf.mxu0  ;;  %v587_v11 = vpop.f32.mrf.mxu1 }
  0xf0   :  { %1159 = vst.msk [vmem:[%s2076_s4 + $0xb8] sm:$0xf] %vm1112_vm3, %v1359_v57  ;;  %v675_v4 = vmul.f32 %v1433_v0, %v1681_v38  ;;  %v707_v5 = vmul.f32 %v1465_v1, %v1681_v38  ;;  %v807_v6 = vmax.f32 %v743_v60, 0.0  ;;  %v839_v7 = vmax.f32 %v775_v61, 0.0 }
  0xf1   :  { %v741_v8 = vadd.f32 %v1686_v40, %v670_v62  ;;  %v773_v9 = vadd.f32 %v1686_v40, %v702_v63  ;;  %1125 = vst.msk [vmem:[%s2076_s4 + $0x30] sm:$0xf] %vm1112_vm3, %v1325_v2  ;;  %1157 = vst.msk [vmem:[%s2076_s4 + $0xb0] sm:$0xf] %vm1112_vm3, %v1357_v3  ;;  %v673_v14 = vmul.f32 %v1681_v38, %v459_v10  ;;  %v1434_v20 = vpop.f32.mrf.mxu0  ;;  %v1466_v21 = vpop.f32.mrf.mxu1 }
  0xf2   :  { %v746_v12 = vadd.f32 %v1686_v40, %v675_v4  ;;  %v778_v13 = vadd.f32 %v1686_v40, %v707_v5  ;;  %v705_v15 = vmul.f32 %v1681_v38, %v587_v11  ;;  %v1328_v16 = vpack.c.bf16 %v807_v6, %v807_v6 }
  0xf3   :  { %v1360_v17 = vpack.c.bf16 %v839_v7, %v839_v7  ;;  %v805_v18 = vmax.f32 %v741_v8, 0.0  ;;  %v837_v19 = vmax.f32 %v773_v9, 0.0  ;;  %v744_v24 = vadd.f32 %v1686_v40, %v673_v14  ;;  %v462_v30 = vpop.f32.mrf.mxu0  ;;  %v590_v31 = vpop.f32.mrf.mxu1 }
  0xf4   :  { %v810_v22 = vmax.f32 %v746_v12, 0.0  ;;  %v842_v23 = vmax.f32 %v778_v13, 0.0  ;;  %v776_v25 = vadd.f32 %v1686_v40, %v705_v15  ;;  %1128 = vst.msk [vmem:[%s2076_s4 + $0x3c] sm:$0xf] %vm1112_vm3, %v1328_v16  ;;  %v676_v28 = vmul.f32 %v1434_v20, %v1681_v38 }
  0xf5   :  { %1160 = vst.msk [vmem:[%s2076_s4 + $0xbc] sm:$0xf] %vm1112_vm3, %v1360_v17  ;;  %v1326_v26 = vpack.c.bf16 %v805_v18, %v805_v18  ;;  %v1358_v27 = vpack.c.bf16 %v837_v19, %v837_v19  ;;  %v708_v29 = vmul.f32 %v1466_v21, %v1681_v38  ;;  %v808_v34 = vmax.f32 %v744_v24, 0.0  ;;  %v1437_v42 = vpop.f32.mrf.mxu0  ;;  %v1469_v43 = vpop.f32.mrf.mxu1 }
  0xf6   :  { %v1331_v32 = vpack.c.bf16 %v810_v22, %v810_v22  ;;  %v1363_v33 = vpack.c.bf16 %v842_v23, %v842_v23  ;;  %v840_v35 = vmax.f32 %v776_v25, 0.0  ;;  %v747_v36 = vadd.f32 %v1686_v40, %v676_v28 }
  0xf7   :  { %1126 = vst.msk [vmem:[%s2076_s4 + $0x34] sm:$0xf] %vm1112_vm3, %v1326_v26  ;;  %1158 = vst.msk [vmem:[%s2076_s4 + $0xb4] sm:$0xf] %vm1112_vm3, %v1358_v27  ;;  %v779_v37 = vadd.f32 %v1686_v40, %v708_v29  ;;  %v674_v39 = vmul.f32 %v1681_v38, %v462_v30  ;;  %v706_v41 = vmul.f32 %v1681_v38, %v590_v31  ;;  %v475_v52 = vpop.f32.mrf.mxu0  ;;  %v603_v53 = vpop.f32.mrf.mxu1 }
  0xf8   :  { %1131 = vst.msk [vmem:[%s2076_s4 + $0x48] sm:$0xf] %vm1112_vm3, %v1331_v32  ;;  %1163 = vst.msk [vmem:[%s2076_s4 + $0xc8] sm:$0xf] %vm1112_vm3, %v1363_v33  ;;  %v1329_v44 = vpack.c.bf16 %v808_v34, %v808_v34  ;;  %v1361_v45 = vpack.c.bf16 %v840_v35, %v840_v35  ;;  %v679_v46 = vmul.f32 %v1437_v42, %v1681_v38  ;;  %v811_v48 = vmax.f32 %v747_v36, 0.0 }
  0xf9   :  { %v711_v47 = vmul.f32 %v1469_v43, %v1681_v38  ;;  %v843_v49 = vmax.f32 %v779_v37, 0.0  ;;  %v745_v50 = vadd.f32 %v1686_v40, %v674_v39  ;;  %v777_v51 = vadd.f32 %v1686_v40, %v706_v41  ;;  %v1438_v62 = vpop.f32.mrf.mxu0  ;;  %v1470_v63 = vpop.f32.mrf.mxu1 }
  0xfa   :  { %1129 = vst.msk [vmem:[%s2076_s4 + $0x40] sm:$0xf] %vm1112_vm3, %v1329_v44  ;;  %1161 = vst.msk [vmem:[%s2076_s4 + $0xc0] sm:$0xf] %vm1112_vm3, %v1361_v45  ;;  %v750_v54 = vadd.f32 %v1686_v40, %v679_v46  ;;  %v677_v56 = vmul.f32 %v1681_v38, %v475_v52  ;;  %v709_v57 = vmul.f32 %v1681_v38, %v603_v53 }
  0xfb   :  { %v782_v55 = vadd.f32 %v1686_v40, %v711_v47  ;;  %v1332_v58 = vpack.c.bf16 %v811_v48, %v811_v48  ;;  %v1364_v59 = vpack.c.bf16 %v843_v49, %v843_v49  ;;  %v809_v60 = vmax.f32 %v745_v50, 0.0  ;;  %v478_v8 = vpop.f32.mrf.mxu0  ;;  %v606_v9 = vpop.f32.mrf.mxu1 }
  0xfc   :  { %v841_v61 = vmax.f32 %v777_v51, 0.0  ;;  %v814_v0 = vmax.f32 %v750_v54, 0.0  ;;  %v748_v2 = vadd.f32 %v1686_v40, %v677_v56  ;;  %v780_v3 = vadd.f32 %v1686_v40, %v709_v57 }
  0xfd   :  { %v846_v1 = vmax.f32 %v782_v55, 0.0  ;;  %1132 = vst.msk [vmem:[%s2076_s4 + $0x4c] sm:$0xf] %vm1112_vm3, %v1332_v58  ;;  %1164 = vst.msk [vmem:[%s2076_s4 + $0xcc] sm:$0xf] %vm1112_vm3, %v1364_v59  ;;  %v1330_v4 = vpack.c.bf16 %v809_v60, %v809_v60  ;;  %v680_v6 = vmul.f32 %v1438_v62, %v1681_v38  ;;  %v712_v7 = vmul.f32 %v1470_v63, %v1681_v38  ;;  %v1441_v18 = vpop.f32.mrf.mxu0  ;;  %v1473_v19 = vpop.f32.mrf.mxu1 }
  0xfe   :  { %v1362_v5 = vpack.c.bf16 %v841_v61, %v841_v61  ;;  %v1335_v10 = vpack.c.bf16 %v814_v0, %v814_v0  ;;  %v812_v12 = vmax.f32 %v748_v2, 0.0  ;;  %v844_v13 = vmax.f32 %v780_v3, 0.0 }
  0xff   :  { %v1367_v11 = vpack.c.bf16 %v846_v1, %v846_v1  ;;  %1130 = vst.msk [vmem:[%s2076_s4 + $0x44] sm:$0xf] %vm1112_vm3, %v1330_v4  ;;  %v751_v14 = vadd.f32 %v1686_v40, %v680_v6  ;;  %v783_v15 = vadd.f32 %v1686_v40, %v712_v7  ;;  %v678_v16 = vmul.f32 %v1681_v38, %v478_v8  ;;  %v491_v28 = vpop.f32.mrf.mxu0  ;;  %v619_v29 = vpop.f32.mrf.mxu1 }
 0x100   :  { %1162 = vst.msk [vmem:[%s2076_s4 + $0xc4] sm:$0xf] %vm1112_vm3, %v1362_v5  ;;  %v710_v17 = vmul.f32 %v1681_v38, %v606_v9  ;;  %1135 = vst.msk [vmem:[%s2076_s4 + $0x58] sm:$0xf] %vm1112_vm3, %v1335_v10  ;;  %v1333_v20 = vpack.c.bf16 %v812_v12, %v812_v12  ;;  %v1365_v21 = vpack.c.bf16 %v844_v13, %v844_v13 }
 0x101   :  { %1167 = vst.msk [vmem:[%s2076_s4 + $0xd8] sm:$0xf] %vm1112_vm3, %v1367_v11  ;;  %v683_v22 = vmul.f32 %v1441_v18, %v1681_v38  ;;  %v715_v23 = vmul.f32 %v1473_v19, %v1681_v38  ;;  %v815_v24 = vmax.f32 %v751_v14, 0.0  ;;  %v847_v25 = vmax.f32 %v783_v15, 0.0  ;;  %v1442_v39 = vpop.f32.mrf.mxu0  ;;  %v1474_v41 = vpop.f32.mrf.mxu1 }
 0x102   :  { %v749_v26 = vadd.f32 %v1686_v40, %v678_v16  ;;  %v781_v27 = vadd.f32 %v1686_v40, %v710_v17  ;;  %1133 = vst.msk [vmem:[%s2076_s4 + $0x50] sm:$0xf] %vm1112_vm3, %v1333_v20  ;;  %1165 = vst.msk [vmem:[%s2076_s4 + $0xd0] sm:$0xf] %vm1112_vm3, %v1365_v21  ;;  %v681_v32 = vmul.f32 %v1681_v38, %v491_v28 }
 0x103   :  { %v754_v30 = vadd.f32 %v1686_v40, %v683_v22  ;;  %v786_v31 = vadd.f32 %v1686_v40, %v715_v23  ;;  %v713_v33 = vmul.f32 %v1681_v38, %v619_v29  ;;  %v1336_v34 = vpack.c.bf16 %v815_v24, %v815_v24  ;;  %v494_v50 = vpop.f32.mrf.mxu0  ;;  %v622_v51 = vpop.f32.mrf.mxu1 }
 0x104   :  { %v1368_v35 = vpack.c.bf16 %v847_v25, %v847_v25  ;;  %v813_v36 = vmax.f32 %v749_v26, 0.0  ;;  %v845_v37 = vmax.f32 %v781_v27, 0.0  ;;  %v752_v44 = vadd.f32 %v1686_v40, %v681_v32 }
 0x105   :  { %v818_v42 = vmax.f32 %v754_v30, 0.0  ;;  %v850_v43 = vmax.f32 %v786_v31, 0.0  ;;  %v784_v45 = vadd.f32 %v1686_v40, %v713_v33  ;;  %1136 = vst.msk [vmem:[%s2076_s4 + $0x5c] sm:$0xf] %vm1112_vm3, %v1336_v34  ;;  %v684_v48 = vmul.f32 %v1442_v39, %v1681_v38  ;;  %v1445_v60 = vpop.f32.mrf.mxu0  ;;  %v1477_v61 = vpop.f32.mrf.mxu1 }
 0x106   :  { %1168 = vst.msk [vmem:[%s2076_s4 + $0xdc] sm:$0xf] %vm1112_vm3, %v1368_v35  ;;  %v1334_v46 = vpack.c.bf16 %v813_v36, %v813_v36  ;;  %v1366_v47 = vpack.c.bf16 %v845_v37, %v845_v37  ;;  %v716_v49 = vmul.f32 %v1474_v41, %v1681_v38  ;;  %v816_v54 = vmax.f32 %v752_v44, 0.0 }
 0x107   :  { %v1339_v52 = vpack.c.bf16 %v818_v42, %v818_v42  ;;  %v1371_v53 = vpack.c.bf16 %v850_v43, %v850_v43  ;;  %v848_v55 = vmax.f32 %v784_v45, 0.0  ;;  %v755_v56 = vadd.f32 %v1686_v40, %v684_v48  ;;  %v507_v6 = vpop.f32.mrf.mxu0  ;;  %v635_v7 = vpop.f32.mrf.mxu1 }
 0x108   :  { %1134 = vst.msk [vmem:[%s2076_s4 + $0x54] sm:$0xf] %vm1112_vm3, %v1334_v46  ;;  %1166 = vst.msk [vmem:[%s2076_s4 + $0xd4] sm:$0xf] %vm1112_vm3, %v1366_v47  ;;  %v787_v57 = vadd.f32 %v1686_v40, %v716_v49  ;;  %v682_v58 = vmul.f32 %v1681_v38, %v494_v50  ;;  %v714_v59 = vmul.f32 %v1681_v38, %v622_v51 }
 0x109   :  { %1139 = vst.msk [vmem:[%s2076_s4 + $0x68] sm:$0xf] %vm1112_vm3, %v1339_v52  ;;  %1171 = vst.msk [vmem:[%s2076_s4 + $0xe8] sm:$0xf] %vm1112_vm3, %v1371_v53  ;;  %v1337_v62 = vpack.c.bf16 %v816_v54, %v816_v54  ;;  %v1369_v63 = vpack.c.bf16 %v848_v55, %v848_v55  ;;  %v687_v0 = vmul.f32 %v1445_v60, %v1681_v38  ;;  %v819_v2 = vmax.f32 %v755_v56, 0.0  ;;  %v1446_v16 = vpop.f32.mrf.mxu0  ;;  %v1478_v17 = vpop.f32.mrf.mxu1 }
 0x10a   :  { %v719_v1 = vmul.f32 %v1477_v61, %v1681_v38  ;;  %v851_v3 = vmax.f32 %v787_v57, 0.0  ;;  %v753_v4 = vadd.f32 %v1686_v40, %v682_v58  ;;  %v785_v5 = vadd.f32 %v1686_v40, %v714_v59 }
 0x10b   :  { %1137 = vst.msk [vmem:[%s2076_s4 + $0x60] sm:$0xf] %vm1112_vm3, %v1337_v62  ;;  %1169 = vst.msk [vmem:[%s2076_s4 + $0xe0] sm:$0xf] %vm1112_vm3, %v1369_v63  ;;  %v758_v8 = vadd.f32 %v1686_v40, %v687_v0  ;;  %v685_v10 = vmul.f32 %v1681_v38, %v507_v6  ;;  %v717_v11 = vmul.f32 %v1681_v38, %v635_v7  ;;  %v510_v26 = vpop.f32.mrf.mxu0  ;;  %v638_v27 = vpop.f32.mrf.mxu1 }
 0x10c   :  { %v790_v9 = vadd.f32 %v1686_v40, %v719_v1  ;;  %v1340_v12 = vpack.c.bf16 %v819_v2, %v819_v2  ;;  %v1372_v13 = vpack.c.bf16 %v851_v3, %v851_v3  ;;  %v817_v14 = vmax.f32 %v753_v4, 0.0 }
 0x10d   :  { %v849_v15 = vmax.f32 %v785_v5, 0.0  ;;  %v822_v18 = vmax.f32 %v758_v8, 0.0  ;;  %v756_v20 = vadd.f32 %v1686_v40, %v685_v10  ;;  %v788_v21 = vadd.f32 %v1686_v40, %v717_v11 }
 0x10e   :  { %v854_v19 = vmax.f32 %v790_v9, 0.0  ;;  %1140 = vst.msk [vmem:[%s2076_s4 + $0x6c] sm:$0xf] %vm1112_vm3, %v1340_v12  ;;  %1172 = vst.msk [vmem:[%s2076_s4 + $0xec] sm:$0xf] %vm1112_vm3, %v1372_v13  ;;  %v1338_v22 = vpack.c.bf16 %v817_v14, %v817_v14  ;;  %v688_v24 = vmul.f32 %v1446_v16, %v1681_v38  ;;  %v720_v25 = vmul.f32 %v1478_v17, %v1681_v38 }
 0x10f   :  { %v1370_v23 = vpack.c.bf16 %v849_v15, %v849_v15  ;;  %v1343_v28 = vpack.c.bf16 %v822_v18, %v822_v18  ;;  %v820_v30 = vmax.f32 %v756_v20, 0.0  ;;  %v852_v31 = vmax.f32 %v788_v21, 0.0 }
 0x110   :  { %v1375_v29 = vpack.c.bf16 %v854_v19, %v854_v19  ;;  %1138 = vst.msk [vmem:[%s2076_s4 + $0x64] sm:$0xf] %vm1112_vm3, %v1338_v22  ;;  %v759_v32 = vadd.f32 %v1686_v40, %v688_v24  ;;  %v791_v33 = vadd.f32 %v1686_v40, %v720_v25  ;;  %v686_v34 = vmul.f32 %v1681_v38, %v510_v26 }
 0x111   :  { %1170 = vst.msk [vmem:[%s2076_s4 + $0xe4] sm:$0xf] %vm1112_vm3, %v1370_v23  ;;  %v718_v35 = vmul.f32 %v1681_v38, %v638_v27  ;;  %1143 = vst.msk [vmem:[%s2076_s4 + $0x78] sm:$0xf] %vm1112_vm3, %v1343_v28  ;;  %v1341_v36 = vpack.c.bf16 %v820_v30, %v820_v30  ;;  %v1373_v37 = vpack.c.bf16 %v852_v31, %v852_v31 }
 0x112   :  { %1175 = vst.msk [vmem:[%s2076_s4 + $0xf8] sm:$0xf] %vm1112_vm3, %v1375_v29  ;;  %v823_v39 = vmax.f32 %v759_v32, 0.0  ;;  %v855_v41 = vmax.f32 %v791_v33, 0.0  ;;  %v757_v42 = vadd.f32 %v1686_v40, %v686_v34 }
 0x113   :  { %v789_v43 = vadd.f32 %v1686_v40, %v718_v35  ;;  %1141 = vst.msk [vmem:[%s2076_s4 + $0x70] sm:$0xf] %vm1112_vm3, %v1341_v36  ;;  %1173 = vst.msk [vmem:[%s2076_s4 + $0xf0] sm:$0xf] %vm1112_vm3, %v1373_v37 }
 0x114   :  { %v1344_v38 = vpack.c.bf16 %v823_v39, %v823_v39  ;;  %v1376_v44 = vpack.c.bf16 %v855_v41, %v855_v41  ;;  %v821_v45 = vmax.f32 %v757_v42, 0.0 }
 0x115   :  { %v853_v46 = vmax.f32 %v789_v43, 0.0 }
 0x116   :  { %1144 = vst.msk [vmem:[%s2076_s4 + $0x7c] sm:$0xf] %vm1112_vm3, %v1344_v38  ;;  %1176 = vst.msk [vmem:[%s2076_s4 + $0xfc] sm:$0xf] %vm1112_vm3, %v1376_v44  ;;  %v1342_v40 = vpack.c.bf16 %v821_v45, %v821_v45 }
 0x117   :  { %v1374_v47 = vpack.c.bf16 %v853_v46, %v853_v46 }
 0x118   :  { %1142 = vst.msk [vmem:[%s2076_s4 + $0x74] sm:$0xf] %vm1112_vm3, %v1342_v40 }
 0x119   :  { %1174 = vst.msk [vmem:[%s2076_s4 + $0xf4] sm:$0xf] %vm1112_vm3, %v1374_v47 }

// kernel: _lambda_.17
= control target key start
LH: loop header
LB: loop body
LE: loop exit
PB: predicated region body
PF: predicated region fallthrough
CT: control target
= control target key end

     0   :  { %vm106_vm0 = vcmask 523264   ;;  %vm354_vm1 = vcmask 60416   ;;  %s660_s1 = inlined_call_operand.vmem [shape: bf16[64,8], index: 1, kind: input, shape index: {}]   ;;  %s661_s0 = inlined_call_operand.vmem [shape: bf16[128,64], index: 0, kind: input, shape index: {}]   ;;  %s662_s2 = inlined_call_operand.vmem [shape: f32[1,8], index: 2, kind: input, shape index: {}]   ;;  %s663_s3 = inlined_call_operand.vmem [shape: f32[1,8], index: 3, kind: input, shape index: {}]   ;;  %s664_s4 = inlined_call_operand.vmem [shape: bf16[128,8], index: 4, kind: output, shape index: {}]  }
   0x1   :  { %v473_v0 = vld [vmem:[%s660_s1 + $0x18] sm:$0xff]   ;;  %v474_v1 = vld [vmem:[%s660_s1 + $0x10] sm:$0xff]   ;;  %v475_v2 = vld [vmem:[%s660_s1 + $0x8] sm:$0xff]  }
   0x2   :  { %441 = vmatprep.subr.bf16.mxu0 %v473_v0  ;;  %465 = vmatprep.subr.bf16.mxu1 %v473_v0  ;;  %v477_v3 = vld [vmem:[%s661_s0] sm:$0xff]   ;;  %v479_v6 = vld [vmem:[%s661_s0 + $0x8] sm:$0xff]   ;;  %v481_v8 = vld [vmem:[%s661_s0 + $0x10] sm:$0xff]  }
   0x3   :  { %442 = vmatpush3.bf16.msra.mxu0 %v473_v0  ;;  %469 = vmatpush3.bf16.msra.mxu1 %v473_v0  ;;  %v478_v4 = vld [vmem:[%s661_s0 + $0x20] sm:$0xff]   ;;  %v480_v7 = vld [vmem:[%s661_s0 + $0x28] sm:$0xff]   ;;  %v482_v9 = vld [vmem:[%s661_s0 + $0x30] sm:$0xff]  }
   0x4   :  { %443 = vmatprep.subr.bf16.mxu0 %v474_v1  ;;  %466 = vmatprep.subr.bf16.mxu1 %v474_v1  ;;  %v476_v5 = vld [vmem:[%s660_s1] sm:$0xff]   ;;  %v483_v10 = vld [vmem:[%s661_s0 + $0x18] sm:$0xff]  }
   0x5   :  { %449 = vmatprep.mubr.msk.bf16.mxu0 %vm106_vm0, %v477_v3  ;;  %457 = vmatprep.mubr.msk.bf16.mxu1 %vm106_vm0, %v478_v4  ;;  %v484_v11 = vld [vmem:[%s661_s0 + $0x38] sm:$0xff]   ;;  %v557_v12 = vld [vmem:[%s662_s2] ss:$0 sm:$0xff] }
   0x6   :  { %v562_v14 = vld [vmem:[%s663_s3] ss:$0 sm:$0xff] }
   0x7   :  { %444 = vmatpush3.bf16.msra.mxu0 %v474_v1  ;;  %470 = vmatpush3.bf16.msra.mxu1 %v474_v1 }
   0x8   :  { %445 = vmatprep.subr.bf16.mxu0 %v475_v2  ;;  %467 = vmatprep.subr.bf16.mxu1 %v475_v2 }
   0xb   :  { %446 = vmatpush3.bf16.msra.mxu0 %v475_v2  ;;  %471 = vmatpush3.bf16.msra.mxu1 %v475_v2 }
   0xc   :  { %447 = vmatprep.subr.bf16.mxu0 %v476_v5  ;;  %468 = vmatprep.subr.bf16.mxu1 %v476_v5 }
   0xf   :  { %448 = vmatpush3.bf16.msra.mxu0 %v476_v5  ;;  %472 = vmatpush3.bf16.msra.mxu1 %v476_v5 }
  0x12   :  { %450 = vmatmul.mubr.msk.bf16.vlgmr.msra.gmra.mxu0 %vm106_vm0, %v479_v6  ;;  %458 = vmatmul.mubr.msk.bf16.vlgmr.msra.gmra.mxu1 %vm106_vm0, %v480_v7 }
  0x13   :  { %453 = vmatprep.mubr.msk.bf16.mxu0 %vm106_vm0, %v481_v8  ;;  %461 = vmatprep.mubr.msk.bf16.mxu1 %vm106_vm0, %v482_v9 }
  0x1a   :  { %454 = vmatmul.mubr.msk.bf16.gmra.mxu0 %vm106_vm0, %v483_v10  ;;  %462 = vmatmul.mubr.msk.bf16.gmra.mxu1 %vm106_vm0, %v484_v11 }
  0xd2   :  { %v451_v13 = vpop.f32.mrf.mxu0  ;;  %v459_v15 = vpop.f32.mrf.mxu1 }
  0xd3   :  { %v237_v16 = vmul.f32 %v451_v13, %v557_v12  ;;  %v245_v17 = vmul.f32 %v459_v15, %v557_v12 }
  0xd4   :  { %v165_v18 = vpop.f32.mrf.mxu0  ;;  %v197_v19 = vpop.f32.mrf.mxu1 }
  0xd5   :  { %v260_v20 = vadd.f32 %v562_v14, %v237_v16  ;;  %v268_v21 = vadd.f32 %v562_v14, %v245_v17  ;;  %v235_v22 = vmul.f32 %v557_v12, %v165_v18  ;;  %v243_v23 = vmul.f32 %v557_v12, %v197_v19 }
  0xd6   :  { %v452_v24 = vpop.f32.mrf.mxu0  ;;  %v460_v25 = vpop.f32.mrf.mxu1 }
  0xd7   :  { %v276_v26 = vmax.f32 %v260_v20, 0.0  ;;  %v284_v27 = vmax.f32 %v268_v21, 0.0  ;;  %v258_v28 = vadd.f32 %v562_v14, %v235_v22  ;;  %v266_v29 = vadd.f32 %v562_v14, %v243_v23 }
  0xd8   :  { %v238_v30 = vmul.f32 %v452_v24, %v557_v12  ;;  %v246_v31 = vmul.f32 %v460_v25, %v557_v12  ;;  %v168_v32 = vpop.f32.mrf.mxu0  ;;  %v200_v33 = vpop.f32.mrf.mxu1 }
  0xd9   :  { %v415_v34 = vpack.c.bf16 %v276_v26, %v276_v26  ;;  %v423_v35 = vpack.c.bf16 %v284_v27, %v284_v27  ;;  %v274_v36 = vmax.f32 %v258_v28, 0.0  ;;  %v282_v37 = vmax.f32 %v266_v29, 0.0 }
  0xda   :  { %v261_v38 = vadd.f32 %v562_v14, %v238_v30  ;;  %v269_v39 = vadd.f32 %v562_v14, %v246_v31  ;;  %v236_v40 = vmul.f32 %v557_v12, %v168_v32  ;;  %v244_v41 = vmul.f32 %v557_v12, %v200_v33  ;;  %v455_v42 = vpop.f32.mrf.mxu0  ;;  %v463_v43 = vpop.f32.mrf.mxu1 }
  0xdb   :  { %357 = vst.msk [vmem:[%s664_s4 + $0x8] sm:$0xf] %vm354_vm1, %v415_v34  ;;  %365 = vst.msk [vmem:[%s664_s4 + $0x28] sm:$0xf] %vm354_vm1, %v423_v35  ;;  %v413_v44 = vpack.c.bf16 %v274_v36, %v274_v36  ;;  %v421_v45 = vpack.c.bf16 %v282_v37, %v282_v37  ;;  %v241_v46 = vmul.f32 %v455_v42, %v557_v12 }
  0xdc   :  { %v249_v47 = vmul.f32 %v463_v43, %v557_v12  ;;  %v277_v48 = vmax.f32 %v261_v38, 0.0  ;;  %v285_v49 = vmax.f32 %v269_v39, 0.0  ;;  %v259_v50 = vadd.f32 %v562_v14, %v236_v40  ;;  %v181_v52 = vpop.f32.mrf.mxu0  ;;  %v213_v53 = vpop.f32.mrf.mxu1 }
  0xdd   :  { %v267_v51 = vadd.f32 %v562_v14, %v244_v41  ;;  %355 = vst.msk [vmem:[%s664_s4] sm:$0xf] %vm354_vm1, %v413_v44  ;;  %363 = vst.msk [vmem:[%s664_s4 + $0x20] sm:$0xf] %vm354_vm1, %v421_v45  ;;  %v264_v54 = vadd.f32 %v562_v14, %v241_v46  ;;  %v239_v56 = vmul.f32 %v557_v12, %v181_v52 }
  0xde   :  { %v272_v55 = vadd.f32 %v562_v14, %v249_v47  ;;  %v247_v57 = vmul.f32 %v557_v12, %v213_v53  ;;  %v416_v58 = vpack.c.bf16 %v277_v48, %v277_v48  ;;  %v424_v59 = vpack.c.bf16 %v285_v49, %v285_v49  ;;  %v456_v62 = vpop.f32.mrf.mxu0  ;;  %v464_v63 = vpop.f32.mrf.mxu1 }
  0xdf   :  { %v275_v60 = vmax.f32 %v259_v50, 0.0  ;;  %v283_v61 = vmax.f32 %v267_v51, 0.0  ;;  %v280_v0 = vmax.f32 %v264_v54, 0.0  ;;  %v262_v2 = vadd.f32 %v562_v14, %v239_v56 }
  0xe0   :  { %v288_v1 = vmax.f32 %v272_v55, 0.0  ;;  %v270_v3 = vadd.f32 %v562_v14, %v247_v57  ;;  %358 = vst.msk [vmem:[%s664_s4 + $0xc] sm:$0xf] %vm354_vm1, %v416_v58  ;;  %366 = vst.msk [vmem:[%s664_s4 + $0x2c] sm:$0xf] %vm354_vm1, %v424_v59  ;;  %v242_v6 = vmul.f32 %v456_v62, %v557_v12  ;;  %v250_v7 = vmul.f32 %v464_v63, %v557_v12  ;;  %v184_v8 = vpop.f32.mrf.mxu0  ;;  %v216_v9 = vpop.f32.mrf.mxu1 }
  0xe1   :  { %v414_v4 = vpack.c.bf16 %v275_v60, %v275_v60  ;;  %v422_v5 = vpack.c.bf16 %v283_v61, %v283_v61  ;;  %v419_v10 = vpack.c.bf16 %v280_v0, %v280_v0  ;;  %v278_v13 = vmax.f32 %v262_v2, 0.0 }
  0xe2   :  { %v427_v11 = vpack.c.bf16 %v288_v1, %v288_v1  ;;  %v286_v15 = vmax.f32 %v270_v3, 0.0  ;;  %v265_v16 = vadd.f32 %v562_v14, %v242_v6  ;;  %v273_v17 = vadd.f32 %v562_v14, %v250_v7 }
  0xe3   :  { %356 = vst.msk [vmem:[%s664_s4 + $0x4] sm:$0xf] %vm354_vm1, %v414_v4  ;;  %364 = vst.msk [vmem:[%s664_s4 + $0x24] sm:$0xf] %vm354_vm1, %v422_v5  ;;  %v240_v18 = vmul.f32 %v557_v12, %v184_v8  ;;  %v248_v19 = vmul.f32 %v557_v12, %v216_v9  ;;  %v417_v20 = vpack.c.bf16 %v278_v13, %v278_v13 }
  0xe4   :  { %361 = vst.msk [vmem:[%s664_s4 + $0x18] sm:$0xf] %vm354_vm1, %v419_v10  ;;  %369 = vst.msk [vmem:[%s664_s4 + $0x38] sm:$0xf] %vm354_vm1, %v427_v11  ;;  %v425_v21 = vpack.c.bf16 %v286_v15, %v286_v15  ;;  %v281_v22 = vmax.f32 %v265_v16, 0.0  ;;  %v289_v23 = vmax.f32 %v273_v17, 0.0 }
  0xe5   :  { %v263_v24 = vadd.f32 %v562_v14, %v240_v18  ;;  %v271_v25 = vadd.f32 %v562_v14, %v248_v19  ;;  %359 = vst.msk [vmem:[%s664_s4 + $0x10] sm:$0xf] %vm354_vm1, %v417_v20 }
  0xe6   :  { %367 = vst.msk [vmem:[%s664_s4 + $0x30] sm:$0xf] %vm354_vm1, %v425_v21  ;;  %v420_v12 = vpack.c.bf16 %v281_v22, %v281_v22  ;;  %v428_v26 = vpack.c.bf16 %v289_v23, %v289_v23 }
  0xe7   :  { %v279_v27 = vmax.f32 %v263_v24, 0.0  ;;  %v287_v28 = vmax.f32 %v271_v25, 0.0 }
  0xe8   :  { %362 = vst.msk [vmem:[%s664_s4 + $0x1c] sm:$0xf] %vm354_vm1, %v420_v12  ;;  %370 = vst.msk [vmem:[%s664_s4 + $0x3c] sm:$0xf] %vm354_vm1, %v428_v26 }
  0xe9   :  { %v418_v14 = vpack.c.bf16 %v279_v27, %v279_v27  ;;  %v426_v29 = vpack.c.bf16 %v287_v28, %v287_v28 }
  0xeb   :  { %360 = vst.msk [vmem:[%s664_s4 + $0x14] sm:$0xf] %vm354_vm1, %v418_v14  ;;  %368 = vst.msk [vmem:[%s664_s4 + $0x34] sm:$0xf] %vm354_vm1, %v426_v29 }

// kernel: _lambda_.20
= control target key start
LH: loop header
LB: loop body
LE: loop exit
PB: predicated region body
PF: predicated region fallthrough
CT: control target
= control target key end

     0   :  { %vm82_vm0 = vcmask 130048   ;;  %vm330_vm1 = vcmask 125952   ;;  %s606_s1 = inlined_call_operand.vmem [shape: bf16[16,16], index: 1, kind: input, shape index: {}]   ;;  %s607_s0 = inlined_call_operand.vmem [shape: bf16[128,16], index: 0, kind: input, shape index: {}]   ;;  %s608_s2 = inlined_call_operand.vmem [shape: f32[1,16], index: 2, kind: input, shape index: {}]   ;;  %s609_s3 = inlined_call_operand.vmem [shape: f32[1,16], index: 3, kind: input, shape index: {}]   ;;  %s610_s4 = inlined_call_operand.vmem [shape: bf16[128,16], index: 4, kind: output, shape index: {}]  }
   0x1   :  { %v431_v0 = vld [vmem:[%s606_s1] sm:$0xff]   ;;  %v434_v3 = vld [vmem:[%s607_s0 + $0x8] sm:$0xff]   ;;  %v436_v5 = vld [vmem:[%s607_s0 + $0x10] sm:$0xff]  }
   0x2   :  { %v432_v1 = vld [vmem:[%s607_s0] sm:$0xff]   ;;  %411 = vmatprep.subr.bf16.mxu0 %v431_v0  ;;  %429 = vmatprep.subr.bf16.mxu1 %v431_v0  ;;  %v435_v4 = vld [vmem:[%s607_s0 + $0x28] sm:$0xff]   ;;  %v437_v6 = vld [vmem:[%s607_s0 + $0x30] sm:$0xff]  }
   0x3   :  { %v433_v2 = vld [vmem:[%s607_s0 + $0x20] sm:$0xff]   ;;  %412 = vmatpush3.bf16.msra.mxu0 %v431_v0  ;;  %430 = vmatpush3.bf16.msra.mxu1 %v431_v0  ;;  %v438_v7 = vld [vmem:[%s607_s0 + $0x18] sm:$0xff]  }
   0x4   :  { %413 = vmatprep.mubr.msk.bf16.mxu0 %vm82_vm0, %v432_v1  ;;  %421 = vmatprep.mubr.msk.bf16.mxu1 %vm82_vm0, %v433_v2  ;;  %v439_v8 = vld [vmem:[%s607_s0 + $0x38] sm:$0xff]   ;;  %v503_v9 = vld [vmem:[%s608_s2] ss:$0 sm:$0xff] }
   0x5   :  { %v508_v11 = vld [vmem:[%s609_s3] ss:$0 sm:$0xff] }
   0x6   :  { %414 = vmatmul.mubr.msk.bf16.vlgmr.msra.gmra.mxu0 %vm82_vm0, %v434_v3  ;;  %422 = vmatmul.mubr.msk.bf16.vlgmr.msra.gmra.mxu1 %vm82_vm0, %v435_v4 }
   0x7   :  { %417 = vmatprep.mubr.msk.bf16.mxu0 %vm82_vm0, %v436_v5  ;;  %425 = vmatprep.mubr.msk.bf16.mxu1 %vm82_vm0, %v437_v6 }
   0xe   :  { %418 = vmatmul.mubr.msk.bf16.gmra.mxu0 %vm82_vm0, %v438_v7  ;;  %426 = vmatmul.mubr.msk.bf16.gmra.mxu1 %vm82_vm0, %v439_v8 }
  0xc6   :  { %v415_v10 = vpop.f32.mrf.mxu0  ;;  %v423_v12 = vpop.f32.mrf.mxu1 }
  0xc7   :  { %v213_v13 = vmul.f32 %v415_v10, %v503_v9  ;;  %v221_v14 = vmul.f32 %v423_v12, %v503_v9 }
  0xc8   :  { %v141_v15 = vpop.f32.mrf.mxu0  ;;  %v173_v16 = vpop.f32.mrf.mxu1 }
  0xc9   :  { %v236_v17 = vadd.f32 %v508_v11, %v213_v13  ;;  %v244_v18 = vadd.f32 %v508_v11, %v221_v14  ;;  %v211_v19 = vmul.f32 %v503_v9, %v141_v15  ;;  %v219_v20 = vmul.f32 %v503_v9, %v173_v16 }
  0xca   :  { %v416_v21 = vpop.f32.mrf.mxu0  ;;  %v424_v22 = vpop.f32.mrf.mxu1 }
  0xcb   :  { %v252_v23 = vmax.f32 %v236_v17, 0.0  ;;  %v260_v24 = vmax.f32 %v244_v18, 0.0  ;;  %v234_v25 = vadd.f32 %v508_v11, %v211_v19  ;;  %v242_v26 = vadd.f32 %v508_v11, %v219_v20 }
  0xcc   :  { %v214_v27 = vmul.f32 %v416_v21, %v503_v9  ;;  %v222_v28 = vmul.f32 %v424_v22, %v503_v9  ;;  %v144_v29 = vpop.f32.mrf.mxu0  ;;  %v176_v30 = vpop.f32.mrf.mxu1 }
  0xcd   :  { %v388_v31 = vpack.c.bf16 %v252_v23, %v252_v23  ;;  %v396_v32 = vpack.c.bf16 %v260_v24, %v260_v24  ;;  %v250_v33 = vmax.f32 %v234_v25, 0.0  ;;  %v258_v34 = vmax.f32 %v242_v26, 0.0 }
  0xce   :  { %v237_v35 = vadd.f32 %v508_v11, %v214_v27  ;;  %v245_v36 = vadd.f32 %v508_v11, %v222_v28  ;;  %v212_v37 = vmul.f32 %v503_v9, %v144_v29  ;;  %v220_v38 = vmul.f32 %v503_v9, %v176_v30  ;;  %v419_v39 = vpop.f32.mrf.mxu0  ;;  %v427_v40 = vpop.f32.mrf.mxu1 }
  0xcf   :  { %333 = vst.msk [vmem:[%s610_s4 + $0x8] sm:$0xf] %vm330_vm1, %v388_v31  ;;  %341 = vst.msk [vmem:[%s610_s4 + $0x28] sm:$0xf] %vm330_vm1, %v396_v32  ;;  %v386_v41 = vpack.c.bf16 %v250_v33, %v250_v33  ;;  %v394_v42 = vpack.c.bf16 %v258_v34, %v258_v34  ;;  %v217_v43 = vmul.f32 %v419_v39, %v503_v9 }
  0xd0   :  { %v225_v44 = vmul.f32 %v427_v40, %v503_v9  ;;  %v253_v45 = vmax.f32 %v237_v35, 0.0  ;;  %v261_v46 = vmax.f32 %v245_v36, 0.0  ;;  %v235_v47 = vadd.f32 %v508_v11, %v212_v37  ;;  %v157_v49 = vpop.f32.mrf.mxu0  ;;  %v189_v50 = vpop.f32.mrf.mxu1 }
  0xd1   :  { %v243_v48 = vadd.f32 %v508_v11, %v220_v38  ;;  %331 = vst.msk [vmem:[%s610_s4] sm:$0xf] %vm330_vm1, %v386_v41  ;;  %339 = vst.msk [vmem:[%s610_s4 + $0x20] sm:$0xf] %vm330_vm1, %v394_v42  ;;  %v240_v51 = vadd.f32 %v508_v11, %v217_v43  ;;  %v215_v53 = vmul.f32 %v503_v9, %v157_v49 }
  0xd2   :  { %v248_v52 = vadd.f32 %v508_v11, %v225_v44  ;;  %v223_v54 = vmul.f32 %v503_v9, %v189_v50  ;;  %v389_v55 = vpack.c.bf16 %v253_v45, %v253_v45  ;;  %v397_v56 = vpack.c.bf16 %v261_v46, %v261_v46  ;;  %v420_v59 = vpop.f32.mrf.mxu0  ;;  %v428_v60 = vpop.f32.mrf.mxu1 }
  0xd3   :  { %v251_v57 = vmax.f32 %v235_v47, 0.0  ;;  %v259_v58 = vmax.f32 %v243_v48, 0.0  ;;  %v256_v61 = vmax.f32 %v240_v51, 0.0  ;;  %v238_v63 = vadd.f32 %v508_v11, %v215_v53 }
  0xd4   :  { %v264_v62 = vmax.f32 %v248_v52, 0.0  ;;  %v246_v0 = vadd.f32 %v508_v11, %v223_v54  ;;  %334 = vst.msk [vmem:[%s610_s4 + $0xc] sm:$0xf] %vm330_vm1, %v389_v55  ;;  %342 = vst.msk [vmem:[%s610_s4 + $0x2c] sm:$0xf] %vm330_vm1, %v397_v56  ;;  %v218_v3 = vmul.f32 %v420_v59, %v503_v9  ;;  %v226_v4 = vmul.f32 %v428_v60, %v503_v9  ;;  %v160_v5 = vpop.f32.mrf.mxu0  ;;  %v192_v6 = vpop.f32.mrf.mxu1 }
  0xd5   :  { %v387_v1 = vpack.c.bf16 %v251_v57, %v251_v57  ;;  %v395_v2 = vpack.c.bf16 %v259_v58, %v259_v58  ;;  %v392_v7 = vpack.c.bf16 %v256_v61, %v256_v61  ;;  %v254_v10 = vmax.f32 %v238_v63, 0.0 }
  0xd6   :  { %v400_v8 = vpack.c.bf16 %v264_v62, %v264_v62  ;;  %v262_v12 = vmax.f32 %v246_v0, 0.0  ;;  %v241_v13 = vadd.f32 %v508_v11, %v218_v3  ;;  %v249_v14 = vadd.f32 %v508_v11, %v226_v4 }
  0xd7   :  { %332 = vst.msk [vmem:[%s610_s4 + $0x4] sm:$0xf] %vm330_vm1, %v387_v1  ;;  %340 = vst.msk [vmem:[%s610_s4 + $0x24] sm:$0xf] %vm330_vm1, %v395_v2  ;;  %v216_v15 = vmul.f32 %v503_v9, %v160_v5  ;;  %v224_v16 = vmul.f32 %v503_v9, %v192_v6  ;;  %v390_v17 = vpack.c.bf16 %v254_v10, %v254_v10 }
  0xd8   :  { %337 = vst.msk [vmem:[%s610_s4 + $0x18] sm:$0xf] %vm330_vm1, %v392_v7  ;;  %345 = vst.msk [vmem:[%s610_s4 + $0x38] sm:$0xf] %vm330_vm1, %v400_v8  ;;  %v398_v18 = vpack.c.bf16 %v262_v12, %v262_v12  ;;  %v257_v19 = vmax.f32 %v241_v13, 0.0  ;;  %v265_v20 = vmax.f32 %v249_v14, 0.0 }
  0xd9   :  { %v239_v21 = vadd.f32 %v508_v11, %v216_v15  ;;  %v247_v22 = vadd.f32 %v508_v11, %v224_v16  ;;  %335 = vst.msk [vmem:[%s610_s4 + $0x10] sm:$0xf] %vm330_vm1, %v390_v17 }
  0xda   :  { %343 = vst.msk [vmem:[%s610_s4 + $0x30] sm:$0xf] %vm330_vm1, %v398_v18  ;;  %v393_v9 = vpack.c.bf16 %v257_v19, %v257_v19  ;;  %v401_v23 = vpack.c.bf16 %v265_v20, %v265_v20 }
  0xdb   :  { %v255_v24 = vmax.f32 %v239_v21, 0.0  ;;  %v263_v25 = vmax.f32 %v247_v22, 0.0 }
  0xdc   :  { %338 = vst.msk [vmem:[%s610_s4 + $0x1c] sm:$0xf] %vm330_vm1, %v393_v9  ;;  %346 = vst.msk [vmem:[%s610_s4 + $0x3c] sm:$0xf] %vm330_vm1, %v401_v23 }
  0xdd   :  { %v391_v11 = vpack.c.bf16 %v255_v24, %v255_v24  ;;  %v399_v26 = vpack.c.bf16 %v263_v25, %v263_v25 }
  0xdf   :  { %336 = vst.msk [vmem:[%s610_s4 + $0x14] sm:$0xf] %vm330_vm1, %v391_v11  ;;  %344 = vst.msk [vmem:[%s610_s4 + $0x34] sm:$0xf] %vm330_vm1, %v399_v26 }

// kernel: _lambda_.19
= control target key start
LH: loop header
LB: loop body
LE: loop exit
PB: predicated region body
PF: predicated region fallthrough
CT: control target
= control target key end

     0   :  { %vm112_vm0 = vcmask 1043456   ;;  %vm87_vm1 = vcmask 64512   ;;  %vm347_vm2 = vcmask 523264   ;;  %vm611_vm3 = vcmask 125952   ;;  %s1060_s5 = inlined_call_operand.vmem [shape: bf16[64,16], index: 5, kind: input, shape index: {}]   ;;  %s1061_s1 = inlined_call_operand.vmem [shape: bf16[8,16], index: 1, kind: input, shape index: {}]   ;;  %s1062_s0 = inlined_call_operand.vmem [shape: bf16[128,8], index: 0, kind: input, shape index: {}]   ;;  %s1063_s4 = inlined_call_operand.vmem [shape: bf16[128,64], index: 4, kind: input, shape index: {}]   ;;  %s1064_s2 = inlined_call_operand.vmem [shape: f32[1,16], index: 2, kind: input, shape index: {}]   ;;  %s1065_s3 = inlined_call_operand.vmem [shape: f32[1,16], index: 3, kind: input, shape index: {}]   ;;  %s1066_s6 = inlined_call_operand.vmem [shape: f32[1,16], index: 6, kind: input, shape index: {}]   ;;  %s1067_s7 = inlined_call_operand.vmem [shape: f32[1,16], index: 7, kind: input, shape index: {}]   ;;  %s1068_s8 = inlined_call_operand.vmem [shape: bf16[128,16], index: 8, kind: output, shape index: {}]  }
   0x1   :  { %v768_v0 = vld [vmem:[%s1060_s5 + $0x18] sm:$0xff]   ;;  %v46_v1 = vld [vmem:[%s1061_s1] sm:$0xf]  ;;  %v769_v2 = vld [vmem:[%s1060_s5 + $0x10] sm:$0xff]  }
   0x2   :  { %743 = vmatprep.subr.bf16.mxu1 %v768_v0  ;;  %767 = vmatprep.subr.msk.bf16.mxu0 %vm112_vm0, %v46_v1  ;;  %v114_v3 = vsel %vm112_vm0, %v46_v1, 0  ;;  %v770_v4 = vld [vmem:[%s1062_s0] sm:$0xff]   ;;  %v771_v5 = vld [vmem:[%s1062_s0 + $0x8] sm:$0xff]   ;;  %v774_v8 = vld [vmem:[%s1062_s0 + $0x10] sm:$0xff]  }
   0x3   :  { %744 = vmatpush3.bf16.msra.mxu1 %v768_v0  ;;  %726 = vmatpush3.bf16.msra.mxu0 %v114_v3  ;;  %v772_v6 = vld [vmem:[%s1060_s5 + $0x8] sm:$0xff]   ;;  %v773_v7 = vld [vmem:[%s1060_s5] sm:$0xff]   ;;  %v776_v10 = vld [vmem:[%s1062_s0 + $0x18] sm:$0xff]  }
   0x4   :  { %745 = vmatprep.subr.bf16.mxu1 %v769_v2  ;;  %727 = vmatprep.mubr.msk.bf16.mxu0 %vm87_vm1, %v770_v4  ;;  %v775_v9 = vld [vmem:[%s1063_s4] sm:$0xff]   ;;  %v777_v12 = vld [vmem:[%s1063_s4 + $0x8] sm:$0xff]   ;;  %v779_v13 = vld [vmem:[%s1063_s4 + $0x10] sm:$0xff]  }
   0x5   :  { %751 = vmatprep.mubr.msk.bf16.mxu1 %vm347_vm2, %v775_v9  ;;  %v778_v11 = vld [vmem:[%s1062_s0 + $0x20] sm:$0xff]   ;;  %v780_v14 = vld [vmem:[%s1062_s0 + $0x28] sm:$0xff]   ;;  %v782_v15 = vld [vmem:[%s1062_s0 + $0x30] sm:$0xff]  }
   0x6   :  { %728 = vmatmul.mubr.msk.bf16.vlgmr.msra.gmra.mxu0 %vm87_vm1, %v771_v5  ;;  %v781_v16 = vld [vmem:[%s1063_s4 + $0x18] sm:$0xff]   ;;  %v783_v17 = vld [vmem:[%s1063_s4 + $0x20] sm:$0xff]   ;;  %v785_v19 = vld [vmem:[%s1063_s4 + $0x28] sm:$0xff]  }
   0x7   :  { %746 = vmatpush3.bf16.msra.mxu1 %v769_v2  ;;  %731 = vmatprep.mubr.msk.bf16.mxu0 %vm87_vm1, %v774_v8  ;;  %v784_v18 = vld [vmem:[%s1062_s0 + $0x38] sm:$0xff]   ;;  %v786_v20 = vld [vmem:[%s1063_s4 + $0x30] sm:$0xff]   ;;  %v915_v24 = vld [vmem:[%s1064_s2] ss:$0 sm:$0xff] }
   0x8   :  { %747 = vmatprep.subr.bf16.mxu1 %v772_v6  ;;  %v787_v21 = vld [vmem:[%s1063_s4 + $0x38] sm:$0xff]   ;;  %v921_v28 = vld [vmem:[%s1065_s3] ss:$0 sm:$0xff] }
   0x9   :  { %v926_v30 = vld [vmem:[%s1066_s6] ss:$0 sm:$0xff] }
   0xa   :  { %v936_v39 = vld [vmem:[%s1067_s7] ss:$0 sm:$0xff] }
   0xb   :  { %748 = vmatpush3.bf16.msra.mxu1 %v772_v6 }
   0xc   :  { %749 = vmatprep.subr.bf16.mxu1 %v773_v7 }
   0xe   :  { %732 = vmatmul.mubr.msk.bf16.gmra.mxu0 %vm87_vm1, %v776_v10 }
   0xf   :  { %750 = vmatpush3.bf16.msra.mxu1 %v773_v7  ;;  %735 = vmatprep.mubr.msk.bf16.mxu0 %vm87_vm1, %v778_v11 }
  0x12   :  { %752 = vmatmul.mubr.msk.bf16.vlgmr.msra.gmra.mxu1 %vm347_vm2, %v777_v12 }
  0x13   :  { %755 = vmatprep.mubr.msk.bf16.mxu1 %vm347_vm2, %v779_v13 }
  0x16   :  { %736 = vmatmul.mubr.msk.bf16.gmra.mxu0 %vm87_vm1, %v780_v14 }
  0x17   :  { %739 = vmatprep.mubr.msk.bf16.mxu0 %vm87_vm1, %v782_v15 }
  0x1a   :  { %756 = vmatmul.mubr.msk.bf16.gmra.mxu1 %vm347_vm2, %v781_v16 }
  0x1b   :  { %759 = vmatprep.mubr.msk.bf16.mxu1 %vm347_vm2, %v783_v17 }
  0x1e   :  { %740 = vmatmul.mubr.msk.bf16.gmra.mxu0 %vm87_vm1, %v784_v18 }
  0x22   :  { %760 = vmatmul.mubr.msk.bf16.gmra.mxu1 %vm347_vm2, %v785_v19 }
  0x23   :  { %763 = vmatprep.mubr.msk.bf16.mxu1 %vm347_vm2, %v786_v20 }
  0x2a   :  { %764 = vmatmul.mubr.msk.bf16.gmra.mxu1 %vm347_vm2, %v787_v21 }
  0xc6   :  { %v729_v22 = vpop.f32.mrf.mxu0 }
  0xc7   :  { %v222_v27 = vmul.f32 %v729_v22, %v915_v24 }
  0xc8   :  { %v150_v23 = vpop.f32.mrf.mxu0 }
  0xc9   :  { %v245_v32 = vadd.f32 %v921_v28, %v222_v27  ;;  %v220_v33 = vmul.f32 %v915_v24, %v150_v23 }
  0xca   :  { %v730_v25 = vpop.f32.mrf.mxu0 }
  0xcb   :  { %v223_v36 = vmul.f32 %v730_v25, %v915_v24  ;;  %v243_v42 = vadd.f32 %v921_v28, %v220_v33 }
  0xcc   :  { %v153_v26 = vpop.f32.mrf.mxu0 }
  0xcd   :  { %v221_v38 = vmul.f32 %v915_v24, %v153_v26  ;;  %v246_v48 = vadd.f32 %v921_v28, %v223_v36 }
  0xce   :  { %v733_v29 = vpop.f32.mrf.mxu0 }
  0xcf   :  { %v226_v45 = vmul.f32 %v733_v29, %v915_v24  ;;  %v244_v52 = vadd.f32 %v921_v28, %v221_v38 }
  0xd0   :  { %v166_v31 = vpop.f32.mrf.mxu0 }
  0xd1   :  { %v224_v53 = vmul.f32 %v915_v24, %v166_v31  ;;  %v249_v60 = vadd.f32 %v921_v28, %v226_v45 }
  0xd2   :  { %v753_v34 = vpop.f32.mrf.mxu1  ;;  %v734_v35 = vpop.f32.mrf.mxu0 }
  0xd3   :  { %v478_v37 = vmul.f32 %v753_v34, %v926_v30  ;;  %v227_v61 = vmul.f32 %v734_v35, %v915_v24  ;;  %v247_v4 = vadd.f32 %v921_v28, %v224_v53 }
  0xd4   :  { %v406_v40 = vpop.f32.mrf.mxu1  ;;  %v169_v41 = vpop.f32.mrf.mxu0 }
  0xd5   :  { %v494_v43 = vadd.f32 %v478_v37, %v245_v32  ;;  %v476_v44 = vmul.f32 %v926_v30, %v406_v40  ;;  %v225_v5 = vmul.f32 %v915_v24, %v169_v41  ;;  %v250_v14 = vadd.f32 %v921_v28, %v227_v61 }
  0xd6   :  { %v754_v46 = vpop.f32.mrf.mxu1  ;;  %v737_v47 = vpop.f32.mrf.mxu0 }
  0xd7   :  { %v517_v49 = vadd.f32 %v936_v39, %v494_v43  ;;  %v492_v50 = vadd.f32 %v476_v44, %v243_v42  ;;  %v479_v51 = vmul.f32 %v754_v46, %v926_v30  ;;  %v230_v6 = vmul.f32 %v737_v47, %v915_v24 }
  0xd8   :  { %v409_v54 = vpop.f32.mrf.mxu1  ;;  %v182_v55 = vpop.f32.mrf.mxu0  ;;  %v248_v22 = vadd.f32 %v921_v28, %v225_v5 }
  0xd9   :  { %v533_v56 = vmax.f32 %v517_v49, 0.0  ;;  %v515_v57 = vadd.f32 %v936_v39, %v492_v50  ;;  %v495_v58 = vadd.f32 %v479_v51, %v246_v48  ;;  %v477_v59 = vmul.f32 %v926_v30, %v409_v54 }
  0xda   :  { %v757_v62 = vpop.f32.mrf.mxu1  ;;  %v738_v63 = vpop.f32.mrf.mxu0  ;;  %v253_v23 = vadd.f32 %v921_v28, %v230_v6  ;;  %v228_v35 = vmul.f32 %v915_v24, %v182_v55 }
  0xdb   :  { %v690_v0 = vpack.c.bf16 %v533_v56, %v533_v56  ;;  %v531_v1 = vmax.f32 %v515_v57, 0.0  ;;  %v518_v2 = vadd.f32 %v936_v39, %v495_v58  ;;  %v493_v3 = vadd.f32 %v477_v59, %v244_v52 }
  0xdc   :  { %v482_v7 = vmul.f32 %v757_v62, %v926_v30  ;;  %v422_v8 = vpop.f32.mrf.mxu1  ;;  %v185_v9 = vpop.f32.mrf.mxu0  ;;  %v231_v36 = vmul.f32 %v738_v63, %v915_v24  ;;  %v251_v52 = vadd.f32 %v921_v28, %v228_v35 }
  0xdd   :  { %614 = vst.msk [vmem:[%s1068_s8 + $0x8] sm:$0xf] %vm611_vm3, %v690_v0  ;;  %v688_v10 = vpack.c.bf16 %v531_v1, %v531_v1  ;;  %v534_v11 = vmax.f32 %v518_v2, 0.0  ;;  %v516_v12 = vadd.f32 %v936_v39, %v493_v3  ;;  %v480_v13 = vmul.f32 %v926_v30, %v422_v8 }
  0xde   :  { %v498_v15 = vadd.f32 %v482_v7, %v249_v60  ;;  %v758_v16 = vpop.f32.mrf.mxu1  ;;  %v741_v17 = vpop.f32.mrf.mxu0  ;;  %v229_v44 = vmul.f32 %v915_v24, %v185_v9  ;;  %v254_v53 = vadd.f32 %v921_v28, %v231_v36 }
  0xdf   :  { %612 = vst.msk [vmem:[%s1068_s8] sm:$0xf] %vm611_vm3, %v688_v10  ;;  %v691_v18 = vpack.c.bf16 %v534_v11, %v534_v11  ;;  %v532_v19 = vmax.f32 %v516_v12, 0.0  ;;  %v496_v20 = vadd.f32 %v480_v13, %v247_v4  ;;  %v483_v21 = vmul.f32 %v758_v16, %v926_v30 }
  0xe0   :  { %v521_v25 = vadd.f32 %v936_v39, %v498_v15  ;;  %v425_v26 = vpop.f32.mrf.mxu1  ;;  %v198_v33 = vpop.f32.mrf.mxu0  ;;  %v234_v45 = vmul.f32 %v741_v17, %v915_v24  ;;  %v252_v60 = vadd.f32 %v921_v28, %v229_v44 }
  0xe1   :  { %615 = vst.msk [vmem:[%s1068_s8 + $0xc] sm:$0xf] %vm611_vm3, %v691_v18  ;;  %v689_v27 = vpack.c.bf16 %v532_v19, %v532_v19  ;;  %v519_v29 = vadd.f32 %v936_v39, %v496_v20  ;;  %v499_v31 = vadd.f32 %v483_v21, %v250_v14  ;;  %v481_v32 = vmul.f32 %v926_v30, %v425_v26 }
  0xe2   :  { %v537_v34 = vmax.f32 %v521_v25, 0.0  ;;  %v761_v37 = vpop.f32.mrf.mxu1  ;;  %v742_v51 = vpop.f32.mrf.mxu0  ;;  %v257_v61 = vadd.f32 %v921_v28, %v234_v45  ;;  %v232_v62 = vmul.f32 %v915_v24, %v198_v33 }
  0xe3   :  { %613 = vst.msk [vmem:[%s1068_s8 + $0x4] sm:$0xf] %vm611_vm3, %v689_v27  ;;  %v535_v38 = vmax.f32 %v519_v29, 0.0  ;;  %v522_v40 = vadd.f32 %v936_v39, %v499_v31  ;;  %v497_v41 = vadd.f32 %v481_v32, %v248_v22  ;;  %v486_v42 = vmul.f32 %v761_v37, %v926_v30 }
  0xe4   :  { %v694_v43 = vpack.c.bf16 %v537_v34, %v537_v34  ;;  %v438_v46 = vpop.f32.mrf.mxu1  ;;  %v201_v4 = vpop.f32.mrf.mxu0  ;;  %v255_v12 = vadd.f32 %v921_v28, %v232_v62  ;;  %v235_v14 = vmul.f32 %v742_v51, %v915_v24 }
  0xe5   :  { %v692_v47 = vpack.c.bf16 %v535_v38, %v535_v38  ;;  %v538_v48 = vmax.f32 %v522_v40, 0.0  ;;  %v520_v49 = vadd.f32 %v936_v39, %v497_v41  ;;  %v502_v50 = vadd.f32 %v486_v42, %v253_v23 }
  0xe6   :  { %618 = vst.msk [vmem:[%s1068_s8 + $0x18] sm:$0xf] %vm611_vm3, %v694_v43  ;;  %v484_v54 = vmul.f32 %v926_v30, %v438_v46  ;;  %v762_v55 = vpop.f32.mrf.mxu1  ;;  %v233_v15 = vmul.f32 %v915_v24, %v201_v4  ;;  %v258_v24 = vadd.f32 %v921_v28, %v235_v14 }
  0xe7   :  { %616 = vst.msk [vmem:[%s1068_s8 + $0x10] sm:$0xf] %vm611_vm3, %v692_v47  ;;  %v695_v56 = vpack.c.bf16 %v538_v48, %v538_v48  ;;  %v536_v57 = vmax.f32 %v520_v49, 0.0  ;;  %v525_v58 = vadd.f32 %v936_v39, %v502_v50  ;;  %v487_v59 = vmul.f32 %v762_v55, %v926_v30 }
  0xe8   :  { %v500_v63 = vadd.f32 %v484_v54, %v251_v52  ;;  %v441_v0 = vpop.f32.mrf.mxu1  ;;  %v256_v29 = vadd.f32 %v921_v28, %v233_v15 }
  0xe9   :  { %619 = vst.msk [vmem:[%s1068_s8 + $0x1c] sm:$0xf] %vm611_vm3, %v695_v56  ;;  %v693_v1 = vpack.c.bf16 %v536_v57, %v536_v57  ;;  %v541_v2 = vmax.f32 %v525_v58, 0.0  ;;  %v503_v3 = vadd.f32 %v487_v59, %v254_v53  ;;  %v485_v5 = vmul.f32 %v926_v30, %v441_v0 }
  0xea   :  { %v523_v6 = vadd.f32 %v936_v39, %v500_v63  ;;  %v765_v7 = vpop.f32.mrf.mxu1 }
  0xeb   :  { %617 = vst.msk [vmem:[%s1068_s8 + $0x14] sm:$0xf] %vm611_vm3, %v693_v1  ;;  %v698_v8 = vpack.c.bf16 %v541_v2, %v541_v2  ;;  %v526_v9 = vadd.f32 %v936_v39, %v503_v3  ;;  %v501_v10 = vadd.f32 %v485_v5, %v252_v60  ;;  %v490_v11 = vmul.f32 %v765_v7, %v926_v30 }
  0xec   :  { %v539_v13 = vmax.f32 %v523_v6, 0.0  ;;  %v454_v16 = vpop.f32.mrf.mxu1 }
  0xed   :  { %622 = vst.msk [vmem:[%s1068_s8 + $0x28] sm:$0xf] %vm611_vm3, %v698_v8  ;;  %v542_v17 = vmax.f32 %v526_v9, 0.0  ;;  %v524_v18 = vadd.f32 %v936_v39, %v501_v10  ;;  %v506_v19 = vadd.f32 %v490_v11, %v257_v61  ;;  %v488_v20 = vmul.f32 %v926_v30, %v454_v16 }
  0xee   :  { %v696_v21 = vpack.c.bf16 %v539_v13, %v539_v13  ;;  %v766_v22 = vpop.f32.mrf.mxu1 }
  0xef   :  { %v699_v23 = vpack.c.bf16 %v542_v17, %v542_v17  ;;  %v540_v25 = vmax.f32 %v524_v18, 0.0  ;;  %v529_v26 = vadd.f32 %v936_v39, %v506_v19  ;;  %v504_v27 = vadd.f32 %v488_v20, %v255_v12 }
  0xf0   :  { %620 = vst.msk [vmem:[%s1068_s8 + $0x20] sm:$0xf] %vm611_vm3, %v696_v21  ;;  %v491_v31 = vmul.f32 %v766_v22, %v926_v30  ;;  %v457_v32 = vpop.f32.mrf.mxu1 }
  0xf1   :  { %623 = vst.msk [vmem:[%s1068_s8 + $0x2c] sm:$0xf] %vm611_vm3, %v699_v23  ;;  %v697_v33 = vpack.c.bf16 %v540_v25, %v540_v25  ;;  %v545_v34 = vmax.f32 %v529_v26, 0.0  ;;  %v527_v35 = vadd.f32 %v936_v39, %v504_v27  ;;  %v489_v36 = vmul.f32 %v926_v30, %v457_v32 }
  0xf2   :  { %v507_v37 = vadd.f32 %v491_v31, %v258_v24 }
  0xf3   :  { %621 = vst.msk [vmem:[%s1068_s8 + $0x24] sm:$0xf] %vm611_vm3, %v697_v33  ;;  %v702_v28 = vpack.c.bf16 %v545_v34, %v545_v34  ;;  %v543_v38 = vmax.f32 %v527_v35, 0.0  ;;  %v505_v40 = vadd.f32 %v489_v36, %v256_v29 }
  0xf4   :  { %v530_v41 = vadd.f32 %v936_v39, %v507_v37 }
  0xf5   :  { %626 = vst.msk [vmem:[%s1068_s8 + $0x38] sm:$0xf] %vm611_vm3, %v702_v28  ;;  %v700_v42 = vpack.c.bf16 %v543_v38, %v543_v38  ;;  %v528_v43 = vadd.f32 %v936_v39, %v505_v40 }
  0xf6   :  { %v546_v30 = vmax.f32 %v530_v41, 0.0 }
  0xf7   :  { %624 = vst.msk [vmem:[%s1068_s8 + $0x30] sm:$0xf] %vm611_vm3, %v700_v42  ;;  %v544_v44 = vmax.f32 %v528_v43, 0.0 }
  0xf8   :  { %v703_v45 = vpack.c.bf16 %v546_v30, %v546_v30 }
  0xf9   :  { %v701_v46 = vpack.c.bf16 %v544_v44, %v544_v44 }
  0xfa   :  { %627 = vst.msk [vmem:[%s1068_s8 + $0x3c] sm:$0xf] %vm611_vm3, %v703_v45 }
  0xfb   :  { %625 = vst.msk [vmem:[%s1068_s8 + $0x34] sm:$0xf] %vm611_vm3, %v701_v46 }

// kernel: _lambda_.18
= control target key start
LH: loop header
LB: loop body
LE: loop exit
PB: predicated region body
PF: predicated region fallthrough
CT: control target
= control target key end

     0   :  { %s3059_s15 = smov 0   ;;  %s3061_s16 = smov 0   ;;  %s3723_s0 = inlined_call_operand.vmem [shape: bf16[1,2,10,18,8], index: 0, kind: input, shape index: {}]   ;;  %s3724_s1 = inlined_call_operand.vmem [shape: bf16[9,1,8,8], index: 1, kind: input, shape index: {}]   ;;  %s3725_s2 = inlined_call_operand.vmem [shape: f32[1,8], index: 2, kind: input, shape index: {}]   ;;  %s3726_s3 = inlined_call_operand.vmem [shape: f32[1,8], index: 3, kind: input, shape index: {}]   ;;  %s3727_s4 = inlined_call_operand.vmem [shape: bf16[2,128,8], index: 4, kind: output, shape index: {}]  }
   0x1   :  { %s3063_s17 = smov 0  }
   0x2 LB: > { %s26_s18 = sadd.s32 1, %s3027_s16  ;;  %p2557_p0 = scmp.ge.s32.totalorder %s3031_s17, 1  ;;  %s3031_s17 = sphi %s3063_s17, %s14_s17   ;;  %s3027_s16 = sphi %s3061_s16, %s3733_s16   ;;  %s3023_s15 = sphi %s3059_s15, %s3732_s15  }
   0x3   : > { %p28_p1 = scmp.ge.s32.totalorder %s26_s18, 2  ;;  %p206_p2 = scmp.lt.s32.totalorder %s3031_s17, 3 }
   0x5   : > { %s3735_s18 = smov (%p28_p1, %s26_s18), 0  ;;  %p207_p3 = pnand %p2557_p0, %p206_p2 }
   0x6   : > { %p248_p4 = scmp.lt.s32.totalorder (!%p207_p3), %s3023_s15, 1 }
   0x7   : > { %210 = sbr.rel (%p207_p3) target bundleno = 383 (0x17f), region = 36 }
   0xc   : > { %v328_v0 = vld [vmem:[%s3724_s1] sm:$0xf]  ;;  %vm393_vm0 = vcmask 1043456   ;;  %v2577_v2 = vld [vmem:[%s3724_s1 + $0xc] sm:$0xf]  ;;  %s3737_s15 = smov (!%p248_p4, %s3023_s15), 1 }
   0xd   : > { %2964 = vmatprep.subr.msk.bf16.mxu1 %vm393_vm0, %v328_v0  ;;  %v395_v1 = vsel %vm393_vm0, %v328_v0, 0  ;;  %2963 = vmatprep.subr.msk.bf16.mxu0 %vm393_vm0, %v328_v0  ;;  %v2587_v3 = vld [vmem:[%s3724_s1 + $0x18] sm:$0xf]  ;;  %s2973_s25 = smul.u32 120, %s3737_s15  ;;  %vm275_vm1 = vcmask 64512   ;;  %v553_v7 = vsel %vm393_vm0, %v2577_v2, 0 }
   0xe   : > { %2962 = vmatpush3.bf16.msra.mxu1 %v395_v1  ;;  %2800 = vmatpush3.bf16.msra.mxu0 %v395_v1  ;;  %v2597_v5 = vld [vmem:[%s3724_s1 + $0x4] sm:$0xf]  ;;  %v2614_v9 = vld [vmem:[%s3724_s1 + $0x10] sm:$0xf]  ;;  %v711_v11 = vsel %vm393_vm0, %v2587_v3, 0  ;;  %vm1679_vm5 = vcmask 1042432  }
   0xf   : > { %2965 = vmatprep.subr.msk.bf16.mxu1 %vm393_vm0, %v2577_v2  ;;  %2966 = vmatprep.subr.msk.bf16.mxu0 %vm393_vm0, %v2587_v3  ;;  %s3097_s28 = scalar_lea.vmem %s3723_s0, %s2973_s25  ;;  %v1134_v19 = vsel %vm393_vm0, %v2597_v5, 0  ;;  %v1314_v21 = vsel %vm393_vm0, %v2614_v9, 0  ;;  %v3148_v24 = vld [vmem:[%s3724_s1 + $0x1c] sm:$0xf]  ;;  %v3155_v31 = vld [vmem:[%s3724_s1 + $0x8] sm:$0xf] }
  0x10   : > { %v3100_v4 = vld [vmem:[%s3097_s28 + $0x30] sm:$0xff]   ;;  %v3106_v6 = vld [vmem:[%s3097_s28 + $0x3c] sm:$0xff]   ;;  %v3121_v12 = vld [vmem:[%s3097_s28 + $0x48] sm:$0xff]   ;;  %vm872_vm2 = vsmask.f32 3328  ;;  %vm1680_vm6 = vcmask 1046532  }
  0x11   : > { %2809 = vmatprep.mubr.msk.bf16.mxu1 %vm275_vm1, %v3100_v4  ;;  %v3001_v8 = vld [vmem:[%s3097_s28] sm:$0xff]   ;;  %v3002_v10 = vld [vmem:[%s3097_s28 + $0xc] sm:$0xff]   ;;  %v3005_v13 = vld [vmem:[%s3097_s28 + $0x18] sm:$0xff]   ;;  %vm873_vm3 = vsmask.f32 7440  ;;  %s2701_s23 = sshll.u32 %s3737_s15, 6 }
  0x12   : > { %2810 = vmatmul.mubr.msk.bf16.vlgmr.msra.gmra.mxu1 %vm275_vm1, %v3106_v6  ;;  %2801 = vmatprep.mubr.msk.bf16.mxu0 %vm275_vm1, %v3001_v8  ;;  %v3129_v14 = vld [vmem:[%s3097_s28 + $0x54] sm:$0xff]   ;;  %v3006_v15 = vld [vmem:[%s3097_s28 + $0x24] sm:$0xff]   ;;  %v842_v16 = vld [vmem:[%s3097_s28] sm:$0xf]  ;;  %s3640_s25 = scalar_lea.vmem %s3727_s4, %s2701_s23  ;;  %vm2410_vm8 = vcmask 60416  }
  0x13   : > { %2818 = vmatpush3.bf16.msra.mxu1 %v553_v7  ;;  %2802 = vmatmul.mubr.msk.bf16.vlgmr.msra.gmra.mxu0 %vm275_vm1, %v3002_v10  ;;  %v843_v17 = vld [vmem:[%s3097_s28 + $0x4] sm:$0xf]  ;;  %v845_v18 = vld [vmem:[%s3097_s28 + $0xc] sm:$0xf]  ;;  %v846_v20 = vld [vmem:[%s3097_s28 + $0x10] sm:$0xf] }
  0x14   : > { %2967 = vmatprep.subr.msk.bf16.mxu1 %vm393_vm0, %v2597_v5  ;;  %2813 = vmatprep.mubr.msk.bf16.mxu1 %vm275_vm1, %v3121_v12  ;;  %v876_v22 = vshrl.u32 %v842_v16, 16  ;;  %v879_v23 = vshll.u32 %v842_v16, 16  ;;  %v885_v25 = vshll.u32 %v843_v17, 16  ;;  %v889_v26 = vshrl.u32 %v843_v17, 16  ;;  %v848_v32 = vld [vmem:[%s3097_s28 + $0x18] sm:$0xf]  ;;  %vm3190_vm4 = vmor %vm872_vm2, %vm873_vm3 }
  0x15   : > { %2836 = vmatpush3.bf16.msra.mxu0 %v711_v11  ;;  %2805 = vmatprep.mubr.msk.bf16.mxu0 %vm275_vm1, %v3005_v13  ;;  %v900_v27 = vshrl.u32 %v845_v18, 16  ;;  %v903_v28 = vshll.u32 %v845_v18, 16  ;;  %v909_v29 = vshll.u32 %v846_v20, 16  ;;  %v913_v30 = vshrl.u32 %v846_v20, 16  ;;  %v849_v35 = vld [vmem:[%s3097_s28 + $0x1c] sm:$0xf]  ;;  %vm3330_vm7 = vmor %vm1679_vm5, %vm1680_vm6 }
  0x16   : > { %2968 = vmatprep.subr.msk.bf16.mxu0 %vm393_vm0, %v2614_v9  ;;  %v878_v33 = vrot.slane %v876_v22, 4  ;;  %v881_v34 = vrot.slane %v879_v23, 5  ;;  %v844_v36 = vld [vmem:[%s3097_s28 + $0x8] sm:$0x1]  ;;  %v3165_v37 = vrot.slane %v885_v25, 5  ;;  %v891_v38 = vrot.slane %v889_v26, 4 }
  0x17   : > { %v902_v39 = vrot.slane %v900_v27, 4  ;;  %v905_v40 = vrot.slane %v903_v28, 5  ;;  %v847_v41 = vld [vmem:[%s3097_s28 + $0x14] sm:$0x1]  ;;  %v3170_v42 = vrot.slane %v909_v29, 5  ;;  %v915_v43 = vrot.slane %v913_v30, 4 }
  0x18   : > { %v924_v44 = vshrl.u32 %v848_v32, 16  ;;  %v927_v45 = vshll.u32 %v848_v32, 16  ;;  %v933_v46 = vshll.u32 %v849_v35, 16  ;;  %v937_v47 = vshrl.u32 %v849_v35, 16  ;;  %v851_v48 = vld [vmem:[%s3097_s28 + $0x24] sm:$0xf] }
  0x19   : > { %v882_v49 = vor.u32 %v881_v34, %v878_v33  ;;  %v892_v50 = vor.u32 %v891_v38, %v3165_v37  ;;  %v895_v51 = vshll.u32 %v844_v36, 16  ;;  %v919_v52 = vshll.u32 %v847_v41, 16  ;;  %v852_v53 = vld [vmem:[%s3097_s28 + $0x28] sm:$0xf]  ;;  %v850_v62 = vld [vmem:[%s3097_s28 + $0x20] sm:$0x1] }
  0x1a   : > { %2814 = vmatmul.mubr.msk.bf16.gmra.mxu1 %vm275_vm1, %v3129_v14  ;;  %v906_v54 = vor.u32 %v905_v40, %v902_v39  ;;  %v916_v55 = vor.u32 %v915_v43, %v3170_v42  ;;  %v926_v56 = vrot.slane %v924_v44, 4  ;;  %v929_v57 = vrot.slane %v927_v45, 5  ;;  %v855_v9 = vld [vmem:[%s3097_s28 + $0x34] sm:$0xf]  ;;  %v853_v17 = vld [vmem:[%s3097_s28 + $0x2c] sm:$0x1] }
  0x1b   : > { %2819 = vmatprep.mubr.msk.bf16.mxu1 %vm275_vm1, %v3002_v10  ;;  %2806 = vmatmul.mubr.msk.bf16.gmra.mxu0 %vm275_vm1, %v3006_v15  ;;  %v3182_v58 = vrot.slane %v933_v46, 5  ;;  %v939_v59 = vrot.slane %v937_v47, 4  ;;  %v948_v60 = vshrl.u32 %v851_v48, 16  ;;  %v951_v61 = vshll.u32 %v851_v48, 16  ;;  %v3007_v25 = vld [vmem:[%s3097_s28 + $0x60] sm:$0xff]   ;;  %v3008_v48 = vld [vmem:[%s3097_s28 + $0x6c] sm:$0xff]  }
  0x1c   : > { %2837 = vmatprep.mubr.msk.bf16.mxu0 %vm275_vm1, %v3005_v13  ;;  %v957_v63 = vshll.u32 %v852_v53, 16  ;;  %v961_v0 = vshrl.u32 %v852_v53, 16  ;;  %v883_v1 = vrot.slane %v882_v49, 4  ;;  %v893_v2 = vrot.slane %v892_v50, 4  ;;  %v858_v35 = vld [vmem:[%s3097_s28 + $0x40] sm:$0xf] }
  0x1d   : > { %v897_v3 = vrot.slane %v895_v51, 5  ;;  %v907_v5 = vrot.slane %v906_v54, 4  ;;  %v921_v7 = vrot.slane %v919_v52, 5  ;;  %v930_v8 = vor.u32 %v929_v57, %v926_v56  ;;  %v856_v40 = vld [vmem:[%s3097_s28 + $0x38] sm:$0x1] }
  0x1e   : > { %v940_v11 = vor.u32 %v939_v59, %v3182_v58  ;;  %v953_v16 = vrot.slane %v951_v61, 5  ;;  %v3196_v18 = vrot.slane %v957_v63, 5  ;;  %v981_v22 = vshll.u32 %v855_v9, 16  ;;  %v860_v47 = vld [vmem:[%s3097_s28 + $0x48] sm:$0xf] }
  0x1f   : > { %v985_v23 = vshrl.u32 %v855_v9, 16  ;;  %v888_v26 = vsel %vm3190_vm4, %v883_v1, %v3165_v37  ;;  %v898_v27 = vsel %vm3190_vm4, %v893_v2, %v897_v3  ;;  %v912_v28 = vsel %vm3190_vm4, %v907_v5, %v3170_v42  ;;  %v861_v53 = vld [vmem:[%s3097_s28 + $0x4c] sm:$0xf]  ;;  %v1650_v10 = vld [vmem:[%s3097_s28 + $0x64] sm:$0xf] }
  0x20   : > { %v931_v29 = vrot.slane %v930_v8, 4  ;;  %v941_v32 = vrot.slane %v940_v11, 4  ;;  %v967_v34 = vshll.u32 %v853_v17, 16  ;;  %v3220_v41 = vrot.slane %v981_v22, 5 }
  0x21   : > { %v2598_v44 = vcombine.low %v888_v26, %v898_v27  ;;  %v1005_v45 = vshll.u32 %v858_v35, 16  ;;  %v1009_v46 = vshrl.u32 %v858_v35, 16  ;;  %v991_v57 = vshll.u32 %v856_v40, 16  ;;  %v866_v35 = vld [vmem:[%s3097_s28 + $0x60] sm:$0xf] }
  0x22   : > { %2820 = vmatmul.mubr.msk.bf16.vlgmr.msra.gmra.mxu1 %vm275_vm1, %v3005_v13  ;;  %v943_v13 = vshll.u32 %v850_v62, 16  ;;  %v936_v50 = vsel %vm3190_vm4, %v931_v29, %v3182_v58  ;;  %v969_v52 = vrot.slane %v967_v34, 5  ;;  %v1020_v62 = vshrl.u32 %v860_v47, 16  ;;  %v859_v58 = vld [vmem:[%s3097_s28 + $0x44] sm:$0x1] }
  0x23   : > { %2854 = vmatpush3.bf16.msra.mxu1 %v1134_v19  ;;  %2823 = vmatprep.mubr.msk.bf16.mxu1 %vm275_vm1, %v3006_v15  ;;  %v963_v19 = vrot.slane %v961_v0, 4  ;;  %v3234_v63 = vrot.slane %v1005_v45, 5  ;;  %v1011_v0 = vrot.slane %v1009_v46, 4  ;;  %v1023_v1 = vshll.u32 %v860_v47, 16  ;;  %v3275_v40 = vld [vmem:[%s3724_s1 + $0x20] sm:$0xf] }
  0x24   : > { %2838 = vmatmul.mubr.msk.bf16.vlgmr.msra.gmra.mxu0 %vm275_vm1, %v3006_v15  ;;  %2969 = vmatprep.subr.msk.bf16.mxu1 %vm393_vm0, %v3148_v24  ;;  %v950_v15 = vrot.slane %v948_v60, 4  ;;  %v945_v33 = vrot.slane %v943_v13, 5  ;;  %v1029_v2 = vshll.u32 %v861_v53, 16  ;;  %v1494_v3 = vsel %vm393_vm0, %v3148_v24, 0  ;;  %v864_v13 = vld [vmem:[%s3097_s28 + $0x58] sm:$0xf] }
  0x25   : > { %2872 = vmatpush3.bf16.msra.mxu0 %v1314_v21  ;;  %2841 = vmatprep.mubr.msk.bf16.mxu0 %vm275_vm1, %v3100_v4  ;;  %v964_v37 = vor.u32 %v963_v19, %v3196_v18  ;;  %v1033_v5 = vshrl.u32 %v861_v53, 16  ;;  %v993_v11 = vrot.slane %v991_v57, 5  ;;  %v1015_v24 = vshll.u32 %v859_v58, 16  ;;  %v868_v58 = vld [vmem:[%s3097_s28 + $0x68] sm:$0x1] }
  0x26   : > { %2970 = vmatprep.subr.msk.bf16.mxu0 %vm393_vm0, %v3155_v31  ;;  %v954_v36 = vor.u32 %v953_v16, %v950_v15  ;;  %v946_v51 = vsel %vm3190_vm4, %v941_v32, %v945_v33  ;;  %v1022_v17 = vrot.slane %v1020_v62, 4  ;;  %v1012_v19 = vor.u32 %v1011_v0, %v3234_v63  ;;  %v1626_v0 = vld [vmem:[%s3097_s28 + $0x4] sm:$0xf] }
  0x27   : > { %v1053_v26 = vshll.u32 %v864_v13, 16  ;;  %v1057_v27 = vshrl.u32 %v864_v13, 16  ;;  %v1805_v29 = vsel %vm393_vm0, %v3155_v31, 0  ;;  %v1017_v34 = vrot.slane %v1015_v24, 5  ;;  %v1625_v13 = vld [vmem:[%s3097_s28] sm:$0xe] }
  0x28   : > { %v955_v54 = vrot.slane %v954_v36, 4  ;;  %v867_v36 = vld [vmem:[%s3097_s28 + $0x64] sm:$0xf]  ;;  %v1013_v31 = vrot.slane %v1012_v19, 4  ;;  %v1266_v45 = vshrl.u32 %v866_v35, 16  ;;  %v1269_v46 = vshll.u32 %v866_v35, 16 }
  0x29   : > { %v1275_v47 = vshll.u32 %v867_v36, 16 }
  0x2a   : > { %2824 = vmatmul.mubr.msk.bf16.gmra.mxu1 %vm275_vm1, %v3100_v4  ;;  %v854_v4 = vld [vmem:[%s3097_s28 + $0x30] sm:$0xf] }
  0x2b   : > { %2827 = vmatprep.mubr.msk.bf16.mxu1 %vm275_vm1, %v3106_v6  ;;  %v972_v20 = vshrl.u32 %v854_v4, 16  ;;  %v975_v21 = vshll.u32 %v854_v4, 16  ;;  %v3239_v4 = vcombine.low %v936_v50, %v946_v51  ;;  %v1018_v51 = vsel %vm3190_vm4, %v1013_v31, %v1017_v34  ;;  %v1630_v31 = vld [vmem:[%s3097_s28 + $0x14] sm:$0x1] }
  0x2c   : > { %2842 = vmatmul.mubr.msk.bf16.gmra.mxu0 %vm275_vm1, %v3106_v6  ;;  %v917_v6 = vrot.slane %v916_v55, 4  ;;  %v965_v55 = vrot.slane %v964_v37, 4 }
  0x2d   : > { %2845 = vmatprep.mubr.msk.bf16.mxu0 %vm275_vm1, %v3121_v12  ;;  %v974_v38 = vrot.slane %v972_v20, 4  ;;  %v977_v39 = vrot.slane %v975_v21, 5  ;;  %v1025_v20 = vrot.slane %v1023_v1, 5  ;;  %v3250_v21 = vrot.slane %v1029_v2, 5 }
  0x2e   : > { %v922_v30 = vsel %vm3190_vm4, %v917_v6, %v921_v7  ;;  %v863_v6 = vld [vmem:[%s3097_s28 + $0x54] sm:$0xf]  ;;  %v960_v7 = vsel %vm3190_vm4, %v955_v54, %v3196_v18  ;;  %v970_v8 = vsel %vm3190_vm4, %v965_v55, %v969_v52  ;;  %v1035_v18 = vrot.slane %v1033_v5, 4 }
  0x2f   : > { %v2599_v49 = vcombine.low %v912_v28, %v922_v30  ;;  %v978_v56 = vor.u32 %v977_v39, %v974_v38  ;;  %v1044_v22 = vshrl.u32 %v863_v6, 16  ;;  %v3253_v28 = vcombine.low %v960_v7, %v970_v8 }
  0x30   : > { %v1026_v37 = vor.u32 %v1025_v20, %v1022_v17 }
  0x31   : > { %v979_v9 = vrot.slane %v978_v56, 4  ;;  %v1046_v39 = vrot.slane %v1044_v22, 4  ;;  %v2634_v22 = vrot.slane %v1625_v13, 9 }
  0x32   : > { %2828 = vmatmul.mubr.msk.bf16.gmra.mxu1 %vm275_vm1, %v3121_v12  ;;  %v857_v12 = vld [vmem:[%s3097_s28 + $0x3c] sm:$0xf]  ;;  %v1027_v52 = vrot.slane %v1026_v37, 4 }
  0x33   : > { %2831 = vmatprep.mubr.msk.bf16.mxu1 %vm275_vm1, %v3129_v14  ;;  %v996_v42 = vshrl.u32 %v857_v12, 16  ;;  %v999_v43 = vshll.u32 %v857_v12, 16  ;;  %v3260_v12 = vld [vmem:[%s3724_s1 + $0x14] sm:$0xf]  ;;  %v984_v30 = vsel %vm3190_vm4, %v979_v9, %v3220_v41  ;;  %v1285_v9 = vshll.u32 %v868_v58, 16 }
  0x34   : > { %2846 = vmatmul.mubr.msk.bf16.gmra.mxu0 %vm275_vm1, %v3129_v14  ;;  %v987_v14 = vrot.slane %v985_v23, 4  ;;  %v862_v23 = vld [vmem:[%s3097_s28 + $0x50] sm:$0x1]  ;;  %v1032_v1 = vsel %vm3190_vm4, %v1027_v52, %v3250_v21 }
  0x35   : > { %2849 = vmatprep.mubr.msk.bf16.mxu0 %vm275_vm1, %v3007_v25  ;;  %v998_v60 = vrot.slane %v996_v42, 4  ;;  %v1001_v61 = vrot.slane %v999_v43, 5  ;;  %v1039_v38 = vshll.u32 %v862_v23, 16  ;;  %v1055_v42 = vrot.slane %v1053_v26, 5 }
  0x36   : > { %v988_v59 = vor.u32 %v987_v14, %v3220_v41  ;;  %v1036_v41 = vor.u32 %v1035_v18, %v3250_v21  ;;  %v1059_v43 = vrot.slane %v1057_v27, 4  ;;  %v1287_v21 = vrot.slane %v1285_v9, 5 }
  0x37   : > { %v1002_v16 = vor.u32 %v1001_v61, %v998_v60  ;;  %v1041_v53 = vrot.slane %v1039_v38, 5  ;;  %v1271_v60 = vrot.slane %v1269_v46, 5  ;;  %v3294_v61 = vrot.slane %v1275_v47, 5 }
  0x38   : > { %v989_v15 = vrot.slane %v988_v59, 4  ;;  %v1037_v54 = vrot.slane %v1036_v41, 4  ;;  %v1060_v56 = vor.u32 %v1059_v43, %v1055_v42  ;;  %v1268_v59 = vrot.slane %v1266_v45, 4  ;;  %v1633_v41 = vld [vmem:[%s3097_s28 + $0x20] sm:$0x1] }
  0x39   : > { %v1003_v33 = vrot.slane %v1002_v16, 4  ;;  %v3033_v38 = vmov 0.0   ;;  %v1694_v45 = vrot.slane %v1630_v31, 5 }
  0x3a   : > { %2832 = vmatmul.mubr.msk.bf16.gmra.mxu1 %vm275_vm1, %v3007_v25  ;;  %v1047_v25 = vshll.u32 %v863_v6, 16  ;;  %v994_v32 = vsel %vm3190_vm4, %v989_v15, %v993_v11  ;;  %v1042_v6 = vsel %vm3190_vm4, %v1037_v54, %v1041_v53  ;;  %v1272_v7 = vor.u32 %v1271_v60, %v1268_v59  ;;  %v1627_v15 = vld [vmem:[%s3097_s28 + $0x8] sm:$0x1]  ;;  %286 = vst.msk [vmem:[#allocation2 + $0x50] sm:$0xff] %vm275_vm1, %v3033_v38  ;;  %v1637_v60 = vld [vmem:[%s3097_s28 + $0x30] sm:$0xe] }
  0x3b   : > { %2855 = vmatprep.mubr.msk.bf16.mxu1 %vm275_vm1, %v2598_v44  ;;  %v865_v44 = vld [vmem:[%s3097_s28 + $0x5c] sm:$0x1]  ;;  %v1008_v50 = vsel %vm3190_vm4, %v1003_v33, %v3234_v63  ;;  %v1684_v11 = vrot.slane %v1626_v0, 5  ;;  %v3316_v16 = vcombine.low %v1032_v1, %v1042_v6  ;;  %v1687_v18 = vrot.slane %v1627_v15, 5  ;;  %276 = vst.msk [vmem:[#allocation2] sm:$0xff] %vm275_vm1, %v3033_v38  ;;  %277 = vst.msk [vmem:[#allocation2 + $0x8] sm:$0xff] %vm275_vm1, %v3033_v38 }
  0x3c   : > { %2850 = vmatmul.mubr.msk.bf16.gmra.mxu0 %vm275_vm1, %v3008_v48  ;;  %v1049_v14 = vrot.slane %v1047_v25, 5  ;;  %v1279_v48 = vshrl.u32 %v867_v36, 16  ;;  %v1063_v57 = vshll.u32 %v865_v44, 16  ;;  %v3301_v63 = vcombine.low %v1008_v50, %v1018_v51  ;;  %v1629_v25 = vld [vmem:[%s3097_s28 + $0x10] sm:$0xf]  ;;  %278 = vst.msk [vmem:[#allocation2 + $0x10] sm:$0xff] %vm275_vm1, %v3033_v38 }
  0x3d   : > { %2873 = vmatprep.mubr.msk.bf16.mxu0 %vm275_vm1, %v2599_v49  ;;  %v1273_v19 = vrot.slane %v1272_v7, 4  ;;  %v1686_v23 = vrot.slane %v1684_v11, 4  ;;  %v1691_v33 = vrot.slane %v1629_v25, 5  ;;  %v1685_v34 = vsel %vm3330_vm7, %v2634_v22, %v1684_v11  ;;  %v1628_v36 = vld [vmem:[%s3097_s28 + $0xc] sm:$0xe]  ;;  %279 = vst.msk [vmem:[#allocation2 + $0x18] sm:$0xff] %vm275_vm1, %v3033_v38 }
  0x3e   : > { %v1050_v55 = vor.u32 %v1049_v14, %v1046_v39  ;;  %v1281_v62 = vrot.slane %v1279_v48, 4  ;;  %v1065_v5 = vrot.slane %v1063_v57, 5  ;;  %280 = vst.msk [vmem:[#allocation2 + $0x20] sm:$0xff] %vm275_vm1, %v3033_v38  ;;  %281 = vst.msk [vmem:[#allocation2 + $0x28] sm:$0xff] %vm275_vm1, %v3033_v38  ;;  %v1631_v39 = vld [vmem:[%s3097_s28 + $0x18] sm:$0xe] }
  0x3f   : > { %v1688_v35 = vsel %vm3330_vm7, %v1686_v23, %v1687_v18  ;;  %282 = vst.msk [vmem:[#allocation2 + $0x30] sm:$0xff] %vm275_vm1, %v3033_v38  ;;  %283 = vst.msk [vmem:[#allocation2 + $0x38] sm:$0xff] %vm275_vm1, %v3033_v38  ;;  %v2635_v43 = vrot.slane %v1628_v36, 9  ;;  %v1693_v44 = vrot.slane %v1691_v33, 4  ;;  %v2636_v46 = vrot.slane %v1631_v39, 9 }
  0x40   : > { %v1051_v2 = vrot.slane %v1050_v55, 4  ;;  %v1282_v8 = vor.u32 %v1281_v62, %v3294_v61  ;;  %284 = vst.msk [vmem:[#allocation2 + $0x40] sm:$0xff] %vm275_vm1, %v3033_v38  ;;  %285 = vst.msk [vmem:[#allocation2 + $0x48] sm:$0xff] %vm275_vm1, %v3033_v38  ;;  %v1701_v48 = vrot.slane %v1633_v41, 5  ;;  %v1635_v50 = vld [vmem:[%s3097_s28 + $0x28] sm:$0xf] }
  0x41   : > { %287 = vst.msk [vmem:[#allocation2 + $0x58] sm:$0xff] %vm275_vm1, %v3033_v38  ;;  %288 = vst.msk [vmem:[#allocation2 + $0x60] sm:$0xff] %vm275_vm1, %v3033_v38  ;;  %v1638_v51 = vld [vmem:[%s3097_s28 + $0x34] sm:$0xf]  ;;  %v1692_v52 = vsel %vm3330_vm7, %v2635_v43, %v1691_v33  ;;  %v1695_v53 = vsel %vm3330_vm7, %v1693_v44, %v1694_v45  ;;  %v1705_v54 = vrot.slane %v1635_v50, 5  ;;  %v1971_v62 = vsel %vm393_vm0, %v3260_v12, 0 }
  0x42   : > { %2856 = vmatmul.mubr.msk.bf16.vlgmr.msra.gmra.mxu1 %vm275_vm1, %v2599_v49  ;;  %v3285_v49 = vcombine.low %v984_v30, %v994_v32  ;;  %v1056_v24 = vsel %vm3190_vm4, %v1051_v2, %v1055_v42  ;;  %v1283_v20 = vrot.slane %v1282_v8, 4  ;;  %v1278_v30 = vsel %vm3190_vm4, %v1273_v19, %v3294_v61  ;;  %289 = vst.msk [vmem:[#allocation2 + $0x68] sm:$0xff] %vm275_vm1, %v3033_v38  ;;  %v1636_v57 = vld [vmem:[%s3097_s28 + $0x2c] sm:$0x1]  ;;  %v1639_v61 = vld [vmem:[%s3097_s28 + $0x38] sm:$0x1] }
  0x43   : > { %2890 = vmatpush3.bf16.msra.mxu1 %v1494_v3  ;;  %2859 = vmatprep.mubr.msk.bf16.mxu1 %vm275_vm1, %v3239_v4  ;;  %v1061_v3 = vrot.slane %v1060_v56, 4  ;;  %290 = vst.msk [vmem:[#allocation2 + $0x70] sm:$0xff] %vm275_vm1, %v3033_v38  ;;  %291 = vst.msk [vmem:[#allocation2 + $0x78] sm:$0xff] %vm275_vm1, %v3033_v38  ;;  %v2643_v42 = vcombine.low %v1685_v34, %v1688_v35  ;;  %v1634_v56 = vld [vmem:[%s3097_s28 + $0x24] sm:$0xe]  ;;  %v1712_v59 = vrot.slane %v1638_v51, 5 }
  0x44   : > { %2874 = vmatmul.mubr.msk.bf16.vlgmr.msra.gmra.mxu0 %vm275_vm1, %v3239_v4  ;;  %2971 = vmatprep.subr.msk.bf16.mxu1 %vm393_vm0, %v3260_v12  ;;  %v1288_v32 = vsel %vm3190_vm4, %v1283_v20, %v1287_v21  ;;  %v3393_v58 = vcombine.low %v1692_v52, %v1695_v53  ;;  %v869_v0 = vld [vmem:[%s3097_s28 + $0x6c] sm:$0xf]  ;;  %v870_v1 = vld [vmem:[%s3097_s28 + $0x70] sm:$0xf]  ;;  %v1708_v6 = vrot.slane %v1636_v57, 5  ;;  %v2137_v7 = vsel %vm393_vm0, %v3275_v40, 0 }
  0x45   : > { %2908 = vmatpush3.bf16.msra.mxu0 %v1805_v29  ;;  %2877 = vmatprep.mubr.msk.bf16.mxu0 %vm275_vm1, %v3253_v28  ;;  %v1066_v17 = vsel %vm3190_vm4, %v1061_v3, %v1065_v5  ;;  %v1632_v29 = vld [vmem:[%s3097_s28 + $0x1c] sm:$0xf]  ;;  %v3368_v14 = vcombine.low %v1278_v30, %v1288_v32  ;;  %v2637_v3 = vrot.slane %v1634_v56, 9  ;;  %v1707_v5 = vrot.slane %v1705_v54, 4  ;;  %v1641_v11 = vld [vmem:[%s3097_s28 + $0x40] sm:$0xf] }
  0x46   : > { %2972 = vmatprep.subr.msk.bf16.mxu0 %vm393_vm0, %v3275_v40  ;;  %v3327_v26 = vcombine.low %v1056_v24, %v1066_v17  ;;  %v1698_v37 = vrot.slane %v1632_v29, 5  ;;  %v2638_v8 = vrot.slane %v1637_v60, 9  ;;  %v1714_v9 = vrot.slane %v1712_v59, 4  ;;  %v1644_v19 = vld [vmem:[%s3097_s28 + $0x4c] sm:$0xf] }
  0x47   : > { %v1715_v12 = vrot.slane %v1639_v61, 5  ;;  %v1446_v13 = vshrl.u32 %v869_v0, 16  ;;  %v1449_v15 = vshll.u32 %v869_v0, 16  ;;  %v1455_v24 = vshll.u32 %v870_v1, 16  ;;  %v1642_v23 = vld [vmem:[%s3097_s28 + $0x44] sm:$0x1] }
  0x48   : > { %v1700_v47 = vrot.slane %v1698_v37, 4  ;;  %v1699_v55 = vsel %vm3330_vm7, %v2636_v46, %v1698_v37  ;;  %v1459_v17 = vshrl.u32 %v870_v1, 16  ;;  %v1709_v40 = vsel %vm3330_vm7, %v1707_v5, %v1708_v6  ;;  %v1643_v18 = vld [vmem:[%s3097_s28 + $0x48] sm:$0xe]  ;;  %v1645_v34 = vld [vmem:[%s3097_s28 + $0x50] sm:$0x1] }
  0x49   : > { %v1719_v20 = vrot.slane %v1641_v11, 5  ;;  %v1713_v21 = vsel %vm3330_vm7, %v2638_v8, %v1712_v59  ;;  %v1716_v22 = vsel %vm3330_vm7, %v1714_v9, %v1715_v12  ;;  %v1726_v25 = vrot.slane %v1644_v19, 5  ;;  %v871_v36 = vld [vmem:[%s3097_s28 + $0x74] sm:$0x1]  ;;  %v1647_v44 = vld [vmem:[%s3097_s28 + $0x58] sm:$0xf] }
  0x4a   : > { %2860 = vmatmul.mubr.msk.bf16.gmra.mxu1 %vm275_vm1, %v3253_v28  ;;  %v1448_v29 = vrot.slane %v1446_v13, 4  ;;  %v1451_v30 = vrot.slane %v1449_v15, 5  ;;  %v1457_v32 = vrot.slane %v1455_v24, 5  ;;  %v1461_v33 = vrot.slane %v1459_v17, 4  ;;  %v1646_v52 = vld [vmem:[%s3097_s28 + $0x54] sm:$0xe] }
  0x4b   : > { %2863 = vmatprep.mubr.msk.bf16.mxu1 %vm275_vm1, %v3285_v49  ;;  %v2647_v31 = vcombine.low %v1713_v21, %v1716_v22  ;;  %v1721_v38 = vrot.slane %v1719_v20, 4  ;;  %v1722_v39 = vrot.slane %v1642_v23, 5  ;;  %v2640_v41 = vrot.slane %v1643_v18, 9  ;;  %v1648_v53 = vld [vmem:[%s3097_s28 + $0x5c] sm:$0x1]  ;;  %v322_v22 = vld [vmem:[#allocation2 + $0x50] sm:$0xff] }
  0x4c   : > { %2878 = vmatmul.mubr.msk.bf16.gmra.mxu0 %vm275_vm1, %v3285_v49  ;;  %v1729_v43 = vrot.slane %v1645_v34, 5  ;;  %v1452_v45 = vor.u32 %v1451_v30, %v1448_v29  ;;  %v1462_v46 = vor.u32 %v1461_v33, %v1457_v32  ;;  %v1733_v50 = vrot.slane %v1647_v44, 5  ;;  %v1649_v6 = vld [vmem:[%s3097_s28 + $0x60] sm:$0xe]  ;;  %v1652_v11 = vld [vmem:[%s3097_s28 + $0x6c] sm:$0xe] }
  0x4d   : > { %2881 = vmatprep.mubr.msk.bf16.mxu0 %vm275_vm1, %v3301_v63  ;;  %v1727_v51 = vsel %vm3330_vm7, %v2640_v41, %v1726_v25  ;;  %v2641_v59 = vrot.slane %v1646_v52, 9  ;;  %v1736_v61 = vrot.slane %v1648_v53, 5  ;;  %v1941_v5 = vrot.slane %v1650_v10, 5  ;;  %v1654_v13 = vld [vmem:[%s3097_s28 + $0x74] sm:$0x1]  ;;  %v320_v18 = vld [vmem:[#allocation2 + $0x40] sm:$0xff] }
  0x4e   : > { %v1735_v60 = vrot.slane %v1733_v50, 4  ;;  %v2670_v17 = vrot.slane %v1652_v11, 9  ;;  %v323_v33 = vld [vmem:[#allocation2 + $0x58] sm:$0xff]  ;;  %v312_v34 = vld [vmem:[#allocation2] sm:$0xff]  ;;  %v326_v44 = vld [vmem:[#allocation2 + $0x70] sm:$0xff] }
  0x4f   : > { %v1734_v1 = vsel %vm3330_vm7, %v2641_v59, %v1733_v50  ;;  %v1943_v8 = vrot.slane %v1941_v5, 4  ;;  %v324_v50 = vld [vmem:[#allocation2 + $0x60] sm:$0xff]  ;;  %v317_v10 = vld [vmem:[#allocation2 + $0x28] sm:$0xff] }
  0x52   : > { %2864 = vmatmul.mubr.msk.bf16.gmra.mxu1 %vm275_vm1, %v3301_v63 }
  0x53   : > { %2867 = vmatprep.mubr.msk.bf16.mxu1 %vm275_vm1, %v3316_v16 }
  0x54   : > { %2882 = vmatmul.mubr.msk.bf16.gmra.mxu0 %vm275_vm1, %v3316_v16 }
  0x55   : > { %2885 = vmatprep.mubr.msk.bf16.mxu0 %vm275_vm1, %v3327_v26 }
  0x5a   : > { %2868 = vmatmul.mubr.msk.bf16.gmra.mxu1 %vm275_vm1, %v3327_v26 }
  0x5b   : > { %2891 = vmatprep.mubr.msk.bf16.mxu1 %vm275_vm1, %v3239_v4  ;;  %v1702_v4 = vsel %vm3330_vm7, %v1700_v47, %v1701_v48  ;;  %v1465_v47 = vshll.u32 %v871_v36, 16 }
  0x5c   : > { %2886 = vmatmul.mubr.msk.bf16.gmra.mxu0 %vm275_vm1, %v3368_v14  ;;  %v3397_v2 = vcombine.low %v1699_v55, %v1702_v4  ;;  %v1463_v55 = vrot.slane %v1462_v46, 4 }
  0x5d   : > { %2909 = vmatprep.mubr.msk.bf16.mxu0 %vm275_vm1, %v2643_v42  ;;  %v1728_v42 = vrot.slane %v1726_v25, 4  ;;  %v1467_v4 = vrot.slane %v1465_v47, 5  ;;  %v314_v25 = vld [vmem:[#allocation2 + $0x10] sm:$0xff] }
  0x5f   : > { %v1468_v0 = vsel %vm3190_vm4, %v1463_v55, %v1467_v4  ;;  %v327_v55 = vld [vmem:[#allocation2 + $0x78] sm:$0xff]  ;;  %v316_v4 = vld [vmem:[#allocation2 + $0x20] sm:$0xff] }
  0x62   : > { %2892 = vmatmul.mubr.msk.bf16.vlgmr.msra.gmra.mxu1 %vm275_vm1, %v3253_v28  ;;  %v1706_v28 = vsel %vm3330_vm7, %v2637_v3, %v1705_v54  ;;  %v1453_v54 = vrot.slane %v1452_v45, 4  ;;  %v313_v45 = vld [vmem:[#allocation2 + $0x8] sm:$0xff] }
  0x63   : > { %2926 = vmatpush3.bf16.msra.mxu1 %v1971_v62  ;;  %2895 = vmatprep.mubr.msk.bf16.mxu1 %vm275_vm1, %v3285_v49  ;;  %v1640_v49 = vld [vmem:[%s3097_s28 + $0x3c] sm:$0xe]  ;;  %v2646_v35 = vcombine.low %v1706_v28, %v1709_v40  ;;  %v2110_v28 = vrot.slane %v1654_v13, 5 }
  0x64   : > { %2910 = vmatmul.mubr.msk.bf16.vlgmr.msra.gmra.mxu0 %vm275_vm1, %v3393_v58  ;;  %v2639_v37 = vrot.slane %v1640_v49, 9  ;;  %v1458_v62 = vsel %vm3190_vm4, %v1453_v54, %v1457_v32 }
  0x65   : > { %2944 = vmatpush3.bf16.msra.mxu0 %v2137_v7  ;;  %2913 = vmatprep.mubr.msk.bf16.mxu0 %vm275_vm1, %v3397_v2  ;;  %v1653_v7 = vld [vmem:[%s3097_s28 + $0x70] sm:$0xf] }
  0x66   : > { %v1720_v48 = vsel %vm3330_vm7, %v2639_v37, %v1719_v20  ;;  %v2107_v12 = vrot.slane %v1653_v7, 5  ;;  %v321_v37 = vld [vmem:[#allocation2 + $0x48] sm:$0xff] }
  0x68   : > { %v2109_v19 = vrot.slane %v2107_v12, 4  ;;  %v2108_v49 = vsel %vm3330_vm7, %v2670_v17, %v2107_v12 }
  0x6a   : > { %2896 = vmatmul.mubr.msk.bf16.gmra.mxu1 %vm275_vm1, %v3301_v63  ;;  %v1723_v63 = vsel %vm3330_vm7, %v1721_v38, %v1722_v39  ;;  %v2111_v20 = vsel %vm3330_vm7, %v2109_v19, %v2110_v28  ;;  %v315_v38 = vld [vmem:[#allocation2 + $0x18] sm:$0xff] }
  0x6b   : > { %2899 = vmatprep.mubr.msk.bf16.mxu1 %vm275_vm1, %v3316_v16  ;;  %v1730_v16 = vsel %vm3330_vm7, %v1728_v42, %v1729_v43  ;;  %v2648_v56 = vcombine.low %v1720_v48, %v1723_v63  ;;  %v2672_v21 = vcombine.low %v2108_v49, %v2111_v20 }
  0x6c   : > { %2914 = vmatmul.mubr.msk.bf16.gmra.mxu0 %vm275_vm1, %v2646_v35  ;;  %v2649_v57 = vcombine.low %v1727_v51, %v1730_v16  ;;  %v318_v51 = vld [vmem:[#allocation2 + $0x30] sm:$0xff] }
  0x6d   : > { %2917 = vmatprep.mubr.msk.bf16.mxu0 %vm275_vm1, %v2647_v31 }
  0x72   : > { %2900 = vmatmul.mubr.msk.bf16.gmra.mxu1 %vm275_vm1, %v3327_v26  ;;  %v1737_v26 = vsel %vm3330_vm7, %v1735_v60, %v1736_v61  ;;  %v325_v61 = vld [vmem:[#allocation2 + $0x68] sm:$0xff] }
  0x73   : > { %2903 = vmatprep.mubr.msk.bf16.mxu1 %vm275_vm1, %v3368_v14  ;;  %v2625_v14 = vcombine.low %v1458_v62, %v1468_v0  ;;  %v2650_v3 = vcombine.low %v1734_v1, %v1737_v26  ;;  %v319_v62 = vld [vmem:[#allocation2 + $0x38] sm:$0xff] }
  0x74   : > { %2918 = vmatmul.mubr.msk.bf16.gmra.mxu0 %vm275_vm1, %v2648_v56 }
  0x75   : > { %2921 = vmatprep.mubr.msk.bf16.mxu0 %vm275_vm1, %v2649_v57 }
  0x7a   : > { %2904 = vmatmul.mubr.msk.bf16.gmra.mxu1 %vm275_vm1, %v2625_v14 }
  0x7b   : > { %2927 = vmatprep.mubr.msk.bf16.mxu1 %vm275_vm1, %v3393_v58  ;;  %v1651_v58 = vld [vmem:[%s3097_s28 + $0x68] sm:$0x1] }
  0x7c   : > { %2922 = vmatmul.mubr.msk.bf16.gmra.mxu0 %vm275_vm1, %v2650_v3  ;;  %v1944_v9 = vrot.slane %v1651_v58, 5 }
  0x7d   : > { %2945 = vmatprep.mubr.msk.bf16.mxu0 %vm275_vm1, %v3397_v2 }
  0x7e   : > { %v1945_v24 = vsel %vm3330_vm7, %v1943_v8, %v1944_v9 }
  0x82   : > { %2928 = vmatmul.mubr.msk.bf16.vlgmr.msra.gmra.mxu1 %vm275_vm1, %v3397_v2  ;;  %v2659_v2 = vrot.slane %v1649_v6, 9 }
  0x83   : > { %2931 = vmatprep.mubr.msk.bf16.mxu1 %vm275_vm1, %v2646_v35 }
  0x84   : > { %2946 = vmatmul.mubr.msk.bf16.vlgmr.msra.gmra.mxu0 %vm275_vm1, %v2646_v35  ;;  %v1942_v15 = vsel %vm3330_vm7, %v2659_v2, %v1941_v5 }
  0x85   : > { %2949 = vmatprep.mubr.msk.bf16.mxu0 %vm275_vm1, %v2647_v31  ;;  %v2661_v40 = vcombine.low %v1942_v15, %v1945_v24 }
  0x8a   : > { %2932 = vmatmul.mubr.msk.bf16.gmra.mxu1 %vm275_vm1, %v2647_v31 }
  0x8b   : > { %2935 = vmatprep.mubr.msk.bf16.mxu1 %vm275_vm1, %v2648_v56 }
  0x8c   : > { %2950 = vmatmul.mubr.msk.bf16.gmra.mxu0 %vm275_vm1, %v2648_v56 }
  0x8d   : > { %2953 = vmatprep.mubr.msk.bf16.mxu0 %vm275_vm1, %v2649_v57 }
  0x92   : > { %2936 = vmatmul.mubr.msk.bf16.gmra.mxu1 %vm275_vm1, %v2649_v57 }
  0x93   : > { %2939 = vmatprep.mubr.msk.bf16.mxu1 %vm275_vm1, %v2650_v3 }
  0x94   : > { %2954 = vmatmul.mubr.msk.bf16.gmra.mxu0 %vm275_vm1, %v2650_v3 }
  0x95   : > { %2957 = vmatprep.mubr.msk.bf16.mxu0 %vm275_vm1, %v2661_v40 }
  0x9a   : > { %2940 = vmatmul.mubr.msk.bf16.gmra.mxu1 %vm275_vm1, %v2661_v40 }
  0x9c   : > { %2958 = vmatmul.mubr.msk.bf16.gmra.mxu0 %vm275_vm1, %v2672_v21 }
  0xd2   : > { %v2811_v23 = vpop.f32.mrf.mxu1 }
  0xd3   : > { %v504_v29 = vadd.f32 %v2811_v23, %v322_v22  ;;  %v2803_v32 = vpop.f32.mrf.mxu0 }
  0xd4   : > { %v463_v30 = vpop.f32.mrf.mxu1  ;;  %v496_v36 = vadd.f32 %v2803_v32, %v314_v25 }
  0xd5   : > { %520 = vst.msk [vmem:[#allocation2 + $0x50] sm:$0xff] %vm275_vm1, %v504_v29  ;;  %v502_v35 = vadd.f32 %v463_v30, %v320_v18  ;;  %v431_v31 = vpop.f32.mrf.mxu0 }
  0xd6   : > { %v2812_v27 = vpop.f32.mrf.mxu1  ;;  %512 = vst.msk [vmem:[#allocation2 + $0x10] sm:$0xff] %vm275_vm1, %v496_v36  ;;  %v494_v41 = vadd.f32 %v431_v31, %v312_v34 }
  0xd7   : > { %518 = vst.msk [vmem:[#allocation2 + $0x40] sm:$0xff] %vm275_vm1, %v502_v35  ;;  %v505_v39 = vadd.f32 %v2812_v27, %v323_v33  ;;  %v2804_v43 = vpop.f32.mrf.mxu0 }
  0xd8   : > { %v466_v42 = vpop.f32.mrf.mxu1  ;;  %510 = vst.msk [vmem:[#allocation2] sm:$0xff] %vm275_vm1, %v494_v41  ;;  %v497_v47 = vadd.f32 %v2804_v43, %v315_v38 }
  0xd9   : > { %521 = vst.msk [vmem:[#allocation2 + $0x58] sm:$0xff] %vm275_vm1, %v505_v39  ;;  %v503_v46 = vadd.f32 %v466_v42, %v321_v37  ;;  %v434_v63 = vpop.f32.mrf.mxu0 }
  0xda   : > { %v2815_v48 = vpop.f32.mrf.mxu1  ;;  %513 = vst.msk [vmem:[#allocation2 + $0x18] sm:$0xff] %vm275_vm1, %v497_v47  ;;  %v495_v52 = vadd.f32 %v434_v63, %v313_v45 }
  0xdb   : > { %519 = vst.msk [vmem:[#allocation2 + $0x48] sm:$0xff] %vm275_vm1, %v503_v46  ;;  %v508_v16 = vadd.f32 %v2815_v48, %v326_v44  ;;  %v2807_v54 = vpop.f32.mrf.mxu0 }
  0xdc   : > { %v479_v53 = vpop.f32.mrf.mxu1  ;;  %511 = vst.msk [vmem:[#allocation2 + $0x8] sm:$0xff] %vm275_vm1, %v495_v52  ;;  %v500_v57 = vadd.f32 %v2807_v54, %v318_v51  ;;  %v536_v47 = vld [vmem:[#allocation2 + $0x50] sm:$0xff] }
  0xdd   : > { %524 = vst.msk [vmem:[#allocation2 + $0x70] sm:$0xff] %vm275_vm1, %v508_v16  ;;  %v506_v56 = vadd.f32 %v479_v53, %v324_v50  ;;  %v447_v60 = vpop.f32.mrf.mxu0  ;;  %v528_v3 = vld [vmem:[#allocation2 + $0x10] sm:$0xff] }
  0xde   : > { %v2816_v59 = vpop.f32.mrf.mxu1  ;;  %516 = vst.msk [vmem:[#allocation2 + $0x30] sm:$0xff] %vm275_vm1, %v500_v57  ;;  %v498_v1 = vadd.f32 %v447_v60, %v316_v4  ;;  %v534_v52 = vld [vmem:[#allocation2 + $0x40] sm:$0xff] }
  0xdf   : > { %522 = vst.msk [vmem:[#allocation2 + $0x60] sm:$0xff] %vm275_vm1, %v506_v56  ;;  %v509_v0 = vadd.f32 %v2816_v59, %v327_v55  ;;  %v2808_v14 = vpop.f32.mrf.mxu0  ;;  %v526_v2 = vld [vmem:[#allocation2] sm:$0xff] }
  0xe0   : > { %v482_v26 = vpop.f32.mrf.mxu1  ;;  %514 = vst.msk [vmem:[#allocation2 + $0x20] sm:$0xff] %vm275_vm1, %v498_v1  ;;  %v501_v6 = vadd.f32 %v2808_v14, %v319_v62  ;;  %v537_v57 = vld [vmem:[#allocation2 + $0x58] sm:$0xff] }
  0xe1   : > { %525 = vst.msk [vmem:[#allocation2 + $0x78] sm:$0xff] %vm275_vm1, %v509_v0  ;;  %v507_v5 = vadd.f32 %v482_v26, %v325_v61  ;;  %v450_v7 = vpop.f32.mrf.mxu0  ;;  %v529_v11 = vld [vmem:[#allocation2 + $0x18] sm:$0xff] }
  0xe2   : > { %v2821_v58 = vpop.f32.mrf.mxu1  ;;  %517 = vst.msk [vmem:[#allocation2 + $0x38] sm:$0xff] %vm275_vm1, %v501_v6  ;;  %v499_v9 = vadd.f32 %v450_v7, %v317_v10  ;;  %v535_v1 = vld [vmem:[#allocation2 + $0x48] sm:$0xff] }
  0xe3   : > { %523 = vst.msk [vmem:[#allocation2 + $0x68] sm:$0xff] %vm275_vm1, %v507_v5  ;;  %v654_v8 = vadd.f32 %v2821_v58, %v528_v3  ;;  %v527_v28 = vld [vmem:[#allocation2 + $0x8] sm:$0xff] }
  0xe4   : > { %v589_v12 = vpop.f32.mrf.mxu1  ;;  %v2839_v13 = vpop.f32.mrf.mxu0  ;;  %515 = vst.msk [vmem:[#allocation2 + $0x28] sm:$0xff] %vm275_vm1, %v499_v9  ;;  %v540_v6 = vld [vmem:[#allocation2 + $0x70] sm:$0xff] }
  0xe5   : > { %670 = vst.msk [vmem:[#allocation2 + $0x10] sm:$0xff] %vm275_vm1, %v654_v8  ;;  %v652_v15 = vadd.f32 %v589_v12, %v526_v2  ;;  %v532_v49 = vld [vmem:[#allocation2 + $0x30] sm:$0xff] }
  0xe6   : > { %v2822_v24 = vpop.f32.mrf.mxu1  ;;  %v747_v17 = vpop.f32.mrf.mxu0  ;;  %v538_v12 = vld [vmem:[#allocation2 + $0x60] sm:$0xff] }
  0xe7   : > { %668 = vst.msk [vmem:[#allocation2] sm:$0xff] %vm275_vm1, %v652_v15  ;;  %v655_v19 = vadd.f32 %v2822_v24, %v529_v11  ;;  %v530_v23 = vld [vmem:[#allocation2 + $0x20] sm:$0xff] }
  0xe8   : > { %v592_v40 = vpop.f32.mrf.mxu1  ;;  %v2840_v20 = vpop.f32.mrf.mxu0 }
  0xe9   : > { %671 = vst.msk [vmem:[#allocation2 + $0x18] sm:$0xff] %vm275_vm1, %v655_v19  ;;  %v653_v21 = vadd.f32 %v592_v40, %v527_v28  ;;  %v533_v32 = vld [vmem:[#allocation2 + $0x38] sm:$0xff] }
  0xea   : > { %v2825_v22 = vpop.f32.mrf.mxu1  ;;  %v750_v18 = vpop.f32.mrf.mxu0  ;;  %v541_v19 = vld [vmem:[#allocation2 + $0x78] sm:$0xff] }
  0xeb   : > { %669 = vst.msk [vmem:[#allocation2 + $0x8] sm:$0xff] %vm275_vm1, %v653_v21  ;;  %v658_v25 = vadd.f32 %v2825_v22, %v532_v49  ;;  %v531_v41 = vld [vmem:[#allocation2 + $0x28] sm:$0xff] }
  0xec   : > { %v686_v29 = vld [vmem:[#allocation2 + $0x10] sm:$0xff]  ;;  %v605_v30 = vpop.f32.mrf.mxu1  ;;  %v2843_v33 = vpop.f32.mrf.mxu0  ;;  %v539_v22 = vld [vmem:[#allocation2 + $0x68] sm:$0xff] }
  0xed   : > { %v812_v34 = vadd.f32 %v2839_v13, %v686_v29  ;;  %674 = vst.msk [vmem:[#allocation2 + $0x30] sm:$0xff] %vm275_vm1, %v658_v25  ;;  %v656_v35 = vadd.f32 %v605_v30, %v530_v23 }
  0xee   : > { %v684_v36 = vld [vmem:[#allocation2] sm:$0xff]  ;;  %v2826_v27 = vpop.f32.mrf.mxu1  ;;  %v763_v31 = vpop.f32.mrf.mxu0 }
  0xef   : > { %828 = vst.msk [vmem:[#allocation2 + $0x10] sm:$0xff] %vm275_vm1, %v812_v34  ;;  %v810_v37 = vadd.f32 %v747_v17, %v684_v36  ;;  %672 = vst.msk [vmem:[#allocation2 + $0x20] sm:$0xff] %vm275_vm1, %v656_v35  ;;  %v659_v38 = vadd.f32 %v2826_v27, %v533_v32 }
  0xf0   : > { %v687_v39 = vld [vmem:[#allocation2 + $0x18] sm:$0xff]  ;;  %v608_v42 = vpop.f32.mrf.mxu1  ;;  %v2844_v43 = vpop.f32.mrf.mxu0 }
  0xf1   : > { %826 = vst.msk [vmem:[#allocation2] sm:$0xff] %vm275_vm1, %v810_v37  ;;  %v813_v44 = vadd.f32 %v2840_v20, %v687_v39  ;;  %675 = vst.msk [vmem:[#allocation2 + $0x38] sm:$0xff] %vm275_vm1, %v659_v38  ;;  %v657_v45 = vadd.f32 %v608_v42, %v531_v41 }
  0xf2   : > { %v685_v46 = vld [vmem:[#allocation2 + $0x8] sm:$0xff]  ;;  %v2829_v48 = vpop.f32.mrf.mxu1  ;;  %v766_v63 = vpop.f32.mrf.mxu0 }
  0xf3   : > { %829 = vst.msk [vmem:[#allocation2 + $0x18] sm:$0xff] %vm275_vm1, %v813_v44  ;;  %v811_v50 = vadd.f32 %v750_v18, %v685_v46  ;;  %673 = vst.msk [vmem:[#allocation2 + $0x28] sm:$0xff] %vm275_vm1, %v657_v45  ;;  %v662_v51 = vadd.f32 %v2829_v48, %v536_v47 }
  0xf4   : > { %v690_v16 = vld [vmem:[#allocation2 + $0x30] sm:$0xff]  ;;  %v621_v53 = vpop.f32.mrf.mxu1  ;;  %v2847_v54 = vpop.f32.mrf.mxu0 }
  0xf5   : > { %827 = vst.msk [vmem:[#allocation2 + $0x8] sm:$0xff] %vm275_vm1, %v811_v50  ;;  %v816_v55 = vadd.f32 %v2843_v33, %v690_v16  ;;  %678 = vst.msk [vmem:[#allocation2 + $0x50] sm:$0xff] %vm275_vm1, %v662_v51  ;;  %v660_v4 = vadd.f32 %v621_v53, %v534_v52 }
  0xf6   : > { %v688_v56 = vld [vmem:[#allocation2 + $0x20] sm:$0xff]  ;;  %v2830_v59 = vpop.f32.mrf.mxu1  ;;  %v779_v60 = vpop.f32.mrf.mxu0  ;;  %v1069_v32 = vld [vmem:[#allocation2 + $0x10] sm:$0xff] }
  0xf7   : > { %832 = vst.msk [vmem:[#allocation2 + $0x30] sm:$0xff] %vm275_vm1, %v816_v55  ;;  %v814_v61 = vadd.f32 %v763_v31, %v688_v56  ;;  %676 = vst.msk [vmem:[#allocation2 + $0x40] sm:$0xff] %vm275_vm1, %v660_v4  ;;  %v663_v62 = vadd.f32 %v2830_v59, %v537_v57 }
  0xf8   : > { %v691_v0 = vld [vmem:[#allocation2 + $0x38] sm:$0xff]  ;;  %v624_v26 = vpop.f32.mrf.mxu1  ;;  %v2848_v14 = vpop.f32.mrf.mxu0  ;;  %v1067_v31 = vld [vmem:[#allocation2] sm:$0xff] }
  0xf9   : > { %830 = vst.msk [vmem:[#allocation2 + $0x20] sm:$0xff] %vm275_vm1, %v814_v61  ;;  %v817_v3 = vadd.f32 %v2844_v43, %v691_v0  ;;  %679 = vst.msk [vmem:[#allocation2 + $0x58] sm:$0xff] %vm275_vm1, %v663_v62  ;;  %v661_v10 = vadd.f32 %v624_v26, %v535_v1 }
  0xfa   : > { %v689_v5 = vld [vmem:[#allocation2 + $0x28] sm:$0xff]  ;;  %v2833_v58 = vpop.f32.mrf.mxu1  ;;  %v782_v7 = vpop.f32.mrf.mxu0  ;;  %v1070_v43 = vld [vmem:[#allocation2 + $0x18] sm:$0xff] }
  0xfb   : > { %833 = vst.msk [vmem:[#allocation2 + $0x38] sm:$0xff] %vm275_vm1, %v817_v3  ;;  %v815_v2 = vadd.f32 %v766_v63, %v689_v5  ;;  %677 = vst.msk [vmem:[#allocation2 + $0x48] sm:$0xff] %vm275_vm1, %v661_v10  ;;  %v666_v8 = vadd.f32 %v2833_v58, %v540_v6 }
  0xfc   : > { %v694_v9 = vld [vmem:[#allocation2 + $0x50] sm:$0xff]  ;;  %v637_v11 = vpop.f32.mrf.mxu1  ;;  %v2851_v13 = vpop.f32.mrf.mxu0  ;;  %v1068_v63 = vld [vmem:[#allocation2 + $0x8] sm:$0xff] }
  0xfd   : > { %831 = vst.msk [vmem:[#allocation2 + $0x28] sm:$0xff] %vm275_vm1, %v815_v2  ;;  %v820_v15 = vadd.f32 %v2847_v54, %v694_v9  ;;  %682 = vst.msk [vmem:[#allocation2 + $0x70] sm:$0xff] %vm275_vm1, %v666_v8  ;;  %v664_v24 = vadd.f32 %v637_v11, %v538_v12 }
  0xfe   : > { %v692_v17 = vld [vmem:[#allocation2 + $0x40] sm:$0xff]  ;;  %v2834_v28 = vpop.f32.mrf.mxu1  ;;  %v795_v40 = vpop.f32.mrf.mxu0  ;;  %v1073_v54 = vld [vmem:[#allocation2 + $0x30] sm:$0xff] }
  0xff   : > { %836 = vst.msk [vmem:[#allocation2 + $0x50] sm:$0xff] %vm275_vm1, %v820_v15  ;;  %v818_v49 = vadd.f32 %v779_v60, %v692_v17  ;;  %680 = vst.msk [vmem:[#allocation2 + $0x60] sm:$0xff] %vm275_vm1, %v664_v24  ;;  %v667_v20 = vadd.f32 %v2834_v28, %v541_v19 }
 0x100   : > { %v695_v21 = vld [vmem:[#allocation2 + $0x58] sm:$0xff]  ;;  %v640_v23 = vpop.f32.mrf.mxu1  ;;  %v2852_v18 = vpop.f32.mrf.mxu0  ;;  %v1071_v60 = vld [vmem:[#allocation2 + $0x20] sm:$0xff] }
 0x101   : > { %834 = vst.msk [vmem:[#allocation2 + $0x40] sm:$0xff] %vm275_vm1, %v818_v49  ;;  %v821_v25 = vadd.f32 %v2848_v14, %v695_v21  ;;  %683 = vst.msk [vmem:[#allocation2 + $0x78] sm:$0xff] %vm275_vm1, %v667_v20  ;;  %v665_v29 = vadd.f32 %v640_v23, %v539_v22 }
 0x102   : > { %v693_v30 = vld [vmem:[#allocation2 + $0x48] sm:$0xff]  ;;  %v2857_v33 = vpop.f32.mrf.mxu1  ;;  %v798_v34 = vpop.f32.mrf.mxu0  ;;  %v1074_v14 = vld [vmem:[#allocation2 + $0x38] sm:$0xff] }
 0x103   : > { %837 = vst.msk [vmem:[#allocation2 + $0x58] sm:$0xff] %vm275_vm1, %v821_v25  ;;  %v819_v35 = vadd.f32 %v782_v7, %v693_v30  ;;  %681 = vst.msk [vmem:[#allocation2 + $0x68] sm:$0xff] %vm275_vm1, %v665_v29  ;;  %v1235_v36 = vadd.f32 %v2857_v33, %v1069_v32 }
 0x104   : > { %v698_v27 = vld [vmem:[#allocation2 + $0x70] sm:$0xff]  ;;  %v1170_v37 = vpop.f32.mrf.mxu1  ;;  %v2875_v38 = vpop.f32.mrf.mxu0  ;;  %v1072_v7 = vld [vmem:[#allocation2 + $0x28] sm:$0xff] }
 0x105   : > { %835 = vst.msk [vmem:[#allocation2 + $0x48] sm:$0xff] %vm275_vm1, %v819_v35  ;;  %v824_v39 = vadd.f32 %v2851_v13, %v698_v27  ;;  %1251 = vst.msk [vmem:[#allocation2 + $0x10] sm:$0xff] %vm275_vm1, %v1235_v36  ;;  %v1233_v41 = vadd.f32 %v1170_v37, %v1067_v31 }
 0x106   : > { %v696_v42 = vld [vmem:[#allocation2 + $0x60] sm:$0xff]  ;;  %v2858_v44 = vpop.f32.mrf.mxu1  ;;  %v1350_v45 = vpop.f32.mrf.mxu0  ;;  %v1077_v13 = vld [vmem:[#allocation2 + $0x50] sm:$0xff] }
 0x107   : > { %840 = vst.msk [vmem:[#allocation2 + $0x70] sm:$0xff] %vm275_vm1, %v824_v39  ;;  %v822_v46 = vadd.f32 %v795_v40, %v696_v42  ;;  %1249 = vst.msk [vmem:[#allocation2] sm:$0xff] %vm275_vm1, %v1233_v41  ;;  %v1236_v47 = vadd.f32 %v2858_v44, %v1070_v43 }
 0x108   : > { %v699_v48 = vld [vmem:[#allocation2 + $0x78] sm:$0xff]  ;;  %v1173_v50 = vpop.f32.mrf.mxu1  ;;  %v2876_v51 = vpop.f32.mrf.mxu0  ;;  %v1075_v40 = vld [vmem:[#allocation2 + $0x40] sm:$0xff] }
 0x109   : > { %838 = vst.msk [vmem:[#allocation2 + $0x60] sm:$0xff] %vm275_vm1, %v822_v46  ;;  %v825_v16 = vadd.f32 %v2852_v18, %v699_v48  ;;  %1252 = vst.msk [vmem:[#allocation2 + $0x18] sm:$0xff] %vm275_vm1, %v1236_v47  ;;  %v1234_v52 = vadd.f32 %v1173_v50, %v1068_v63 }
 0x10a   : > { %v697_v53 = vld [vmem:[#allocation2 + $0x68] sm:$0xff]  ;;  %v2861_v55 = vpop.f32.mrf.mxu1  ;;  %v1353_v4 = vpop.f32.mrf.mxu0  ;;  %v1078_v18 = vld [vmem:[#allocation2 + $0x58] sm:$0xff] }
 0x10b   : > { %841 = vst.msk [vmem:[#allocation2 + $0x78] sm:$0xff] %vm275_vm1, %v825_v16  ;;  %v823_v56 = vadd.f32 %v798_v34, %v697_v53  ;;  %1250 = vst.msk [vmem:[#allocation2 + $0x8] sm:$0xff] %vm275_vm1, %v1234_v52  ;;  %v1239_v57 = vadd.f32 %v2861_v55, %v1073_v54 }
 0x10c   : > { %v1291_v59 = vld [vmem:[#allocation2 + $0x10] sm:$0xff]  ;;  %v1186_v61 = vpop.f32.mrf.mxu1  ;;  %v2879_v62 = vpop.f32.mrf.mxu0  ;;  %v1076_v34 = vld [vmem:[#allocation2 + $0x48] sm:$0xff] }
 0x10d   : > { %839 = vst.msk [vmem:[#allocation2 + $0x68] sm:$0xff] %vm275_vm1, %v823_v56  ;;  %v1415_v0 = vadd.f32 %v2875_v38, %v1291_v59  ;;  %1255 = vst.msk [vmem:[#allocation2 + $0x30] sm:$0xff] %vm275_vm1, %v1239_v57  ;;  %v1237_v1 = vadd.f32 %v1186_v61, %v1071_v60 }
 0x10e   : > { %v1289_v26 = vld [vmem:[#allocation2] sm:$0xff]  ;;  %v2862_v3 = vpop.f32.mrf.mxu1  ;;  %v1366_v10 = vpop.f32.mrf.mxu0  ;;  %v1081_v38 = vld [vmem:[#allocation2 + $0x70] sm:$0xff] }
 0x10f   : > { %1431 = vst.msk [vmem:[#allocation2 + $0x10] sm:$0xff] %vm275_vm1, %v1415_v0  ;;  %v1413_v5 = vadd.f32 %v1350_v45, %v1289_v26  ;;  %1253 = vst.msk [vmem:[#allocation2 + $0x20] sm:$0xff] %vm275_vm1, %v1237_v1  ;;  %v1240_v6 = vadd.f32 %v2862_v3, %v1074_v14 }
 0x110   : > { %v1292_v58 = vld [vmem:[#allocation2 + $0x18] sm:$0xff]  ;;  %v1189_v2 = vpop.f32.mrf.mxu1  ;;  %v2880_v8 = vpop.f32.mrf.mxu0  ;;  %v1079_v45 = vld [vmem:[#allocation2 + $0x60] sm:$0xff] }
 0x111   : > { %1429 = vst.msk [vmem:[#allocation2] sm:$0xff] %vm275_vm1, %v1413_v5  ;;  %v1416_v9 = vadd.f32 %v2876_v51, %v1292_v58  ;;  %1256 = vst.msk [vmem:[#allocation2 + $0x38] sm:$0xff] %vm275_vm1, %v1240_v6  ;;  %v1238_v12 = vadd.f32 %v1189_v2, %v1072_v7 }
 0x112   : > { %v1290_v11 = vld [vmem:[#allocation2 + $0x8] sm:$0xff]  ;;  %v2865_v15 = vpop.f32.mrf.mxu1  ;;  %v1369_v24 = vpop.f32.mrf.mxu0  ;;  %v1082_v51 = vld [vmem:[#allocation2 + $0x78] sm:$0xff] }
 0x113   : > { %1432 = vst.msk [vmem:[#allocation2 + $0x18] sm:$0xff] %vm275_vm1, %v1416_v9  ;;  %v1414_v17 = vadd.f32 %v1353_v4, %v1290_v11  ;;  %1254 = vst.msk [vmem:[#allocation2 + $0x28] sm:$0xff] %vm275_vm1, %v1238_v12  ;;  %v1243_v19 = vadd.f32 %v2865_v15, %v1077_v13 }
 0x114   : > { %v1295_v28 = vld [vmem:[#allocation2 + $0x30] sm:$0xff]  ;;  %v1202_v49 = vpop.f32.mrf.mxu1  ;;  %v2883_v20 = vpop.f32.mrf.mxu0  ;;  %v1080_v4 = vld [vmem:[#allocation2 + $0x68] sm:$0xff] }
 0x115   : > { %1430 = vst.msk [vmem:[#allocation2 + $0x8] sm:$0xff] %vm275_vm1, %v1414_v17  ;;  %v1419_v21 = vadd.f32 %v2879_v62, %v1295_v28  ;;  %1259 = vst.msk [vmem:[#allocation2 + $0x50] sm:$0xff] %vm275_vm1, %v1243_v19  ;;  %v1241_v22 = vadd.f32 %v1202_v49, %v1075_v40 }
 0x116   : > { %v1293_v23 = vld [vmem:[#allocation2 + $0x20] sm:$0xff]  ;;  %v2866_v25 = vpop.f32.mrf.mxu1  ;;  %v1382_v29 = vpop.f32.mrf.mxu0  ;;  %v1471_v62 = vld [vmem:[#allocation2 + $0x10] sm:$0xff] }
 0x117   : > { %1435 = vst.msk [vmem:[#allocation2 + $0x30] sm:$0xff] %vm275_vm1, %v1419_v21  ;;  %v1417_v30 = vadd.f32 %v1366_v10, %v1293_v23  ;;  %1257 = vst.msk [vmem:[#allocation2 + $0x40] sm:$0xff] %vm275_vm1, %v1241_v22  ;;  %v1244_v32 = vadd.f32 %v2866_v25, %v1078_v18 }
 0x118   : > { %v1296_v33 = vld [vmem:[#allocation2 + $0x38] sm:$0xff]  ;;  %v1205_v35 = vpop.f32.mrf.mxu1  ;;  %v2884_v36 = vpop.f32.mrf.mxu0  ;;  %v1469_v10 = vld [vmem:[#allocation2] sm:$0xff] }
 0x119   : > { %1433 = vst.msk [vmem:[#allocation2 + $0x20] sm:$0xff] %vm275_vm1, %v1417_v30  ;;  %v1420_v27 = vadd.f32 %v2880_v8, %v1296_v33  ;;  %1260 = vst.msk [vmem:[#allocation2 + $0x58] sm:$0xff] %vm275_vm1, %v1244_v32  ;;  %v1242_v31 = vadd.f32 %v1205_v35, %v1076_v34 }
 0x11a   : > { %v1294_v37 = vld [vmem:[#allocation2 + $0x28] sm:$0xff]  ;;  %v2869_v39 = vpop.f32.mrf.mxu1  ;;  %v1385_v41 = vpop.f32.mrf.mxu0  ;;  %v1472_v8 = vld [vmem:[#allocation2 + $0x18] sm:$0xff] }
 0x11b   : > { %1436 = vst.msk [vmem:[#allocation2 + $0x38] sm:$0xff] %vm275_vm1, %v1420_v27  ;;  %v1418_v42 = vadd.f32 %v1369_v24, %v1294_v37  ;;  %1258 = vst.msk [vmem:[#allocation2 + $0x48] sm:$0xff] %vm275_vm1, %v1242_v31  ;;  %v1247_v43 = vadd.f32 %v2869_v39, %v1081_v38 }
 0x11c   : > { %v1299_v44 = vld [vmem:[#allocation2 + $0x50] sm:$0xff]  ;;  %v1218_v46 = vpop.f32.mrf.mxu1  ;;  %v2887_v47 = vpop.f32.mrf.mxu0  ;;  %v1470_v24 = vld [vmem:[#allocation2 + $0x8] sm:$0xff] }
 0x11d   : > { %1434 = vst.msk [vmem:[#allocation2 + $0x28] sm:$0xff] %vm275_vm1, %v1418_v42  ;;  %v1423_v48 = vadd.f32 %v2883_v20, %v1299_v44  ;;  %1263 = vst.msk [vmem:[#allocation2 + $0x70] sm:$0xff] %vm275_vm1, %v1247_v43  ;;  %v1245_v63 = vadd.f32 %v1218_v46, %v1079_v45 }
 0x11e   : > { %v1297_v50 = vld [vmem:[#allocation2 + $0x40] sm:$0xff]  ;;  %v2870_v16 = vpop.f32.mrf.mxu1  ;;  %v1398_v52 = vpop.f32.mrf.mxu0  ;;  %v1475_v20 = vld [vmem:[#allocation2 + $0x30] sm:$0xff] }
 0x11f   : > { %1439 = vst.msk [vmem:[#allocation2 + $0x50] sm:$0xff] %vm275_vm1, %v1423_v48  ;;  %v1421_v53 = vadd.f32 %v1382_v29, %v1297_v50  ;;  %1261 = vst.msk [vmem:[#allocation2 + $0x60] sm:$0xff] %vm275_vm1, %v1245_v63  ;;  %v1248_v54 = vadd.f32 %v2870_v16, %v1082_v51 }
 0x120   : > { %v1300_v55 = vld [vmem:[#allocation2 + $0x58] sm:$0xff]  ;;  %v1221_v56 = vpop.f32.mrf.mxu1  ;;  %v2888_v57 = vpop.f32.mrf.mxu0  ;;  %v1473_v29 = vld [vmem:[#allocation2 + $0x20] sm:$0xff] }
 0x121   : > { %1437 = vst.msk [vmem:[#allocation2 + $0x40] sm:$0xff] %vm275_vm1, %v1421_v53  ;;  %v1424_v59 = vadd.f32 %v2884_v36, %v1300_v55  ;;  %1264 = vst.msk [vmem:[#allocation2 + $0x78] sm:$0xff] %vm275_vm1, %v1248_v54  ;;  %v1246_v60 = vadd.f32 %v1221_v56, %v1080_v4 }
 0x122   : > { %v1298_v61 = vld [vmem:[#allocation2 + $0x48] sm:$0xff]  ;;  %v2893_v0 = vpop.f32.mrf.mxu1  ;;  %v1401_v1 = vpop.f32.mrf.mxu0  ;;  %v1476_v36 = vld [vmem:[#allocation2 + $0x38] sm:$0xff] }
 0x123   : > { %1440 = vst.msk [vmem:[#allocation2 + $0x58] sm:$0xff] %vm275_vm1, %v1424_v59  ;;  %v1422_v26 = vadd.f32 %v1385_v41, %v1298_v61  ;;  %1262 = vst.msk [vmem:[#allocation2 + $0x68] sm:$0xff] %vm275_vm1, %v1246_v60  ;;  %v1595_v14 = vadd.f32 %v2893_v0, %v1471_v62 }
 0x124   : > { %v1303_v3 = vld [vmem:[#allocation2 + $0x70] sm:$0xff]  ;;  %v1530_v5 = vpop.f32.mrf.mxu1  ;;  %v2911_v6 = vpop.f32.mrf.mxu0  ;;  %v1474_v41 = vld [vmem:[#allocation2 + $0x28] sm:$0xff] }
 0x125   : > { %1438 = vst.msk [vmem:[#allocation2 + $0x48] sm:$0xff] %vm275_vm1, %v1422_v26  ;;  %v1427_v58 = vadd.f32 %v2887_v47, %v1303_v3  ;;  %1611 = vst.msk [vmem:[#allocation2 + $0x10] sm:$0xff] %vm275_vm1, %v1595_v14  ;;  %v1593_v7 = vadd.f32 %v1530_v5, %v1469_v10 }
 0x126   : > { %v1301_v2 = vld [vmem:[#allocation2 + $0x60] sm:$0xff]  ;;  %v2894_v9 = vpop.f32.mrf.mxu1  ;;  %v1841_v12 = vpop.f32.mrf.mxu0  ;;  %v1479_v47 = vld [vmem:[#allocation2 + $0x50] sm:$0xff] }
 0x127   : > { %1443 = vst.msk [vmem:[#allocation2 + $0x70] sm:$0xff] %vm275_vm1, %v1427_v58  ;;  %v1425_v11 = vadd.f32 %v1398_v52, %v1301_v2  ;;  %1609 = vst.msk [vmem:[#allocation2] sm:$0xff] %vm275_vm1, %v1593_v7  ;;  %v1596_v13 = vadd.f32 %v2894_v9, %v1472_v8 }
 0x128   : > { %v1304_v15 = vld [vmem:[#allocation2 + $0x78] sm:$0xff]  ;;  %v1533_v17 = vpop.f32.mrf.mxu1  ;;  %v2912_v19 = vpop.f32.mrf.mxu0  ;;  %v1477_v52 = vld [vmem:[#allocation2 + $0x40] sm:$0xff] }
 0x129   : > { %1441 = vst.msk [vmem:[#allocation2 + $0x60] sm:$0xff] %vm275_vm1, %v1425_v11  ;;  %v1428_v28 = vadd.f32 %v2888_v57, %v1304_v15  ;;  %1612 = vst.msk [vmem:[#allocation2 + $0x18] sm:$0xff] %vm275_vm1, %v1596_v13  ;;  %v1594_v40 = vadd.f32 %v1533_v17, %v1470_v24 }
 0x12a   : > { %v1302_v49 = vld [vmem:[#allocation2 + $0x68] sm:$0xff]  ;;  %v2897_v21 = vpop.f32.mrf.mxu1  ;;  %v1844_v22 = vpop.f32.mrf.mxu0  ;;  %v1480_v57 = vld [vmem:[#allocation2 + $0x58] sm:$0xff] }
 0x12b   : > { %1444 = vst.msk [vmem:[#allocation2 + $0x78] sm:$0xff] %vm275_vm1, %v1428_v28  ;;  %v1426_v23 = vadd.f32 %v1401_v1, %v1302_v49  ;;  %1610 = vst.msk [vmem:[#allocation2 + $0x8] sm:$0xff] %vm275_vm1, %v1594_v40  ;;  %v1599_v18 = vadd.f32 %v2897_v21, %v1475_v20 }
 0x12c   : > { %v1740_v25 = vld [vmem:[#allocation2 + $0x10] sm:$0xff]  ;;  %v1546_v30 = vpop.f32.mrf.mxu1  ;;  %v2915_v32 = vpop.f32.mrf.mxu0  ;;  %v1478_v1 = vld [vmem:[#allocation2 + $0x48] sm:$0xff] }
 0x12d   : > { %1442 = vst.msk [vmem:[#allocation2 + $0x68] sm:$0xff] %vm275_vm1, %v1426_v23  ;;  %v1906_v33 = vadd.f32 %v2911_v6, %v1740_v25  ;;  %1615 = vst.msk [vmem:[#allocation2 + $0x30] sm:$0xff] %vm275_vm1, %v1599_v18  ;;  %v1597_v34 = vadd.f32 %v1546_v30, %v1473_v29 }
 0x12e   : > { %v1738_v35 = vld [vmem:[#allocation2] sm:$0xff]  ;;  %v2898_v27 = vpop.f32.mrf.mxu1  ;;  %v1857_v31 = vpop.f32.mrf.mxu0  ;;  %v1483_v6 = vld [vmem:[#allocation2 + $0x70] sm:$0xff] }
 0x12f   : > { %1922 = vst.msk [vmem:[#allocation2 + $0x10] sm:$0xff] %vm275_vm1, %v1906_v33  ;;  %v1904_v37 = vadd.f32 %v1841_v12, %v1738_v35  ;;  %1613 = vst.msk [vmem:[#allocation2 + $0x20] sm:$0xff] %vm275_vm1, %v1597_v34  ;;  %v1600_v38 = vadd.f32 %v2898_v27, %v1476_v36 }
 0x130   : > { %v1741_v39 = vld [vmem:[#allocation2 + $0x18] sm:$0xff]  ;;  %v1549_v42 = vpop.f32.mrf.mxu1  ;;  %v2916_v43 = vpop.f32.mrf.mxu0  ;;  %v1481_v12 = vld [vmem:[#allocation2 + $0x60] sm:$0xff] }
 0x131   : > { %1920 = vst.msk [vmem:[#allocation2] sm:$0xff] %vm275_vm1, %v1904_v37  ;;  %v1907_v44 = vadd.f32 %v2912_v19, %v1741_v39  ;;  %1616 = vst.msk [vmem:[#allocation2 + $0x38] sm:$0xff] %vm275_vm1, %v1600_v38  ;;  %v1598_v45 = vadd.f32 %v1549_v42, %v1474_v41 }
 0x132   : > { %v1739_v46 = vld [vmem:[#allocation2 + $0x8] sm:$0xff]  ;;  %v2901_v48 = vpop.f32.mrf.mxu1  ;;  %v1860_v63 = vpop.f32.mrf.mxu0  ;;  %v1484_v19 = vld [vmem:[#allocation2 + $0x78] sm:$0xff] }
 0x133   : > { %1923 = vst.msk [vmem:[#allocation2 + $0x18] sm:$0xff] %vm275_vm1, %v1907_v44  ;;  %v1905_v50 = vadd.f32 %v1844_v22, %v1739_v46  ;;  %1614 = vst.msk [vmem:[#allocation2 + $0x28] sm:$0xff] %vm275_vm1, %v1598_v45  ;;  %v1603_v51 = vadd.f32 %v2901_v48, %v1479_v47 }
 0x134   : > { %v1744_v16 = vld [vmem:[#allocation2 + $0x30] sm:$0xff]  ;;  %v1562_v53 = vpop.f32.mrf.mxu1  ;;  %v2919_v54 = vpop.f32.mrf.mxu0  ;;  %v1482_v22 = vld [vmem:[#allocation2 + $0x68] sm:$0xff] }
 0x135   : > { %1921 = vst.msk [vmem:[#allocation2 + $0x8] sm:$0xff] %vm275_vm1, %v1905_v50  ;;  %v1910_v55 = vadd.f32 %v2915_v32, %v1744_v16  ;;  %1619 = vst.msk [vmem:[#allocation2 + $0x50] sm:$0xff] %vm275_vm1, %v1603_v51  ;;  %v1601_v4 = vadd.f32 %v1562_v53, %v1477_v52 }
 0x136   : > { %v1742_v56 = vld [vmem:[#allocation2 + $0x20] sm:$0xff]  ;;  %v2902_v59 = vpop.f32.mrf.mxu1  ;;  %v1873_v60 = vpop.f32.mrf.mxu0  ;;  %v1948_v32 = vld [vmem:[#allocation2 + $0x10] sm:$0xff] }
 0x137   : > { %1926 = vst.msk [vmem:[#allocation2 + $0x30] sm:$0xff] %vm275_vm1, %v1910_v55  ;;  %v1908_v61 = vadd.f32 %v1857_v31, %v1742_v56  ;;  %1617 = vst.msk [vmem:[#allocation2 + $0x40] sm:$0xff] %vm275_vm1, %v1601_v4  ;;  %v1604_v62 = vadd.f32 %v2902_v59, %v1480_v57 }
 0x138   : > { %v1745_v0 = vld [vmem:[#allocation2 + $0x38] sm:$0xff]  ;;  %v1565_v26 = vpop.f32.mrf.mxu1  ;;  %v2920_v14 = vpop.f32.mrf.mxu0  ;;  %v1946_v31 = vld [vmem:[#allocation2] sm:$0xff] }
 0x139   : > { %1924 = vst.msk [vmem:[#allocation2 + $0x20] sm:$0xff] %vm275_vm1, %v1908_v61  ;;  %v1911_v3 = vadd.f32 %v2916_v43, %v1745_v0  ;;  %1620 = vst.msk [vmem:[#allocation2 + $0x58] sm:$0xff] %vm275_vm1, %v1604_v62  ;;  %v1602_v10 = vadd.f32 %v1565_v26, %v1478_v1 }
 0x13a   : > { %v1743_v5 = vld [vmem:[#allocation2 + $0x28] sm:$0xff]  ;;  %v2905_v58 = vpop.f32.mrf.mxu1  ;;  %v1876_v7 = vpop.f32.mrf.mxu0  ;;  %v1949_v43 = vld [vmem:[#allocation2 + $0x18] sm:$0xff] }
 0x13b   : > { %1927 = vst.msk [vmem:[#allocation2 + $0x38] sm:$0xff] %vm275_vm1, %v1911_v3  ;;  %v1909_v2 = vadd.f32 %v1860_v63, %v1743_v5  ;;  %1618 = vst.msk [vmem:[#allocation2 + $0x48] sm:$0xff] %vm275_vm1, %v1602_v10  ;;  %v1607_v8 = vadd.f32 %v2905_v58, %v1483_v6 }
 0x13c   : > { %v1748_v9 = vld [vmem:[#allocation2 + $0x50] sm:$0xff]  ;;  %v1578_v11 = vpop.f32.mrf.mxu1  ;;  %v2923_v13 = vpop.f32.mrf.mxu0  ;;  %v1947_v63 = vld [vmem:[#allocation2 + $0x8] sm:$0xff] }
 0x13d   : > { %1925 = vst.msk [vmem:[#allocation2 + $0x28] sm:$0xff] %vm275_vm1, %v1909_v2  ;;  %v1914_v15 = vadd.f32 %v2919_v54, %v1748_v9  ;;  %1623 = vst.msk [vmem:[#allocation2 + $0x70] sm:$0xff] %vm275_vm1, %v1607_v8  ;;  %v1605_v24 = vadd.f32 %v1578_v11, %v1481_v12 }
 0x13e   : > { %v1746_v17 = vld [vmem:[#allocation2 + $0x40] sm:$0xff]  ;;  %v2906_v28 = vpop.f32.mrf.mxu1  ;;  %v1889_v40 = vpop.f32.mrf.mxu0  ;;  %v1952_v54 = vld [vmem:[#allocation2 + $0x30] sm:$0xff] }
 0x13f   : > { %1930 = vst.msk [vmem:[#allocation2 + $0x50] sm:$0xff] %vm275_vm1, %v1914_v15  ;;  %v1912_v49 = vadd.f32 %v1873_v60, %v1746_v17  ;;  %1621 = vst.msk [vmem:[#allocation2 + $0x60] sm:$0xff] %vm275_vm1, %v1605_v24  ;;  %v1608_v20 = vadd.f32 %v2906_v28, %v1484_v19  ;;  %v3616_v28 = vld [vmem:[%s3725_s2] ss:$0 sm:$0xff] }
 0x140   : > { %v1749_v21 = vld [vmem:[#allocation2 + $0x58] sm:$0xff]  ;;  %v1581_v23 = vpop.f32.mrf.mxu1  ;;  %v2924_v18 = vpop.f32.mrf.mxu0  ;;  %v1950_v60 = vld [vmem:[#allocation2 + $0x20] sm:$0xff] }
 0x141   : > { %1928 = vst.msk [vmem:[#allocation2 + $0x40] sm:$0xff] %vm275_vm1, %v1912_v49  ;;  %v1915_v25 = vadd.f32 %v2920_v14, %v1749_v21  ;;  %1624 = vst.msk [vmem:[#allocation2 + $0x78] sm:$0xff] %vm275_vm1, %v1608_v20  ;;  %v1606_v29 = vadd.f32 %v1581_v23, %v1482_v22  ;;  %v3621_v22 = vld [vmem:[%s3726_s3] ss:$0 sm:$0xff] }
 0x142   : > { %v1747_v30 = vld [vmem:[#allocation2 + $0x48] sm:$0xff]  ;;  %v2929_v33 = vpop.f32.mrf.mxu1  ;;  %v1892_v34 = vpop.f32.mrf.mxu0  ;;  %v1953_v14 = vld [vmem:[#allocation2 + $0x38] sm:$0xff] }
 0x143   : > { %1931 = vst.msk [vmem:[#allocation2 + $0x58] sm:$0xff] %vm275_vm1, %v1915_v25  ;;  %v1913_v35 = vadd.f32 %v1876_v7, %v1747_v30  ;;  %1622 = vst.msk [vmem:[#allocation2 + $0x68] sm:$0xff] %vm275_vm1, %v1606_v29  ;;  %v2072_v36 = vadd.f32 %v2929_v33, %v1948_v32 }
 0x144   : > { %v1752_v27 = vld [vmem:[#allocation2 + $0x70] sm:$0xff]  ;;  %v2007_v37 = vpop.f32.mrf.mxu1  ;;  %v2947_v38 = vpop.f32.mrf.mxu0  ;;  %v1951_v7 = vld [vmem:[#allocation2 + $0x28] sm:$0xff] }
 0x145   : > { %1929 = vst.msk [vmem:[#allocation2 + $0x48] sm:$0xff] %vm275_vm1, %v1913_v35  ;;  %v1918_v39 = vadd.f32 %v2923_v13, %v1752_v27  ;;  %2088 = vst.msk [vmem:[#allocation2 + $0x10] sm:$0xff] %vm275_vm1, %v2072_v36  ;;  %v2070_v41 = vadd.f32 %v2007_v37, %v1946_v31 }
 0x146   : > { %v1750_v42 = vld [vmem:[#allocation2 + $0x60] sm:$0xff]  ;;  %v2930_v44 = vpop.f32.mrf.mxu1  ;;  %v2173_v45 = vpop.f32.mrf.mxu0  ;;  %v1956_v13 = vld [vmem:[#allocation2 + $0x50] sm:$0xff] }
 0x147   : > { %1934 = vst.msk [vmem:[#allocation2 + $0x70] sm:$0xff] %vm275_vm1, %v1918_v39  ;;  %v1916_v46 = vadd.f32 %v1889_v40, %v1750_v42  ;;  %2086 = vst.msk [vmem:[#allocation2] sm:$0xff] %vm275_vm1, %v2070_v41  ;;  %v2073_v47 = vadd.f32 %v2930_v44, %v1949_v43 }
 0x148   : > { %v1753_v48 = vld [vmem:[#allocation2 + $0x78] sm:$0xff]  ;;  %v2010_v50 = vpop.f32.mrf.mxu1  ;;  %v2948_v51 = vpop.f32.mrf.mxu0  ;;  %v1954_v49 = vld [vmem:[#allocation2 + $0x40] sm:$0xff] }
 0x149   : > { %1932 = vst.msk [vmem:[#allocation2 + $0x60] sm:$0xff] %vm275_vm1, %v1916_v46  ;;  %v1919_v16 = vadd.f32 %v2924_v18, %v1753_v48  ;;  %2089 = vst.msk [vmem:[#allocation2 + $0x18] sm:$0xff] %vm275_vm1, %v2073_v47  ;;  %v2071_v52 = vadd.f32 %v2010_v50, %v1947_v63 }
 0x14a   : > { %v1751_v53 = vld [vmem:[#allocation2 + $0x68] sm:$0xff]  ;;  %v2933_v55 = vpop.f32.mrf.mxu1  ;;  %v2176_v4 = vpop.f32.mrf.mxu0  ;;  %v1957_v30 = vld [vmem:[#allocation2 + $0x58] sm:$0xff] }
 0x14b   : > { %1935 = vst.msk [vmem:[#allocation2 + $0x78] sm:$0xff] %vm275_vm1, %v1919_v16  ;;  %v1917_v56 = vadd.f32 %v1892_v34, %v1751_v53  ;;  %2087 = vst.msk [vmem:[#allocation2 + $0x8] sm:$0xff] %vm275_vm1, %v2071_v52  ;;  %v2076_v57 = vadd.f32 %v2933_v55, %v1952_v54 }
 0x14c   : > { %v2114_v59 = vld [vmem:[#allocation2 + $0x10] sm:$0xff]  ;;  %v2023_v61 = vpop.f32.mrf.mxu1  ;;  %v2951_v62 = vpop.f32.mrf.mxu0  ;;  %v1955_v37 = vld [vmem:[#allocation2 + $0x48] sm:$0xff] }
 0x14d   : > { %1933 = vst.msk [vmem:[#allocation2 + $0x68] sm:$0xff] %vm275_vm1, %v1917_v56  ;;  %v2238_v0 = vadd.f32 %v2947_v38, %v2114_v59  ;;  %2092 = vst.msk [vmem:[#allocation2 + $0x30] sm:$0xff] %vm275_vm1, %v2076_v57  ;;  %v2074_v1 = vadd.f32 %v2023_v61, %v1950_v60 }
 0x14e   : > { %v2112_v26 = vld [vmem:[#allocation2] sm:$0xff]  ;;  %v2934_v3 = vpop.f32.mrf.mxu1  ;;  %v2189_v10 = vpop.f32.mrf.mxu0  ;;  %v1960_v16 = vld [vmem:[#allocation2 + $0x70] sm:$0xff] }
 0x14f   : > { %2254 = vst.msk [vmem:[#allocation2 + $0x10] sm:$0xff] %vm275_vm1, %v2238_v0  ;;  %v2236_v5 = vadd.f32 %v2173_v45, %v2112_v26  ;;  %2090 = vst.msk [vmem:[#allocation2 + $0x20] sm:$0xff] %vm275_vm1, %v2074_v1  ;;  %v2077_v6 = vadd.f32 %v2934_v3, %v1953_v14 }
 0x150   : > { %v2115_v58 = vld [vmem:[#allocation2 + $0x18] sm:$0xff]  ;;  %v2026_v2 = vpop.f32.mrf.mxu1  ;;  %v2952_v8 = vpop.f32.mrf.mxu0  ;;  %v1958_v61 = vld [vmem:[#allocation2 + $0x60] sm:$0xff] }
 0x151   : > { %2252 = vst.msk [vmem:[#allocation2] sm:$0xff] %vm275_vm1, %v2236_v5  ;;  %v2239_v9 = vadd.f32 %v2948_v51, %v2115_v58  ;;  %2093 = vst.msk [vmem:[#allocation2 + $0x38] sm:$0xff] %vm275_vm1, %v2077_v6  ;;  %v2075_v12 = vadd.f32 %v2026_v2, %v1951_v7 }
 0x152   : > { %v2113_v11 = vld [vmem:[#allocation2 + $0x8] sm:$0xff]  ;;  %v2937_v15 = vpop.f32.mrf.mxu1  ;;  %v2192_v24 = vpop.f32.mrf.mxu0  ;;  %v1961_v58 = vld [vmem:[#allocation2 + $0x78] sm:$0xff] }
 0x153   : > { %2255 = vst.msk [vmem:[#allocation2 + $0x18] sm:$0xff] %vm275_vm1, %v2239_v9  ;;  %v2237_v17 = vadd.f32 %v2176_v4, %v2113_v11  ;;  %2091 = vst.msk [vmem:[#allocation2 + $0x28] sm:$0xff] %vm275_vm1, %v2075_v12  ;;  %v2080_v19 = vadd.f32 %v2937_v15, %v1956_v13 }
 0x154   : > { %v2118_v40 = vld [vmem:[#allocation2 + $0x30] sm:$0xff]  ;;  %v2039_v20 = vpop.f32.mrf.mxu1  ;;  %v2955_v21 = vpop.f32.mrf.mxu0 }
 0x155   : > { %2253 = vst.msk [vmem:[#allocation2 + $0x8] sm:$0xff] %vm275_vm1, %v2237_v17  ;;  %v2242_v23 = vadd.f32 %v2951_v62, %v2118_v40  ;;  %2096 = vst.msk [vmem:[#allocation2 + $0x50] sm:$0xff] %vm275_vm1, %v2080_v19  ;;  %v2078_v18 = vadd.f32 %v2039_v20, %v1954_v49  ;;  %v1959_v19 = vld [vmem:[#allocation2 + $0x68] sm:$0xff] }
 0x156   : > { %v2270_v25 = vld [vmem:[#allocation2 + $0x10] sm:$0xff]  ;;  %v2116_v29 = vld [vmem:[#allocation2 + $0x20] sm:$0xff]  ;;  %v2938_v32 = vpop.f32.mrf.mxu1  ;;  %v2205_v33 = vpop.f32.mrf.mxu0 }
 0x157   : > { %v2293_v34 = vmul.f32 %v3616_v28, %v2270_v25  ;;  %2258 = vst.msk [vmem:[#allocation2 + $0x30] sm:$0xff] %vm275_vm1, %v2242_v23  ;;  %v2240_v35 = vadd.f32 %v2189_v10, %v2116_v29  ;;  %2094 = vst.msk [vmem:[#allocation2 + $0x40] sm:$0xff] %vm275_vm1, %v2078_v18  ;;  %v2081_v36 = vadd.f32 %v2938_v32, %v1957_v30 }
 0x158   : > { %v2268_v27 = vld [vmem:[#allocation2] sm:$0xff]  ;;  %v2119_v31 = vld [vmem:[#allocation2 + $0x38] sm:$0xff]  ;;  %v2042_v38 = vpop.f32.mrf.mxu1  ;;  %v2956_v39 = vpop.f32.mrf.mxu0 }
 0x159   : > { %v2316_v41 = vadd.f32 %v3621_v22, %v2293_v34  ;;  %v2291_v42 = vmul.f32 %v3616_v28, %v2268_v27  ;;  %2256 = vst.msk [vmem:[#allocation2 + $0x20] sm:$0xff] %vm275_vm1, %v2240_v35  ;;  %v2243_v43 = vadd.f32 %v2952_v8, %v2119_v31  ;;  %2097 = vst.msk [vmem:[#allocation2 + $0x58] sm:$0xff] %vm275_vm1, %v2081_v36 }
 0x15a   : > { %v2079_v44 = vadd.f32 %v2042_v38, %v1955_v37  ;;  %v2271_v45 = vld [vmem:[#allocation2 + $0x18] sm:$0xff]  ;;  %v2117_v46 = vld [vmem:[#allocation2 + $0x28] sm:$0xff]  ;;  %v2941_v47 = vpop.f32.mrf.mxu1  ;;  %v2208_v52 = vpop.f32.mrf.mxu0 }
 0x15b   : > { %v2332_v48 = vmax.f32 %v2316_v41, 0.0  ;;  %v2314_v63 = vadd.f32 %v3621_v22, %v2291_v42  ;;  %v2294_v50 = vmul.f32 %v3616_v28, %v2271_v45  ;;  %2259 = vst.msk [vmem:[#allocation2 + $0x38] sm:$0xff] %vm275_vm1, %v2243_v43  ;;  %v2241_v51 = vadd.f32 %v2192_v24, %v2117_v46 }
 0x15c   : > { %2095 = vst.msk [vmem:[#allocation2 + $0x48] sm:$0xff] %vm275_vm1, %v2079_v44  ;;  %v2269_v53 = vld [vmem:[#allocation2 + $0x8] sm:$0xff]  ;;  %v2122_v54 = vld [vmem:[#allocation2 + $0x50] sm:$0xff]  ;;  %v2084_v55 = vadd.f32 %v2941_v47, %v1960_v16  ;;  %v2055_v4 = vpop.f32.mrf.mxu1  ;;  %v2959_v7 = vpop.f32.mrf.mxu0 }
 0x15d   : > { %v2704_v56 = vpack.c.bf16 %v2332_v48, %v2332_v48  ;;  %v2330_v57 = vmax.f32 %v2314_v63, 0.0  ;;  %v2317_v59 = vadd.f32 %v3621_v22, %v2294_v50  ;;  %v2292_v60 = vmul.f32 %v3616_v28, %v2269_v53  ;;  %2257 = vst.msk [vmem:[#allocation2 + $0x28] sm:$0xff] %vm275_vm1, %v2241_v51 }
 0x15e   : > { %v2274_v62 = vld [vmem:[#allocation2 + $0x30] sm:$0xff]  ;;  %v2246_v0 = vadd.f32 %v2955_v21, %v2122_v54  ;;  %v2120_v1 = vld [vmem:[#allocation2 + $0x40] sm:$0xff]  ;;  %2100 = vst.msk [vmem:[#allocation2 + $0x70] sm:$0xff] %vm275_vm1, %v2084_v55  ;;  %v2082_v26 = vadd.f32 %v2055_v4, %v1958_v61  ;;  %v2942_v14 = vpop.f32.mrf.mxu1  ;;  %v2221_v30 = vpop.f32.mrf.mxu0 }
 0x15f   : > { %2413 = vst.msk [vmem:[%s3640_s25 + $0x8] sm:$0xf] %vm2410_vm8, %v2704_v56  ;;  %v2702_v3 = vpack.c.bf16 %v2330_v57, %v2330_v57  ;;  %v2333_v10 = vmax.f32 %v2317_v59, 0.0  ;;  %v2315_v5 = vadd.f32 %v3621_v22, %v2292_v60  ;;  %v2297_v6 = vmul.f32 %v3616_v28, %v2274_v62 }
 0x160   : > { %v2272_v2 = vld [vmem:[#allocation2 + $0x20] sm:$0xff]  ;;  %2262 = vst.msk [vmem:[#allocation2 + $0x50] sm:$0xff] %vm275_vm1, %v2246_v0  ;;  %v2244_v8 = vadd.f32 %v2205_v33, %v2120_v1  ;;  %v2123_v9 = vld [vmem:[#allocation2 + $0x58] sm:$0xff]  ;;  %2098 = vst.msk [vmem:[#allocation2 + $0x60] sm:$0xff] %vm275_vm1, %v2082_v26  ;;  %v2085_v12 = vadd.f32 %v2942_v14, %v1961_v58  ;;  %v2058_v11 = vpop.f32.mrf.mxu1  ;;  %v2960_v44 = vpop.f32.mrf.mxu0 }
 0x161   : > { %2411 = vst.msk [vmem:[%s3640_s25] sm:$0xf] %vm2410_vm8, %v2702_v3  ;;  %v2705_v13 = vpack.c.bf16 %v2333_v10, %v2333_v10  ;;  %v2331_v15 = vmax.f32 %v2315_v5, 0.0  ;;  %v2320_v24 = vadd.f32 %v3621_v22, %v2297_v6  ;;  %v2295_v17 = vmul.f32 %v3616_v28, %v2272_v2 }
 0x162   : > { %v2275_v40 = vld [vmem:[#allocation2 + $0x38] sm:$0xff]  ;;  %2260 = vst.msk [vmem:[#allocation2 + $0x40] sm:$0xff] %vm275_vm1, %v2244_v8  ;;  %v2247_v49 = vadd.f32 %v2956_v39, %v2123_v9  ;;  %2101 = vst.msk [vmem:[#allocation2 + $0x78] sm:$0xff] %vm275_vm1, %v2085_v12  ;;  %v2083_v21 = vadd.f32 %v2058_v11, %v1959_v19  ;;  %v2224_v4 = vpop.f32.mrf.mxu0 }
 0x163   : > { %v2121_v20 = vld [vmem:[#allocation2 + $0x48] sm:$0xff]  ;;  %2414 = vst.msk [vmem:[%s3640_s25 + $0xc] sm:$0xf] %vm2410_vm8, %v2705_v13  ;;  %v2703_v23 = vpack.c.bf16 %v2331_v15, %v2331_v15  ;;  %v2336_v18 = vmax.f32 %v2320_v24, 0.0  ;;  %v2318_v25 = vadd.f32 %v3621_v22, %v2295_v17  ;;  %v2298_v29 = vmul.f32 %v3616_v28, %v2275_v40 }
 0x164   : > { %v2273_v32 = vld [vmem:[#allocation2 + $0x28] sm:$0xff]  ;;  %2263 = vst.msk [vmem:[#allocation2 + $0x58] sm:$0xff] %vm275_vm1, %v2247_v49  ;;  %v2245_v33 = vadd.f32 %v2208_v52, %v2121_v20  ;;  %2099 = vst.msk [vmem:[#allocation2 + $0x68] sm:$0xff] %vm275_vm1, %v2083_v21 }
 0x165   : > { %2412 = vst.msk [vmem:[%s3640_s25 + $0x4] sm:$0xf] %vm2410_vm8, %v2703_v23  ;;  %v2708_v34 = vpack.c.bf16 %v2336_v18, %v2336_v18  ;;  %v2334_v35 = vmax.f32 %v2318_v25, 0.0  ;;  %v2321_v36 = vadd.f32 %v3621_v22, %v2298_v29  ;;  %v2296_v27 = vmul.f32 %v3616_v28, %v2273_v32  ;;  %v2126_v31 = vld [vmem:[#allocation2 + $0x70] sm:$0xff] }
 0x166   : > { %2261 = vst.msk [vmem:[#allocation2 + $0x48] sm:$0xff] %vm275_vm1, %v2245_v33  ;;  %v2250_v37 = vadd.f32 %v2959_v7, %v2126_v31 }
 0x167   : > { %2417 = vst.msk [vmem:[%s3640_s25 + $0x18] sm:$0xf] %vm2410_vm8, %v2708_v34  ;;  %v2706_v38 = vpack.c.bf16 %v2334_v35, %v2334_v35  ;;  %v2337_v39 = vmax.f32 %v2321_v36, 0.0  ;;  %v2319_v41 = vadd.f32 %v3621_v22, %v2296_v27  ;;  %v2278_v42 = vld [vmem:[#allocation2 + $0x50] sm:$0xff]  ;;  %v2124_v43 = vld [vmem:[#allocation2 + $0x60] sm:$0xff] }
 0x168   : > { %v2301_v45 = vmul.f32 %v3616_v28, %v2278_v42  ;;  %2266 = vst.msk [vmem:[#allocation2 + $0x70] sm:$0xff] %vm275_vm1, %v2250_v37  ;;  %v2248_v46 = vadd.f32 %v2221_v30, %v2124_v43 }
 0x169   : > { %2415 = vst.msk [vmem:[%s3640_s25 + $0x10] sm:$0xf] %vm2410_vm8, %v2706_v38  ;;  %v2709_v47 = vpack.c.bf16 %v2337_v39, %v2337_v39  ;;  %v2335_v48 = vmax.f32 %v2319_v41, 0.0  ;;  %v2276_v63 = vld [vmem:[#allocation2 + $0x40] sm:$0xff]  ;;  %v2127_v50 = vld [vmem:[#allocation2 + $0x78] sm:$0xff] }
 0x16a   : > { %v2324_v51 = vadd.f32 %v3621_v22, %v2301_v45  ;;  %v2299_v16 = vmul.f32 %v3616_v28, %v2276_v63  ;;  %2264 = vst.msk [vmem:[#allocation2 + $0x60] sm:$0xff] %vm275_vm1, %v2248_v46  ;;  %v2251_v52 = vadd.f32 %v2960_v44, %v2127_v50 }
 0x16b   : > { %2418 = vst.msk [vmem:[%s3640_s25 + $0x1c] sm:$0xf] %vm2410_vm8, %v2709_v47  ;;  %v2707_v53 = vpack.c.bf16 %v2335_v48, %v2335_v48  ;;  %v2279_v54 = vld [vmem:[#allocation2 + $0x58] sm:$0xff]  ;;  %v2125_v55 = vld [vmem:[#allocation2 + $0x68] sm:$0xff] }
 0x16c   : > { %v2340_v56 = vmax.f32 %v2324_v51, 0.0  ;;  %v2322_v57 = vadd.f32 %v3621_v22, %v2299_v16  ;;  %v2302_v59 = vmul.f32 %v3616_v28, %v2279_v54  ;;  %2267 = vst.msk [vmem:[#allocation2 + $0x78] sm:$0xff] %vm275_vm1, %v2251_v52  ;;  %v2249_v60 = vadd.f32 %v2224_v4, %v2125_v55 }
 0x16d   : > { %2416 = vst.msk [vmem:[%s3640_s25 + $0x14] sm:$0xf] %vm2410_vm8, %v2707_v53  ;;  %v2277_v61 = vld [vmem:[#allocation2 + $0x48] sm:$0xff] }
 0x16e   : > { %v2712_v62 = vpack.c.bf16 %v2340_v56, %v2340_v56  ;;  %v2338_v0 = vmax.f32 %v2322_v57, 0.0  ;;  %v2325_v1 = vadd.f32 %v3621_v22, %v2302_v59  ;;  %v2300_v26 = vmul.f32 %v3616_v28, %v2277_v61  ;;  %2265 = vst.msk [vmem:[#allocation2 + $0x68] sm:$0xff] %vm275_vm1, %v2249_v60 }
 0x16f   : > { %v2282_v14 = vld [vmem:[#allocation2 + $0x70] sm:$0xff] }
 0x170   : > { %2421 = vst.msk [vmem:[%s3640_s25 + $0x28] sm:$0xf] %vm2410_vm8, %v2712_v62  ;;  %v2710_v3 = vpack.c.bf16 %v2338_v0, %v2338_v0  ;;  %v2341_v10 = vmax.f32 %v2325_v1, 0.0  ;;  %v2323_v5 = vadd.f32 %v3621_v22, %v2300_v26  ;;  %v2305_v6 = vmul.f32 %v3616_v28, %v2282_v14 }
 0x171   : > { %v2280_v58 = vld [vmem:[#allocation2 + $0x60] sm:$0xff] }
 0x172   : > { %2419 = vst.msk [vmem:[%s3640_s25 + $0x20] sm:$0xf] %vm2410_vm8, %v2710_v3  ;;  %v2713_v7 = vpack.c.bf16 %v2341_v10, %v2341_v10  ;;  %v2339_v2 = vmax.f32 %v2323_v5, 0.0  ;;  %v2328_v8 = vadd.f32 %v3621_v22, %v2305_v6  ;;  %v2303_v9 = vmul.f32 %v3616_v28, %v2280_v58 }
 0x173   : > { %v2283_v12 = vld [vmem:[#allocation2 + $0x78] sm:$0xff] }
 0x174   : > { %2422 = vst.msk [vmem:[%s3640_s25 + $0x2c] sm:$0xf] %vm2410_vm8, %v2713_v7  ;;  %v2711_v11 = vpack.c.bf16 %v2339_v2, %v2339_v2  ;;  %v2344_v13 = vmax.f32 %v2328_v8, 0.0  ;;  %v2326_v15 = vadd.f32 %v3621_v22, %v2303_v9  ;;  %v2306_v24 = vmul.f32 %v3616_v28, %v2283_v12 }
 0x175   : > { %v2281_v17 = vld [vmem:[#allocation2 + $0x68] sm:$0xff] }
 0x176   : > { %2420 = vst.msk [vmem:[%s3640_s25 + $0x24] sm:$0xf] %vm2410_vm8, %v2711_v11  ;;  %v2716_v19 = vpack.c.bf16 %v2344_v13, %v2344_v13  ;;  %v2342_v40 = vmax.f32 %v2326_v15, 0.0  ;;  %v2329_v49 = vadd.f32 %v3621_v22, %v2306_v24  ;;  %v2304_v20 = vmul.f32 %v3616_v28, %v2281_v17 }
 0x178   : > { %2425 = vst.msk [vmem:[%s3640_s25 + $0x38] sm:$0xf] %vm2410_vm8, %v2716_v19  ;;  %v2714_v21 = vpack.c.bf16 %v2342_v40, %v2342_v40  ;;  %v2345_v23 = vmax.f32 %v2329_v49, 0.0  ;;  %v2327_v18 = vadd.f32 %v3621_v22, %v2304_v20 }
 0x17a   : > { %2423 = vst.msk [vmem:[%s3640_s25 + $0x30] sm:$0xf] %vm2410_vm8, %v2714_v21  ;;  %v2717_v25 = vpack.c.bf16 %v2345_v23, %v2345_v23  ;;  %v2343_v29 = vmax.f32 %v2327_v18, 0.0 }
 0x17c   : > { %2426 = vst.msk [vmem:[%s3640_s25 + $0x3c] sm:$0xf] %vm2410_vm8, %v2717_v25  ;;  %v2715_v30 = vpack.c.bf16 %v2343_v29, %v2343_v29 }
 0x17e   : > { %2424 = vst.msk [vmem:[%s3640_s25 + $0x34] sm:$0xf] %vm2410_vm8, %v2715_v30 }
 0x17f PF: > { %s14_s17 = sadd.s32 1, %s3031_s17   ;;  %s3732_s15 = smov %s3027_s16 }
 0x180   : > { %p11_p5 = scmp.ge.s32.totalorder %s14_s17, 4   ;;  %s3733_s16 = smov %s3735_s18 }
 0x182   :  { %13 = sbr.rel (!%p11_p5) target bundleno = 2 (0x2), region = 83 }

// kernel: _lambda_.22
= control target key start
LH: loop header
LB: loop body
LE: loop exit
PB: predicated region body
PF: predicated region fallthrough
CT: control target
= control target key end

     0   :  { %vm52_vm0 = vcmask 130048   ;;  %vm253_vm1 = vcmask 257024   ;;  %s395_s1 = inlined_call_operand.vmem [shape: bf16[16,32], index: 1, kind: input, shape index: {}]   ;;  %s396_s5 = inlined_call_operand.vmem [shape: bf16[16,32], index: 5, kind: input, shape index: {}]   ;;  %s397_s0 = inlined_call_operand.vmem [shape: bf16[32,16], index: 0, kind: input, shape index: {}]   ;;  %s398_s4 = inlined_call_operand.vmem [shape: bf16[32,16], index: 4, kind: input, shape index: {}]   ;;  %s399_s2 = inlined_call_operand.vmem [shape: f32[1,32], index: 2, kind: input, shape index: {}]   ;;  %s400_s6 = inlined_call_operand.vmem [shape: f32[1,32], index: 6, kind: input, shape index: {}]   ;;  %s401_s3 = inlined_call_operand.vmem [shape: f32[1,32], index: 3, kind: input, shape index: {}]   ;;  %s402_s7 = inlined_call_operand.vmem [shape: f32[1,32], index: 7, kind: input, shape index: {}]   ;;  %s403_s8 = inlined_call_operand.vmem [shape: bf16[32,32], index: 8, kind: output, shape index: {}]  }
   0x1   :  { %v302_v0 = vld [vmem:[%s395_s1] sm:$0xff]   ;;  %v306_v4 = vld [vmem:[%s397_s0 + $0x8] sm:$0xff]  }
   0x2   :  { %v303_v1 = vld [vmem:[%s396_s5] sm:$0xff]   ;;  %290 = vmatprep.subr.bf16.mxu0 %v302_v0  ;;  %v307_v5 = vld [vmem:[%s398_s4 + $0x8] sm:$0xff]  }
   0x3   :  { %v304_v2 = vld [vmem:[%s397_s0] sm:$0xff]   ;;  %296 = vmatprep.subr.bf16.mxu1 %v303_v1  ;;  %291 = vmatpush3.bf16.msra.mxu0 %v302_v0 }
   0x4   :  { %v305_v3 = vld [vmem:[%s398_s4] sm:$0xff]   ;;  %297 = vmatpush3.bf16.msra.mxu1 %v303_v1  ;;  %292 = vmatprep.mubr.msk.bf16.mxu0 %vm52_vm0, %v304_v2 }
   0x5   :  { %298 = vmatprep.mubr.msk.bf16.mxu1 %vm52_vm0, %v305_v3  ;;  %v267_v6 = vld [vmem:[%s399_s2] ss:$0 sm:$0xff] }
   0x6   :  { %293 = vmatmul.mubr.msk.bf16.vlgmr.msra.gmra.mxu0 %vm52_vm0, %v306_v4  ;;  %v274_v7 = vld [vmem:[%s400_s6] ss:$0 sm:$0xff] }
   0x7   :  { %299 = vmatmul.mubr.msk.bf16.vlgmr.msra.gmra.mxu1 %vm52_vm0, %v307_v5  ;;  %v268_v9 = vld [vmem:[%s401_s3] ss:$0 sm:$0xff] }
   0x8   :  { %v275_v17 = vld [vmem:[%s402_s7] ss:$0 sm:$0xff] }
  0xc6   :  { %v294_v8 = vpop.f32.mrf.mxu0 }
  0xc7   :  { %v117_v10 = vmul.f32 %v294_v8, %v267_v6  ;;  %v300_v11 = vpop.f32.mrf.mxu1 }
  0xc8   :  { %v216_v12 = vmul.f32 %v300_v11, %v274_v7  ;;  %v93_v13 = vpop.f32.mrf.mxu0 }
  0xc9   :  { %v128_v14 = vadd.f32 %v268_v9, %v117_v10  ;;  %v115_v15 = vmul.f32 %v267_v6, %v93_v13  ;;  %v192_v16 = vpop.f32.mrf.mxu1 }
  0xca   :  { %v295_v18 = vpop.f32.mrf.mxu0  ;;  %v214_v21 = vmul.f32 %v274_v7, %v192_v16 }
  0xcb   :  { %v220_v19 = vadd.f32 %v216_v12, %v128_v14  ;;  %v126_v20 = vadd.f32 %v268_v9, %v115_v15  ;;  %v118_v22 = vmul.f32 %v295_v18, %v267_v6  ;;  %v301_v23 = vpop.f32.mrf.mxu1 }
  0xcc   :  { %v217_v24 = vmul.f32 %v301_v23, %v274_v7  ;;  %v96_v25 = vpop.f32.mrf.mxu0 }
  0xcd   :  { %v231_v26 = vadd.f32 %v275_v17, %v220_v19  ;;  %v218_v27 = vadd.f32 %v214_v21, %v126_v20  ;;  %v129_v28 = vadd.f32 %v268_v9, %v118_v22  ;;  %v116_v29 = vmul.f32 %v267_v6, %v96_v25  ;;  %v195_v30 = vpop.f32.mrf.mxu1 }
  0xce   :  { %v215_v31 = vmul.f32 %v274_v7, %v195_v30 }
  0xcf   :  { %v235_v32 = vmax.f32 %v231_v26, 0.0  ;;  %v229_v33 = vadd.f32 %v275_v17, %v218_v27  ;;  %v221_v34 = vadd.f32 %v217_v24, %v129_v28  ;;  %v127_v35 = vadd.f32 %v268_v9, %v116_v29 }
  0xd1   :  { %v282_v36 = vpack.c.bf16 %v235_v32, %v235_v32  ;;  %v233_v37 = vmax.f32 %v229_v33, 0.0  ;;  %v232_v38 = vadd.f32 %v275_v17, %v221_v34  ;;  %v219_v39 = vadd.f32 %v215_v31, %v127_v35 }
  0xd3   :  { %256 = vst.msk [vmem:[%s403_s8 + $0x8] sm:$0xf] %vm253_vm1, %v282_v36  ;;  %v280_v40 = vpack.c.bf16 %v233_v37, %v233_v37  ;;  %v236_v41 = vmax.f32 %v232_v38, 0.0  ;;  %v230_v42 = vadd.f32 %v275_v17, %v219_v39 }
  0xd5   :  { %254 = vst.msk [vmem:[%s403_s8] sm:$0xf] %vm253_vm1, %v280_v40  ;;  %v283_v43 = vpack.c.bf16 %v236_v41, %v236_v41  ;;  %v234_v44 = vmax.f32 %v230_v42, 0.0 }
  0xd7   :  { %257 = vst.msk [vmem:[%s403_s8 + $0xc] sm:$0xf] %vm253_vm1, %v283_v43  ;;  %v281_v45 = vpack.c.bf16 %v234_v44, %v234_v44 }
  0xd9   :  { %255 = vst.msk [vmem:[%s403_s8 + $0x4] sm:$0xf] %vm253_vm1, %v281_v45 }

// kernel: _lambda_.23
= control target key start
LH: loop header
LB: loop body
LE: loop exit
PB: predicated region body
PF: predicated region fallthrough
CT: control target
= control target key end

     0   :  { %vm48_vm0 = vcmask 261120   ;;  %vm146_vm1 = vcmask 257024   ;;  %s242_s1 = inlined_call_operand.vmem [shape: bf16[32,32], index: 1, kind: input, shape index: {}]   ;;  %s243_s0 = inlined_call_operand.vmem [shape: bf16[32,32], index: 0, kind: input, shape index: {}]   ;;  %s244_s2 = inlined_call_operand.vmem [shape: f32[1,32], index: 2, kind: input, shape index: {}]   ;;  %s245_s3 = inlined_call_operand.vmem [shape: f32[1,32], index: 3, kind: input, shape index: {}]   ;;  %s246_s4 = inlined_call_operand.vmem [shape: bf16[32,32], index: 4, kind: output, shape index: {}]  }
   0x1   :  { %v183_v0 = vld [vmem:[%s242_s1 + $0x8] sm:$0xff]   ;;  %v184_v1 = vld [vmem:[%s242_s1] sm:$0xff]  }
   0x2   :  { %175 = vmatprep.subr.bf16.mxu0 %v183_v0  ;;  %v185_v2 = vld [vmem:[%s243_s0] sm:$0xff]   ;;  %v186_v3 = vld [vmem:[%s243_s0 + $0x8] sm:$0xff]  }
   0x3   :  { %176 = vmatpush3.bf16.msra.mxu0 %v183_v0  ;;  %179 = vmatprep.mubr.msk.bf16.mxu0 %vm48_vm0, %v185_v2  ;;  %v161_v4 = vld [vmem:[%s244_s2] ss:$0 sm:$0xff] }
   0x4   :  { %177 = vmatprep.subr.bf16.mxu0 %v184_v1  ;;  %v162_v6 = vld [vmem:[%s245_s3] ss:$0 sm:$0xff] }
   0x7   :  { %178 = vmatpush3.bf16.msra.mxu0 %v184_v1 }
   0xa   :  { %180 = vmatmul.mubr.msk.bf16.vlgmr.msra.gmra.mxu0 %vm48_vm0, %v186_v3 }
  0xca   :  { %v181_v5 = vpop.f32.mrf.mxu0 }
  0xcb   :  { %v113_v7 = vmul.f32 %v181_v5, %v161_v4 }
  0xcc   :  { %v89_v8 = vpop.f32.mrf.mxu0 }
  0xcd   :  { %v124_v9 = vadd.f32 %v162_v6, %v113_v7  ;;  %v111_v10 = vmul.f32 %v161_v4, %v89_v8 }
  0xce   :  { %v182_v11 = vpop.f32.mrf.mxu0 }
  0xcf   :  { %v128_v12 = vmax.f32 %v124_v9, 0.0  ;;  %v122_v13 = vadd.f32 %v162_v6, %v111_v10  ;;  %v114_v14 = vmul.f32 %v182_v11, %v161_v4 }
  0xd0   :  { %v92_v15 = vpop.f32.mrf.mxu0 }
  0xd1   :  { %v169_v16 = vpack.c.bf16 %v128_v12, %v128_v12  ;;  %v126_v17 = vmax.f32 %v122_v13, 0.0  ;;  %v125_v18 = vadd.f32 %v162_v6, %v114_v14  ;;  %v112_v19 = vmul.f32 %v161_v4, %v92_v15 }
  0xd3   :  { %149 = vst.msk [vmem:[%s246_s4 + $0x8] sm:$0xf] %vm146_vm1, %v169_v16  ;;  %v167_v20 = vpack.c.bf16 %v126_v17, %v126_v17  ;;  %v129_v21 = vmax.f32 %v125_v18, 0.0  ;;  %v123_v22 = vadd.f32 %v162_v6, %v112_v19 }
  0xd5   :  { %147 = vst.msk [vmem:[%s246_s4] sm:$0xf] %vm146_vm1, %v167_v20  ;;  %v170_v23 = vpack.c.bf16 %v129_v21, %v129_v21  ;;  %v127_v24 = vmax.f32 %v123_v22, 0.0 }
  0xd7   :  { %150 = vst.msk [vmem:[%s246_s4 + $0xc] sm:$0xf] %vm146_vm1, %v170_v23  ;;  %v168_v25 = vpack.c.bf16 %v127_v24, %v127_v24 }
  0xd9   :  { %148 = vst.msk [vmem:[%s246_s4 + $0x4] sm:$0xf] %vm146_vm1, %v168_v25 }

// kernel: _lambda_.21
= control target key start
LH: loop header
LB: loop body
LE: loop exit
PB: predicated region body
PF: predicated region fallthrough
CT: control target
= control target key end

     0   :  { %s2567_s15 = smov 0   ;;  %s2569_s16 = smov 0   ;;  %s2969_s0 = inlined_call_operand.vmem [shape: bf16[4,2,5,17,16], index: 0, kind: input, shape index: {}]   ;;  %s2970_s1 = inlined_call_operand.vmem [shape: bf16[9,1,16,16], index: 1, kind: input, shape index: {}]   ;;  %s2971_s2 = inlined_call_operand.vmem [shape: f32[1,16], index: 2, kind: input, shape index: {}]   ;;  %s2972_s3 = inlined_call_operand.vmem [shape: f32[1,16], index: 3, kind: input, shape index: {}]   ;;  %s2973_s4 = inlined_call_operand.vmem [shape: bf16[2,64,16], index: 4, kind: output, shape index: {}]  }
   0x1   :  { %s2571_s17 = smov 0   ;;  %s2573_s18 = smov 0  }
   0x2   :  { %s2575_s19 = smov 0  }
   0x3 LB: > { %s26_s20 = sadd.s32 1, %s2535_s18  ;;  %p42_p1 = scmp.ne.s32.totalorder %s2527_s16, %s2523_s15  ;;  %s2539_s19 = sphi %s2575_s19, %s14_s19   ;;  %s2535_s18 = sphi %s2573_s18, %s2979_s18   ;;  %s2531_s17 = sphi %s2571_s17, %s2978_s17   ;;  %s2527_s16 = sphi %s2569_s16, %s2977_s16   ;;  %s2523_s15 = sphi %s2567_s15, %s2976_s15  }
   0x4   : > { %p28_p0 = scmp.ge.s32.totalorder %s26_s20, 2  ;;  %p43_p2 = scmp.eq.s32.totalorder %s2539_s19, 0 }
   0x5   : > { %s35_s22 = sadd.s32 1, %s2527_s16  ;;  %p2141_p5 = scmp.ge.s32.totalorder %s2539_s19, 2 }
   0x6   : > { %s2981_s20 = smov (%p28_p0, %s26_s20), 0  ;;  %p44_p3 = por %p43_p2, %p42_p1 }
   0x7   : > { %s30_s21 = ssub.s32 %s2535_s18, %s2981_s20  ;;  %194 = sbr.rel (%p2141_p5) target bundleno = 33 (0x21), region = 28 }
   0x8   : > { %p33_p4 = scmp.eq.s32.totalorder %s30_s21, 0 }
   0xa   : > { %s2602_s23 = scalar_select %p33_p4, %s2527_s16, %s35_s22  }
   0xc   : > { %197 = sbr.rel (!%p44_p3) target bundleno = 33 (0x21), region = 32  ;;  %s199_s24 = sand.u32 (%p44_p3), 1, %s2527_s16  }
   0xd   : > { %s2431_s25 = smul.u32 (%p44_p3), 60, %s2535_s18 }
   0xe   : > { %s2430_s26 = smul.u32 (%p44_p3), 240, %s199_s24 }
   0xf   : > { %s2610_s29 = scalar_lea.vmem (%p44_p3), %s2969_s0, %s2431_s25 }
  0x10   : > { %v222_v0 = vld [vmem:[%s2610_s29] sm:$0xff] (%p44_p3)   ;;  %v226_v1 = vld [vmem:[%s2610_s29 + $0x8] sm:$0xff] (%p44_p3)   ;;  %v230_v2 = vld [vmem:[%s2610_s29 + $0x10] sm:$0xff] (%p44_p3)   ;;  %s2615_s30 = scalar_lea.vmem (%p44_p3), [#allocation3], %s2430_s26 }
  0x11   : > { %223 = vst [vmem:[%s2615_s30] sm:$0xff] %v222_v0   ;;  %227 = vst [vmem:[%s2615_s30 + $0x8] sm:$0xff] %v226_v1   ;;  %v234_v3 = vld [vmem:[%s2610_s29 + $0x18] sm:$0xff]   ;;  %v238_v4 = vld [vmem:[%s2610_s29 + $0x20] sm:$0xff]  }
  0x12   : > { %231 = vst [vmem:[%s2615_s30 + $0x10] sm:$0xff] %v230_v2   ;;  %v242_v5 = vld [vmem:[%s2610_s29 + $0x28] sm:$0xff]   ;;  %235 = vst [vmem:[%s2615_s30 + $0x18] sm:$0xff] %v234_v3   ;;  %v246_v6 = vld [vmem:[%s2610_s29 + $0x30] sm:$0xff]  }
  0x13   : > { %239 = vst [vmem:[%s2615_s30 + $0x20] sm:$0xff] %v238_v4   ;;  %243 = vst [vmem:[%s2615_s30 + $0x28] sm:$0xff] %v242_v5   ;;  %v250_v7 = vld [vmem:[%s2610_s29 + $0x38] sm:$0xf]  ;;  %v256_v9 = vld [vmem:[%s2610_s29 + $0x80] sm:$0xff]  }
  0x14   : > { %v252_v8 = vld [vmem:[%s2610_s29 + $0x78] sm:$0xff]   ;;  %247 = vst [vmem:[%s2615_s30 + $0x30] sm:$0xff] %v246_v6   ;;  %251 = vst [vmem:[%s2615_s30 + $0x38] sm:$0xf] %v250_v7  ;;  %v260_v10 = vld [vmem:[%s2610_s29 + $0x88] sm:$0xff]  }
  0x15   : > { %253 = vst [vmem:[%s2615_s30 + $0x3c] sm:$0xff] %v252_v8   ;;  %v264_v11 = vld [vmem:[%s2610_s29 + $0x90] sm:$0xff]   ;;  %257 = vst [vmem:[%s2615_s30 + $0x44] sm:$0xff] %v256_v9   ;;  %v268_v12 = vld [vmem:[%s2610_s29 + $0x98] sm:$0xff]  }
  0x16   : > { %261 = vst [vmem:[%s2615_s30 + $0x4c] sm:$0xff] %v260_v10   ;;  %265 = vst [vmem:[%s2615_s30 + $0x54] sm:$0xff] %v264_v11   ;;  %v272_v13 = vld [vmem:[%s2610_s29 + $0xa0] sm:$0xff]   ;;  %v276_v14 = vld [vmem:[%s2610_s29 + $0xa8] sm:$0xff]  }
  0x17   : > { %269 = vst [vmem:[%s2615_s30 + $0x5c] sm:$0xff] %v268_v12   ;;  %273 = vst [vmem:[%s2615_s30 + $0x64] sm:$0xff] %v272_v13   ;;  %v280_v15 = vld [vmem:[%s2610_s29 + $0xb0] sm:$0xf]  ;;  %v286_v17 = vld [vmem:[%s2610_s29 + $0xf8] sm:$0xff]  }
  0x18   : > { %277 = vst [vmem:[%s2615_s30 + $0x6c] sm:$0xff] %v276_v14   ;;  %v282_v16 = vld [vmem:[%s2610_s29 + $0xf0] sm:$0xff]   ;;  %281 = vst [vmem:[%s2615_s30 + $0x74] sm:$0xf] %v280_v15  ;;  %v290_v18 = vld [vmem:[%s2610_s29 + $0x100] sm:$0xff]  }
  0x19   : > { %283 = vst [vmem:[%s2615_s30 + $0x78] sm:$0xff] %v282_v16   ;;  %287 = vst [vmem:[%s2615_s30 + $0x80] sm:$0xff] %v286_v17   ;;  %v294_v19 = vld [vmem:[%s2610_s29 + $0x108] sm:$0xff]   ;;  %v298_v20 = vld [vmem:[%s2610_s29 + $0x110] sm:$0xff]  }
  0x1a   : > { %291 = vst [vmem:[%s2615_s30 + $0x88] sm:$0xff] %v290_v18   ;;  %295 = vst [vmem:[%s2615_s30 + $0x90] sm:$0xff] %v294_v19   ;;  %v302_v21 = vld [vmem:[%s2610_s29 + $0x118] sm:$0xff]   ;;  %v306_v22 = vld [vmem:[%s2610_s29 + $0x120] sm:$0xff]  }
  0x1b   : > { %299 = vst [vmem:[%s2615_s30 + $0x98] sm:$0xff] %v298_v20   ;;  %v310_v23 = vld [vmem:[%s2610_s29 + $0x128] sm:$0xf]  ;;  %303 = vst [vmem:[%s2615_s30 + $0xa0] sm:$0xff] %v302_v21   ;;  %v316_v25 = vld [vmem:[%s2610_s29 + $0x170] sm:$0xff]  }
  0x1c   : > { %307 = vst [vmem:[%s2615_s30 + $0xa8] sm:$0xff] %v306_v22   ;;  %311 = vst [vmem:[%s2615_s30 + $0xb0] sm:$0xf] %v310_v23  ;;  %v312_v24 = vld [vmem:[%s2610_s29 + $0x168] sm:$0xff]   ;;  %v320_v26 = vld [vmem:[%s2610_s29 + $0x178] sm:$0xff]  }
  0x1d   : > { %313 = vst [vmem:[%s2615_s30 + $0xb4] sm:$0xff] %v312_v24   ;;  %317 = vst [vmem:[%s2615_s30 + $0xbc] sm:$0xff] %v316_v25   ;;  %v324_v27 = vld [vmem:[%s2610_s29 + $0x180] sm:$0xff]   ;;  %v328_v28 = vld [vmem:[%s2610_s29 + $0x188] sm:$0xff]  }
  0x1e   : > { %321 = vst [vmem:[%s2615_s30 + $0xc4] sm:$0xff] %v320_v26   ;;  %v332_v29 = vld [vmem:[%s2610_s29 + $0x190] sm:$0xff]   ;;  %325 = vst [vmem:[%s2615_s30 + $0xcc] sm:$0xff] %v324_v27   ;;  %v336_v30 = vld [vmem:[%s2610_s29 + $0x198] sm:$0xff]  }
  0x1f   : > { %329 = vst [vmem:[%s2615_s30 + $0xd4] sm:$0xff] %v328_v28   ;;  %333 = vst [vmem:[%s2615_s30 + $0xdc] sm:$0xff] %v332_v29   ;;  %v340_v31 = vld [vmem:[%s2610_s29 + $0x1a0] sm:$0xf] }
  0x20   : > { %337 = vst [vmem:[%s2615_s30 + $0xe4] sm:$0xff] %v336_v30   ;;  %341 = vst [vmem:[%s2615_s30 + $0xec] sm:$0xf] %v340_v31 }
  0x21 PF: > { %p2143_p6 = scmp.ge.s32.totalorder %s2539_s19, 1  ;;  %p484_p7 = scmp.lt.s32.totalorder %s2539_s19, 3 }
  0x23   : > { %p485_p8 = pnand %p2143_p6, %p484_p7 }
  0x24   : > { %s491_s7 = sand.u32 (!%p485_p8), 1, %s2523_s15   ;;  %p541_p9 = scmp.lt.s32.totalorder (!%p485_p8), %s2531_s17, 1 }
  0x25   : > { %488 = sbr.rel (%p485_p8) target bundleno = 351 (0x15f), region = 73 }
  0x26   : > { %s2432_s8 = smul.u32 (!%p485_p8), 240, %s491_s7 }
  0x28   : > { %s2698_s13 = scalar_lea.vmem (!%p485_p8), [#allocation3], %s2432_s8 }
  0x2a   : > { %v2474_v32 = vld [vmem:[%s2970_s1] sm:$0xff]   ;;  %vm550_vm0 = vcmask 130048   ;;  %v2477_v33 = vld [vmem:[%s2970_s1 + $0x30] sm:$0xff]   ;;  %vm819_vm1 = vsmask.f32 3328  ;;  %v2541_v35 = vmov 0.0  }
  0x2b   : > { %2428 = vmatprep.subr.bf16.mxu1 %v2474_v32  ;;  %2338 = vmatprep.subr.bf16.mxu0 %v2474_v32  ;;  %v2480_v34 = vld [vmem:[%s2970_s1 + $0x10] sm:$0xff]   ;;  %vm820_vm2 = vsmask.f32 7440  ;;  %553 = vst.msk [vmem:[#allocation2 + $0x10] sm:$0xff] %vm550_vm0, %v2541_v35  ;;  %551 = vst.msk [vmem:[#allocation2] sm:$0xff] %vm550_vm0, %v2541_v35  ;;  %v2476_v37 = vld [vmem:[%s2698_s13 + $0x18] sm:$0xff]  }
  0x2c   : > { %2429 = vmatpush3.bf16.msra.mxu1 %v2474_v32  ;;  %2339 = vmatpush3.bf16.msra.mxu0 %v2474_v32  ;;  %552 = vst.msk [vmem:[#allocation2 + $0x8] sm:$0xff] %vm550_vm0, %v2541_v35  ;;  %554 = vst.msk [vmem:[#allocation2 + $0x18] sm:$0xff] %vm550_vm0, %v2541_v35  ;;  %v2475_v36 = vld [vmem:[%s2698_s13] sm:$0xff]   ;;  %v2478_v38 = vld [vmem:[%s2698_s13 + $0xc] sm:$0xff]   ;;  %s2983_s17 = smov (!%p541_p9, %s2531_s17), 1  ;;  %vm2001_vm4 = vcmask 125952  }
  0x2d   : > { %555 = vst.msk [vmem:[#allocation2 + $0x20] sm:$0xff] %vm550_vm0, %v2541_v35  ;;  %556 = vst.msk [vmem:[#allocation2 + $0x28] sm:$0xff] %vm550_vm0, %v2541_v35  ;;  %2348 = vmatprep.subr.bf16.mxu1 %v2477_v33  ;;  %2358 = vmatprep.subr.bf16.mxu0 %v2480_v34  ;;  %v2479_v39 = vld [vmem:[%s2698_s13 + $0x24] sm:$0xff]   ;;  %v804_v40 = vld [vmem:[%s2698_s13] sm:$0xf]  ;;  %s2284_s10 = sshll.u32 %s2983_s17, 5 }
  0x2e   : > { %557 = vst.msk [vmem:[#allocation2 + $0x30] sm:$0xff] %vm550_vm0, %v2541_v35  ;;  %558 = vst.msk [vmem:[#allocation2 + $0x38] sm:$0xff] %vm550_vm0, %v2541_v35  ;;  %2340 = vmatprep.mubr.msk.bf16.mxu0 %vm550_vm0, %v2475_v36  ;;  %2344 = vmatprep.mubr.msk.bf16.mxu1 %vm550_vm0, %v2476_v37  ;;  %v805_v41 = vld [vmem:[%s2698_s13 + $0x4] sm:$0xf]  ;;  %v806_v42 = vld [vmem:[%s2698_s13 + $0x8] sm:$0x1] }
  0x2f   : > { %2341 = vmatmul.mubr.msk.bf16.vlgmr.msra.gmra.mxu0 %vm550_vm0, %v2478_v38  ;;  %2345 = vmatmul.mubr.msk.bf16.vlgmr.msra.gmra.mxu1 %vm550_vm0, %v2479_v39  ;;  %v823_v43 = vshrl.u32 %v804_v40, 16  ;;  %v826_v44 = vshll.u32 %v804_v40, 16  ;;  %v832_v45 = vshll.u32 %v805_v41, 16  ;;  %v836_v46 = vshrl.u32 %v805_v41, 16  ;;  %v2481_v48 = vld [vmem:[%s2970_s1 + $0x40] sm:$0xff]   ;;  %vm2720_vm3 = vmor %vm819_vm1, %vm820_vm2  ;;  %v2483_v15 = vld [vmem:[%s2970_s1 + $0x8] sm:$0xff]  }
  0x30   : > { %2359 = vmatpush3.bf16.msra.mxu0 %v2480_v34  ;;  %2349 = vmatpush3.bf16.msra.mxu1 %v2477_v33  ;;  %v842_v47 = vshll.u32 %v806_v42, 16  ;;  %v807_v49 = vld [vmem:[%s2698_s13 + $0xc] sm:$0xf]  ;;  %v808_v54 = vld [vmem:[%s2698_s13 + $0x10] sm:$0xf] }
  0x31   : > { %2350 = vmatprep.mubr.msk.bf16.mxu1 %vm550_vm0, %v2478_v38  ;;  %v825_v50 = vrot.slane %v823_v43, 4  ;;  %v828_v51 = vrot.slane %v826_v44, 5  ;;  %v834_v52 = vrot.slane %v832_v45, 5  ;;  %v838_v53 = vrot.slane %v836_v46, 4  ;;  %2368 = vmatprep.subr.bf16.mxu1 %v2481_v48  ;;  %v809_v56 = vld [vmem:[%s2698_s13 + $0x14] sm:$0x1] }
  0x32   : > { %v844_v55 = vrot.slane %v842_v47, 5  ;;  %v847_v57 = vshrl.u32 %v807_v49, 16  ;;  %v850_v58 = vshll.u32 %v807_v49, 16  ;;  %v856_v59 = vshll.u32 %v808_v54, 16  ;;  %v810_v4 = vld [vmem:[%s2698_s13 + $0x18] sm:$0xf]  ;;  %2378 = vmatprep.subr.bf16.mxu0 %v2483_v15 }
  0x33   : > { %v829_v60 = vor.u32 %v828_v51, %v825_v50  ;;  %v839_v61 = vor.u32 %v838_v53, %v834_v52  ;;  %v860_v62 = vshrl.u32 %v808_v54, 16  ;;  %v866_v63 = vshll.u32 %v809_v56, 16  ;;  %v811_v9 = vld [vmem:[%s2698_s13 + $0x1c] sm:$0xf]  ;;  %v812_v11 = vld [vmem:[%s2698_s13 + $0x20] sm:$0x1] }
  0x34   : > { %v849_v1 = vrot.slane %v847_v57, 4  ;;  %v852_v2 = vrot.slane %v850_v58, 5  ;;  %v858_v3 = vrot.slane %v856_v59, 5  ;;  %v871_v12 = vshrl.u32 %v810_v4, 16  ;;  %v813_v20 = vld [vmem:[%s2698_s13 + $0x24] sm:$0xf] }
  0x35   : > { %v830_v5 = vrot.slane %v829_v60, 4  ;;  %v840_v6 = vrot.slane %v839_v61, 4  ;;  %v862_v7 = vrot.slane %v860_v62, 4  ;;  %v868_v8 = vrot.slane %v866_v63, 5  ;;  %v814_v21 = vld [vmem:[%s2698_s13 + $0x28] sm:$0xf] }
  0x36   : > { %v853_v10 = vor.u32 %v852_v2, %v849_v1  ;;  %v874_v13 = vshll.u32 %v810_v4, 16  ;;  %v880_v14 = vshll.u32 %v811_v9, 16  ;;  %v884_v19 = vshrl.u32 %v811_v9, 16  ;;  %v815_v26 = vld [vmem:[%s2698_s13 + $0x2c] sm:$0x1]  ;;  %v2482_v29 = vld [vmem:[%s2698_s13 + $0x30] sm:$0xff]  }
  0x37   : > { %2351 = vmatmul.mubr.msk.bf16.vlgmr.msra.gmra.mxu1 %vm550_vm0, %v2476_v37  ;;  %v835_v16 = vsel %vm2720_vm3, %v830_v5, %v834_v52  ;;  %v845_v17 = vsel %vm2720_vm3, %v840_v6, %v844_v55  ;;  %v863_v18 = vor.u32 %v862_v7, %v858_v3  ;;  %v873_v24 = vrot.slane %v871_v12, 4  ;;  %v2742_v27 = vld [vmem:[%s2970_s1 + $0x38] sm:$0xff]   ;;  %v816_v49 = vld [vmem:[%s2698_s13 + $0x30] sm:$0xf]  ;;  %v817_v52 = vld [vmem:[%s2698_s13 + $0x34] sm:$0xf] }
  0x38   : > { %v2165_v22 = vcombine.low %v835_v16, %v845_v17  ;;  %v854_v23 = vrot.slane %v853_v10, 4  ;;  %2369 = vmatpush3.bf16.msra.mxu1 %v2481_v48  ;;  %2354 = vmatprep.mubr.msk.bf16.mxu1 %vm550_vm0, %v2479_v39  ;;  %v876_v25 = vrot.slane %v874_v13, 5  ;;  %v882_v30 = vrot.slane %v880_v14, 5  ;;  %v818_v53 = vld [vmem:[%s2698_s13 + $0x38] sm:$0x1]  ;;  %v2484_v9 = vld [vmem:[%s2698_s13 + $0x3c] sm:$0xff]  }
  0x39   : > { %v864_v28 = vrot.slane %v863_v18, 4  ;;  %v886_v31 = vrot.slane %v884_v19, 4  ;;  %v890_v32 = vshll.u32 %v812_v11, 16  ;;  %v895_v35 = vshrl.u32 %v813_v20, 16  ;;  %2388 = vmatprep.subr.bf16.mxu1 %v2742_v27  ;;  %v2489_v5 = vld [vmem:[%s2970_s1 + $0x18] sm:$0xff]   ;;  %v2773_v16 = vld [vmem:[%s2970_s1 + $0x28] sm:$0xff]  }
  0x3a   : > { %2360 = vmatprep.mubr.msk.bf16.mxu0 %vm550_vm0, %v2165_v22  ;;  %v859_v33 = vsel %vm2720_vm3, %v854_v23, %v858_v3  ;;  %v877_v34 = vor.u32 %v876_v25, %v873_v24  ;;  %v898_v36 = vshll.u32 %v813_v20, 16  ;;  %v904_v40 = vshll.u32 %v814_v21, 16  ;;  %v2230_v22 = vld [vmem:[%s2698_s13 + $0x78] sm:$0xf]  ;;  %v2231_v23 = vld [vmem:[%s2698_s13 + $0x7c] sm:$0xf] }
  0x3b   : > { %v869_v37 = vsel %vm2720_vm3, %v864_v28, %v868_v8  ;;  %v887_v38 = vor.u32 %v886_v31, %v882_v30  ;;  %v892_v39 = vrot.slane %v890_v32, 5  ;;  %v897_v43 = vrot.slane %v895_v35, 4  ;;  %v2232_v24 = vld [vmem:[%s2698_s13 + $0x80] sm:$0x1]  ;;  %v2233_v32 = vld [vmem:[%s2698_s13 + $0x84] sm:$0xf] }
  0x3c   : > { %v2166_v41 = vcombine.low %v859_v33, %v869_v37  ;;  %v878_v42 = vrot.slane %v877_v34, 4  ;;  %v900_v44 = vrot.slane %v898_v36, 5  ;;  %v906_v46 = vrot.slane %v904_v40, 5  ;;  %v2234_v36 = vld [vmem:[%s2698_s13 + $0x88] sm:$0xf]  ;;  %v2795_v37 = vld [vmem:[%s2970_s1 + $0x20] sm:$0xff]  }
  0x3d   : > { %v888_v45 = vrot.slane %v887_v38, 4  ;;  %v908_v47 = vshrl.u32 %v814_v21, 16  ;;  %v914_v48 = vshll.u32 %v815_v26, 16  ;;  %v1041_v54 = vshrl.u32 %v816_v49, 16  ;;  %v2486_v21 = vld [vmem:[%s2698_s13 + $0x48] sm:$0xff]  }
  0x3e   : > { %2361 = vmatmul.mubr.msk.bf16.vlgmr.msra.gmra.mxu0 %vm550_vm0, %v2166_v41  ;;  %v883_v50 = vsel %vm2720_vm3, %v878_v42, %v882_v30  ;;  %v901_v51 = vor.u32 %v900_v44, %v897_v43  ;;  %v1044_v55 = vshll.u32 %v816_v49, 16  ;;  %v1050_v59 = vshll.u32 %v817_v52, 16  ;;  %v2487_v30 = vld [vmem:[%s2698_s13 + $0x54] sm:$0xff]   ;;  %v2236_v44 = vld [vmem:[%s2698_s13 + $0x90] sm:$0xf]  ;;  %v2488_v49 = vld [vmem:[%s2698_s13 + $0x60] sm:$0xff]  }
  0x3f   : > { %2355 = vmatmul.mubr.msk.bf16.gmra.mxu1 %vm550_vm0, %v2482_v29  ;;  %v893_v56 = vsel %vm2720_vm3, %v888_v45, %v892_v39  ;;  %v910_v57 = vrot.slane %v908_v47, 4  ;;  %v916_v58 = vrot.slane %v914_v48, 5  ;;  %2379 = vmatpush3.bf16.msra.mxu0 %v2483_v15  ;;  %v1043_v62 = vrot.slane %v1041_v54, 4  ;;  %v2237_v45 = vld [vmem:[%s2698_s13 + $0x94] sm:$0xf] }
  0x40   : > { %v2167_v60 = vcombine.low %v883_v50, %v893_v56  ;;  %v902_v61 = vrot.slane %v901_v51, 4  ;;  %2370 = vmatprep.mubr.msk.bf16.mxu1 %vm550_vm0, %v2166_v41  ;;  %v1046_v63 = vrot.slane %v1044_v55, 5  ;;  %v1052_v2 = vrot.slane %v1050_v59, 5  ;;  %2398 = vmatprep.subr.bf16.mxu0 %v2489_v5  ;;  %v2235_v50 = vld [vmem:[%s2698_s13 + $0x8c] sm:$0x1]  ;;  %v2491_v55 = vld [vmem:[%s2698_s13 + $0x78] sm:$0xff]  }
  0x41   : > { %v911_v1 = vor.u32 %v910_v57, %v906_v46  ;;  %v1054_v3 = vshrl.u32 %v817_v52, 16  ;;  %v1060_v4 = vshll.u32 %v818_v53, 16  ;;  %v1567_v25 = vshrl.u32 %v2230_v22, 16 }
  0x42   : > { %2364 = vmatprep.mubr.msk.bf16.mxu0 %vm550_vm0, %v2167_v60  ;;  %v1047_v6 = vor.u32 %v1046_v63, %v1043_v62  ;;  %v907_v7 = vsel %vm2720_vm3, %v902_v61, %v906_v46  ;;  %v1570_v26 = vshll.u32 %v2230_v22, 16  ;;  %v1576_v28 = vshll.u32 %v2231_v23, 16  ;;  %v2240_v61 = vld [vmem:[%s2698_s13 + $0xa0] sm:$0xf]  ;;  %v2493_v22 = vld [vmem:[%s2698_s13 + $0x84] sm:$0xff]  }
  0x43   : > { %v912_v8 = vrot.slane %v911_v1, 4  ;;  %v1056_v10 = vrot.slane %v1054_v3, 4  ;;  %v1062_v12 = vrot.slane %v1060_v4, 5  ;;  %v1580_v29 = vshrl.u32 %v2231_v23, 16  ;;  %v2238_v3 = vld [vmem:[%s2698_s13 + $0x98] sm:$0x1] }
  0x44   : > { %v1048_v11 = vrot.slane %v1047_v6, 4  ;;  %v1586_v31 = vshll.u32 %v2232_v24, 16  ;;  %v1569_v33 = vrot.slane %v1567_v25, 4  ;;  %v1572_v34 = vrot.slane %v1570_v26, 5 }
  0x45   : > { %v917_v13 = vsel %vm2720_vm3, %v912_v8, %v916_v58  ;;  %v1057_v14 = vor.u32 %v1056_v10, %v1052_v2  ;;  %v1582_v35 = vrot.slane %v1580_v29, 4  ;;  %v1591_v38 = vshrl.u32 %v2233_v32, 16 }
  0x46   : > { %v2168_v15 = vcombine.low %v907_v7, %v917_v13  ;;  %v1053_v17 = vsel %vm2720_vm3, %v1048_v11, %v1052_v2  ;;  %v1594_v39 = vshll.u32 %v2233_v32, 16  ;;  %v1600_v40 = vshll.u32 %v2234_v36, 16 }
  0x47   : > { %2371 = vmatmul.mubr.msk.bf16.vlgmr.msra.gmra.mxu1 %vm550_vm0, %v2167_v60  ;;  %v1058_v18 = vrot.slane %v1057_v14, 4  ;;  %v1573_v41 = vor.u32 %v1572_v34, %v1569_v33  ;;  %v1604_v43 = vshrl.u32 %v2234_v36, 16  ;;  %v1588_v46 = vrot.slane %v1586_v31, 5  ;;  %v2239_v60 = vld [vmem:[%s2698_s13 + $0x9c] sm:$0xf] }
  0x48   : > { %2365 = vmatmul.mubr.msk.bf16.gmra.mxu0 %vm550_vm0, %v2168_v15  ;;  %2374 = vmatprep.mubr.msk.bf16.mxu1 %vm550_vm0, %v2168_v15  ;;  %v1593_v47 = vrot.slane %v1591_v38, 4  ;;  %v1615_v48 = vshrl.u32 %v2236_v44, 16  ;;  %v1596_v51 = vrot.slane %v1594_v39, 5  ;;  %v1602_v52 = vrot.slane %v1600_v40, 5  ;;  %v2241_v31 = vld [vmem:[%s2698_s13 + $0xa4] sm:$0x1] }
  0x49   : > { %2380 = vmatprep.mubr.msk.bf16.mxu0 %vm550_vm0, %v2484_v9  ;;  %v1063_v19 = vsel %vm2720_vm3, %v1058_v18, %v1062_v12  ;;  %2389 = vmatpush3.bf16.msra.mxu1 %v2742_v27  ;;  %v1578_v27 = vrot.slane %v1576_v28, 5  ;;  %v1618_v53 = vshll.u32 %v2236_v44, 16  ;;  %v1624_v54 = vshll.u32 %v2237_v45, 16  ;;  %v2494_v28 = vld [vmem:[%s2698_s13 + $0x90] sm:$0xff]   ;;  %v2495_v40 = vld [vmem:[%s2698_s13 + $0x9c] sm:$0xff]  }
  0x4a   : > { %v2176_v20 = vcombine.low %v1053_v17, %v1063_v19  ;;  %2408 = vmatprep.subr.bf16.mxu1 %v2773_v16  ;;  %v1574_v56 = vrot.slane %v1573_v41, 4  ;;  %v1606_v58 = vrot.slane %v1604_v43, 4  ;;  %v1628_v59 = vshrl.u32 %v2237_v45, 16  ;;  %v2490_v17 = vld [vmem:[%s2698_s13 + $0x6c] sm:$0xff]   ;;  %v2497_v45 = vld [vmem:[%s2698_s13 + $0xb4] sm:$0xff]  }
  0x4b   : > { %v1583_v42 = vor.u32 %v1582_v35, %v1578_v27  ;;  %v1617_v62 = vrot.slane %v1615_v48, 4  ;;  %v1620_v63 = vrot.slane %v1618_v53, 5  ;;  %v1626_v1 = vrot.slane %v1624_v54, 5  ;;  %v2498_v48 = vld [vmem:[%s2698_s13 + $0xc0] sm:$0xff]  }
  0x4c   : > { %v1630_v2 = vrot.slane %v1628_v59, 4  ;;  %v1579_v4 = vsel %vm2720_vm3, %v1574_v56, %v1578_v27  ;;  %v1607_v6 = vor.u32 %v1606_v58, %v1602_v52  ;;  %v1610_v7 = vshll.u32 %v2235_v50, 16  ;;  %v2500_v50 = vld [vmem:[%s2698_s13 + $0xd8] sm:$0xff]   ;;  %v569_v54 = vld [vmem:[#allocation2] sm:$0xff] }
  0x4d   : > { %v1584_v57 = vrot.slane %v1583_v42, 4  ;;  %v1639_v9 = vshrl.u32 %v2239_v60, 16  ;;  %v1642_v10 = vshll.u32 %v2239_v60, 16  ;;  %v1648_v11 = vshll.u32 %v2240_v61, 16  ;;  %v573_v56 = vld [vmem:[#allocation2 + $0x20] sm:$0xff]  ;;  %v572_v59 = vld [vmem:[#allocation2 + $0x18] sm:$0xff] }
  0x4e   : > { %v1621_v12 = vor.u32 %v1620_v63, %v1617_v62  ;;  %v1631_v13 = vor.u32 %v1630_v2, %v1626_v1  ;;  %v1634_v14 = vshll.u32 %v2238_v3, 16  ;;  %v1652_v15 = vshrl.u32 %v2240_v61, 16  ;;  %v576_v62 = vld [vmem:[#allocation2 + $0x38] sm:$0xff]  ;;  %v570_v2 = vld [vmem:[#allocation2 + $0x8] sm:$0xff] }
  0x4f   : > { %2375 = vmatmul.mubr.msk.bf16.gmra.mxu1 %vm550_vm0, %v2176_v20  ;;  %v1589_v8 = vsel %vm2720_vm3, %v1584_v57, %v1588_v46  ;;  %v1608_v20 = vrot.slane %v1607_v6, 4  ;;  %v1641_v23 = vrot.slane %v1639_v9, 4  ;;  %v1644_v24 = vrot.slane %v1642_v10, 5 }
  0x50   : > { %2381 = vmatmul.mubr.msk.bf16.vlgmr.msra.gmra.mxu0 %vm550_vm0, %v2486_v21  ;;  %2390 = vmatprep.mubr.msk.bf16.mxu1 %vm550_vm0, %v2486_v21  ;;  %v2244_v18 = vcombine.low %v1579_v4, %v1589_v8  ;;  %v1612_v21 = vrot.slane %v1610_v7, 5  ;;  %v1650_v25 = vrot.slane %v1648_v11, 5  ;;  %v1654_v26 = vrot.slane %v1652_v15, 4 }
  0x51   : > { %2384 = vmatprep.mubr.msk.bf16.mxu0 %vm550_vm0, %v2487_v30  ;;  %2399 = vmatpush3.bf16.msra.mxu0 %v2489_v5  ;;  %v1597_v5 = vor.u32 %v1596_v51, %v1593_v47  ;;  %v1622_v29 = vrot.slane %v1621_v12, 4  ;;  %v1645_v34 = vor.u32 %v1644_v24, %v1641_v23  ;;  %v1658_v35 = vshll.u32 %v2241_v31, 16  ;;  %v571_v51 = vld [vmem:[#allocation2 + $0x10] sm:$0xff] }
  0x52   : > { %2418 = vmatprep.subr.bf16.mxu0 %v2795_v37  ;;  %v1613_v33 = vsel %vm2720_vm3, %v1608_v20, %v1612_v21  ;;  %v1655_v27 = vor.u32 %v1654_v26, %v1650_v25 }
  0x53   : > { %v1598_v19 = vrot.slane %v1597_v5, 4  ;;  %v1627_v36 = vsel %vm2720_vm3, %v1622_v29, %v1626_v1  ;;  %v1646_v42 = vrot.slane %v1645_v34, 4  ;;  %v1660_v44 = vrot.slane %v1658_v35, 5  ;;  %v574_v5 = vld [vmem:[#allocation2 + $0x28] sm:$0xff] }
  0x54   : > { %v1656_v43 = vrot.slane %v1655_v27, 4 }
  0x55   : > { %v1603_v32 = vsel %vm2720_vm3, %v1598_v19, %v1602_v52  ;;  %v575_v52 = vld [vmem:[#allocation2 + $0x30] sm:$0xff] }
  0x56   : > { %v2245_v39 = vcombine.low %v1603_v32, %v1613_v33  ;;  %v1661_v46 = vsel %vm2720_vm3, %v1656_v43, %v1660_v44 }
  0x57   : > { %2391 = vmatmul.mubr.msk.bf16.vlgmr.msra.gmra.mxu1 %vm550_vm0, %v2487_v30  ;;  %v1632_v30 = vrot.slane %v1631_v13, 4 }
  0x58   : > { %2385 = vmatmul.mubr.msk.bf16.gmra.mxu0 %vm550_vm0, %v2488_v49  ;;  %2394 = vmatprep.mubr.msk.bf16.mxu1 %vm550_vm0, %v2488_v49  ;;  %v2499_v49 = vld [vmem:[%s2698_s13 + $0xcc] sm:$0xff]   ;;  %s2935_s13 = scalar_lea.vmem %s2973_s4, %s2284_s10 }
  0x59   : > { %2400 = vmatprep.mubr.msk.bf16.mxu0 %vm550_vm0, %v2491_v55  ;;  %2409 = vmatpush3.bf16.msra.mxu1 %v2773_v16  ;;  %v1636_v16 = vrot.slane %v1634_v14, 5 }
  0x5b   : > { %v1637_v38 = vsel %vm2720_vm3, %v1632_v30, %v1636_v16 }
  0x5c   : > { %v2246_v41 = vcombine.low %v1627_v36, %v1637_v38 }
  0x5f   : > { %2395 = vmatmul.mubr.msk.bf16.gmra.mxu1 %vm550_vm0, %v2490_v17 }
  0x60   : > { %2401 = vmatmul.mubr.msk.bf16.vlgmr.msra.gmra.mxu0 %vm550_vm0, %v2493_v22  ;;  %2410 = vmatprep.mubr.msk.bf16.mxu1 %vm550_vm0, %v2244_v18 }
  0x61   : > { %2404 = vmatprep.mubr.msk.bf16.mxu0 %vm550_vm0, %v2494_v28  ;;  %2419 = vmatpush3.bf16.msra.mxu0 %v2795_v37  ;;  %v1651_v37 = vsel %vm2720_vm3, %v1646_v42, %v1650_v25 }
  0x62   : > { %v2247_v47 = vcombine.low %v1651_v37, %v1661_v46 }
  0x67   : > { %2411 = vmatmul.mubr.msk.bf16.vlgmr.msra.gmra.mxu1 %vm550_vm0, %v2245_v39 }
  0x68   : > { %2405 = vmatmul.mubr.msk.bf16.gmra.mxu0 %vm550_vm0, %v2495_v40  ;;  %2414 = vmatprep.mubr.msk.bf16.mxu1 %vm550_vm0, %v2246_v41 }
  0x69   : > { %2420 = vmatprep.mubr.msk.bf16.mxu0 %vm550_vm0, %v2497_v45 }
  0x6f   : > { %2415 = vmatmul.mubr.msk.bf16.gmra.mxu1 %vm550_vm0, %v2247_v47 }
  0x70   : > { %2421 = vmatmul.mubr.msk.bf16.vlgmr.msra.gmra.mxu0 %vm550_vm0, %v2498_v48 }
  0x71   : > { %2424 = vmatprep.mubr.msk.bf16.mxu0 %vm550_vm0, %v2499_v49 }
  0x78   : > { %2425 = vmatmul.mubr.msk.bf16.gmra.mxu0 %vm550_vm0, %v2500_v50 }
  0xef   : > { %v2342_v53 = vpop.f32.mrf.mxu0  ;;  %v2346_v55 = vpop.f32.mrf.mxu1 }
  0xf0   : > { %v684_v0 = vadd.f32 %v2342_v53, %v571_v51  ;;  %v688_v57 = vadd.f32 %v2346_v55, %v575_v52 }
  0xf1   : > { %v651_v58 = vpop.f32.mrf.mxu0  ;;  %v667_v61 = vpop.f32.mrf.mxu1 }
  0xf2   : > { %692 = vst.msk [vmem:[#allocation2 + $0x10] sm:$0xff] %vm550_vm0, %v684_v0  ;;  %v682_v60 = vadd.f32 %v651_v58, %v569_v54  ;;  %696 = vst.msk [vmem:[#allocation2 + $0x30] sm:$0xff] %vm550_vm0, %v688_v57  ;;  %v686_v63 = vadd.f32 %v667_v61, %v573_v56 }
  0xf3   : > { %v2343_v1 = vpop.f32.mrf.mxu0  ;;  %v2347_v4 = vpop.f32.mrf.mxu1 }
  0xf4   : > { %690 = vst.msk [vmem:[#allocation2] sm:$0xff] %vm550_vm0, %v682_v60  ;;  %v685_v3 = vadd.f32 %v2343_v1, %v572_v59  ;;  %694 = vst.msk [vmem:[#allocation2 + $0x20] sm:$0xff] %vm550_vm0, %v686_v63  ;;  %v689_v6 = vadd.f32 %v2347_v4, %v576_v62 }
  0xf5   : > { %v654_v7 = vpop.f32.mrf.mxu0  ;;  %v670_v9 = vpop.f32.mrf.mxu1 }
  0xf6   : > { %693 = vst.msk [vmem:[#allocation2 + $0x18] sm:$0xff] %vm550_vm0, %v685_v3  ;;  %v683_v8 = vadd.f32 %v654_v7, %v570_v2  ;;  %697 = vst.msk [vmem:[#allocation2 + $0x38] sm:$0xff] %vm550_vm0, %v689_v6  ;;  %v687_v10 = vadd.f32 %v670_v9, %v574_v5 }
  0xf7   : > { %v2352_v11 = vpop.f32.mrf.mxu1 }
  0xf8   : > { %691 = vst.msk [vmem:[#allocation2 + $0x8] sm:$0xff] %vm550_vm0, %v683_v8  ;;  %695 = vst.msk [vmem:[#allocation2 + $0x28] sm:$0xff] %vm550_vm0, %v687_v10 }
  0xf9   : > { %v700_v12 = vld [vmem:[#allocation2 + $0x10] sm:$0xff]  ;;  %v757_v14 = vpop.f32.mrf.mxu1 }
  0xfa   : > { %v790_v13 = vadd.f32 %v2352_v11, %v700_v12  ;;  %v704_v25 = vld [vmem:[#allocation2 + $0x30] sm:$0xff] }
  0xfb   : > { %v698_v15 = vld [vmem:[#allocation2] sm:$0xff]  ;;  %v2353_v18 = vpop.f32.mrf.mxu1 }
  0xfc   : > { %798 = vst.msk [vmem:[#allocation2 + $0x10] sm:$0xff] %vm550_vm0, %v790_v13  ;;  %v788_v17 = vadd.f32 %v757_v14, %v698_v15  ;;  %v702_v30 = vld [vmem:[#allocation2 + $0x20] sm:$0xff] }
  0xfd   : > { %v701_v19 = vld [vmem:[#allocation2 + $0x18] sm:$0xff]  ;;  %v760_v21 = vpop.f32.mrf.mxu1 }
  0xfe   : > { %796 = vst.msk [vmem:[#allocation2] sm:$0xff] %vm550_vm0, %v788_v17  ;;  %v791_v20 = vadd.f32 %v2353_v18, %v701_v19  ;;  %v2362_v22 = vpop.f32.mrf.mxu0  ;;  %v705_v27 = vld [vmem:[#allocation2 + $0x38] sm:$0xff] }
  0xff   : > { %v699_v23 = vld [vmem:[#allocation2 + $0x8] sm:$0xff]  ;;  %v2356_v26 = vpop.f32.mrf.mxu1 }
 0x100   : > { %799 = vst.msk [vmem:[#allocation2 + $0x18] sm:$0xff] %vm550_vm0, %v791_v20  ;;  %v789_v24 = vadd.f32 %v760_v21, %v699_v23  ;;  %v993_v28 = vpop.f32.mrf.mxu0  ;;  %v794_v29 = vadd.f32 %v2356_v26, %v704_v25  ;;  %v703_v41 = vld [vmem:[#allocation2 + $0x28] sm:$0xff] }
 0x101   : > { %v773_v16 = vpop.f32.mrf.mxu1 }
 0x102   : > { %797 = vst.msk [vmem:[#allocation2 + $0x8] sm:$0xff] %vm550_vm0, %v789_v24  ;;  %802 = vst.msk [vmem:[#allocation2 + $0x30] sm:$0xff] %vm550_vm0, %v794_v29  ;;  %v2363_v32 = vpop.f32.mrf.mxu0  ;;  %v792_v33 = vadd.f32 %v773_v16, %v702_v30 }
 0x103   : > { %v920_v31 = vld [vmem:[#allocation2 + $0x10] sm:$0xff]  ;;  %v2357_v35 = vpop.f32.mrf.mxu1 }
 0x104   : > { %v1026_v34 = vadd.f32 %v2362_v22, %v920_v31  ;;  %800 = vst.msk [vmem:[#allocation2 + $0x20] sm:$0xff] %vm550_vm0, %v792_v33  ;;  %v996_v38 = vpop.f32.mrf.mxu0  ;;  %v795_v39 = vadd.f32 %v2357_v35, %v705_v27 }
 0x105   : > { %v918_v36 = vld [vmem:[#allocation2] sm:$0xff]  ;;  %v776_v42 = vpop.f32.mrf.mxu1 }
 0x106   : > { %1034 = vst.msk [vmem:[#allocation2 + $0x10] sm:$0xff] %vm550_vm0, %v1026_v34  ;;  %v1024_v40 = vadd.f32 %v993_v28, %v918_v36  ;;  %803 = vst.msk [vmem:[#allocation2 + $0x38] sm:$0xff] %vm550_vm0, %v795_v39  ;;  %v793_v44 = vadd.f32 %v776_v42, %v703_v41 }
 0x107   : > { %v921_v43 = vld [vmem:[#allocation2 + $0x18] sm:$0xff]  ;;  %v2372_v37 = vpop.f32.mrf.mxu1 }
 0x108   : > { %1032 = vst.msk [vmem:[#allocation2] sm:$0xff] %vm550_vm0, %v1024_v40  ;;  %v1027_v45 = vadd.f32 %v2363_v32, %v921_v43  ;;  %v2366_v47 = vpop.f32.mrf.mxu0  ;;  %801 = vst.msk [vmem:[#allocation2 + $0x28] sm:$0xff] %vm550_vm0, %v793_v44 }
 0x109   : > { %v919_v46 = vld [vmem:[#allocation2 + $0x8] sm:$0xff]  ;;  %v924_v49 = vld [vmem:[#allocation2 + $0x30] sm:$0xff]  ;;  %v1121_v50 = vpop.f32.mrf.mxu1 }
 0x10a   : > { %1035 = vst.msk [vmem:[#allocation2 + $0x18] sm:$0xff] %vm550_vm0, %v1027_v45  ;;  %v1025_v48 = vadd.f32 %v996_v38, %v919_v46  ;;  %v1030_v51 = vadd.f32 %v2366_v47, %v924_v49  ;;  %v1009_v52 = vpop.f32.mrf.mxu0 }
 0x10b   : > { %v922_v53 = vld [vmem:[#allocation2 + $0x20] sm:$0xff]  ;;  %v2373_v54 = vpop.f32.mrf.mxu1 }
 0x10c   : > { %1033 = vst.msk [vmem:[#allocation2 + $0x8] sm:$0xff] %vm550_vm0, %v1025_v48  ;;  %1038 = vst.msk [vmem:[#allocation2 + $0x30] sm:$0xff] %vm550_vm0, %v1030_v51  ;;  %v1028_v0 = vadd.f32 %v1009_v52, %v922_v53  ;;  %v2367_v55 = vpop.f32.mrf.mxu0 }
 0x10d   : > { %v1066_v56 = vld [vmem:[#allocation2 + $0x10] sm:$0xff]  ;;  %v925_v57 = vld [vmem:[#allocation2 + $0x38] sm:$0xff]  ;;  %v1124_v59 = vpop.f32.mrf.mxu1 }
 0x10e   : > { %v1154_v58 = vadd.f32 %v2372_v37, %v1066_v56  ;;  %1036 = vst.msk [vmem:[#allocation2 + $0x20] sm:$0xff] %vm550_vm0, %v1028_v0  ;;  %v1031_v60 = vadd.f32 %v2367_v55, %v925_v57  ;;  %v1012_v61 = vpop.f32.mrf.mxu0 }
 0x10f   : > { %v1064_v62 = vld [vmem:[#allocation2] sm:$0xff]  ;;  %v923_v63 = vld [vmem:[#allocation2 + $0x28] sm:$0xff]  ;;  %v2376_v2 = vpop.f32.mrf.mxu1 }
 0x110   : > { %1162 = vst.msk [vmem:[#allocation2 + $0x10] sm:$0xff] %vm550_vm0, %v1154_v58  ;;  %v1152_v1 = vadd.f32 %v1121_v50, %v1064_v62  ;;  %1039 = vst.msk [vmem:[#allocation2 + $0x38] sm:$0xff] %vm550_vm0, %v1031_v60  ;;  %v1029_v3 = vadd.f32 %v1012_v61, %v923_v63  ;;  %v2382_v5 = vpop.f32.mrf.mxu0 }
 0x111   : > { %v1067_v4 = vld [vmem:[#allocation2 + $0x18] sm:$0xff]  ;;  %v1137_v7 = vpop.f32.mrf.mxu1 }
 0x112   : > { %1160 = vst.msk [vmem:[#allocation2] sm:$0xff] %vm550_vm0, %v1152_v1  ;;  %v1155_v6 = vadd.f32 %v2373_v54, %v1067_v4  ;;  %1037 = vst.msk [vmem:[#allocation2 + $0x28] sm:$0xff] %vm550_vm0, %v1029_v3  ;;  %v1262_v9 = vpop.f32.mrf.mxu0 }
 0x113   : > { %v1065_v8 = vld [vmem:[#allocation2 + $0x8] sm:$0xff]  ;;  %v1070_v11 = vld [vmem:[#allocation2 + $0x30] sm:$0xff]  ;;  %v2377_v12 = vpop.f32.mrf.mxu1 }
 0x114   : > { %1163 = vst.msk [vmem:[#allocation2 + $0x18] sm:$0xff] %vm550_vm0, %v1155_v6  ;;  %v1153_v10 = vadd.f32 %v1124_v59, %v1065_v8  ;;  %v1158_v13 = vadd.f32 %v2376_v2, %v1070_v11  ;;  %v2383_v14 = vpop.f32.mrf.mxu0 }
 0x115   : > { %v1068_v15 = vld [vmem:[#allocation2 + $0x20] sm:$0xff]  ;;  %v1140_v17 = vpop.f32.mrf.mxu1 }
 0x116   : > { %1161 = vst.msk [vmem:[#allocation2 + $0x8] sm:$0xff] %vm550_vm0, %v1153_v10  ;;  %1166 = vst.msk [vmem:[#allocation2 + $0x30] sm:$0xff] %vm550_vm0, %v1158_v13  ;;  %v1156_v19 = vadd.f32 %v1137_v7, %v1068_v15  ;;  %v1265_v20 = vpop.f32.mrf.mxu0 }
 0x117   : > { %v1181_v18 = vld [vmem:[#allocation2 + $0x10] sm:$0xff]  ;;  %v1071_v22 = vld [vmem:[#allocation2 + $0x38] sm:$0xff]  ;;  %v2392_v23 = vpop.f32.mrf.mxu1 }
 0x118   : > { %v1295_v21 = vadd.f32 %v2382_v5, %v1181_v18  ;;  %1164 = vst.msk [vmem:[#allocation2 + $0x20] sm:$0xff] %vm550_vm0, %v1156_v19  ;;  %v1159_v25 = vadd.f32 %v2377_v12, %v1071_v22  ;;  %v2386_v26 = vpop.f32.mrf.mxu0 }
 0x119   : > { %v1179_v24 = vld [vmem:[#allocation2] sm:$0xff]  ;;  %v1069_v29 = vld [vmem:[#allocation2 + $0x28] sm:$0xff]  ;;  %v1368_v30 = vpop.f32.mrf.mxu1 }
 0x11a   : > { %1303 = vst.msk [vmem:[#allocation2 + $0x10] sm:$0xff] %vm550_vm0, %v1295_v21  ;;  %v1293_v28 = vadd.f32 %v1262_v9, %v1179_v24  ;;  %1167 = vst.msk [vmem:[#allocation2 + $0x38] sm:$0xff] %vm550_vm0, %v1159_v25  ;;  %v1157_v31 = vadd.f32 %v1140_v17, %v1069_v29  ;;  %v1278_v32 = vpop.f32.mrf.mxu0 }
 0x11b   : > { %v1182_v16 = vld [vmem:[#allocation2 + $0x18] sm:$0xff]  ;;  %v2393_v34 = vpop.f32.mrf.mxu1 }
 0x11c   : > { %1301 = vst.msk [vmem:[#allocation2] sm:$0xff] %vm550_vm0, %v1293_v28  ;;  %v1296_v33 = vadd.f32 %v2383_v14, %v1182_v16  ;;  %1165 = vst.msk [vmem:[#allocation2 + $0x28] sm:$0xff] %vm550_vm0, %v1157_v31  ;;  %v2387_v35 = vpop.f32.mrf.mxu0 }
 0x11d   : > { %v1180_v27 = vld [vmem:[#allocation2 + $0x8] sm:$0xff]  ;;  %v1185_v38 = vld [vmem:[#allocation2 + $0x30] sm:$0xff]  ;;  %v1371_v39 = vpop.f32.mrf.mxu1 }
 0x11e   : > { %1304 = vst.msk [vmem:[#allocation2 + $0x18] sm:$0xff] %vm550_vm0, %v1296_v33  ;;  %v1294_v36 = vadd.f32 %v1265_v20, %v1180_v27  ;;  %v1299_v40 = vadd.f32 %v2386_v26, %v1185_v38  ;;  %v1281_v41 = vpop.f32.mrf.mxu0 }
 0x11f   : > { %v1183_v42 = vld [vmem:[#allocation2 + $0x20] sm:$0xff]  ;;  %v2396_v43 = vpop.f32.mrf.mxu1 }
 0x120   : > { %1302 = vst.msk [vmem:[#allocation2 + $0x8] sm:$0xff] %vm550_vm0, %v1294_v36  ;;  %1307 = vst.msk [vmem:[#allocation2 + $0x30] sm:$0xff] %vm550_vm0, %v1299_v40  ;;  %v1297_v44 = vadd.f32 %v1278_v32, %v1183_v42  ;;  %v2402_v37 = vpop.f32.mrf.mxu0 }
 0x121   : > { %v1311_v45 = vld [vmem:[#allocation2 + $0x10] sm:$0xff]  ;;  %v1186_v47 = vld [vmem:[#allocation2 + $0x38] sm:$0xff]  ;;  %v1384_v48 = vpop.f32.mrf.mxu1 }
 0x122   : > { %v1401_v46 = vadd.f32 %v2392_v23, %v1311_v45  ;;  %1305 = vst.msk [vmem:[#allocation2 + $0x20] sm:$0xff] %vm550_vm0, %v1297_v44  ;;  %v1300_v49 = vadd.f32 %v2387_v35, %v1186_v47  ;;  %v1507_v51 = vpop.f32.mrf.mxu0 }
 0x123   : > { %v1309_v50 = vld [vmem:[#allocation2] sm:$0xff]  ;;  %v1184_v53 = vld [vmem:[#allocation2 + $0x28] sm:$0xff]  ;;  %v2397_v54 = vpop.f32.mrf.mxu1 }
 0x124   : > { %1409 = vst.msk [vmem:[#allocation2 + $0x10] sm:$0xff] %vm550_vm0, %v1401_v46  ;;  %v1399_v52 = vadd.f32 %v1368_v30, %v1309_v50  ;;  %1308 = vst.msk [vmem:[#allocation2 + $0x38] sm:$0xff] %vm550_vm0, %v1300_v49  ;;  %v1298_v0 = vadd.f32 %v1281_v41, %v1184_v53  ;;  %v2403_v56 = vpop.f32.mrf.mxu0 }
 0x125   : > { %v1312_v55 = vld [vmem:[#allocation2 + $0x18] sm:$0xff]  ;;  %v1387_v58 = vpop.f32.mrf.mxu1 }
 0x126   : > { %1407 = vst.msk [vmem:[#allocation2] sm:$0xff] %vm550_vm0, %v1399_v52  ;;  %v1402_v57 = vadd.f32 %v2393_v34, %v1312_v55  ;;  %1306 = vst.msk [vmem:[#allocation2 + $0x28] sm:$0xff] %vm550_vm0, %v1298_v0  ;;  %v1510_v60 = vpop.f32.mrf.mxu0 }
 0x127   : > { %v1310_v59 = vld [vmem:[#allocation2 + $0x8] sm:$0xff]  ;;  %v1315_v62 = vld [vmem:[#allocation2 + $0x30] sm:$0xff]  ;;  %v2412_v63 = vpop.f32.mrf.mxu1 }
 0x128   : > { %1410 = vst.msk [vmem:[#allocation2 + $0x18] sm:$0xff] %vm550_vm0, %v1402_v57  ;;  %v1400_v61 = vadd.f32 %v1371_v39, %v1310_v59  ;;  %v1405_v1 = vadd.f32 %v2396_v43, %v1315_v62  ;;  %v2406_v2 = vpop.f32.mrf.mxu0 }
 0x129   : > { %v1313_v3 = vld [vmem:[#allocation2 + $0x20] sm:$0xff]  ;;  %v1737_v4 = vpop.f32.mrf.mxu1 }
 0x12a   : > { %1408 = vst.msk [vmem:[#allocation2 + $0x8] sm:$0xff] %vm550_vm0, %v1400_v61  ;;  %1413 = vst.msk [vmem:[#allocation2 + $0x30] sm:$0xff] %vm550_vm0, %v1405_v1  ;;  %v1403_v5 = vadd.f32 %v1384_v48, %v1313_v3  ;;  %v1523_v7 = vpop.f32.mrf.mxu0 }
 0x12b   : > { %v1426_v6 = vld [vmem:[#allocation2 + $0x10] sm:$0xff]  ;;  %v1316_v9 = vld [vmem:[#allocation2 + $0x38] sm:$0xff]  ;;  %v2413_v15 = vpop.f32.mrf.mxu1 }
 0x12c   : > { %v1540_v8 = vadd.f32 %v2402_v37, %v1426_v6  ;;  %1411 = vst.msk [vmem:[#allocation2 + $0x20] sm:$0xff] %vm550_vm0, %v1403_v5  ;;  %v1406_v10 = vadd.f32 %v2397_v54, %v1316_v9  ;;  %v2407_v12 = vpop.f32.mrf.mxu0 }
 0x12d   : > { %v1424_v11 = vld [vmem:[#allocation2] sm:$0xff]  ;;  %v1314_v14 = vld [vmem:[#allocation2 + $0x28] sm:$0xff]  ;;  %v1740_v25 = vpop.f32.mrf.mxu1 }
 0x12e   : > { %1548 = vst.msk [vmem:[#allocation2 + $0x10] sm:$0xff] %vm550_vm0, %v1540_v8  ;;  %v1538_v13 = vadd.f32 %v1507_v51, %v1424_v11  ;;  %1414 = vst.msk [vmem:[#allocation2 + $0x38] sm:$0xff] %vm550_vm0, %v1406_v10  ;;  %v1404_v17 = vadd.f32 %v1387_v58, %v1314_v14  ;;  %v1526_v19 = vpop.f32.mrf.mxu0 }
 0x12f   : > { %v1427_v18 = vld [vmem:[#allocation2 + $0x18] sm:$0xff]  ;;  %v2416_v33 = vpop.f32.mrf.mxu1 }
 0x130   : > { %1546 = vst.msk [vmem:[#allocation2] sm:$0xff] %vm550_vm0, %v1538_v13  ;;  %v1541_v20 = vadd.f32 %v2403_v56, %v1427_v18  ;;  %1412 = vst.msk [vmem:[#allocation2 + $0x28] sm:$0xff] %vm550_vm0, %v1404_v17  ;;  %v2422_v22 = vpop.f32.mrf.mxu0 }
 0x131   : > { %v1425_v21 = vld [vmem:[#allocation2 + $0x8] sm:$0xff]  ;;  %v1430_v24 = vld [vmem:[#allocation2 + $0x30] sm:$0xff]  ;;  %v1753_v42 = vpop.f32.mrf.mxu1 }
 0x132   : > { %1549 = vst.msk [vmem:[#allocation2 + $0x18] sm:$0xff] %vm550_vm0, %v1541_v20  ;;  %v1539_v23 = vadd.f32 %v1510_v60, %v1425_v21  ;;  %v1544_v26 = vadd.f32 %v2406_v2, %v1430_v24  ;;  %v1876_v29 = vpop.f32.mrf.mxu0  ;;  %v2272_v2 = vld [vmem:[%s2971_s2] ss:$0 sm:$0xff] }
 0x133   : > { %v1428_v28 = vld [vmem:[#allocation2 + $0x20] sm:$0xff]  ;;  %v2417_v48 = vpop.f32.mrf.mxu1 }
 0x134   : > { %1547 = vst.msk [vmem:[#allocation2 + $0x8] sm:$0xff] %vm550_vm0, %v1539_v23  ;;  %1552 = vst.msk [vmem:[#allocation2 + $0x30] sm:$0xff] %vm550_vm0, %v1544_v26  ;;  %v1542_v30 = vadd.f32 %v1523_v7, %v1428_v28  ;;  %v2423_v38 = vpop.f32.mrf.mxu0  ;;  %v2273_v7 = vld [vmem:[%s2972_s3] ss:$0 sm:$0xff] }
 0x135   : > { %v1664_v16 = vld [vmem:[#allocation2 + $0x10] sm:$0xff]  ;;  %v1431_v32 = vld [vmem:[#allocation2 + $0x38] sm:$0xff]  ;;  %v1756_v57 = vpop.f32.mrf.mxu1 }
 0x136   : > { %v1770_v31 = vadd.f32 %v2412_v63, %v1664_v16  ;;  %1550 = vst.msk [vmem:[#allocation2 + $0x20] sm:$0xff] %vm550_vm0, %v1542_v30  ;;  %v1545_v34 = vadd.f32 %v2407_v12, %v1431_v32  ;;  %v1879_v37 = vpop.f32.mrf.mxu0 }
 0x137   : > { %v1662_v27 = vld [vmem:[#allocation2] sm:$0xff]  ;;  %v1429_v36 = vld [vmem:[#allocation2 + $0x28] sm:$0xff] }
 0x138   : > { %1778 = vst.msk [vmem:[#allocation2 + $0x10] sm:$0xff] %vm550_vm0, %v1770_v31  ;;  %v1768_v35 = vadd.f32 %v1737_v4, %v1662_v27  ;;  %1553 = vst.msk [vmem:[#allocation2 + $0x38] sm:$0xff] %vm550_vm0, %v1545_v34  ;;  %v1543_v39 = vadd.f32 %v1526_v19, %v1429_v36  ;;  %v2426_v53 = vpop.f32.mrf.mxu0 }
 0x139   : > { %v1665_v40 = vld [vmem:[#allocation2 + $0x18] sm:$0xff] }
 0x13a   : > { %1776 = vst.msk [vmem:[#allocation2] sm:$0xff] %vm550_vm0, %v1768_v35  ;;  %v1771_v41 = vadd.f32 %v2413_v15, %v1665_v40  ;;  %1551 = vst.msk [vmem:[#allocation2 + $0x28] sm:$0xff] %vm550_vm0, %v1543_v39  ;;  %v1892_v61 = vpop.f32.mrf.mxu0 }
 0x13b   : > { %v1663_v43 = vld [vmem:[#allocation2 + $0x8] sm:$0xff]  ;;  %v1668_v45 = vld [vmem:[#allocation2 + $0x30] sm:$0xff] }
 0x13c   : > { %1779 = vst.msk [vmem:[#allocation2 + $0x18] sm:$0xff] %vm550_vm0, %v1771_v41  ;;  %v1769_v44 = vadd.f32 %v1740_v25, %v1663_v43  ;;  %v1774_v46 = vadd.f32 %v2416_v33, %v1668_v45  ;;  %v2427_v5 = vpop.f32.mrf.mxu0 }
 0x13d   : > { %v1666_v47 = vld [vmem:[#allocation2 + $0x20] sm:$0xff] }
 0x13e   : > { %1777 = vst.msk [vmem:[#allocation2 + $0x8] sm:$0xff] %vm550_vm0, %v1769_v44  ;;  %1782 = vst.msk [vmem:[#allocation2 + $0x30] sm:$0xff] %vm550_vm0, %v1774_v46  ;;  %v1772_v49 = vadd.f32 %v1753_v42, %v1666_v47  ;;  %v1895_v17 = vpop.f32.mrf.mxu0 }
 0x13f   : > { %v1795_v50 = vld [vmem:[#allocation2 + $0x10] sm:$0xff]  ;;  %v1669_v52 = vld [vmem:[#allocation2 + $0x38] sm:$0xff] }
 0x140   : > { %v1909_v51 = vadd.f32 %v2422_v22, %v1795_v50  ;;  %1780 = vst.msk [vmem:[#allocation2 + $0x20] sm:$0xff] %vm550_vm0, %v1772_v49  ;;  %v1775_v54 = vadd.f32 %v2417_v48, %v1669_v52 }
 0x141   : > { %v1793_v0 = vld [vmem:[#allocation2] sm:$0xff]  ;;  %v1667_v56 = vld [vmem:[#allocation2 + $0x28] sm:$0xff] }
 0x142   : > { %1917 = vst.msk [vmem:[#allocation2 + $0x10] sm:$0xff] %vm550_vm0, %v1909_v51  ;;  %v1907_v55 = vadd.f32 %v1876_v29, %v1793_v0  ;;  %1783 = vst.msk [vmem:[#allocation2 + $0x38] sm:$0xff] %vm550_vm0, %v1775_v54  ;;  %v1773_v58 = vadd.f32 %v1756_v57, %v1667_v56 }
 0x143   : > { %v1796_v59 = vld [vmem:[#allocation2 + $0x18] sm:$0xff] }
 0x144   : > { %1915 = vst.msk [vmem:[#allocation2] sm:$0xff] %vm550_vm0, %v1907_v55  ;;  %v1910_v60 = vadd.f32 %v2423_v38, %v1796_v59  ;;  %1781 = vst.msk [vmem:[#allocation2 + $0x28] sm:$0xff] %vm550_vm0, %v1773_v58 }
 0x145   : > { %v1794_v62 = vld [vmem:[#allocation2 + $0x8] sm:$0xff]  ;;  %v1799_v1 = vld [vmem:[#allocation2 + $0x30] sm:$0xff] }
 0x146   : > { %1918 = vst.msk [vmem:[#allocation2 + $0x18] sm:$0xff] %vm550_vm0, %v1910_v60  ;;  %v1908_v63 = vadd.f32 %v1879_v37, %v1794_v62  ;;  %v1913_v3 = vadd.f32 %v2426_v53, %v1799_v1 }
 0x147   : > { %v1797_v4 = vld [vmem:[#allocation2 + $0x20] sm:$0xff] }
 0x148   : > { %1916 = vst.msk [vmem:[#allocation2 + $0x8] sm:$0xff] %vm550_vm0, %v1908_v63  ;;  %1921 = vst.msk [vmem:[#allocation2 + $0x30] sm:$0xff] %vm550_vm0, %v1913_v3  ;;  %v1911_v8 = vadd.f32 %v1892_v61, %v1797_v4 }
 0x149   : > { %v1925_v6 = vld [vmem:[#allocation2 + $0x10] sm:$0xff]  ;;  %v1800_v10 = vld [vmem:[#allocation2 + $0x38] sm:$0xff] }
 0x14a   : > { %v1940_v9 = vmul.f32 %v2272_v2, %v1925_v6  ;;  %1919 = vst.msk [vmem:[#allocation2 + $0x20] sm:$0xff] %vm550_vm0, %v1911_v8  ;;  %v1914_v12 = vadd.f32 %v2427_v5, %v1800_v10 }
 0x14b   : > { %v1923_v11 = vld [vmem:[#allocation2] sm:$0xff]  ;;  %v1798_v15 = vld [vmem:[#allocation2 + $0x28] sm:$0xff] }
 0x14c   : > { %v1955_v13 = vadd.f32 %v2273_v7, %v1940_v9  ;;  %v1938_v14 = vmul.f32 %v2272_v2, %v1923_v11  ;;  %1922 = vst.msk [vmem:[#allocation2 + $0x38] sm:$0xff] %vm550_vm0, %v1914_v12  ;;  %v1912_v19 = vadd.f32 %v1895_v17, %v1798_v15 }
 0x14d   : > { %v1926_v18 = vld [vmem:[#allocation2 + $0x18] sm:$0xff] }
 0x14e   : > { %v1963_v20 = vmax.f32 %v1955_v13, 0.0  ;;  %v1953_v21 = vadd.f32 %v2273_v7, %v1938_v14  ;;  %v1941_v22 = vmul.f32 %v2272_v2, %v1926_v18  ;;  %1920 = vst.msk [vmem:[#allocation2 + $0x28] sm:$0xff] %vm550_vm0, %v1912_v19 }
 0x14f   : > { %v1924_v23 = vld [vmem:[#allocation2 + $0x8] sm:$0xff]  ;;  %v1929_v29 = vld [vmem:[#allocation2 + $0x30] sm:$0xff] }
 0x150   : > { %v2287_v24 = vpack.c.bf16 %v1963_v20, %v1963_v20  ;;  %v1961_v25 = vmax.f32 %v1953_v21, 0.0  ;;  %v1956_v26 = vadd.f32 %v2273_v7, %v1941_v22  ;;  %v1939_v28 = vmul.f32 %v2272_v2, %v1924_v23 }
 0x151   : > { %v1944_v30 = vmul.f32 %v2272_v2, %v1929_v29  ;;  %v1927_v33 = vld [vmem:[#allocation2 + $0x20] sm:$0xff] }
 0x152   : > { %2004 = vst.msk [vmem:[%s2935_s13 + $0x8] sm:$0xf] %vm2001_vm4, %v2287_v24  ;;  %v2285_v16 = vpack.c.bf16 %v1961_v25, %v1961_v25  ;;  %v1964_v31 = vmax.f32 %v1956_v26, 0.0  ;;  %v1954_v32 = vadd.f32 %v2273_v7, %v1939_v28  ;;  %v1942_v27 = vmul.f32 %v2272_v2, %v1927_v33 }
 0x153   : > { %v1959_v34 = vadd.f32 %v2273_v7, %v1944_v30  ;;  %v1930_v38 = vld [vmem:[#allocation2 + $0x38] sm:$0xff] }
 0x154   : > { %2002 = vst.msk [vmem:[%s2935_s13] sm:$0xf] %vm2001_vm4, %v2285_v16  ;;  %v2288_v35 = vpack.c.bf16 %v1964_v31, %v1964_v31  ;;  %v1962_v36 = vmax.f32 %v1954_v32, 0.0  ;;  %v1957_v40 = vadd.f32 %v2273_v7, %v1942_v27  ;;  %v1945_v41 = vmul.f32 %v2272_v2, %v1930_v38 }
 0x155   : > { %v1967_v39 = vmax.f32 %v1959_v34, 0.0  ;;  %v1928_v43 = vld [vmem:[#allocation2 + $0x28] sm:$0xff] }
 0x156   : > { %2005 = vst.msk [vmem:[%s2935_s13 + $0xc] sm:$0xf] %vm2001_vm4, %v2288_v35  ;;  %v2286_v42 = vpack.c.bf16 %v1962_v36, %v1962_v36  ;;  %v1965_v45 = vmax.f32 %v1957_v40, 0.0  ;;  %v1960_v37 = vadd.f32 %v2273_v7, %v1945_v41  ;;  %v1943_v46 = vmul.f32 %v2272_v2, %v1928_v43 }
 0x157   : > { %v2291_v44 = vpack.c.bf16 %v1967_v39, %v1967_v39 }
 0x158   : > { %2003 = vst.msk [vmem:[%s2935_s13 + $0x4] sm:$0xf] %vm2001_vm4, %v2286_v42  ;;  %v2289_v47 = vpack.c.bf16 %v1965_v45, %v1965_v45  ;;  %v1968_v48 = vmax.f32 %v1960_v37, 0.0  ;;  %v1958_v49 = vadd.f32 %v2273_v7, %v1943_v46 }
 0x159   : > { %2008 = vst.msk [vmem:[%s2935_s13 + $0x18] sm:$0xf] %vm2001_vm4, %v2291_v44 }
 0x15a   : > { %2006 = vst.msk [vmem:[%s2935_s13 + $0x10] sm:$0xf] %vm2001_vm4, %v2289_v47  ;;  %v2292_v50 = vpack.c.bf16 %v1968_v48, %v1968_v48  ;;  %v1966_v51 = vmax.f32 %v1958_v49, 0.0 }
 0x15c   : > { %2009 = vst.msk [vmem:[%s2935_s13 + $0x1c] sm:$0xf] %vm2001_vm4, %v2292_v50  ;;  %v2290_v52 = vpack.c.bf16 %v1966_v51, %v1966_v51 }
 0x15e   : > { %2007 = vst.msk [vmem:[%s2935_s13 + $0x14] sm:$0xf] %vm2001_vm4, %v2290_v52 }
 0x15f PF: > { %s14_s19 = sadd.s32 1, %s2539_s19   ;;  %s2976_s15 = smov %s2527_s16 }
 0x160   : > { %p11_p10 = scmp.ge.s32.totalorder %s14_s19, 4   ;;  %s2977_s16 = smov %s2602_s23 }
 0x161   : > { %s2978_s17 = smov %s2535_s18  ;;  %s2979_s18 = smov %s2981_s20 }
 0x162   :  { %13 = sbr.rel (!%p11_p10) target bundleno = 3 (0x3), region = 132 }

// kernel: _lambda_.26
= control target key start
LH: loop header
LB: loop body
LE: loop exit
PB: predicated region body
PF: predicated region fallthrough
CT: control target
= control target key end

     0   :  { %v173_v0 = vmov 0.0   ;;  %vm174_vm0 = vmmov 0   ;;  %vm57_vm1 = vcmask 523264   ;;  %vm130_vm2 = vcmask 519168   ;;  %s227_s1 = inlined_call_operand.vmem [shape: bf16[64,64], index: 1, kind: input, shape index: {}]   ;;  %s228_s0 = inlined_call_operand.vmem [shape: bf16[16,64], index: 0, kind: input, shape index: {}]   ;;  %s229_s2 = inlined_call_operand.vmem [shape: f32[1,64], index: 2, kind: input, shape index: {}]   ;;  %s230_s3 = inlined_call_operand.vmem [shape: f32[1,64], index: 3, kind: input, shape index: {}]   ;;  %s231_s4 = inlined_call_operand.vmem [shape: bf16[16,64], index: 4, kind: output, shape index: {}]  }
   0x1   :  { %154 = vmatprep.subr.bf16.mxu0 %v173_v0  ;;  %v168_v1 = vld [vmem:[%s227_s1 + $0x18] sm:$0xff]   ;;  %162 = vmatprep.mubr.msk.bf16.mxu0 %vm174_vm0, %v173_v0  ;;  %v169_v2 = vld [vmem:[%s227_s1 + $0x10] sm:$0xff]   ;;  %v170_v3 = vld [vmem:[%s227_s1 + $0x8] sm:$0xff]  }
   0x2   :  { %155 = vmatpush3.bf16.msra.mxu0 %v168_v1  ;;  %v171_v4 = vld [vmem:[%s227_s1] sm:$0xff]  }
   0x3   :  { %156 = vmatprep.subr.bf16.mxu0 %v173_v0  ;;  %v172_v5 = vld [vmem:[%s228_s0] sm:$0xff]  }
   0x4   :  { %v143_v6 = vld [vmem:[%s229_s2] ss:$0 sm:$0xff] }
   0x5   :  { %v144_v8 = vld [vmem:[%s230_s3] ss:$0 sm:$0xff] }
   0x6   :  { %157 = vmatpush3.bf16.msra.mxu0 %v169_v2 }
   0x7   :  { %158 = vmatprep.subr.bf16.mxu0 %v173_v0 }
   0xa   :  { %159 = vmatpush3.bf16.msra.mxu0 %v170_v3 }
   0xb   :  { %160 = vmatprep.subr.bf16.mxu0 %v173_v0 }
   0xe   :  { %161 = vmatpush3.bf16.msra.mxu0 %v171_v4 }
  0x11   :  { %163 = vmatmul.mubr.msk.bf16.vlgmr.msra.gmra.mxu0 %vm57_vm1, %v172_v5 }
  0xd1   :  { %v95_v7 = vpop.f32.mrf.mxu0 }
  0xd2   :  { %v109_v9 = vmul.f32 %v143_v6, %v95_v7 }
  0xd3   :  { %v164_v10 = vpop.f32.mrf.mxu0 }
  0xd4   :  { %v118_v11 = vadd.f32 %v144_v8, %v109_v9 }
  0xd5   :  { %v98_v12 = vpop.f32.mrf.mxu0 }
  0xd6   :  { %v120_v13 = vmax.f32 %v118_v11, 0.0  ;;  %v110_v14 = vmul.f32 %v143_v6, %v98_v12 }
  0xd7   :  { %v165_v15 = vpop.f32.mrf.mxu0 }
  0xd8   :  { %v147_v16 = vpack.c.bf16 %v120_v13, %v120_v13  ;;  %v119_v17 = vadd.f32 %v144_v8, %v110_v14 }
  0xda   :  { %131 = vst.msk [vmem:[%s231_s4] sm:$0xf] %vm130_vm2, %v147_v16  ;;  %v121_v18 = vmax.f32 %v119_v17, 0.0 }
  0xdc   :  { %v148_v19 = vpack.c.bf16 %v121_v18, %v121_v18 }
  0xde   :  { %132 = vst.msk [vmem:[%s231_s4 + $0x4] sm:$0xf] %vm130_vm2, %v148_v19 }

// kernel: _lambda_.24
= control target key start
LH: loop header
LB: loop body
LE: loop exit
PB: predicated region body
PF: predicated region fallthrough
CT: control target
= control target key end

     0   :  { %s1980_s15 = smov 0   ;;  %s1982_s16 = smov 0   ;;  %s2261_s0 = inlined_call_operand.vmem [shape: bf16[4,2,3,17,32], index: 0, kind: input, shape index: {}]   ;;  %s2262_s1 = inlined_call_operand.vmem [shape: bf16[9,1,32,32], index: 1, kind: input, shape index: {}]   ;;  %s2263_s2 = inlined_call_operand.vmem [shape: f32[1,32], index: 2, kind: input, shape index: {}]   ;;  %s2264_s3 = inlined_call_operand.vmem [shape: f32[1,32], index: 3, kind: input, shape index: {}]   ;;  %s2265_s4 = inlined_call_operand.vmem [shape: bf16[2,32,32], index: 4, kind: output, shape index: {}]  }
   0x1   :  { %s1984_s17 = smov 0   ;;  %s1986_s18 = smov 0  }
   0x2   :  { %s1988_s19 = smov 0  }
   0x3 LB: > { %s26_s20 = sadd.s32 1, %s1948_s18  ;;  %p42_p1 = scmp.ne.s32.totalorder %s1940_s16, %s1936_s15  ;;  %s1952_s19 = sphi %s1988_s19, %s14_s19   ;;  %s1948_s18 = sphi %s1986_s18, %s2271_s18   ;;  %s1944_s17 = sphi %s1984_s17, %s2270_s17   ;;  %s1940_s16 = sphi %s1982_s16, %s2269_s16   ;;  %s1936_s15 = sphi %s1980_s15, %s2268_s15  }
   0x4   : > { %p28_p0 = scmp.ge.s32.totalorder %s26_s20, 2  ;;  %p43_p2 = scmp.eq.s32.totalorder %s1952_s19, 0 }
   0x5   : > { %s35_s22 = sadd.s32 1, %s1940_s16  ;;  %p1613_p5 = scmp.ge.s32.totalorder %s1952_s19, 2 }
   0x6   : > { %s2273_s20 = smov (%p28_p0, %s26_s20), 0  ;;  %p44_p3 = por %p43_p2, %p42_p1 }
   0x7   : > { %s30_s21 = ssub.s32 %s1948_s18, %s2273_s20  ;;  %194 = sbr.rel (%p1613_p5) target bundleno = 27 (0x1b), region = 28 }
   0x8   : > { %p33_p4 = scmp.eq.s32.totalorder %s30_s21, 0 }
   0xa   : > { %s2015_s23 = scalar_select %p33_p4, %s1940_s16, %s35_s22  }
   0xc   : > { %197 = sbr.rel (!%p44_p3) target bundleno = 27 (0x1b), region = 32  ;;  %s199_s24 = sand.u32 (%p44_p3), 1, %s1940_s16  }
   0xd   : > { %s1843_s25 = smul.u32 (%p44_p3), 36, %s1948_s18 }
   0xe   : > { %s1842_s26 = smul.u32 (%p44_p3), 144, %s199_s24 }
   0xf   : > { %s2023_s29 = scalar_lea.vmem (%p44_p3), %s2261_s0, %s1843_s25 }
  0x10   : > { %v222_v0 = vld [vmem:[%s2023_s29] sm:$0xff] (%p44_p3)   ;;  %v226_v1 = vld [vmem:[%s2023_s29 + $0x8] sm:$0xff] (%p44_p3)   ;;  %v230_v2 = vld [vmem:[%s2023_s29 + $0x10] sm:$0xff] (%p44_p3)   ;;  %s2028_s30 = scalar_lea.vmem (%p44_p3), [#allocation3], %s1842_s26 }
  0x11   : > { %223 = vst [vmem:[%s2028_s30] sm:$0xff] %v222_v0   ;;  %227 = vst [vmem:[%s2028_s30 + $0x8] sm:$0xff] %v226_v1   ;;  %v234_v3 = vld [vmem:[%s2023_s29 + $0x18] sm:$0xff]   ;;  %v238_v4 = vld [vmem:[%s2023_s29 + $0x20] sm:$0xf] }
  0x12   : > { %231 = vst [vmem:[%s2028_s30 + $0x10] sm:$0xff] %v230_v2   ;;  %v240_v5 = vld [vmem:[%s2023_s29 + $0x48] sm:$0xff]   ;;  %235 = vst [vmem:[%s2028_s30 + $0x18] sm:$0xff] %v234_v3   ;;  %v244_v6 = vld [vmem:[%s2023_s29 + $0x50] sm:$0xff]  }
  0x13   : > { %239 = vst [vmem:[%s2028_s30 + $0x20] sm:$0xf] %v238_v4  ;;  %241 = vst [vmem:[%s2028_s30 + $0x24] sm:$0xff] %v240_v5   ;;  %v248_v7 = vld [vmem:[%s2023_s29 + $0x58] sm:$0xff]   ;;  %v252_v8 = vld [vmem:[%s2023_s29 + $0x60] sm:$0xff]  }
  0x14   : > { %245 = vst [vmem:[%s2028_s30 + $0x2c] sm:$0xff] %v244_v6   ;;  %249 = vst [vmem:[%s2028_s30 + $0x34] sm:$0xff] %v248_v7   ;;  %v256_v9 = vld [vmem:[%s2023_s29 + $0x68] sm:$0xf]  ;;  %v258_v10 = vld [vmem:[%s2023_s29 + $0x90] sm:$0xff]  }
  0x15   : > { %253 = vst [vmem:[%s2028_s30 + $0x3c] sm:$0xff] %v252_v8   ;;  %v262_v11 = vld [vmem:[%s2023_s29 + $0x98] sm:$0xff]   ;;  %257 = vst [vmem:[%s2028_s30 + $0x44] sm:$0xf] %v256_v9  ;;  %v266_v12 = vld [vmem:[%s2023_s29 + $0xa0] sm:$0xff]  }
  0x16   : > { %259 = vst [vmem:[%s2028_s30 + $0x48] sm:$0xff] %v258_v10   ;;  %263 = vst [vmem:[%s2028_s30 + $0x50] sm:$0xff] %v262_v11   ;;  %v270_v13 = vld [vmem:[%s2023_s29 + $0xa8] sm:$0xff]   ;;  %v274_v14 = vld [vmem:[%s2023_s29 + $0xb0] sm:$0xf] }
  0x17   : > { %267 = vst [vmem:[%s2028_s30 + $0x58] sm:$0xff] %v266_v12   ;;  %271 = vst [vmem:[%s2028_s30 + $0x60] sm:$0xff] %v270_v13   ;;  %v276_v15 = vld [vmem:[%s2023_s29 + $0xd8] sm:$0xff]   ;;  %v280_v16 = vld [vmem:[%s2023_s29 + $0xe0] sm:$0xff]  }
  0x18   : > { %275 = vst [vmem:[%s2028_s30 + $0x68] sm:$0xf] %v274_v14  ;;  %v284_v17 = vld [vmem:[%s2023_s29 + $0xe8] sm:$0xff]   ;;  %277 = vst [vmem:[%s2028_s30 + $0x6c] sm:$0xff] %v276_v15   ;;  %v288_v18 = vld [vmem:[%s2023_s29 + $0xf0] sm:$0xff]  }
  0x19   : > { %281 = vst [vmem:[%s2028_s30 + $0x74] sm:$0xff] %v280_v16   ;;  %285 = vst [vmem:[%s2028_s30 + $0x7c] sm:$0xff] %v284_v17   ;;  %v292_v19 = vld [vmem:[%s2023_s29 + $0xf8] sm:$0xf] }
  0x1a   : > { %289 = vst [vmem:[%s2028_s30 + $0x84] sm:$0xff] %v288_v18   ;;  %293 = vst [vmem:[%s2028_s30 + $0x8c] sm:$0xf] %v292_v19 }
  0x1b PF: > { %p1615_p6 = scmp.ge.s32.totalorder %s1952_s19, 1  ;;  %p388_p7 = scmp.lt.s32.totalorder %s1952_s19, 3 }
  0x1d   : > { %p389_p8 = pnand %p1615_p6, %p388_p7 }
  0x1e   : > { %s395_s7 = sand.u32 (!%p389_p8), 1, %s1936_s15   ;;  %p445_p9 = scmp.lt.s32.totalorder (!%p389_p8), %s1944_s17, 1 }
  0x1f   : > { %392 = sbr.rel (%p389_p8) target bundleno = 343 (0x157), region = 73 }
  0x20   : > { %s1844_s10 = smul.u32 (!%p389_p8), 144, %s395_s7 }
  0x22   : > { %s2082_s21 = scalar_lea.vmem (!%p389_p8), [#allocation3], %s1844_s10 }
  0x24   : > { %v1886_v20 = vld [vmem:[%s2262_s1 + $0x8] sm:$0xff]   ;;  %v1887_v21 = vld [vmem:[%s2262_s1] sm:$0xff]   ;;  %vm454_vm0 = vcmask 261120   ;;  %v1954_v26 = vmov 0.0   ;;  %vm653_vm1 = vsmask.f32 3328 }
  0x25   : > { %1770 = vmatprep.subr.bf16.mxu0 %v1886_v20  ;;  %v1888_v22 = vld [vmem:[%s2262_s1 + $0x68] sm:$0xff]   ;;  %v1891_v23 = vld [vmem:[%s2262_s1 + $0x60] sm:$0xff]   ;;  %457 = vst.msk [vmem:[#allocation2 + $0x10] sm:$0xff] %vm454_vm0, %v1954_v26  ;;  %455 = vst.msk [vmem:[#allocation2] sm:$0xff] %vm454_vm0, %v1954_v26  ;;  %vm654_vm2 = vsmask.f32 7440 }
  0x26   : > { %1771 = vmatpush3.bf16.msra.mxu0 %v1886_v20  ;;  %1778 = vmatprep.subr.bf16.mxu1 %v1888_v22  ;;  %v1889_v24 = vld [vmem:[%s2082_s21] sm:$0xff]   ;;  %v1890_v25 = vld [vmem:[%s2082_s21 + $0xc] sm:$0xff]   ;;  %456 = vst.msk [vmem:[#allocation2 + $0x8] sm:$0xff] %vm454_vm0, %v1954_v26  ;;  %458 = vst.msk [vmem:[#allocation2 + $0x18] sm:$0xff] %vm454_vm0, %v1954_v26  ;;  %s2275_s17 = smov (!%p445_p9, %s1944_s17), 1  ;;  %vm1477_vm4 = vcmask 257024  }
  0x27   : > { %1772 = vmatprep.subr.bf16.mxu0 %v1887_v21  ;;  %1779 = vmatpush3.bf16.msra.mxu1 %v1888_v22  ;;  %v1892_v27 = vld [vmem:[%s2082_s21 + $0x18] sm:$0xff]   ;;  %v1894_v29 = vld [vmem:[%s2262_s1 + $0x20] sm:$0xff]   ;;  %v646_v32 = vld [vmem:[%s2082_s21 + $0x8] sm:$0x1]  ;;  %s1729_s8 = sshll.u32 %s2275_s17, 4 }
  0x28   : > { %1774 = vmatprep.mubr.msk.bf16.mxu0 %vm454_vm0, %v1889_v24  ;;  %1780 = vmatprep.subr.bf16.mxu1 %v1891_v23  ;;  %v1893_v28 = vld [vmem:[%s2262_s1 + $0x28] sm:$0xff]   ;;  %v644_v30 = vld [vmem:[%s2082_s21] sm:$0xf]  ;;  %v645_v31 = vld [vmem:[%s2082_s21 + $0x4] sm:$0xf]  ;;  %v676_v37 = vshll.u32 %v646_v32, 16  ;;  %s452_s11 = scalar_lea.vmem %s2265_s4, %s1729_s8 }
  0x29   : > { %1782 = vmatprep.mubr.msk.bf16.mxu1 %vm454_vm0, %v1890_v25  ;;  %v657_v33 = vshrl.u32 %v644_v30, 16  ;;  %v660_v34 = vshll.u32 %v644_v30, 16  ;;  %v666_v35 = vshll.u32 %v645_v31, 16  ;;  %v670_v36 = vshrl.u32 %v645_v31, 16  ;;  %v647_v38 = vld [vmem:[%s2082_s21 + $0xc] sm:$0xf]  ;;  %vm2115_vm3 = vmor %vm653_vm1, %vm654_vm2 }
  0x2a   : > { %1773 = vmatpush3.bf16.msra.mxu0 %v1887_v21  ;;  %v1895_v39 = vld [vmem:[%s2262_s1 + $0x88] sm:$0xff]   ;;  %v648_v42 = vld [vmem:[%s2082_s21 + $0x10] sm:$0xf]  ;;  %v649_v43 = vld [vmem:[%s2082_s21 + $0x14] sm:$0x1]  ;;  %v678_v46 = vrot.slane %v676_v37, 5 }
  0x2b   : > { %1781 = vmatpush3.bf16.msra.mxu1 %v1891_v23  ;;  %1786 = vmatprep.subr.bf16.mxu0 %v1893_v28  ;;  %v659_v40 = vrot.slane %v657_v33, 4  ;;  %v662_v41 = vrot.slane %v660_v34, 5  ;;  %v668_v44 = vrot.slane %v666_v35, 5  ;;  %v672_v45 = vrot.slane %v670_v36, 4  ;;  %v1896_v52 = vld [vmem:[%s2262_s1 + $0x80] sm:$0xff]   ;;  %v1897_v6 = vld [vmem:[%s2262_s1 + $0x18] sm:$0xff]  }
  0x2c   : > { %v681_v47 = vshrl.u32 %v647_v38, 16  ;;  %1794 = vmatprep.subr.bf16.mxu1 %v1895_v39  ;;  %v684_v49 = vshll.u32 %v647_v38, 16  ;;  %v690_v50 = vshll.u32 %v648_v42, 16  ;;  %v694_v51 = vshrl.u32 %v648_v42, 16  ;;  %v650_v61 = vld [vmem:[%s2082_s21 + $0x18] sm:$0xf] }
  0x2d   : > { %1775 = vmatmul.mubr.msk.bf16.vlgmr.msra.gmra.mxu0 %vm454_vm0, %v1890_v25  ;;  %v663_v48 = vor.u32 %v662_v41, %v659_v40  ;;  %v673_v54 = vor.u32 %v672_v45, %v668_v44  ;;  %v700_v56 = vshll.u32 %v649_v43, 16  ;;  %v651_v0 = vld [vmem:[%s2082_s21 + $0x1c] sm:$0xf]  ;;  %v652_v1 = vld [vmem:[%s2082_s21 + $0x20] sm:$0x1]  ;;  %v795_v5 = vshrl.u32 %v650_v61, 16 }
  0x2e   : > { %1787 = vmatpush3.bf16.msra.mxu0 %v1893_v28  ;;  %1783 = vmatmul.mubr.msk.bf16.vlgmr.msra.gmra.mxu1 %vm454_vm0, %v1892_v27  ;;  %v683_v55 = vrot.slane %v681_v47, 4  ;;  %v686_v58 = vrot.slane %v684_v49, 5  ;;  %v692_v59 = vrot.slane %v690_v50, 5  ;;  %v696_v60 = vrot.slane %v694_v51, 4  ;;  %v1899_v15 = vld [vmem:[%s2082_s21 + $0x24] sm:$0xff]   ;;  %v1900_v35 = vld [vmem:[%s2082_s21 + $0x30] sm:$0xff]  }
  0x2f   : > { %1788 = vmatprep.subr.bf16.mxu0 %v1894_v29  ;;  %1795 = vmatpush3.bf16.msra.mxu1 %v1895_v39  ;;  %v664_v57 = vrot.slane %v663_v48, 4  ;;  %v674_v62 = vrot.slane %v673_v54, 4  ;;  %v702_v63 = vrot.slane %v700_v56, 5  ;;  %v798_v8 = vshll.u32 %v650_v61, 16  ;;  %v1898_v26 = vld [vmem:[%s2262_s1 + $0x10] sm:$0xff]   ;;  %v1901_v27 = vld [vmem:[%s2262_s1 + $0x78] sm:$0xff]  }
  0x30   : > { %1796 = vmatprep.subr.bf16.mxu1 %v1896_v52  ;;  %v687_v3 = vor.u32 %v686_v58, %v683_v55  ;;  %v697_v4 = vor.u32 %v696_v60, %v692_v59  ;;  %v804_v9 = vshll.u32 %v651_v0, 16  ;;  %v808_v10 = vshrl.u32 %v651_v0, 16  ;;  %v1902_v32 = vld [vmem:[%s2262_s1 + $0x70] sm:$0xff]   ;;  %v1904_v34 = vld [vmem:[%s2262_s1 + $0x38] sm:$0xff]   ;;  %v1910_v51 = vld [vmem:[%s2262_s1 + $0x48] sm:$0xff]  }
  0x31   : > { %v669_v2 = vsel %vm2115_vm3, %v664_v57, %v668_v44  ;;  %v679_v7 = vsel %vm2115_vm3, %v674_v62, %v678_v46  ;;  %v797_v14 = vrot.slane %v795_v5, 4  ;;  %v800_v16 = vrot.slane %v798_v8, 5  ;;  %v1906_v36 = vld [vmem:[%s2082_s21 + $0x48] sm:$0xff]   ;;  %v1905_v37 = vld [vmem:[%s2262_s1 + $0x30] sm:$0xff]   ;;  %v1695_v50 = vld [vmem:[%s2082_s21 + $0x58] sm:$0xf] }
  0x32   : > { %1789 = vmatpush3.bf16.msra.mxu0 %v1894_v29  ;;  %v1637_v11 = vcombine.low %v669_v2, %v679_v7  ;;  %v688_v12 = vrot.slane %v687_v3, 4  ;;  %v698_v13 = vrot.slane %v697_v4, 4  ;;  %v806_v17 = vrot.slane %v804_v9, 5  ;;  %v1903_v38 = vld [vmem:[%s2082_s21 + $0x3c] sm:$0xff]   ;;  %v1691_v40 = vld [vmem:[%s2082_s21 + $0x48] sm:$0xf] }
  0x33   : > { %1797 = vmatpush3.bf16.msra.mxu1 %v1896_v52  ;;  %1802 = vmatprep.subr.bf16.mxu0 %v1897_v6  ;;  %v810_v18 = vrot.slane %v808_v10, 4  ;;  %v814_v19 = vshll.u32 %v652_v1, 16  ;;  %v801_v23 = vor.u32 %v800_v16, %v797_v14  ;;  %v1908_v39 = vld [vmem:[%s2262_s1 + $0x58] sm:$0xff]   ;;  %v1693_v42 = vld [vmem:[%s2082_s21 + $0x50] sm:$0x1]  ;;  %v1195_v43 = vshrl.u32 %v1691_v40, 16 }
  0x34   : > { %1790 = vmatprep.mubr.msk.bf16.mxu0 %vm454_vm0, %v1637_v11  ;;  %v693_v20 = vsel %vm2115_vm3, %v688_v12, %v692_v59  ;;  %v703_v21 = vsel %vm2115_vm3, %v698_v13, %v702_v63  ;;  %1810 = vmatprep.subr.bf16.mxu1 %v1901_v27  ;;  %v1692_v41 = vld [vmem:[%s2082_s21 + $0x4c] sm:$0xf]  ;;  %v1198_v44 = vshll.u32 %v1691_v40, 16  ;;  %v1909_v47 = vld [vmem:[%s2262_s1 + $0x50] sm:$0xff]   ;;  %v1214_v48 = vshll.u32 %v1693_v42, 16  ;;  %v1911_v9 = vld [vmem:[%s2262_s1 + $0x40] sm:$0xff]  }
  0x35   : > { %v1638_v22 = vcombine.low %v693_v20, %v703_v21  ;;  %v811_v24 = vor.u32 %v810_v18, %v806_v17  ;;  %v816_v25 = vrot.slane %v814_v19, 5  ;;  %v802_v28 = vrot.slane %v801_v23, 4  ;;  %v1694_v49 = vld [vmem:[%s2082_s21 + $0x54] sm:$0xf]  ;;  %v1696_v58 = vld [vmem:[%s2082_s21 + $0x5c] sm:$0x1] }
  0x36   : > { %v1204_v45 = vshll.u32 %v1692_v41, 16  ;;  %v1208_v46 = vshrl.u32 %v1692_v41, 16  ;;  %v1907_v52 = vld [vmem:[%s2082_s21 + $0x54] sm:$0xff]   ;;  %v1197_v54 = vrot.slane %v1195_v43, 4  ;;  %v1200_v55 = vrot.slane %v1198_v44, 5  ;;  %v1912_v11 = vld [vmem:[%s2082_s21 + $0x6c] sm:$0xff]  }
  0x37   : > { %1791 = vmatmul.mubr.msk.bf16.vlgmr.msra.gmra.mxu0 %vm454_vm0, %v1638_v22  ;;  %1798 = vmatprep.mubr.msk.bf16.mxu1 %vm454_vm0, %v1638_v22  ;;  %v812_v29 = vrot.slane %v811_v24, 4  ;;  %v807_v30 = vsel %vm2115_vm3, %v802_v28, %v806_v17  ;;  %v1216_v59 = vrot.slane %v1214_v48, 5  ;;  %v1219_v60 = vshrl.u32 %v1694_v49, 16  ;;  %v1913_v21 = vld [vmem:[%s2082_s21 + $0x78] sm:$0xff]   ;;  %v467_v23 = vld [vmem:[#allocation2 + $0x10] sm:$0xff] }
  0x38   : > { %1803 = vmatpush3.bf16.msra.mxu0 %v1897_v6  ;;  %1806 = vmatprep.mubr.msk.bf16.mxu0 %vm454_vm0, %v1899_v15  ;;  %v1206_v56 = vrot.slane %v1204_v45, 5  ;;  %v1210_v57 = vrot.slane %v1208_v46, 4  ;;  %v1222_v61 = vshll.u32 %v1694_v49, 16  ;;  %v1228_v62 = vshll.u32 %v1695_v50, 16  ;;  %v468_v28 = vld [vmem:[#allocation2 + $0x18] sm:$0xff]  ;;  %v466_v53 = vld [vmem:[#allocation2 + $0x8] sm:$0xff] }
  0x39   : > { %v817_v31 = vsel %vm2115_vm3, %v812_v29, %v816_v25  ;;  %1804 = vmatprep.subr.bf16.mxu0 %v1898_v26  ;;  %v1201_v63 = vor.u32 %v1200_v55, %v1197_v54  ;;  %v1232_v1 = vshrl.u32 %v1695_v50, 16  ;;  %v1238_v2 = vshll.u32 %v1696_v58, 16  ;;  %v465_v25 = vld [vmem:[#allocation2] sm:$0xff] }
  0x3a   : > { %v1647_v33 = vcombine.low %v807_v30, %v817_v31  ;;  %v1211_v0 = vor.u32 %v1210_v57, %v1206_v56  ;;  %v1221_v3 = vrot.slane %v1219_v60, 4  ;;  %v1224_v4 = vrot.slane %v1222_v61, 5 }
  0x3b   : > { %v1230_v5 = vrot.slane %v1228_v62, 5  ;;  %v1202_v6 = vrot.slane %v1201_v63, 4  ;;  %v1234_v8 = vrot.slane %v1232_v1, 4  ;;  %v1240_v15 = vrot.slane %v1238_v2, 5 }
  0x3c   : > { %1799 = vmatmul.mubr.msk.bf16.vlgmr.msra.gmra.mxu1 %vm454_vm0, %v1647_v33  ;;  %1805 = vmatpush3.bf16.msra.mxu0 %v1898_v26  ;;  %v1212_v7 = vrot.slane %v1211_v0, 4  ;;  %v1225_v10 = vor.u32 %v1224_v4, %v1221_v3 }
  0x3d   : > { %1811 = vmatpush3.bf16.msra.mxu1 %v1901_v27  ;;  %1814 = vmatprep.mubr.msk.bf16.mxu1 %vm454_vm0, %v1900_v35  ;;  %v1207_v12 = vsel %vm2115_vm3, %v1202_v6, %v1206_v56  ;;  %v1235_v14 = vor.u32 %v1234_v8, %v1230_v5 }
  0x3e   : > { %1812 = vmatprep.subr.bf16.mxu1 %v1902_v32  ;;  %1818 = vmatprep.subr.bf16.mxu0 %v1904_v34  ;;  %v1217_v13 = vsel %vm2115_vm3, %v1212_v7, %v1216_v59  ;;  %v1226_v17 = vrot.slane %v1225_v10, 4 }
  0x3f   : > { %1807 = vmatmul.mubr.msk.bf16.vlgmr.msra.gmra.mxu0 %vm454_vm0, %v1900_v35  ;;  %v1701_v16 = vcombine.low %v1207_v12, %v1217_v13  ;;  %v1236_v18 = vrot.slane %v1235_v14, 4 }
  0x40   : > { %1819 = vmatpush3.bf16.msra.mxu0 %v1904_v34  ;;  %1822 = vmatprep.mubr.msk.bf16.mxu0 %vm454_vm0, %v1906_v36  ;;  %v1231_v19 = vsel %vm2115_vm3, %v1226_v17, %v1230_v5 }
  0x41   : > { %1813 = vmatpush3.bf16.msra.mxu1 %v1902_v32  ;;  %1820 = vmatprep.subr.bf16.mxu0 %v1905_v37  ;;  %v1241_v20 = vsel %vm2115_vm3, %v1236_v18, %v1240_v15 }
  0x42   : > { %1826 = vmatprep.subr.bf16.mxu1 %v1908_v39  ;;  %v1702_v22 = vcombine.low %v1231_v19, %v1241_v20 }
  0x44   : > { %1815 = vmatmul.mubr.msk.bf16.vlgmr.msra.gmra.mxu1 %vm454_vm0, %v1903_v38  ;;  %1821 = vmatpush3.bf16.msra.mxu0 %v1905_v37 }
  0x45   : > { %1827 = vmatpush3.bf16.msra.mxu1 %v1908_v39  ;;  %1834 = vmatprep.subr.bf16.mxu0 %v1910_v51 }
  0x46   : > { %1828 = vmatprep.subr.bf16.mxu1 %v1909_v47  ;;  %1830 = vmatprep.mubr.msk.bf16.mxu1 %vm454_vm0, %v1701_v16 }
  0x47   : > { %1823 = vmatmul.mubr.msk.bf16.vlgmr.msra.gmra.mxu0 %vm454_vm0, %v1907_v52 }
  0x48   : > { %1835 = vmatpush3.bf16.msra.mxu0 %v1910_v51  ;;  %1838 = vmatprep.mubr.msk.bf16.mxu0 %vm454_vm0, %v1912_v11 }
  0x49   : > { %1829 = vmatpush3.bf16.msra.mxu1 %v1909_v47  ;;  %1836 = vmatprep.subr.bf16.mxu0 %v1911_v9 }
  0x4c   : > { %1837 = vmatpush3.bf16.msra.mxu0 %v1911_v9  ;;  %1831 = vmatmul.mubr.msk.bf16.vlgmr.msra.gmra.mxu1 %vm454_vm0, %v1702_v22 }
  0x4f   : > { %1839 = vmatmul.mubr.msk.bf16.vlgmr.msra.gmra.mxu0 %vm454_vm0, %v1913_v21 }
  0xed   : > { %v1776_v24 = vpop.f32.mrf.mxu0 }
  0xee   : > { %v552_v26 = vadd.f32 %v1776_v24, %v467_v23  ;;  %v1784_v31 = vpop.f32.mrf.mxu1 }
  0xef   : > { %v535_v27 = vpop.f32.mrf.mxu0 }
  0xf0   : > { %556 = vst.msk [vmem:[#allocation2 + $0x10] sm:$0xff] %vm454_vm0, %v552_v26  ;;  %v550_v29 = vadd.f32 %v535_v27, %v465_v25  ;;  %v621_v35 = vpop.f32.mrf.mxu1 }
  0xf1   : > { %v1777_v30 = vpop.f32.mrf.mxu0 }
  0xf2   : > { %554 = vst.msk [vmem:[#allocation2] sm:$0xff] %vm454_vm0, %v550_v29  ;;  %v553_v32 = vadd.f32 %v1777_v30, %v468_v28  ;;  %v1785_v39 = vpop.f32.mrf.mxu1 }
  0xf3   : > { %v538_v33 = vpop.f32.mrf.mxu0 }
  0xf4   : > { %557 = vst.msk [vmem:[#allocation2 + $0x18] sm:$0xff] %vm454_vm0, %v553_v32  ;;  %v551_v34 = vadd.f32 %v538_v33, %v466_v53  ;;  %v624_v45 = vpop.f32.mrf.mxu1 }
  0xf6   : > { %555 = vst.msk [vmem:[#allocation2 + $0x8] sm:$0xff] %vm454_vm0, %v551_v34 }
  0xf7   : > { %v560_v36 = vld [vmem:[#allocation2 + $0x10] sm:$0xff]  ;;  %v1792_v43 = vpop.f32.mrf.mxu0 }
  0xf8   : > { %v638_v37 = vadd.f32 %v1784_v31, %v560_v36 }
  0xf9   : > { %v558_v38 = vld [vmem:[#allocation2] sm:$0xff]  ;;  %v771_v47 = vpop.f32.mrf.mxu0 }
  0xfa   : > { %642 = vst.msk [vmem:[#allocation2 + $0x10] sm:$0xff] %vm454_vm0, %v638_v37  ;;  %v636_v40 = vadd.f32 %v621_v35, %v558_v38 }
  0xfb   : > { %v561_v41 = vld [vmem:[#allocation2 + $0x18] sm:$0xff]  ;;  %v1793_v51 = vpop.f32.mrf.mxu0 }
  0xfc   : > { %640 = vst.msk [vmem:[#allocation2] sm:$0xff] %vm454_vm0, %v636_v40  ;;  %v639_v42 = vadd.f32 %v1785_v39, %v561_v41  ;;  %v1800_v55 = vpop.f32.mrf.mxu1 }
  0xfd   : > { %v559_v44 = vld [vmem:[#allocation2 + $0x8] sm:$0xff]  ;;  %v774_v58 = vpop.f32.mrf.mxu0 }
  0xfe   : > { %643 = vst.msk [vmem:[#allocation2 + $0x18] sm:$0xff] %vm454_vm0, %v639_v42  ;;  %v637_v46 = vadd.f32 %v624_v45, %v559_v44  ;;  %v879_v60 = vpop.f32.mrf.mxu1 }
  0xff   : > { %v1808_v3 = vpop.f32.mrf.mxu0 }
 0x100   : > { %641 = vst.msk [vmem:[#allocation2 + $0x8] sm:$0xff] %vm454_vm0, %v637_v46  ;;  %v1801_v0 = vpop.f32.mrf.mxu1 }
 0x101   : > { %v706_v48 = vld [vmem:[#allocation2 + $0x10] sm:$0xff]  ;;  %v980_v8 = vpop.f32.mrf.mxu0 }
 0x102   : > { %v788_v49 = vadd.f32 %v1792_v43, %v706_v48  ;;  %v882_v6 = vpop.f32.mrf.mxu1 }
 0x103   : > { %v704_v50 = vld [vmem:[#allocation2] sm:$0xff]  ;;  %v1809_v12 = vpop.f32.mrf.mxu0 }
 0x104   : > { %792 = vst.msk [vmem:[#allocation2 + $0x10] sm:$0xff] %vm454_vm0, %v788_v49  ;;  %v786_v52 = vadd.f32 %v771_v47, %v704_v50  ;;  %v1816_v15 = vpop.f32.mrf.mxu1 }
 0x105   : > { %v707_v54 = vld [vmem:[#allocation2 + $0x18] sm:$0xff]  ;;  %v983_v18 = vpop.f32.mrf.mxu0 }
 0x106   : > { %790 = vst.msk [vmem:[#allocation2] sm:$0xff] %vm454_vm0, %v786_v52  ;;  %v789_v56 = vadd.f32 %v1793_v51, %v707_v54  ;;  %v1066_v20 = vpop.f32.mrf.mxu1 }
 0x107   : > { %v705_v57 = vld [vmem:[#allocation2 + $0x8] sm:$0xff]  ;;  %v1824_v27 = vpop.f32.mrf.mxu0 }
 0x108   : > { %793 = vst.msk [vmem:[#allocation2 + $0x18] sm:$0xff] %vm454_vm0, %v789_v56  ;;  %v787_v59 = vadd.f32 %v774_v58, %v705_v57  ;;  %v1817_v24 = vpop.f32.mrf.mxu1 }
 0x109   : > { %v1165_v53 = vpop.f32.mrf.mxu0 }
 0x10a   : > { %791 = vst.msk [vmem:[#allocation2 + $0x8] sm:$0xff] %vm454_vm0, %v787_v59  ;;  %v1069_v30 = vpop.f32.mrf.mxu1 }
 0x10b   : > { %v820_v61 = vld [vmem:[#allocation2 + $0x10] sm:$0xff]  ;;  %v1825_v35 = vpop.f32.mrf.mxu0 }
 0x10c   : > { %v896_v62 = vadd.f32 %v1800_v55, %v820_v61  ;;  %v1832_v38 = vpop.f32.mrf.mxu1 }
 0x10d   : > { %v818_v63 = vld [vmem:[#allocation2] sm:$0xff]  ;;  %v1168_v41 = vpop.f32.mrf.mxu0 }
 0x10e   : > { %900 = vst.msk [vmem:[#allocation2 + $0x10] sm:$0xff] %vm454_vm0, %v896_v62  ;;  %v894_v1 = vadd.f32 %v879_v60, %v818_v63  ;;  %v1309_v43 = vpop.f32.mrf.mxu1 }
 0x10f   : > { %v821_v2 = vld [vmem:[#allocation2 + $0x18] sm:$0xff]  ;;  %v1840_v50 = vpop.f32.mrf.mxu0 }
 0x110   : > { %898 = vst.msk [vmem:[#allocation2] sm:$0xff] %vm454_vm0, %v894_v1  ;;  %v897_v4 = vadd.f32 %v1801_v0, %v821_v2  ;;  %v1833_v47 = vpop.f32.mrf.mxu1 }
 0x111   : > { %v819_v5 = vld [vmem:[#allocation2 + $0x8] sm:$0xff]  ;;  %v1408_v56 = vpop.f32.mrf.mxu0 }
 0x112   : > { %901 = vst.msk [vmem:[#allocation2 + $0x18] sm:$0xff] %vm454_vm0, %v897_v4  ;;  %v895_v7 = vadd.f32 %v882_v6, %v819_v5  ;;  %v1312_v54 = vpop.f32.mrf.mxu1  ;;  %v1722_v5 = vld [vmem:[%s2264_s3] ss:$0 sm:$0xff] }
 0x113   : > { %v1841_v60 = vpop.f32.mrf.mxu0 }
 0x114   : > { %899 = vst.msk [vmem:[#allocation2 + $0x8] sm:$0xff] %vm454_vm0, %v895_v7 }
 0x115   : > { %v911_v9 = vld [vmem:[#allocation2 + $0x10] sm:$0xff]  ;;  %v1411_v1 = vpop.f32.mrf.mxu0 }
 0x116   : > { %v997_v10 = vadd.f32 %v1808_v3, %v911_v9  ;;  %v1721_v3 = vld [vmem:[%s2263_s2] ss:$0 sm:$0xff] }
 0x117   : > { %v909_v11 = vld [vmem:[#allocation2] sm:$0xff] }
 0x118   : > { %1001 = vst.msk [vmem:[#allocation2 + $0x10] sm:$0xff] %vm454_vm0, %v997_v10  ;;  %v995_v13 = vadd.f32 %v980_v8, %v909_v11 }
 0x119   : > { %v912_v14 = vld [vmem:[#allocation2 + $0x18] sm:$0xff] }
 0x11a   : > { %999 = vst.msk [vmem:[#allocation2] sm:$0xff] %vm454_vm0, %v995_v13  ;;  %v998_v16 = vadd.f32 %v1809_v12, %v912_v14 }
 0x11b   : > { %v910_v17 = vld [vmem:[#allocation2 + $0x8] sm:$0xff] }
 0x11c   : > { %1002 = vst.msk [vmem:[#allocation2 + $0x18] sm:$0xff] %vm454_vm0, %v998_v16  ;;  %v996_v19 = vadd.f32 %v983_v18, %v910_v17 }
 0x11e   : > { %1000 = vst.msk [vmem:[#allocation2 + $0x8] sm:$0xff] %vm454_vm0, %v996_v19 }
 0x11f   : > { %v1005_v21 = vld [vmem:[#allocation2 + $0x10] sm:$0xff] }
 0x120   : > { %v1083_v22 = vadd.f32 %v1816_v15, %v1005_v21 }
 0x121   : > { %v1003_v23 = vld [vmem:[#allocation2] sm:$0xff] }
 0x122   : > { %1087 = vst.msk [vmem:[#allocation2 + $0x10] sm:$0xff] %vm454_vm0, %v1083_v22  ;;  %v1081_v25 = vadd.f32 %v1066_v20, %v1003_v23 }
 0x123   : > { %v1006_v26 = vld [vmem:[#allocation2 + $0x18] sm:$0xff] }
 0x124   : > { %1085 = vst.msk [vmem:[#allocation2] sm:$0xff] %vm454_vm0, %v1081_v25  ;;  %v1084_v28 = vadd.f32 %v1817_v24, %v1006_v26 }
 0x125   : > { %v1004_v29 = vld [vmem:[#allocation2 + $0x8] sm:$0xff] }
 0x126   : > { %1088 = vst.msk [vmem:[#allocation2 + $0x18] sm:$0xff] %vm454_vm0, %v1084_v28  ;;  %v1082_v31 = vadd.f32 %v1069_v30, %v1004_v29 }
 0x128   : > { %1086 = vst.msk [vmem:[#allocation2 + $0x8] sm:$0xff] %vm454_vm0, %v1082_v31 }
 0x129   : > { %v1096_v32 = vld [vmem:[#allocation2 + $0x10] sm:$0xff] }
 0x12a   : > { %v1182_v33 = vadd.f32 %v1824_v27, %v1096_v32 }
 0x12b   : > { %v1094_v34 = vld [vmem:[#allocation2] sm:$0xff] }
 0x12c   : > { %1186 = vst.msk [vmem:[#allocation2 + $0x10] sm:$0xff] %vm454_vm0, %v1182_v33  ;;  %v1180_v36 = vadd.f32 %v1165_v53, %v1094_v34 }
 0x12d   : > { %v1097_v37 = vld [vmem:[#allocation2 + $0x18] sm:$0xff] }
 0x12e   : > { %1184 = vst.msk [vmem:[#allocation2] sm:$0xff] %vm454_vm0, %v1180_v36  ;;  %v1183_v39 = vadd.f32 %v1825_v35, %v1097_v37 }
 0x12f   : > { %v1095_v40 = vld [vmem:[#allocation2 + $0x8] sm:$0xff] }
 0x130   : > { %1187 = vst.msk [vmem:[#allocation2 + $0x18] sm:$0xff] %vm454_vm0, %v1183_v39  ;;  %v1181_v42 = vadd.f32 %v1168_v41, %v1095_v40 }
 0x132   : > { %1185 = vst.msk [vmem:[#allocation2 + $0x8] sm:$0xff] %vm454_vm0, %v1181_v42 }
 0x133   : > { %v1244_v44 = vld [vmem:[#allocation2 + $0x10] sm:$0xff] }
 0x134   : > { %v1326_v45 = vadd.f32 %v1832_v38, %v1244_v44 }
 0x135   : > { %v1242_v46 = vld [vmem:[#allocation2] sm:$0xff] }
 0x136   : > { %1330 = vst.msk [vmem:[#allocation2 + $0x10] sm:$0xff] %vm454_vm0, %v1326_v45  ;;  %v1324_v48 = vadd.f32 %v1309_v43, %v1242_v46 }
 0x137   : > { %v1245_v49 = vld [vmem:[#allocation2 + $0x18] sm:$0xff] }
 0x138   : > { %1328 = vst.msk [vmem:[#allocation2] sm:$0xff] %vm454_vm0, %v1324_v48  ;;  %v1327_v51 = vadd.f32 %v1833_v47, %v1245_v49 }
 0x139   : > { %v1243_v52 = vld [vmem:[#allocation2 + $0x8] sm:$0xff] }
 0x13a   : > { %1331 = vst.msk [vmem:[#allocation2 + $0x18] sm:$0xff] %vm454_vm0, %v1327_v51  ;;  %v1325_v55 = vadd.f32 %v1312_v54, %v1243_v52 }
 0x13c   : > { %1329 = vst.msk [vmem:[#allocation2 + $0x8] sm:$0xff] %vm454_vm0, %v1325_v55 }
 0x13d   : > { %v1339_v57 = vld [vmem:[#allocation2 + $0x10] sm:$0xff] }
 0x13e   : > { %v1425_v58 = vadd.f32 %v1840_v50, %v1339_v57 }
 0x13f   : > { %v1337_v59 = vld [vmem:[#allocation2] sm:$0xff] }
 0x140   : > { %1429 = vst.msk [vmem:[#allocation2 + $0x10] sm:$0xff] %vm454_vm0, %v1425_v58  ;;  %v1423_v61 = vadd.f32 %v1408_v56, %v1337_v59 }
 0x141   : > { %v1340_v62 = vld [vmem:[#allocation2 + $0x18] sm:$0xff] }
 0x142   : > { %1427 = vst.msk [vmem:[#allocation2] sm:$0xff] %vm454_vm0, %v1423_v61  ;;  %v1426_v63 = vadd.f32 %v1841_v60, %v1340_v62 }
 0x143   : > { %v1338_v0 = vld [vmem:[#allocation2 + $0x8] sm:$0xff] }
 0x144   : > { %1430 = vst.msk [vmem:[#allocation2 + $0x18] sm:$0xff] %vm454_vm0, %v1426_v63  ;;  %v1424_v2 = vadd.f32 %v1411_v1, %v1338_v0 }
 0x146   : > { %1428 = vst.msk [vmem:[#allocation2 + $0x8] sm:$0xff] %vm454_vm0, %v1424_v2 }
 0x147   : > { %v1433_v4 = vld [vmem:[#allocation2 + $0x10] sm:$0xff] }
 0x148   : > { %v1444_v6 = vmul.f32 %v1721_v3, %v1433_v4 }
 0x149   : > { %v1431_v7 = vld [vmem:[#allocation2] sm:$0xff] }
 0x14a   : > { %v1455_v8 = vadd.f32 %v1722_v5, %v1444_v6  ;;  %v1442_v9 = vmul.f32 %v1721_v3, %v1431_v7 }
 0x14b   : > { %v1434_v10 = vld [vmem:[#allocation2 + $0x18] sm:$0xff] }
 0x14c   : > { %v1459_v11 = vmax.f32 %v1455_v8, 0.0  ;;  %v1453_v12 = vadd.f32 %v1722_v5, %v1442_v9  ;;  %v1445_v13 = vmul.f32 %v1721_v3, %v1434_v10 }
 0x14d   : > { %v1432_v14 = vld [vmem:[#allocation2 + $0x8] sm:$0xff] }
 0x14e   : > { %v1732_v15 = vpack.c.bf16 %v1459_v11, %v1459_v11  ;;  %v1457_v16 = vmax.f32 %v1453_v12, 0.0  ;;  %v1456_v17 = vadd.f32 %v1722_v5, %v1445_v13  ;;  %v1443_v18 = vmul.f32 %v1721_v3, %v1432_v14 }
 0x150   : > { %1480 = vst.msk [vmem:[%s452_s11 + $0x8] sm:$0xf] %vm1477_vm4, %v1732_v15  ;;  %v1730_v19 = vpack.c.bf16 %v1457_v16, %v1457_v16  ;;  %v1460_v20 = vmax.f32 %v1456_v17, 0.0  ;;  %v1454_v21 = vadd.f32 %v1722_v5, %v1443_v18 }
 0x152   : > { %1478 = vst.msk [vmem:[%s452_s11] sm:$0xf] %vm1477_vm4, %v1730_v19  ;;  %v1733_v22 = vpack.c.bf16 %v1460_v20, %v1460_v20  ;;  %v1458_v23 = vmax.f32 %v1454_v21, 0.0 }
 0x154   : > { %1481 = vst.msk [vmem:[%s452_s11 + $0xc] sm:$0xf] %vm1477_vm4, %v1733_v22  ;;  %v1731_v24 = vpack.c.bf16 %v1458_v23, %v1458_v23 }
 0x156   : > { %1479 = vst.msk [vmem:[%s452_s11 + $0x4] sm:$0xf] %vm1477_vm4, %v1731_v24 }
 0x157 PF: > { %s14_s19 = sadd.s32 1, %s1952_s19   ;;  %s2268_s15 = smov %s1940_s16 }
 0x158   : > { %p11_p10 = scmp.ge.s32.totalorder %s14_s19, 4   ;;  %s2269_s16 = smov %s2015_s23 }
 0x159   : > { %s2270_s17 = smov %s1948_s18  ;;  %s2271_s18 = smov %s2273_s20 }
 0x15a   :  { %13 = sbr.rel (!%p11_p10) target bundleno = 3 (0x3), region = 132 }

// kernel: _lambda_.25
= control target key start
LH: loop header
LB: loop body
LE: loop exit
PB: predicated region body
PF: predicated region fallthrough
CT: control target
= control target key end

     0   :  { %v266_v0 = vmov 0.0   ;;  %vm267_vm0 = vmmov 0   ;;  %vm53_vm1 = vcmask 261120   ;;  %vm213_vm2 = vcmask 519168   ;;  %s349_s1 = inlined_call_operand.vmem [shape: bf16[32,64], index: 1, kind: input, shape index: {}]   ;;  %s350_s5 = inlined_call_operand.vmem [shape: bf16[32,64], index: 5, kind: input, shape index: {}]   ;;  %s351_s0 = inlined_call_operand.vmem [shape: bf16[16,32], index: 0, kind: input, shape index: {}]   ;;  %s352_s4 = inlined_call_operand.vmem [shape: bf16[16,32], index: 4, kind: input, shape index: {}]   ;;  %s353_s2 = inlined_call_operand.vmem [shape: f32[1,64], index: 2, kind: input, shape index: {}]   ;;  %s354_s6 = inlined_call_operand.vmem [shape: f32[1,64], index: 6, kind: input, shape index: {}]   ;;  %s355_s3 = inlined_call_operand.vmem [shape: f32[1,64], index: 3, kind: input, shape index: {}]   ;;  %s356_s7 = inlined_call_operand.vmem [shape: f32[1,64], index: 7, kind: input, shape index: {}]   ;;  %s357_s8 = inlined_call_operand.vmem [shape: bf16[16,64], index: 8, kind: output, shape index: {}]  }
   0x1   :  { %242 = vmatprep.subr.bf16.mxu0 %v266_v0  ;;  %250 = vmatprep.subr.bf16.mxu1 %v266_v0  ;;  %v260_v1 = vld [vmem:[%s349_s1 + $0x8] sm:$0xff]   ;;  %v262_v3 = vld [vmem:[%s349_s1] sm:$0xff]  }
   0x2   :  { %v261_v2 = vld [vmem:[%s350_s5 + $0x8] sm:$0xff]   ;;  %246 = vmatprep.mubr.msk.bf16.mxu0 %vm267_vm0, %v266_v0  ;;  %254 = vmatprep.mubr.msk.bf16.mxu1 %vm267_vm0, %v266_v0  ;;  %v263_v4 = vld [vmem:[%s350_s5] sm:$0xff]  }
   0x3   :  { %243 = vmatpush3.bf16.msra.mxu0 %v260_v1  ;;  %251 = vmatpush3.bf16.msra.mxu1 %v261_v2  ;;  %v264_v5 = vld [vmem:[%s351_s0] sm:$0xff]  }
   0x4   :  { %244 = vmatprep.subr.bf16.mxu0 %v266_v0  ;;  %252 = vmatprep.subr.bf16.mxu1 %v266_v0  ;;  %v265_v6 = vld [vmem:[%s352_s4] sm:$0xff]  }
   0x5   :  { %v224_v7 = vld [vmem:[%s353_s2] ss:$0 sm:$0xff] }
   0x6   :  { %v230_v8 = vld [vmem:[%s354_s6] ss:$0 sm:$0xff] }
   0x7   :  { %245 = vmatpush3.bf16.msra.mxu0 %v262_v3  ;;  %253 = vmatpush3.bf16.msra.mxu1 %v263_v4  ;;  %v225_v10 = vld [vmem:[%s355_s3] ss:$0 sm:$0xff] }
   0x8   :  { %v231_v17 = vld [vmem:[%s356_s7] ss:$0 sm:$0xff] }
   0xa   :  { %247 = vmatmul.mubr.msk.bf16.vlgmr.msra.gmra.mxu0 %vm53_vm1, %v264_v5  ;;  %255 = vmatmul.mubr.msk.bf16.vlgmr.msra.gmra.mxu1 %vm53_vm1, %v265_v6 }
  0xca   :  { %v91_v9 = vpop.f32.mrf.mxu0  ;;  %v176_v12 = vpop.f32.mrf.mxu1 }
  0xcb   :  { %v105_v11 = vmul.f32 %v224_v7, %v91_v9  ;;  %v190_v13 = vmul.f32 %v230_v8, %v176_v12 }
  0xcc   :  { %v248_v14 = vpop.f32.mrf.mxu0  ;;  %v256_v16 = vpop.f32.mrf.mxu1 }
  0xcd   :  { %v114_v15 = vadd.f32 %v225_v10, %v105_v11 }
  0xce   :  { %v94_v18 = vpop.f32.mrf.mxu0  ;;  %v179_v21 = vpop.f32.mrf.mxu1 }
  0xcf   :  { %v192_v19 = vadd.f32 %v190_v13, %v114_v15  ;;  %v106_v20 = vmul.f32 %v224_v7, %v94_v18  ;;  %v191_v25 = vmul.f32 %v230_v8, %v179_v21 }
  0xd0   :  { %v249_v22 = vpop.f32.mrf.mxu0  ;;  %v257_v26 = vpop.f32.mrf.mxu1 }
  0xd1   :  { %v201_v23 = vadd.f32 %v231_v17, %v192_v19  ;;  %v115_v24 = vadd.f32 %v225_v10, %v106_v20 }
  0xd3   :  { %v203_v27 = vmax.f32 %v201_v23, 0.0  ;;  %v193_v28 = vadd.f32 %v191_v25, %v115_v24 }
  0xd5   :  { %v234_v29 = vpack.c.bf16 %v203_v27, %v203_v27  ;;  %v202_v30 = vadd.f32 %v231_v17, %v193_v28 }
  0xd7   :  { %214 = vst.msk [vmem:[%s357_s8] sm:$0xf] %vm213_vm2, %v234_v29  ;;  %v204_v31 = vmax.f32 %v202_v30, 0.0 }
  0xd9   :  { %v235_v32 = vpack.c.bf16 %v204_v31, %v204_v31 }
  0xdb   :  { %215 = vst.msk [vmem:[%s357_s8 + $0x4] sm:$0xf] %vm213_vm2, %v235_v32 }

// kernel: _lambda_.28
= control target key start
LH: loop header
LB: loop body
LE: loop exit
PB: predicated region body
PF: predicated region fallthrough
CT: control target
= control target key end

     0   :  { %v322_v0 = vmov 0.0   ;;  %vm323_vm0 = vmmov 0   ;;  %vm69_vm1 = vcmask 523264   ;;  %s414_s1 = inlined_call_operand.vmem [shape: bf16[64,128], index: 1, kind: input, shape index: {}]   ;;  %s415_s5 = inlined_call_operand.vmem [shape: bf16[64,128], index: 5, kind: input, shape index: {}]   ;;  %s416_s0 = inlined_call_operand.vmem [shape: bf16[16,64], index: 0, kind: input, shape index: {}]   ;;  %s417_s4 = inlined_call_operand.vmem [shape: bf16[16,64], index: 4, kind: input, shape index: {}]   ;;  %s418_s2 = inlined_call_operand.vmem [shape: f32[1,128], index: 2, kind: input, shape index: {}]   ;;  %s419_s6 = inlined_call_operand.vmem [shape: f32[1,128], index: 6, kind: input, shape index: {}]   ;;  %s420_s3 = inlined_call_operand.vmem [shape: f32[1,128], index: 3, kind: input, shape index: {}]   ;;  %s421_s7 = inlined_call_operand.vmem [shape: f32[1,128], index: 7, kind: input, shape index: {}]   ;;  %s422_s8 = inlined_call_operand.vmem [shape: bf16[16,128], index: 8, kind: output, shape index: {}]  }
   0x1   :  { %286 = vmatprep.subr.bf16.mxu0 %v322_v0  ;;  %298 = vmatprep.subr.bf16.mxu1 %v322_v0  ;;  %v312_v1 = vld [vmem:[%s414_s1 + $0x18] sm:$0xff]   ;;  %v314_v3 = vld [vmem:[%s414_s1 + $0x10] sm:$0xff]   ;;  %v316_v5 = vld [vmem:[%s414_s1 + $0x8] sm:$0xff]  }
   0x2   :  { %v313_v2 = vld [vmem:[%s415_s5 + $0x18] sm:$0xff]   ;;  %294 = vmatprep.mubr.msk.bf16.mxu0 %vm323_vm0, %v322_v0  ;;  %306 = vmatprep.mubr.msk.bf16.mxu1 %vm323_vm0, %v322_v0  ;;  %v315_v4 = vld [vmem:[%s415_s5 + $0x10] sm:$0xff]   ;;  %v317_v6 = vld [vmem:[%s415_s5 + $0x8] sm:$0xff]  }
   0x3   :  { %287 = vmatpush3.bf16.msra.mxu0 %v312_v1  ;;  %299 = vmatpush3.bf16.msra.mxu1 %v313_v2  ;;  %v318_v7 = vld [vmem:[%s414_s1] sm:$0xff]  }
   0x4   :  { %288 = vmatprep.subr.bf16.mxu0 %v322_v0  ;;  %300 = vmatprep.subr.bf16.mxu1 %v322_v0  ;;  %v319_v8 = vld [vmem:[%s415_s5] sm:$0xff]  }
   0x5   :  { %v320_v9 = vld [vmem:[%s416_s0] sm:$0xff]  }
   0x6   :  { %v321_v10 = vld [vmem:[%s417_s4] sm:$0xff]  }
   0x7   :  { %289 = vmatpush3.bf16.msra.mxu0 %v314_v3  ;;  %301 = vmatpush3.bf16.msra.mxu1 %v315_v4  ;;  %v257_v11 = vld [vmem:[%s418_s2] ss:$0 sm:$0xff] }
   0x8   :  { %290 = vmatprep.subr.bf16.mxu0 %v322_v0  ;;  %302 = vmatprep.subr.bf16.mxu1 %v322_v0  ;;  %v265_v12 = vld [vmem:[%s419_s6] ss:$0 sm:$0xff] }
   0x9   :  { %v258_v14 = vld [vmem:[%s420_s3] ss:$0 sm:$0xff] }
   0xa   :  { %v266_v25 = vld [vmem:[%s421_s7] ss:$0 sm:$0xff] }
   0xb   :  { %291 = vmatpush3.bf16.msra.mxu0 %v316_v5  ;;  %303 = vmatpush3.bf16.msra.mxu1 %v317_v6 }
   0xc   :  { %292 = vmatprep.subr.bf16.mxu0 %v322_v0  ;;  %304 = vmatprep.subr.bf16.mxu1 %v322_v0 }
   0xf   :  { %293 = vmatpush3.bf16.msra.mxu0 %v318_v7  ;;  %305 = vmatpush3.bf16.msra.mxu1 %v319_v8 }
  0x12   :  { %295 = vmatmul.mubr.msk.bf16.vlgmr.msra.gmra.mxu0 %vm69_vm1, %v320_v9  ;;  %307 = vmatmul.mubr.msk.bf16.vlgmr.msra.gmra.mxu1 %vm69_vm1, %v321_v10 }
  0xd2   :  { %v107_v13 = vpop.f32.mrf.mxu0  ;;  %v208_v16 = vpop.f32.mrf.mxu1 }
  0xd3   :  { %v121_v15 = vmul.f32 %v257_v11, %v107_v13  ;;  %v222_v17 = vmul.f32 %v265_v12, %v208_v16 }
  0xd4   :  { %v296_v18 = vpop.f32.mrf.mxu0  ;;  %v308_v20 = vpop.f32.mrf.mxu1 }
  0xd5   :  { %v130_v19 = vadd.f32 %v258_v14, %v121_v15 }
  0xd6   :  { %v110_v21 = vpop.f32.mrf.mxu0  ;;  %v211_v24 = vpop.f32.mrf.mxu1 }
  0xd7   :  { %v224_v22 = vadd.f32 %v222_v17, %v130_v19  ;;  %v122_v23 = vmul.f32 %v257_v11, %v110_v21  ;;  %v223_v28 = vmul.f32 %v265_v12, %v211_v24 }
  0xd8   :  { %v297_v26 = vpop.f32.mrf.mxu0  ;;  %v309_v29 = vpop.f32.mrf.mxu1 }
  0xd9   :  { %v131_v27 = vadd.f32 %v258_v14, %v122_v23  ;;  %v233_v30 = vadd.f32 %v266_v25, %v224_v22 }
  0xdb   :  { %v225_v31 = vadd.f32 %v223_v28, %v131_v27  ;;  %v235_v33 = vmax.f32 %v233_v30, 0.0 }
  0xdd   :  { %v234_v32 = vadd.f32 %v266_v25, %v225_v31 }
  0xdf   :  { %v236_v34 = vmax.f32 %v234_v32, 0.0 }
  0xe1   :  { %v274_v35 = vpack.c.bf16 %v236_v34, %v235_v33 }
  0xe3   :  { %275 = vst [vmem:[%s422_s8] sm:$0xff] %v274_v35  }

// kernel: _lambda_.27
= control target key start
LH: loop header
LB: loop body
LE: loop exit
PB: predicated region body
PF: predicated region fallthrough
CT: control target
= control target key end

     0   :  { %s1893_s15 = smov 0   ;;  %s1895_s16 = smov 0   ;;  %s2175_s0 = inlined_call_operand.vmem [shape: bf16[4,2,2,17,64], index: 0, kind: input, shape index: {}]   ;;  %s2176_s1 = inlined_call_operand.vmem [shape: bf16[9,1,64,64], index: 1, kind: input, shape index: {}]   ;;  %s2177_s2 = inlined_call_operand.vmem [shape: f32[1,64], index: 2, kind: input, shape index: {}]   ;;  %s2178_s3 = inlined_call_operand.vmem [shape: f32[1,64], index: 3, kind: input, shape index: {}]   ;;  %s2179_s4 = inlined_call_operand.vmem [shape: bf16[2,16,64], index: 4, kind: output, shape index: {}]  }
   0x1   :  { %s1897_s17 = smov 0   ;;  %s1899_s18 = smov 0  }
   0x2   :  { %s1901_s19 = smov 0  }
   0x3 LB: > { %s26_s20 = sadd.s32 1, %s1860_s18  ;;  %p42_p1 = scmp.ne.s32.totalorder %s1852_s16, %s1848_s15  ;;  %s1864_s19 = sphi %s1901_s19, %s14_s19   ;;  %s1860_s18 = sphi %s1899_s18, %s2183_s18   ;;  %s1856_s17 = sphi %s1897_s17, %s2182_s17   ;;  %s1852_s16 = sphi %s1895_s16, %s2181_s16   ;;  %s1848_s15 = sphi %s1893_s15, %s2180_s15  }
   0x4   : > { %p28_p0 = scmp.ge.s32.totalorder %s26_s20, 2  ;;  %p43_p2 = scmp.eq.s32.totalorder %s1864_s19, 0 }
   0x5   : > { %s35_s22 = sadd.s32 1, %s1852_s16  ;;  %p1434_p5 = scmp.ge.s32.totalorder %s1864_s19, 2 }
   0x6   : > { %s2185_s20 = smov (%p28_p0, %s26_s20), 0  ;;  %p44_p3 = por %p43_p2, %p42_p1 }
   0x7   : > { %s30_s21 = ssub.s32 %s1860_s18, %s2185_s20  ;;  %194 = sbr.rel (%p1434_p5) target bundleno = 23 (0x17), region = 28 }
   0x8   : > { %p33_p4 = scmp.eq.s32.totalorder %s30_s21, 0 }
   0xa   : > { %s1928_s23 = scalar_select %p33_p4, %s1852_s16, %s35_s22  }
   0xc   : > { %197 = sbr.rel (!%p44_p3) target bundleno = 23 (0x17), region = 32  ;;  %s199_s24 = sand.u32 (%p44_p3), 1, %s1852_s16  }
   0xd   : > { %s1734_s25 = smul.u32 (%p44_p3), 24, %s1860_s18 }
   0xe   : > { %s1733_s26 = smul.u32 (%p44_p3), 96, %s199_s24 }
   0xf   : > { %s205_s29 = scalar_lea.vmem (%p44_p3), %s2175_s0, %s1734_s25 }
  0x10   : > { %v222_v0 = vld [vmem:[%s205_s29] sm:$0xff] (%p44_p3)   ;;  %v226_v1 = vld [vmem:[%s205_s29 + $0x8] sm:$0xff] (%p44_p3)   ;;  %v230_v2 = vld [vmem:[%s205_s29 + $0x10] sm:$0xff] (%p44_p3)   ;;  %s201_s30 = scalar_lea.vmem (%p44_p3), [#allocation3], %s1733_s26 }
  0x11   : > { %223 = vst [vmem:[%s201_s30] sm:$0xff] %v222_v0   ;;  %227 = vst [vmem:[%s201_s30 + $0x8] sm:$0xff] %v226_v1   ;;  %v234_v3 = vld [vmem:[%s205_s29 + $0x30] sm:$0xff]   ;;  %v238_v4 = vld [vmem:[%s205_s29 + $0x38] sm:$0xff]  }
  0x12   : > { %231 = vst [vmem:[%s201_s30 + $0x10] sm:$0xff] %v230_v2   ;;  %v242_v5 = vld [vmem:[%s205_s29 + $0x40] sm:$0xff]   ;;  %235 = vst [vmem:[%s201_s30 + $0x18] sm:$0xff] %v234_v3   ;;  %v250_v7 = vld [vmem:[%s205_s29 + $0x68] sm:$0xff]  }
  0x13   : > { %239 = vst [vmem:[%s201_s30 + $0x20] sm:$0xff] %v238_v4   ;;  %243 = vst [vmem:[%s201_s30 + $0x28] sm:$0xff] %v242_v5   ;;  %v246_v6 = vld [vmem:[%s205_s29 + $0x60] sm:$0xff]   ;;  %v254_v8 = vld [vmem:[%s205_s29 + $0x70] sm:$0xff]  }
  0x14   : > { %247 = vst [vmem:[%s201_s30 + $0x30] sm:$0xff] %v246_v6   ;;  %251 = vst [vmem:[%s201_s30 + $0x38] sm:$0xff] %v250_v7   ;;  %v258_v9 = vld [vmem:[%s205_s29 + $0x90] sm:$0xff]   ;;  %v262_v10 = vld [vmem:[%s205_s29 + $0x98] sm:$0xff]  }
  0x15   : > { %255 = vst [vmem:[%s201_s30 + $0x40] sm:$0xff] %v254_v8   ;;  %v266_v11 = vld [vmem:[%s205_s29 + $0xa0] sm:$0xff]   ;;  %259 = vst [vmem:[%s201_s30 + $0x48] sm:$0xff] %v258_v9  }
  0x16   : > { %263 = vst [vmem:[%s201_s30 + $0x50] sm:$0xff] %v262_v10   ;;  %267 = vst [vmem:[%s201_s30 + $0x58] sm:$0xff] %v266_v11  }
  0x17 PF: > { %p1436_p6 = scmp.ge.s32.totalorder %s1864_s19, 1  ;;  %p340_p7 = scmp.lt.s32.totalorder %s1864_s19, 3 }
  0x19   : > { %p341_p8 = pnand %p1436_p6, %p340_p7 }
  0x1a   : > { %s347_s11 = sand.u32 (!%p341_p8), 1, %s1848_s15   ;;  %p397_p9 = scmp.lt.s32.totalorder (!%p341_p8), %s1856_s17, 1 }
  0x1b   : > { %344 = sbr.rel (%p341_p8) target bundleno = 345 (0x159), region = 73 }
  0x1c   : > { %s1735_s12 = smul.u32 (!%p341_p8), 96, %s347_s11 }
  0x1e   : > { %s1967_s22 = scalar_lea.vmem (!%p341_p8), [#allocation3], %s1735_s12 }
  0x20   : > { %v1778_v12 = vld [vmem:[%s2176_s1 + $0x18] sm:$0xff]   ;;  %v1866_v13 = vmov 0.0   ;;  %v1779_v14 = vld [vmem:[%s2176_s1 + $0x10] sm:$0xff]   ;;  %vm1867_vm0 = vmmov 0   ;;  %vm406_vm1 = vcmask 523264   ;;  %v1781_v17 = vld [vmem:[%s2176_s1 + $0x8] sm:$0xff]  }
  0x21   : > { %1625 = vmatprep.subr.bf16.mxu0 %v1866_v13  ;;  %1637 = vmatprep.subr.bf16.mxu1 %v1866_v13  ;;  %v1780_v15 = vld [vmem:[%s2176_s1 + $0xd8] sm:$0xff]   ;;  %v1782_v16 = vld [vmem:[%s2176_s1 + $0xd0] sm:$0xff]   ;;  %407 = vst.msk [vmem:[#allocation2] sm:$0xff] %vm406_vm1, %v1866_v13  ;;  %408 = vst.msk [vmem:[#allocation2 + $0x8] sm:$0xff] %vm406_vm1, %v1866_v13  ;;  %vm613_vm2 = vsmask.f32 7424 }
  0x22   : > { %1626 = vmatpush3.bf16.msra.mxu0 %v1778_v12  ;;  %1633 = vmatprep.mubr.msk.bf16.mxu0 %vm1867_vm0, %v1866_v13  ;;  %v1784_v18 = vld [vmem:[%s2176_s1 + $0xc8] sm:$0xff]   ;;  %v1783_v19 = vld [vmem:[%s2176_s1] sm:$0xff]   ;;  %v1785_v20 = vld [vmem:[%s1967_s22] sm:$0xff]   ;;  %s2187_s17 = smov (!%p397_p9, %s1856_s17), 1  ;;  %vm1300_vm3 = vcmask 519168  }
  0x23   : > { %1627 = vmatprep.subr.bf16.mxu0 %v1866_v13  ;;  %1645 = vmatprep.mubr.msk.bf16.mxu1 %vm1867_vm0, %v1866_v13  ;;  %v1786_v21 = vld [vmem:[%s2176_s1 + $0xc0] sm:$0xff]   ;;  %v1787_v22 = vld [vmem:[%s2176_s1 + $0x58] sm:$0xff]   ;;  %v1794_v25 = vld [vmem:[%s1967_s22] sm:$0xff]   ;;  %s1577_s6 = sshll.u32 %s2187_s17, 3 }
  0x24   : > { %1638 = vmatpush3.bf16.msra.mxu1 %v1780_v15  ;;  %v1788_v23 = vld [vmem:[%s1967_s22 + $0xc] sm:$0xff]   ;;  %v1795_v26 = vld [vmem:[%s1967_s22 + $0x8] ss:$0 sps:$4 sm:$0x11]   ;;  %v1789_v27 = vld [vmem:[%s2176_s1 + $0x50] sm:$0xff]   ;;  %v617_v29 = vshll.u32 %v1794_v25, 16  ;;  %s404_s9 = scalar_lea.vmem %s2179_s4, %s1577_s6 }
  0x25   : > { %1639 = vmatprep.subr.bf16.mxu1 %v1866_v13  ;;  %v1791_v24 = vld [vmem:[%s2176_s1 + $0x118] sm:$0xff]   ;;  %v1793_v28 = vld [vmem:[%s2176_s1 + $0x110] sm:$0xff]   ;;  %v1790_v30 = vld [vmem:[%s2176_s1 + $0x48] sm:$0xff]   ;;  %v615_v31 = vshrl.u32 %v1794_v25, 16  ;;  %v622_v33 = vshll.u32 %v1795_v26, 16 }
  0x26   : > { %1628 = vmatpush3.bf16.msra.mxu0 %v1779_v14  ;;  %v619_v32 = vrot.slane %v617_v29, 1  ;;  %v1800_v34 = vld [vmem:[%s1967_s22 + $0xc] sm:$0xff]   ;;  %v1801_v35 = vld [vmem:[%s1967_s22 + $0x14] ss:$0 sps:$4 sm:$0x11]   ;;  %v1796_v37 = vld [vmem:[%s2176_s1 + $0x108] sm:$0xff]  }
  0x27   : > { %1629 = vmatprep.subr.bf16.mxu0 %v1866_v13  ;;  %v1792_v36 = vld [vmem:[%s2176_s1 + $0x40] sm:$0xff]   ;;  %v624_v38 = vrot.slane %v622_v33, 1  ;;  %v718_v39 = vshrl.u32 %v1800_v34, 16  ;;  %v720_v40 = vshll.u32 %v1800_v34, 16  ;;  %v725_v41 = vshll.u32 %v1801_v35, 16  ;;  %v1797_v48 = vld [vmem:[%s2176_s1 + $0x38] sm:$0xff]  }
  0x28   : > { %1640 = vmatpush3.bf16.msra.mxu1 %v1782_v16  ;;  %v620_v42 = vor.u32 %v619_v32, %v615_v31  ;;  %v1798_v43 = vld [vmem:[%s2176_s1 + $0x100] sm:$0xff]   ;;  %v1803_v50 = vld [vmem:[%s2176_s1 + $0xf8] sm:$0xff]   ;;  %v1799_v51 = vld [vmem:[%s2176_s1 + $0x30] sm:$0xff]  }
  0x29   : > { %1641 = vmatprep.subr.bf16.mxu1 %v1866_v13  ;;  %v722_v44 = vrot.slane %v720_v40, 1  ;;  %v727_v45 = vrot.slane %v725_v41, 1  ;;  %v1805_v52 = vld [vmem:[%s2176_s1 + $0xf0] sm:$0xff]   ;;  %v1802_v53 = vld [vmem:[%s2176_s1 + $0x28] sm:$0xff]   ;;  %v1804_v55 = vld [vmem:[%s2176_s1 + $0x20] sm:$0xff]  }
  0x2a   : > { %1630 = vmatpush3.bf16.msra.mxu0 %v1781_v17  ;;  %v625_v47 = vsel %vm613_vm2, %v620_v42, %v624_v38  ;;  %v1807_v54 = vld [vmem:[%s2176_s1 + $0xe8] sm:$0xff]   ;;  %v1809_v56 = vld [vmem:[%s2176_s1 + $0xe0] sm:$0xff]   ;;  %v1808_v58 = vld [vmem:[%s2176_s1 + $0x78] sm:$0xff]  }
  0x2b   : > { %1631 = vmatprep.subr.bf16.mxu0 %v1866_v13  ;;  %v723_v46 = vor.u32 %v722_v44, %v718_v39  ;;  %v1806_v57 = vld [vmem:[%s1967_s22 + $0x18] sm:$0xff]   ;;  %v1811_v59 = vld [vmem:[%s1967_s22 + $0x24] sm:$0xff]   ;;  %v1821_v61 = vld [vmem:[%s1967_s22 + $0x30] sm:$0xff]  }
  0x2c   : > { %1642 = vmatpush3.bf16.msra.mxu1 %v1784_v18  ;;  %v1813_v60 = vld [vmem:[%s2176_s1 + $0xb8] sm:$0xff]   ;;  %v1810_v62 = vld [vmem:[%s2176_s1 + $0x70] sm:$0xff]   ;;  %v1822_v0 = vld [vmem:[%s1967_s22 + $0x38] ss:$0 sps:$4 sm:$0x11]   ;;  %v1098_v1 = vshll.u32 %v1821_v61, 16 }
  0x2d   : > { %1643 = vmatprep.subr.bf16.mxu1 %v1866_v13  ;;  %v728_v49 = vsel %vm613_vm2, %v723_v46, %v727_v45  ;;  %v1815_v63 = vld [vmem:[%s2176_s1 + $0xb0] sm:$0xff]   ;;  %v1812_v2 = vld [vmem:[%s2176_s1 + $0x68] sm:$0xff]   ;;  %v1096_v4 = vshrl.u32 %v1821_v61, 16  ;;  %v1103_v6 = vshll.u32 %v1822_v0, 16  ;;  %v1814_v7 = vld [vmem:[%s2176_s1 + $0x60] sm:$0xff]  }
  0x2e   : > { %1632 = vmatpush3.bf16.msra.mxu0 %v1783_v19  ;;  %v1817_v3 = vld [vmem:[%s2176_s1 + $0xa8] sm:$0xff]   ;;  %v1100_v5 = vrot.slane %v1098_v1, 1  ;;  %v1819_v8 = vld [vmem:[%s2176_s1 + $0xa0] sm:$0xff]   ;;  %v1818_v12 = vld [vmem:[%s2176_s1 + $0x98] sm:$0xff]  }
  0x2f   : > { %1649 = vmatprep.subr.bf16.mxu0 %v1866_v13  ;;  %v1105_v10 = vrot.slane %v1103_v6, 1  ;;  %v1816_v11 = vld [vmem:[%s1967_s22 + $0x30] sm:$0xff]   ;;  %v1820_v15 = vld [vmem:[%s2176_s1 + $0x90] sm:$0xff]   ;;  %v1823_v16 = vld [vmem:[%s2176_s1 + $0x88] sm:$0xff]  }
  0x30   : > { %1644 = vmatpush3.bf16.msra.mxu1 %v1786_v21  ;;  %v1101_v9 = vor.u32 %v1100_v5, %v1096_v4  ;;  %v1824_v17 = vld [vmem:[%s2176_s1 + $0x80] sm:$0xff]   ;;  %v1825_v18 = vld [vmem:[%s1967_s22 + $0x48] sm:$0xff]  }
  0x31   : > { %1634 = vmatmul.mubr.msk.bf16.vlgmr.msra.gmra.mxu0 %vm406_vm1, %v1785_v20  ;;  %1661 = vmatprep.subr.bf16.mxu1 %v1866_v13  ;;  %v413_v19 = vld [vmem:[#allocation2] sm:$0xff] }
  0x32   : > { %1650 = vmatpush3.bf16.msra.mxu0 %v1787_v22  ;;  %1657 = vmatprep.mubr.msk.bf16.mxu0 %vm1867_vm0, %v1866_v13  ;;  %v1106_v14 = vsel %vm613_vm2, %v1101_v9, %v1105_v10 }
  0x33   : > { %1646 = vmatmul.mubr.msk.bf16.vlgmr.msra.gmra.mxu1 %vm406_vm1, %v1788_v23  ;;  %1651 = vmatprep.subr.bf16.mxu0 %v1866_v13  ;;  %v414_v23 = vld [vmem:[#allocation2 + $0x8] sm:$0xff] }
  0x34   : > { %1662 = vmatpush3.bf16.msra.mxu1 %v1791_v24  ;;  %1669 = vmatprep.mubr.msk.bf16.mxu1 %vm1867_vm0, %v1866_v13 }
  0x35   : > { %1663 = vmatprep.subr.bf16.mxu1 %v1866_v13 }
  0x36   : > { %1652 = vmatpush3.bf16.msra.mxu0 %v1789_v27 }
  0x37   : > { %1653 = vmatprep.subr.bf16.mxu0 %v1866_v13 }
  0x38   : > { %1664 = vmatpush3.bf16.msra.mxu1 %v1793_v28 }
  0x39   : > { %1665 = vmatprep.subr.bf16.mxu1 %v1866_v13 }
  0x3a   : > { %1654 = vmatpush3.bf16.msra.mxu0 %v1790_v30 }
  0x3b   : > { %1655 = vmatprep.subr.bf16.mxu0 %v1866_v13 }
  0x3c   : > { %1666 = vmatpush3.bf16.msra.mxu1 %v1796_v37 }
  0x3d   : > { %1667 = vmatprep.subr.bf16.mxu1 %v1866_v13 }
  0x3e   : > { %1656 = vmatpush3.bf16.msra.mxu0 %v1792_v36 }
  0x3f   : > { %1673 = vmatprep.subr.bf16.mxu0 %v1866_v13 }
  0x40   : > { %1668 = vmatpush3.bf16.msra.mxu1 %v1798_v43 }
  0x41   : > { %1658 = vmatmul.mubr.msk.bf16.vlgmr.msra.gmra.mxu0 %vm406_vm1, %v625_v47  ;;  %1685 = vmatprep.subr.bf16.mxu1 %v1866_v13 }
  0x42   : > { %1674 = vmatpush3.bf16.msra.mxu0 %v1797_v48  ;;  %1681 = vmatprep.mubr.msk.bf16.mxu0 %vm1867_vm0, %v1866_v13 }
  0x43   : > { %1675 = vmatprep.subr.bf16.mxu0 %v1866_v13  ;;  %1670 = vmatmul.mubr.msk.bf16.vlgmr.msra.gmra.mxu1 %vm406_vm1, %v728_v49 }
  0x44   : > { %1686 = vmatpush3.bf16.msra.mxu1 %v1803_v50  ;;  %1693 = vmatprep.mubr.msk.bf16.mxu1 %vm1867_vm0, %v1866_v13 }
  0x45   : > { %1687 = vmatprep.subr.bf16.mxu1 %v1866_v13 }
  0x46   : > { %1676 = vmatpush3.bf16.msra.mxu0 %v1799_v51 }
  0x47   : > { %1677 = vmatprep.subr.bf16.mxu0 %v1866_v13 }
  0x48   : > { %1688 = vmatpush3.bf16.msra.mxu1 %v1805_v52 }
  0x49   : > { %1689 = vmatprep.subr.bf16.mxu1 %v1866_v13 }
  0x4a   : > { %1678 = vmatpush3.bf16.msra.mxu0 %v1802_v53 }
  0x4b   : > { %1679 = vmatprep.subr.bf16.mxu0 %v1866_v13 }
  0x4c   : > { %1690 = vmatpush3.bf16.msra.mxu1 %v1807_v54 }
  0x4d   : > { %1691 = vmatprep.subr.bf16.mxu1 %v1866_v13 }
  0x4e   : > { %1680 = vmatpush3.bf16.msra.mxu0 %v1804_v55 }
  0x4f   : > { %1697 = vmatprep.subr.bf16.mxu0 %v1866_v13 }
  0x50   : > { %1692 = vmatpush3.bf16.msra.mxu1 %v1809_v56 }
  0x51   : > { %1682 = vmatmul.mubr.msk.bf16.vlgmr.msra.gmra.mxu0 %vm406_vm1, %v1806_v57  ;;  %1709 = vmatprep.subr.bf16.mxu1 %v1866_v13 }
  0x52   : > { %1698 = vmatpush3.bf16.msra.mxu0 %v1808_v58  ;;  %1705 = vmatprep.mubr.msk.bf16.mxu0 %vm1867_vm0, %v1866_v13 }
  0x53   : > { %1699 = vmatprep.subr.bf16.mxu0 %v1866_v13  ;;  %1694 = vmatmul.mubr.msk.bf16.vlgmr.msra.gmra.mxu1 %vm406_vm1, %v1811_v59 }
  0x54   : > { %1710 = vmatpush3.bf16.msra.mxu1 %v1813_v60  ;;  %1717 = vmatprep.mubr.msk.bf16.mxu1 %vm1867_vm0, %v1866_v13 }
  0x55   : > { %1711 = vmatprep.subr.bf16.mxu1 %v1866_v13 }
  0x56   : > { %1700 = vmatpush3.bf16.msra.mxu0 %v1810_v62 }
  0x57   : > { %1701 = vmatprep.subr.bf16.mxu0 %v1866_v13 }
  0x58   : > { %1712 = vmatpush3.bf16.msra.mxu1 %v1815_v63 }
  0x59   : > { %1713 = vmatprep.subr.bf16.mxu1 %v1866_v13 }
  0x5a   : > { %1702 = vmatpush3.bf16.msra.mxu0 %v1812_v2 }
  0x5b   : > { %1703 = vmatprep.subr.bf16.mxu0 %v1866_v13 }
  0x5c   : > { %1714 = vmatpush3.bf16.msra.mxu1 %v1817_v3 }
  0x5d   : > { %1715 = vmatprep.subr.bf16.mxu1 %v1866_v13 }
  0x5e   : > { %1704 = vmatpush3.bf16.msra.mxu0 %v1814_v7 }
  0x5f   : > { %1721 = vmatprep.subr.bf16.mxu0 %v1866_v13 }
  0x60   : > { %1716 = vmatpush3.bf16.msra.mxu1 %v1819_v8 }
  0x61   : > { %1706 = vmatmul.mubr.msk.bf16.vlgmr.msra.gmra.mxu0 %vm406_vm1, %v1816_v11 }
  0x62   : > { %1722 = vmatpush3.bf16.msra.mxu0 %v1818_v12  ;;  %1729 = vmatprep.mubr.msk.bf16.mxu0 %vm1867_vm0, %v1866_v13 }
  0x63   : > { %1723 = vmatprep.subr.bf16.mxu0 %v1866_v13  ;;  %1718 = vmatmul.mubr.msk.bf16.vlgmr.msra.gmra.mxu1 %vm406_vm1, %v1106_v14 }
  0x66   : > { %1724 = vmatpush3.bf16.msra.mxu0 %v1820_v15 }
  0x67   : > { %1725 = vmatprep.subr.bf16.mxu0 %v1866_v13 }
  0x6a   : > { %1726 = vmatpush3.bf16.msra.mxu0 %v1823_v16 }
  0x6b   : > { %1727 = vmatprep.subr.bf16.mxu0 %v1866_v13 }
  0x6e   : > { %1728 = vmatpush3.bf16.msra.mxu0 %v1824_v17 }
  0x71   : > { %1730 = vmatmul.mubr.msk.bf16.vlgmr.msra.gmra.mxu0 %vm406_vm1, %v1825_v18 }
  0xf1   : > { %v489_v20 = vpop.f32.mrf.mxu0 }
  0xf2   : > { %v496_v21 = vadd.f32 %v489_v20, %v413_v19 }
  0xf3   : > { %v1635_v22 = vpop.f32.mrf.mxu0  ;;  %v577_v24 = vpop.f32.mrf.mxu1 }
  0xf4   : > { %498 = vst.msk [vmem:[#allocation2] sm:$0xff] %vm406_vm1, %v496_v21 }
  0xf5   : > { %v492_v25 = vpop.f32.mrf.mxu0  ;;  %v1647_v26 = vpop.f32.mrf.mxu1 }
  0xf6   : > { %v497_v27 = vadd.f32 %v492_v25, %v414_v23 }
  0xf7   : > { %v1636_v28 = vpop.f32.mrf.mxu0  ;;  %v580_v29 = vpop.f32.mrf.mxu1 }
  0xf8   : > { %499 = vst.msk [vmem:[#allocation2 + $0x8] sm:$0xff] %vm406_vm1, %v497_v27  ;;  %v1571_v27 = vld [vmem:[%s2177_s2] ss:$0 sm:$0xff] }
  0xf9   : > { %v1648_v13 = vpop.f32.mrf.mxu1 }
  0xfb   : > { %v500_v30 = vld [vmem:[#allocation2] sm:$0xff] }
  0xfc   : > { %v584_v31 = vadd.f32 %v577_v24, %v500_v30 }
  0xfe   : > { %586 = vst.msk [vmem:[#allocation2] sm:$0xff] %vm406_vm1, %v584_v31 }
  0xff   : > { %v501_v32 = vld [vmem:[#allocation2 + $0x8] sm:$0xff] }
 0x100   : > { %v585_v33 = vadd.f32 %v580_v29, %v501_v32  ;;  %v1572_v29 = vld [vmem:[%s2178_s3] ss:$0 sm:$0xff] }
 0x101   : > { %v687_v34 = vpop.f32.mrf.mxu0 }
 0x102   : > { %587 = vst.msk [vmem:[#allocation2 + $0x8] sm:$0xff] %vm406_vm1, %v585_v33 }
 0x103   : > { %v1659_v35 = vpop.f32.mrf.mxu0  ;;  %v790_v36 = vpop.f32.mrf.mxu1 }
 0x105   : > { %v594_v37 = vld [vmem:[#allocation2] sm:$0xff]  ;;  %v690_v38 = vpop.f32.mrf.mxu0  ;;  %v1671_v39 = vpop.f32.mrf.mxu1 }
 0x106   : > { %v694_v40 = vadd.f32 %v687_v34, %v594_v37 }
 0x107   : > { %v1660_v41 = vpop.f32.mrf.mxu0  ;;  %v793_v42 = vpop.f32.mrf.mxu1 }
 0x108   : > { %696 = vst.msk [vmem:[#allocation2] sm:$0xff] %vm406_vm1, %v694_v40 }
 0x109   : > { %v595_v43 = vld [vmem:[#allocation2 + $0x8] sm:$0xff]  ;;  %v1672_v44 = vpop.f32.mrf.mxu1 }
 0x10a   : > { %v695_v45 = vadd.f32 %v690_v38, %v595_v43 }
 0x10c   : > { %697 = vst.msk [vmem:[#allocation2 + $0x8] sm:$0xff] %vm406_vm1, %v695_v45 }
 0x10f   : > { %v698_v46 = vld [vmem:[#allocation2] sm:$0xff] }
 0x110   : > { %v797_v47 = vadd.f32 %v790_v36, %v698_v46 }
 0x111   : > { %v883_v48 = vpop.f32.mrf.mxu0 }
 0x112   : > { %799 = vst.msk [vmem:[#allocation2] sm:$0xff] %vm406_vm1, %v797_v47 }
 0x113   : > { %v699_v49 = vld [vmem:[#allocation2 + $0x8] sm:$0xff]  ;;  %v1683_v50 = vpop.f32.mrf.mxu0  ;;  %v971_v51 = vpop.f32.mrf.mxu1 }
 0x114   : > { %v798_v52 = vadd.f32 %v793_v42, %v699_v49 }
 0x115   : > { %v886_v53 = vpop.f32.mrf.mxu0  ;;  %v1695_v54 = vpop.f32.mrf.mxu1 }
 0x116   : > { %800 = vst.msk [vmem:[#allocation2 + $0x8] sm:$0xff] %vm406_vm1, %v798_v52 }
 0x117   : > { %v1684_v55 = vpop.f32.mrf.mxu0  ;;  %v974_v56 = vpop.f32.mrf.mxu1 }
 0x119   : > { %v806_v57 = vld [vmem:[#allocation2] sm:$0xff]  ;;  %v1696_v58 = vpop.f32.mrf.mxu1 }
 0x11a   : > { %v890_v59 = vadd.f32 %v883_v48, %v806_v57 }
 0x11c   : > { %892 = vst.msk [vmem:[#allocation2] sm:$0xff] %vm406_vm1, %v890_v59 }
 0x11d   : > { %v807_v60 = vld [vmem:[#allocation2 + $0x8] sm:$0xff] }
 0x11e   : > { %v891_v61 = vadd.f32 %v886_v53, %v807_v60 }
 0x120   : > { %893 = vst.msk [vmem:[#allocation2 + $0x8] sm:$0xff] %vm406_vm1, %v891_v61 }
 0x121   : > { %v1062_v62 = vpop.f32.mrf.mxu0 }
 0x123   : > { %v894_v63 = vld [vmem:[#allocation2] sm:$0xff]  ;;  %v1707_v0 = vpop.f32.mrf.mxu0  ;;  %v1168_v1 = vpop.f32.mrf.mxu1 }
 0x124   : > { %v978_v2 = vadd.f32 %v971_v51, %v894_v63 }
 0x125   : > { %v1065_v3 = vpop.f32.mrf.mxu0  ;;  %v1719_v4 = vpop.f32.mrf.mxu1 }
 0x126   : > { %980 = vst.msk [vmem:[#allocation2] sm:$0xff] %vm406_vm1, %v978_v2 }
 0x127   : > { %v895_v5 = vld [vmem:[#allocation2 + $0x8] sm:$0xff]  ;;  %v1708_v6 = vpop.f32.mrf.mxu0  ;;  %v1171_v7 = vpop.f32.mrf.mxu1 }
 0x128   : > { %v979_v8 = vadd.f32 %v974_v56, %v895_v5 }
 0x129   : > { %v1720_v9 = vpop.f32.mrf.mxu1 }
 0x12a   : > { %981 = vst.msk [vmem:[#allocation2 + $0x8] sm:$0xff] %vm406_vm1, %v979_v8 }
 0x12d   : > { %v985_v10 = vld [vmem:[#allocation2] sm:$0xff] }
 0x12e   : > { %v1069_v11 = vadd.f32 %v1062_v62, %v985_v10 }
 0x130   : > { %1071 = vst.msk [vmem:[#allocation2] sm:$0xff] %vm406_vm1, %v1069_v11 }
 0x131   : > { %v986_v12 = vld [vmem:[#allocation2 + $0x8] sm:$0xff]  ;;  %v1259_v14 = vpop.f32.mrf.mxu0 }
 0x132   : > { %v1070_v15 = vadd.f32 %v1065_v3, %v986_v12 }
 0x133   : > { %v1731_v16 = vpop.f32.mrf.mxu0 }
 0x134   : > { %1072 = vst.msk [vmem:[#allocation2 + $0x8] sm:$0xff] %vm406_vm1, %v1070_v15 }
 0x135   : > { %v1262_v17 = vpop.f32.mrf.mxu0 }
 0x137   : > { %v1076_v18 = vld [vmem:[#allocation2] sm:$0xff]  ;;  %v1732_v19 = vpop.f32.mrf.mxu0 }
 0x138   : > { %v1175_v20 = vadd.f32 %v1168_v1, %v1076_v18 }
 0x13a   : > { %1177 = vst.msk [vmem:[#allocation2] sm:$0xff] %vm406_vm1, %v1175_v20 }
 0x13b   : > { %v1077_v21 = vld [vmem:[#allocation2 + $0x8] sm:$0xff] }
 0x13c   : > { %v1176_v22 = vadd.f32 %v1171_v7, %v1077_v21 }
 0x13e   : > { %1178 = vst.msk [vmem:[#allocation2 + $0x8] sm:$0xff] %vm406_vm1, %v1176_v22 }
 0x141   : > { %v1182_v23 = vld [vmem:[#allocation2] sm:$0xff] }
 0x142   : > { %v1266_v24 = vadd.f32 %v1259_v14, %v1182_v23 }
 0x144   : > { %1268 = vst.msk [vmem:[#allocation2] sm:$0xff] %vm406_vm1, %v1266_v24 }
 0x145   : > { %v1183_v25 = vld [vmem:[#allocation2 + $0x8] sm:$0xff] }
 0x146   : > { %v1267_v26 = vadd.f32 %v1262_v17, %v1183_v25 }
 0x148   : > { %1269 = vst.msk [vmem:[#allocation2 + $0x8] sm:$0xff] %vm406_vm1, %v1267_v26 }
 0x14b   : > { %v1270_v28 = vld [vmem:[#allocation2] sm:$0xff] }
 0x14c   : > { %v1279_v13 = vmul.f32 %v1571_v27, %v1270_v28 }
 0x14e   : > { %v1288_v30 = vadd.f32 %v1572_v29, %v1279_v13 }
 0x14f   : > { %v1271_v31 = vld [vmem:[#allocation2 + $0x8] sm:$0xff] }
 0x150   : > { %v1290_v32 = vmax.f32 %v1288_v30, 0.0  ;;  %v1280_v33 = vmul.f32 %v1571_v27, %v1271_v31 }
 0x152   : > { %v1578_v34 = vpack.c.bf16 %v1290_v32, %v1290_v32  ;;  %v1289_v35 = vadd.f32 %v1572_v29, %v1280_v33 }
 0x154   : > { %1301 = vst.msk [vmem:[%s404_s9] sm:$0xf] %vm1300_vm3, %v1578_v34  ;;  %v1291_v36 = vmax.f32 %v1289_v35, 0.0 }
 0x156   : > { %v1579_v37 = vpack.c.bf16 %v1291_v36, %v1291_v36 }
 0x158   : > { %1302 = vst.msk [vmem:[%s404_s9 + $0x4] sm:$0xf] %vm1300_vm3, %v1579_v37 }
 0x159 PF: > { %s14_s19 = sadd.s32 1, %s1864_s19   ;;  %s2180_s15 = smov %s1852_s16 }
 0x15a   : > { %p11_p10 = scmp.ge.s32.totalorder %s14_s19, 4   ;;  %s2181_s16 = smov %s1928_s23 }
 0x15b   : > { %s2182_s17 = smov %s1860_s18  ;;  %s2183_s18 = smov %s2185_s20 }
 0x15c   :  { %13 = sbr.rel (!%p11_p10) target bundleno = 3 (0x3), region = 132 }

// kernel: _lambda_.29
= control target key start
LH: loop header
LB: loop body
LE: loop exit
PB: predicated region body
PF: predicated region fallthrough
CT: control target
= control target key end

     0   :  { %v234_v1 = vmov 0.0   ;;  %vm235_vm0 = vmmov 0   ;;  %s293_s0 = inlined_call_operand.vmem [shape: bf16[2,1,128], index: 0, kind: input, shape index: {}]   ;;  %s294_s1 = inlined_call_operand.vmem [shape: bf16[128,128], index: 1, kind: input, shape index: {}]   ;;  %s295_s2 = inlined_call_operand.vmem [shape: f32[1,128], index: 2, kind: input, shape index: {}]   ;;  %s296_s3 = inlined_call_operand.hbm [shape: f32[2,128], index: 3, kind: output, shape index: {}]  }
   0x1   :  { %v202_v0 = vld [vmem:[%s294_s1 + $0x38] sm:$0xff]   ;;  %179 = vmatprep.subr.bf16.mxu0 %v234_v1  ;;  %v203_v2 = vld [vmem:[%s294_s1 + $0x30] sm:$0xff]   ;;  %195 = vmatprep.mubr.msk.bf16.mxu0 %vm235_vm0, %v234_v1  ;;  %v204_v3 = vld [vmem:[%s294_s1 + $0x28] sm:$0xff]  }
   0x2   :  { %180 = vmatpush3.bf16.msra.mxu0 %v202_v0  ;;  %v205_v4 = vld [vmem:[%s294_s1 + $0x20] sm:$0xff]  }
   0x3   :  { %181 = vmatprep.subr.bf16.mxu0 %v234_v1 }
   0x6   :  { %182 = vmatpush3.bf16.msra.mxu0 %v203_v2 }
   0x7   :  { %183 = vmatprep.subr.bf16.mxu0 %v234_v1 }
   0xa   :  { %184 = vmatpush3.bf16.msra.mxu0 %v204_v3 }
   0xb   :  { %8 = vsyncpa [#allocation3], 0  ;;  %185 = vmatprep.subr.bf16.mxu0 %v234_v1  ;;  %v206_v5 = vld [vmem:[%s294_s1 + $0x18] sm:$0xff]   ;;  %v211_v6 = vld [vmem:[%s293_s0 + $0x1] ss:$0 sps:$4 sm:$0x11]  }
   0xc   :  { %v207_v7 = vld [vmem:[%s294_s1 + $0x10] sm:$0xff]   ;;  %v210_v8 = vld [vmem:[%s293_s0] ss:$0 sps:$4 sm:$0x11]   ;;  %v50_v9 = vunpack.c.l.b16 %v211_v6  ;;  %v208_v10 = vld [vmem:[%s294_s1 + $0x8] sm:$0xff]   ;;  %vm52_vm1 = vcmask 1041409  }
   0xd   :  { %v49_v11 = vunpack.c.l.b16 %v210_v8  ;;  %v209_v13 = vld [vmem:[%s294_s1] sm:$0xff]   ;;  %s236_s6 = smov [#allocation2]  }
   0xe   :  { %186 = vmatpush3.bf16.msra.mxu0 %v205_v4  ;;  %v51_v12 = vrot.slane %v50_v9, 7  ;;  %v161_v16 = vld [vmem:[%s295_s2] ss:$0 sm:$0xff]  ;;  %s151_s7 = sshll.u32 %s236_s6, 4  ;;  %s152_s7 = int_to_ptr.vmem [resolvable:$true] %s151_s7 }
   0xf   :  { %187 = vmatprep.subr.bf16.mxu0 %v234_v1  ;;  %s212_s8 = scalar_lea.vmem %s152_s7, 32  ;;  %p217_p1 = scmp.lt.s32.totalorder %s152_s7, %s152_s7 }
  0x10   :  { %v53_v14 = vsel %vm52_vm1, %v51_v12, %v49_v11  ;;  %p213_p0 = scmp.ne.s32.totalorder %s152_s7, %s212_s8  ;;  %p218_p2 = scmp.lt.s32.totalorder %s212_s8, %s212_s8 }
  0x11   :  { %v54_v15 = vpack.c.b16 %v53_v14, %v53_v14 }
  0x12   :  { %188 = vmatpush3.bf16.msra.mxu0 %v206_v5  ;;  %p219_p3 = por %p218_p2, %p217_p1 }
  0x13   :  { %189 = vmatprep.subr.bf16.mxu0 %v234_v1 }
  0x14   :  { %p220_p4 = pnand %p219_p3, %p213_p0 }
  0x16   :  { %190 = vmatpush3.bf16.msra.mxu0 %v207_v7 }
  0x17   :  { %191 = vmatprep.subr.bf16.mxu0 %v234_v1 }
  0x1a   :  { %192 = vmatpush3.bf16.msra.mxu0 %v208_v10 }
  0x1b   :  { %193 = vmatprep.subr.bf16.mxu0 %v234_v1 }
  0x1e   :  { %194 = vmatpush3.bf16.msra.mxu0 %v209_v13 }
  0x21   :  { %196 = vmatmul.mubr.bf16.vlgmr.msra.gmra.mxu0 %v54_v15 }
  0xe1   :  { %v138_v17 = vpop.f32.mrf.mxu0 }
  0xe2   :  { %v139_v18 = vadd.f32 %v161_v16, %v138_v17 }
  0xe3   :  { %v197_v19 = vpop.f32.mrf.mxu0 }
  0xe4   :  { %144 = vst [vmem:[#allocation2] sm:$0x3] %v139_v18 }
  0xe5   :  { %v141_v20 = vpop.f32.mrf.mxu0 }
  0xe6   :  { %223 = shalt.err (!%p220_p4)
}
  0xe7   :  { %154 = dma.vmem_to_hbm [thread:$0]  %s152_s7, 32, %s296_s3, [#allocation3]   ;;  %v198_v21 = vpop.f32.mrf.mxu0 }
  0xe8   :  { %232 = dma.done.wait [#allocation3], 32  }
  0xe9   :  { %233 = vsyncadd [#allocation3], 4294967264 }
  0xea   :  { %158 = vsyncpa [#allocation3], 1 }

</bundles_post_ra>
